<compile_context>
chip_gen: v6e
topology: v6e:2x2x1
jax: 0.10.0
libtpu: 0.0.40
codegen_flags: <defaults>
</compile_context>

<pallas_src>
import functools

import numpy as np
import jax
import jax.numpy as jnp
from jax import lax
from jax.experimental import pallas as pl
from jax.experimental.pallas import tpu as pltpu


# ------------------------------ Pallas kernel --------------------------------

def _rotate_lanes(x, k):
    """out[:, s] = x[:, (s + k) mod S] for static k (concat of two lane slices)."""
    if k == 0:
        return x
    return jnp.concatenate([x[:, k:], x[:, :k]], axis=1)


def _classifier_kernel(x_ref,
                       w1_ref, b1_ref, w2_ref, b2_ref, w3_ref, b3_ref,
                       w4_ref, b4_ref,
                       m1_ref, m2_ref, m3_ref, g1_ref, g2_ref,
                       fw1_ref, fb1_ref, fw2_ref, fb2_ref, fw3_ref, fb3_ref,
                       gum_ref, o_ref, *,
                       off1, off2, off3, cin1, cin_mid, pool_w1, pool_w2,
                       batch, n_ch, sp, tau):

    def conv_relu(act, w_ref, b_ref, mask_ref, offsets, cin):
        # act: [cin, S] f32, channel-major with flattened batch*spatial on lanes.
        # Conv = sum over taps of  W_tap[Cout,cin] @ (rotated & zero-masked act).
        w = w_ref[...]            # [Cout, K*K*cin] bf16
        mask = mask_ref[...]      # [K*K, S] f32 (0/1 "same"-padding masks)
        cout, s_len = w.shape[0], act.shape[1]
        acc = jnp.zeros((cout, s_len), jnp.float32)
        for t, off in enumerate(offsets):
            tap = (_rotate_lanes(act, off) * mask[t:t + 1, :]).astype(jnp.bfloat16)
            acc = acc + jnp.dot(w[:, t * cin:(t + 1) * cin], tap,
                                preferred_element_type=jnp.float32)
        return jnp.maximum(acc + b_ref[...], 0.0)        # [Cout, S] f32

    def maxpool2x2(act, g_ref, row):
        # Max over each 2x2 window = max of 4 lane rotations; compaction of the
        # even (y, x) positions via an exact 0/1 selection matmul on the MXU.
        m = act
        for shift in (1, row, row + 1):
            m = jnp.maximum(m, _rotate_lanes(act, shift))
        return jnp.dot(m.astype(jnp.bfloat16), g_ref[...],
                       preferred_element_type=jnp.float32)

    a = conv_relu(x_ref[...], w1_ref, b1_ref, m1_ref, off1, cin1)      # [16, S1]
    a = conv_relu(a, w2_ref, b2_ref, m2_ref, off2, cin_mid)            # [16, S1]
    a = maxpool2x2(a, g1_ref, pool_w1)                                 # [16, S2]
    a = conv_relu(a, w3_ref, b3_ref, m3_ref, off3, cin_mid)            # [16, S2]
    a = conv_relu(a, w4_ref, b4_ref, m3_ref, off3, cin_mid)            # [16, S2]
    a = maxpool2x2(a, g2_ref, pool_w2)                                 # [16, S3]

    # Flatten to PyTorch's NCHW `view(-1, 256)` order: row b is channel-major.
    rows = []
    for b in range(batch):
        parts = [a[c:c + 1, b * sp:(b + 1) * sp] for c in range(n_ch)]
        rows.append(jnp.concatenate(parts, axis=1))
    xfc = jnp.concatenate(rows, axis=0)                                # [B, n_ch*sp]

    h = jnp.dot(xfc.astype(jnp.bfloat16), fw1_ref[...],
                preferred_element_type=jnp.float32) + fb1_ref[...]
    h = jnp.maximum(h, 0.0)
    h = jnp.dot(h.astype(jnp.bfloat16), fw2_ref[...],
                preferred_element_type=jnp.float32) + fb2_ref[...]
    h = jnp.maximum(h, 0.0)
    logits = jnp.dot(h.astype(jnp.bfloat16), fw3_ref[...],
                     preferred_element_type=jnp.float32) + fb3_ref[...]

    # F.gumbel_softmax(..., hard=True) forward value == one-hot(argmax(z));
    # softmax is monotone so the soft probabilities are not needed for the value.
    z = (logits + gum_ref[...]) / tau
    n = z.shape[-1]
    zmax = jnp.max(z, axis=-1, keepdims=True)
    col = lax.broadcasted_iota(jnp.int32, z.shape, 1)
    cand = jnp.where(z == zmax, col, n)                  # first-max tie-breaking
    first = jnp.min(cand, axis=-1, keepdims=True)
    o_ref[...] = (col == first).astype(o_ref.dtype)


# ------------------------- host-side constants / glue -------------------------

def _tap_offsets(ksize, pad, width):
    # Flat lane offset of tap (dy, dx) in the [C, B*H*W] layout.
    return tuple((dy - pad) * width + (dx - pad)
                 for dy in range(ksize) for dx in range(ksize))


def _conv_masks(batch, h, w, ksize, pad):
    # [K*K, B*H*W] 0/1 masks implementing zero "same" padding (and stopping the
    # lane rotation from wrapping across rows / images).
    s = np.arange(batch * h * w)
    y = (s % (h * w)) // w
    x = s % w
    rows = []
    for dy in range(ksize):
        for dx in range(ksize):
            rows.append((y + dy - pad >= 0) & (y + dy - pad < h) &
                        (x + dx - pad >= 0) & (x + dx - pad < w))
    return jnp.asarray(np.stack(rows).astype(np.float32))


def _pool_select(batch, h, w):
    # [B*H*W, B*(H/2)*(W/2)] 0/1 matrix selecting the even (y, x) positions.
    ho, wo = h // 2, w // 2
    s = np.arange(batch * h * w)
    so = np.arange(batch * ho * wo)
    bi, yi, xi = s // (h * w), (s % (h * w)) // w, s % w
    bo, yo, xo = so // (ho * wo), (so % (ho * wo)) // wo, so % wo
    g = ((bi[:, None] == bo[None, :]) &
         (yi[:, None] == 2 * yo[None, :]) &
         (xi[:, None] == 2 * xo[None, :]))
    return jnp.asarray(g.astype(np.float32)).astype(jnp.bfloat16)


def _conv_w_mat(w_oihw):
    # [O, Cin, K, K] -> [O, K*K*Cin] bf16, tap-major rows matching _tap_offsets.
    o, ci, kh, kw = w_oihw.shape
    return jnp.transpose(w_oihw, (0, 2, 3, 1)).reshape(o, kh * kw * ci).astype(jnp.bfloat16)


def classifier_forward(x_nchw, params, gumbel, tau=1.0):
    (c1w, c1b), (c2w, c2b), (c3w, c3b), (c4w, c4b), \
        (f1w, f1b), (f2w, f2b), (f3w, f3b) = params
    batch, cin, h1, w1 = x_nchw.shape
    h2, w2 = h1 // 2, w1 // 2
    h3, w3 = h2 // 2, w2 // 2
    n_ch = c4w.shape[0]
    n_cls = f3w.shape[1]

    # Channel-major flattened input [Cin, B*H*W]; pad Cin 3 -> 8 (zero channels
    # + zero weight columns) so every matmul contraction dim is sublane-aligned.
    cin_pad = 8
    x_cm = jnp.transpose(x_nchw, (1, 0, 2, 3)).reshape(cin, batch * h1 * w1)
    x_cm = jnp.pad(x_cm, ((0, cin_pad - cin), (0, 0)))
    c1w_pad = jnp.pad(c1w, ((0, 0), (0, cin_pad - cin), (0, 0), (0, 0)))

    kernel = functools.partial(
        _classifier_kernel,
        off1=_tap_offsets(5, 2, w1),
        off2=_tap_offsets(3, 1, w1),
        off3=_tap_offsets(3, 1, w2),
        cin1=cin_pad, cin_mid=n_ch,
        pool_w1=w1, pool_w2=w2,
        batch=batch, n_ch=n_ch, sp=h3 * w3, tau=tau)

    n_inputs = 21
    return pl.pallas_call(
        kernel,
        out_shape=jax.ShapeDtypeStruct((batch, n_cls), jnp.float32),
        in_specs=[pl.BlockSpec(memory_space=pltpu.MemorySpace.VMEM)] * n_inputs,
        out_specs=pl.BlockSpec(memory_space=pltpu.MemorySpace.VMEM),
    )(
        x_cm,
        _conv_w_mat(c1w_pad), c1b.reshape(-1, 1),
        _conv_w_mat(c2w), c2b.reshape(-1, 1),
        _conv_w_mat(c3w), c3b.reshape(-1, 1),
        _conv_w_mat(c4w), c4b.reshape(-1, 1),
        _conv_masks(batch, h1, w1, 5, 2),
        _conv_masks(batch, h1, w1, 3, 1),
        _conv_masks(batch, h2, w2, 3, 1),
        _pool_select(batch, h1, w1),
        _pool_select(batch, h2, w2),
        f1w.astype(jnp.bfloat16), f1b.reshape(1, -1),
        f2w.astype(jnp.bfloat16), f2b.reshape(1, -1),
        f3w.astype(jnp.bfloat16), f3b.reshape(1, -1),
        gumbel,
    )


# ----------------------------- parameter init --------------------------------

def init_params(key):
    def conv_init(k, o, c, ks):
        k1, k2 = jax.random.split(k)
        bound = 1.0 / float(jnp.sqrt(c * ks * ks))
        w = jax.random.uniform(k1, (o, c, ks, ks), jnp.float32, -bound, bound)
        b = jax.random.uniform(k2, (o,), jnp.float32, -bound, bound)
        return w, b

    def fc_init(k, i, o):
        k1, k2 = jax.random.split(k)
        bound = 1.0 / float(jnp.sqrt(i))
        w = jax.random.uniform(k1, (i, o), jnp.float32, -bound, bound)  # [in, out]
        b = jax.random.uniform(k2, (o,), jnp.float32, -bound, bound)
        return w, b

    ks = jax.random.split(key, 7)
    return (
        conv_init(ks[0], 16, 3, 5),
        conv_init(ks[1], 16, 16, 3),
        conv_init(ks[2], 16, 16, 3),
        conv_init(ks[3], 16, 16, 3),
        fc_init(ks[4], 256, 64),
        fc_init(ks[5], 64, 32),
        fc_init(ks[6], 32, 16),
    )


# ---------------------------------- main --------------------------------------

if __name__ == "__main__":
    key = jax.random.PRNGKey(0)
    kx, kp, kg = jax.random.split(key, 3)

    B, CIN, H, W = 3, 3, 16, 16
    x = jax.random.uniform(kx, (B, CIN, H, W), jnp.float32)   # like torch.rand (NCHW)
    params = init_params(kp)
    # Gumbel noise for F.gumbel_softmax, sampled deterministically in the wrapper.
    # TODO(synk): straight-through gradient of hard gumbel-softmax not implemented
    # (forward value only, as required by the spec).
    gumbel = jax.random.gumbel(kg, (B, 16), jnp.float32)

    fwd = jax.jit(functools.partial(classifier_forward, tau=1.0))
    out = jax.block_until_ready(fwd(x, params, gumbel))

    assert out.shape == (B, 16)
    assert out.dtype == jnp.float32
    # each row of the hard gumbel-softmax output must be a one-hot vector
    assert bool(jnp.all(jnp.sum(out, axis=-1) == 1.0))
    assert bool(jnp.all((out == 0.0) | (out == 1.0)))
    print("KERNEL_OK")
</pallas_src>

<mosaic_0001>
module attributes {stable_mosaic.version = 11 : i64} {
  func.func @_classifier_kernel(%arg0: memref<8x768xf32, #tpu.memory_space<vmem>>, %arg1: memref<16x200xbf16, #tpu.memory_space<vmem>>, %arg2: memref<16x1xf32, #tpu.memory_space<vmem>>, %arg3: memref<16x144xbf16, #tpu.memory_space<vmem>>, %arg4: memref<16x1xf32, #tpu.memory_space<vmem>>, %arg5: memref<16x144xbf16, #tpu.memory_space<vmem>>, %arg6: memref<16x1xf32, #tpu.memory_space<vmem>>, %arg7: memref<16x144xbf16, #tpu.memory_space<vmem>>, %arg8: memref<16x1xf32, #tpu.memory_space<vmem>>, %arg9: memref<25x768xf32, #tpu.memory_space<vmem>>, %arg10: memref<9x768xf32, #tpu.memory_space<vmem>>, %arg11: memref<9x192xf32, #tpu.memory_space<vmem>>, %arg12: memref<768x192xbf16, #tpu.memory_space<vmem>>, %arg13: memref<192x48xbf16, #tpu.memory_space<vmem>>, %arg14: memref<256x64xbf16, #tpu.memory_space<vmem>>, %arg15: memref<1x64xf32, #tpu.memory_space<vmem>>, %arg16: memref<64x32xbf16, #tpu.memory_space<vmem>>, %arg17: memref<1x32xf32, #tpu.memory_space<vmem>>, %arg18: memref<32x16xbf16, #tpu.memory_space<vmem>>, %arg19: memref<1x16xf32, #tpu.memory_space<vmem>>, %arg20: memref<3x16xf32, #tpu.memory_space<vmem>>, %arg21: memref<3x16xf32, #tpu.memory_space<vmem>>) attributes {dimension_semantics = [], scalar_prefetch = 0 : i64, scratch_operands = 0 : i64, tpu.core_type = #tpu.core_type<tc>} {
    %c0 = arith.constant 0 : index
    %c0_0 = arith.constant 0 : index
    %0 = vector.load %arg0[%c0, %c0_0] : memref<8x768xf32, #tpu.memory_space<vmem>>, vector<8x768xf32>
    %c0_1 = arith.constant 0 : index
    %c0_2 = arith.constant 0 : index
    %1 = vector.load %arg1[%c0_1, %c0_2] : memref<16x200xbf16, #tpu.memory_space<vmem>>, vector<16x200xbf16>
    %c0_3 = arith.constant 0 : index
    %c0_4 = arith.constant 0 : index
    %2 = vector.load %arg9[%c0_3, %c0_4] : memref<25x768xf32, #tpu.memory_space<vmem>>, vector<25x768xf32>
    %cst = arith.constant 0.000000e+00 : f32
    %3 = vector.broadcast %cst : f32 to vector<16x768xf32>
    %4 = vector.extract_strided_slice %0 {offsets = [0, 734], sizes = [8, 34], strides = [1, 1]} : vector<8x768xf32> to vector<8x34xf32>
    %5 = vector.extract_strided_slice %0 {offsets = [0, 0], sizes = [8, 734], strides = [1, 1]} : vector<8x768xf32> to vector<8x734xf32>
    %6 = tpu.concatenate %4, %5 in 1 : vector<8x34xf32>, vector<8x734xf32> -> vector<8x768xf32>
    %7 = vector.extract_strided_slice %2 {offsets = [0, 0], sizes = [1, 768], strides = [1, 1]} : vector<25x768xf32> to vector<1x768xf32>
    %8 = vector.broadcast %7 : vector<1x768xf32> to vector<8x768xf32>
    %9 = arith.mulf %6, %8 : vector<8x768xf32>
    %10 = arith.truncf %9 : vector<8x768xf32> to vector<8x768xbf16>
    %11 = vector.extract_strided_slice %1 {offsets = [0, 0], sizes = [16, 8], strides = [1, 1]} : vector<16x200xbf16> to vector<16x8xbf16>
    %cst_5 = arith.constant dense<0.000000e+00> : vector<16x768xf32>
    %12 = tpu.matmul %11, %10, %cst_5 {dimension_numbers = #tpu.dot_dimension_numbers<[1], [0], [0], [1], [0, 0, 1, 1], [], []>} : vector<16x8xbf16>, vector<8x768xbf16>, vector<16x768xf32> -> vector<16x768xf32>
    %13 = arith.addf %3, %12 : vector<16x768xf32>
    %14 = vector.extract_strided_slice %0 {offsets = [0, 735], sizes = [8, 33], strides = [1, 1]} : vector<8x768xf32> to vector<8x33xf32>
    %15 = vector.extract_strided_slice %0 {offsets = [0, 0], sizes = [8, 735], strides = [1, 1]} : vector<8x768xf32> to vector<8x735xf32>
    %16 = tpu.concatenate %14, %15 in 1 : vector<8x33xf32>, vector<8x735xf32> -> vector<8x768xf32>
    %17 = vector.extract_strided_slice %2 {offsets = [1, 0], sizes = [1, 768], strides = [1, 1]} : vector<25x768xf32> to vector<1x768xf32>
    %18 = vector.broadcast %17 : vector<1x768xf32> to vector<8x768xf32>
    %19 = arith.mulf %16, %18 : vector<8x768xf32>
    %20 = arith.truncf %19 : vector<8x768xf32> to vector<8x768xbf16>
    %21 = vector.extract_strided_slice %1 {offsets = [0, 8], sizes = [16, 8], strides = [1, 1]} : vector<16x200xbf16> to vector<16x8xbf16>
    %cst_6 = arith.constant dense<0.000000e+00> : vector<16x768xf32>
    %22 = tpu.matmul %21, %20, %cst_6 {dimension_numbers = #tpu.dot_dimension_numbers<[1], [0], [0], [1], [0, 0, 1, 1], [], []>} : vector<16x8xbf16>, vector<8x768xbf16>, vector<16x768xf32> -> vector<16x768xf32>
    %23 = arith.addf %13, %22 : vector<16x768xf32>
    %24 = vector.extract_strided_slice %0 {offsets = [0, 736], sizes = [8, 32], strides = [1, 1]} : vector<8x768xf32> to vector<8x32xf32>
    %25 = vector.extract_strided_slice %0 {offsets = [0, 0], sizes = [8, 736], strides = [1, 1]} : vector<8x768xf32> to vector<8x736xf32>
    %26 = tpu.concatenate %24, %25 in 1 : vector<8x32xf32>, vector<8x736xf32> -> vector<8x768xf32>
    %27 = vector.extract_strided_slice %2 {offsets = [2, 0], sizes = [1, 768], strides = [1, 1]} : vector<25x768xf32> to vector<1x768xf32>
    %28 = vector.broadcast %27 : vector<1x768xf32> to vector<8x768xf32>
    %29 = arith.mulf %26, %28 : vector<8x768xf32>
    %30 = arith.truncf %29 : vector<8x768xf32> to vector<8x768xbf16>
    %31 = vector.extract_strided_slice %1 {offsets = [0, 16], sizes = [16, 8], strides = [1, 1]} : vector<16x200xbf16> to vector<16x8xbf16>
    %cst_7 = arith.constant dense<0.000000e+00> : vector<16x768xf32>
    %32 = tpu.matmul %31, %30, %cst_7 {dimension_numbers = #tpu.dot_dimension_numbers<[1], [0], [0], [1], [0, 0, 1, 1], [], []>} : vector<16x8xbf16>, vector<8x768xbf16>, vector<16x768xf32> -> vector<16x768xf32>
    %33 = arith.addf %23, %32 : vector<16x768xf32>
    %34 = vector.extract_strided_slice %0 {offsets = [0, 737], sizes = [8, 31], strides = [1, 1]} : vector<8x768xf32> to vector<8x31xf32>
    %35 = vector.extract_strided_slice %0 {offsets = [0, 0], sizes = [8, 737], strides = [1, 1]} : vector<8x768xf32> to vector<8x737xf32>
    %36 = tpu.concatenate %34, %35 in 1 : vector<8x31xf32>, vector<8x737xf32> -> vector<8x768xf32>
    %37 = vector.extract_strided_slice %2 {offsets = [3, 0], sizes = [1, 768], strides = [1, 1]} : vector<25x768xf32> to vector<1x768xf32>
    %38 = vector.broadcast %37 : vector<1x768xf32> to vector<8x768xf32>
    %39 = arith.mulf %36, %38 : vector<8x768xf32>
    %40 = arith.truncf %39 : vector<8x768xf32> to vector<8x768xbf16>
    %41 = vector.extract_strided_slice %1 {offsets = [0, 24], sizes = [16, 8], strides = [1, 1]} : vector<16x200xbf16> to vector<16x8xbf16>
    %cst_8 = arith.constant dense<0.000000e+00> : vector<16x768xf32>
    %42 = tpu.matmul %41, %40, %cst_8 {dimension_numbers = #tpu.dot_dimension_numbers<[1], [0], [0], [1], [0, 0, 1, 1], [], []>} : vector<16x8xbf16>, vector<8x768xbf16>, vector<16x768xf32> -> vector<16x768xf32>
    %43 = arith.addf %33, %42 : vector<16x768xf32>
    %44 = vector.extract_strided_slice %0 {offsets = [0, 738], sizes = [8, 30], strides = [1, 1]} : vector<8x768xf32> to vector<8x30xf32>
    %45 = vector.extract_strided_slice %0 {offsets = [0, 0], sizes = [8, 738], strides = [1, 1]} : vector<8x768xf32> to vector<8x738xf32>
    %46 = tpu.concatenate %44, %45 in 1 : vector<8x30xf32>, vector<8x738xf32> -> vector<8x768xf32>
    %47 = vector.extract_strided_slice %2 {offsets = [4, 0], sizes = [1, 768], strides = [1, 1]} : vector<25x768xf32> to vector<1x768xf32>
    %48 = vector.broadcast %47 : vector<1x768xf32> to vector<8x768xf32>
    %49 = arith.mulf %46, %48 : vector<8x768xf32>
    %50 = arith.truncf %49 : vector<8x768xf32> to vector<8x768xbf16>
    %51 = vector.extract_strided_slice %1 {offsets = [0, 32], sizes = [16, 8], strides = [1, 1]} : vector<16x200xbf16> to vector<16x8xbf16>
    %cst_9 = arith.constant dense<0.000000e+00> : vector<16x768xf32>
    %52 = tpu.matmul %51, %50, %cst_9 {dimension_numbers = #tpu.dot_dimension_numbers<[1], [0], [0], [1], [0, 0, 1, 1], [], []>} : vector<16x8xbf16>, vector<8x768xbf16>, vector<16x768xf32> -> vector<16x768xf32>
    %53 = arith.addf %43, %52 : vector<16x768xf32>
    %54 = vector.extract_strided_slice %0 {offsets = [0, 750], sizes = [8, 18], strides = [1, 1]} : vector<8x768xf32> to vector<8x18xf32>
    %55 = vector.extract_strided_slice %0 {offsets = [0, 0], sizes = [8, 750], strides = [1, 1]} : vector<8x768xf32> to vector<8x750xf32>
    %56 = tpu.concatenate %54, %55 in 1 : vector<8x18xf32>, vector<8x750xf32> -> vector<8x768xf32>
    %57 = vector.extract_strided_slice %2 {offsets = [5, 0], sizes = [1, 768], strides = [1, 1]} : vector<25x768xf32> to vector<1x768xf32>
    %58 = vector.broadcast %57 : vector<1x768xf32> to vector<8x768xf32>
    %59 = arith.mulf %56, %58 : vector<8x768xf32>
    %60 = arith.truncf %59 : vector<8x768xf32> to vector<8x768xbf16>
    %61 = vector.extract_strided_slice %1 {offsets = [0, 40], sizes = [16, 8], strides = [1, 1]} : vector<16x200xbf16> to vector<16x8xbf16>
    %cst_10 = arith.constant dense<0.000000e+00> : vector<16x768xf32>
    %62 = tpu.matmul %61, %60, %cst_10 {dimension_numbers = #tpu.dot_dimension_numbers<[1], [0], [0], [1], [0, 0, 1, 1], [], []>} : vector<16x8xbf16>, vector<8x768xbf16>, vector<16x768xf32> -> vector<16x768xf32>
    %63 = arith.addf %53, %62 : vector<16x768xf32>
    %64 = vector.extract_strided_slice %0 {offsets = [0, 751], sizes = [8, 17], strides = [1, 1]} : vector<8x768xf32> to vector<8x17xf32>
    %65 = vector.extract_strided_slice %0 {offsets = [0, 0], sizes = [8, 751], strides = [1, 1]} : vector<8x768xf32> to vector<8x751xf32>
    %66 = tpu.concatenate %64, %65 in 1 : vector<8x17xf32>, vector<8x751xf32> -> vector<8x768xf32>
    %67 = vector.extract_strided_slice %2 {offsets = [6, 0], sizes = [1, 768], strides = [1, 1]} : vector<25x768xf32> to vector<1x768xf32>
    %68 = vector.broadcast %67 : vector<1x768xf32> to vector<8x768xf32>
    %69 = arith.mulf %66, %68 : vector<8x768xf32>
    %70 = arith.truncf %69 : vector<8x768xf32> to vector<8x768xbf16>
    %71 = vector.extract_strided_slice %1 {offsets = [0, 48], sizes = [16, 8], strides = [1, 1]} : vector<16x200xbf16> to vector<16x8xbf16>
    %cst_11 = arith.constant dense<0.000000e+00> : vector<16x768xf32>
    %72 = tpu.matmul %71, %70, %cst_11 {dimension_numbers = #tpu.dot_dimension_numbers<[1], [0], [0], [1], [0, 0, 1, 1], [], []>} : vector<16x8xbf16>, vector<8x768xbf16>, vector<16x768xf32> -> vector<16x768xf32>
    %73 = arith.addf %63, %72 : vector<16x768xf32>
    %74 = vector.extract_strided_slice %0 {offsets = [0, 752], sizes = [8, 16], strides = [1, 1]} : vector<8x768xf32> to vector<8x16xf32>
    %75 = vector.extract_strided_slice %0 {offsets = [0, 0], sizes = [8, 752], strides = [1, 1]} : vector<8x768xf32> to vector<8x752xf32>
    %76 = tpu.concatenate %74, %75 in 1 : vector<8x16xf32>, vector<8x752xf32> -> vector<8x768xf32>
    %77 = vector.extract_strided_slice %2 {offsets = [7, 0], sizes = [1, 768], strides = [1, 1]} : vector<25x768xf32> to vector<1x768xf32>
    %78 = vector.broadcast %77 : vector<1x768xf32> to vector<8x768xf32>
    %79 = arith.mulf %76, %78 : vector<8x768xf32>
    %80 = arith.truncf %79 : vector<8x768xf32> to vector<8x768xbf16>
    %81 = vector.extract_strided_slice %1 {offsets = [0, 56], sizes = [16, 8], strides = [1, 1]} : vector<16x200xbf16> to vector<16x8xbf16>
    %cst_12 = arith.constant dense<0.000000e+00> : vector<16x768xf32>
    %82 = tpu.matmul %81, %80, %cst_12 {dimension_numbers = #tpu.dot_dimension_numbers<[1], [0], [0], [1], [0, 0, 1, 1], [], []>} : vector<16x8xbf16>, vector<8x768xbf16>, vector<16x768xf32> -> vector<16x768xf32>
    %83 = arith.addf %73, %82 : vector<16x768xf32>
    %84 = vector.extract_strided_slice %0 {offsets = [0, 753], sizes = [8, 15], strides = [1, 1]} : vector<8x768xf32> to vector<8x15xf32>
    %85 = vector.extract_strided_slice %0 {offsets = [0, 0], sizes = [8, 753], strides = [1, 1]} : vector<8x768xf32> to vector<8x753xf32>
    %86 = tpu.concatenate %84, %85 in 1 : vector<8x15xf32>, vector<8x753xf32> -> vector<8x768xf32>
    %87 = vector.extract_strided_slice %2 {offsets = [8, 0], sizes = [1, 768], strides = [1, 1]} : vector<25x768xf32> to vector<1x768xf32>
    %88 = vector.broadcast %87 : vector<1x768xf32> to vector<8x768xf32>
    %89 = arith.mulf %86, %88 : vector<8x768xf32>
    %90 = arith.truncf %89 : vector<8x768xf32> to vector<8x768xbf16>
    %91 = vector.extract_strided_slice %1 {offsets = [0, 64], sizes = [16, 8], strides = [1, 1]} : vector<16x200xbf16> to vector<16x8xbf16>
    %cst_13 = arith.constant dense<0.000000e+00> : vector<16x768xf32>
    %92 = tpu.matmul %91, %90, %cst_13 {dimension_numbers = #tpu.dot_dimension_numbers<[1], [0], [0], [1], [0, 0, 1, 1], [], []>} : vector<16x8xbf16>, vector<8x768xbf16>, vector<16x768xf32> -> vector<16x768xf32>
    %93 = arith.addf %83, %92 : vector<16x768xf32>
    %94 = vector.extract_strided_slice %0 {offsets = [0, 754], sizes = [8, 14], strides = [1, 1]} : vector<8x768xf32> to vector<8x14xf32>
    %95 = vector.extract_strided_slice %0 {offsets = [0, 0], sizes = [8, 754], strides = [1, 1]} : vector<8x768xf32> to vector<8x754xf32>
    %96 = tpu.concatenate %94, %95 in 1 : vector<8x14xf32>, vector<8x754xf32> -> vector<8x768xf32>
    %97 = vector.extract_strided_slice %2 {offsets = [9, 0], sizes = [1, 768], strides = [1, 1]} : vector<25x768xf32> to vector<1x768xf32>
    %98 = vector.broadcast %97 : vector<1x768xf32> to vector<8x768xf32>
    %99 = arith.mulf %96, %98 : vector<8x768xf32>
    %100 = arith.truncf %99 : vector<8x768xf32> to vector<8x768xbf16>
    %101 = vector.extract_strided_slice %1 {offsets = [0, 72], sizes = [16, 8], strides = [1, 1]} : vector<16x200xbf16> to vector<16x8xbf16>
    %cst_14 = arith.constant dense<0.000000e+00> : vector<16x768xf32>
    %102 = tpu.matmul %101, %100, %cst_14 {dimension_numbers = #tpu.dot_dimension_numbers<[1], [0], [0], [1], [0, 0, 1, 1], [], []>} : vector<16x8xbf16>, vector<8x768xbf16>, vector<16x768xf32> -> vector<16x768xf32>
    %103 = arith.addf %93, %102 : vector<16x768xf32>
    %104 = vector.extract_strided_slice %0 {offsets = [0, 766], sizes = [8, 2], strides = [1, 1]} : vector<8x768xf32> to vector<8x2xf32>
    %105 = vector.extract_strided_slice %0 {offsets = [0, 0], sizes = [8, 766], strides = [1, 1]} : vector<8x768xf32> to vector<8x766xf32>
    %106 = tpu.concatenate %104, %105 in 1 : vector<8x2xf32>, vector<8x766xf32> -> vector<8x768xf32>
    %107 = vector.extract_strided_slice %2 {offsets = [10, 0], sizes = [1, 768], strides = [1, 1]} : vector<25x768xf32> to vector<1x768xf32>
    %108 = vector.broadcast %107 : vector<1x768xf32> to vector<8x768xf32>
    %109 = arith.mulf %106, %108 : vector<8x768xf32>
    %110 = arith.truncf %109 : vector<8x768xf32> to vector<8x768xbf16>
    %111 = vector.extract_strided_slice %1 {offsets = [0, 80], sizes = [16, 8], strides = [1, 1]} : vector<16x200xbf16> to vector<16x8xbf16>
    %cst_15 = arith.constant dense<0.000000e+00> : vector<16x768xf32>
    %112 = tpu.matmul %111, %110, %cst_15 {dimension_numbers = #tpu.dot_dimension_numbers<[1], [0], [0], [1], [0, 0, 1, 1], [], []>} : vector<16x8xbf16>, vector<8x768xbf16>, vector<16x768xf32> -> vector<16x768xf32>
    %113 = arith.addf %103, %112 : vector<16x768xf32>
    %114 = vector.extract_strided_slice %0 {offsets = [0, 767], sizes = [8, 1], strides = [1, 1]} : vector<8x768xf32> to vector<8x1xf32>
    %115 = vector.extract_strided_slice %0 {offsets = [0, 0], sizes = [8, 767], strides = [1, 1]} : vector<8x768xf32> to vector<8x767xf32>
    %116 = tpu.concatenate %114, %115 in 1 : vector<8x1xf32>, vector<8x767xf32> -> vector<8x768xf32>
    %117 = vector.extract_strided_slice %2 {offsets = [11, 0], sizes = [1, 768], strides = [1, 1]} : vector<25x768xf32> to vector<1x768xf32>
    %118 = vector.broadcast %117 : vector<1x768xf32> to vector<8x768xf32>
    %119 = arith.mulf %116, %118 : vector<8x768xf32>
    %120 = arith.truncf %119 : vector<8x768xf32> to vector<8x768xbf16>
    %121 = vector.extract_strided_slice %1 {offsets = [0, 88], sizes = [16, 8], strides = [1, 1]} : vector<16x200xbf16> to vector<16x8xbf16>
    %cst_16 = arith.constant dense<0.000000e+00> : vector<16x768xf32>
    %122 = tpu.matmul %121, %120, %cst_16 {dimension_numbers = #tpu.dot_dimension_numbers<[1], [0], [0], [1], [0, 0, 1, 1], [], []>} : vector<16x8xbf16>, vector<8x768xbf16>, vector<16x768xf32> -> vector<16x768xf32>
    %123 = arith.addf %113, %122 : vector<16x768xf32>
    %124 = vector.extract_strided_slice %2 {offsets = [12, 0], sizes = [1, 768], strides = [1, 1]} : vector<25x768xf32> to vector<1x768xf32>
    %125 = vector.broadcast %124 : vector<1x768xf32> to vector<8x768xf32>
    %126 = arith.mulf %0, %125 : vector<8x768xf32>
    %127 = arith.truncf %126 : vector<8x768xf32> to vector<8x768xbf16>
    %128 = vector.extract_strided_slice %1 {offsets = [0, 96], sizes = [16, 8], strides = [1, 1]} : vector<16x200xbf16> to vector<16x8xbf16>
    %cst_17 = arith.constant dense<0.000000e+00> : vector<16x768xf32>
    %129 = tpu.matmul %128, %127, %cst_17 {dimension_numbers = #tpu.dot_dimension_numbers<[1], [0], [0], [1], [0, 0, 1, 1], [], []>} : vector<16x8xbf16>, vector<8x768xbf16>, vector<16x768xf32> -> vector<16x768xf32>
    %130 = arith.addf %123, %129 : vector<16x768xf32>
    %131 = vector.extract_strided_slice %0 {offsets = [0, 1], sizes = [8, 767], strides = [1, 1]} : vector<8x768xf32> to vector<8x767xf32>
    %132 = vector.extract_strided_slice %0 {offsets = [0, 0], sizes = [8, 1], strides = [1, 1]} : vector<8x768xf32> to vector<8x1xf32>
    %133 = tpu.concatenate %131, %132 in 1 : vector<8x767xf32>, vector<8x1xf32> -> vector<8x768xf32>
    %134 = vector.extract_strided_slice %2 {offsets = [13, 0], sizes = [1, 768], strides = [1, 1]} : vector<25x768xf32> to vector<1x768xf32>
    %135 = vector.broadcast %134 : vector<1x768xf32> to vector<8x768xf32>
    %136 = arith.mulf %133, %135 : vector<8x768xf32>
    %137 = arith.truncf %136 : vector<8x768xf32> to vector<8x768xbf16>
    %138 = vector.extract_strided_slice %1 {offsets = [0, 104], sizes = [16, 8], strides = [1, 1]} : vector<16x200xbf16> to vector<16x8xbf16>
    %cst_18 = arith.constant dense<0.000000e+00> : vector<16x768xf32>
    %139 = tpu.matmul %138, %137, %cst_18 {dimension_numbers = #tpu.dot_dimension_numbers<[1], [0], [0], [1], [0, 0, 1, 1], [], []>} : vector<16x8xbf16>, vector<8x768xbf16>, vector<16x768xf32> -> vector<16x768xf32>
    %140 = arith.addf %130, %139 : vector<16x768xf32>
    %141 = vector.extract_strided_slice %0 {offsets = [0, 2], sizes = [8, 766], strides = [1, 1]} : vector<8x768xf32> to vector<8x766xf32>
    %142 = vector.extract_strided_slice %0 {offsets = [0, 0], sizes = [8, 2], strides = [1, 1]} : vector<8x768xf32> to vector<8x2xf32>
    %143 = tpu.concatenate %141, %142 in 1 : vector<8x766xf32>, vector<8x2xf32> -> vector<8x768xf32>
    %144 = vector.extract_strided_slice %2 {offsets = [14, 0], sizes = [1, 768], strides = [1, 1]} : vector<25x768xf32> to vector<1x768xf32>
    %145 = vector.broadcast %144 : vector<1x768xf32> to vector<8x768xf32>
    %146 = arith.mulf %143, %145 : vector<8x768xf32>
    %147 = arith.truncf %146 : vector<8x768xf32> to vector<8x768xbf16>
    %148 = vector.extract_strided_slice %1 {offsets = [0, 112], sizes = [16, 8], strides = [1, 1]} : vector<16x200xbf16> to vector<16x8xbf16>
    %cst_19 = arith.constant dense<0.000000e+00> : vector<16x768xf32>
    %149 = tpu.matmul %148, %147, %cst_19 {dimension_numbers = #tpu.dot_dimension_numbers<[1], [0], [0], [1], [0, 0, 1, 1], [], []>} : vector<16x8xbf16>, vector<8x768xbf16>, vector<16x768xf32> -> vector<16x768xf32>
    %150 = arith.addf %140, %149 : vector<16x768xf32>
    %151 = vector.extract_strided_slice %0 {offsets = [0, 14], sizes = [8, 754], strides = [1, 1]} : vector<8x768xf32> to vector<8x754xf32>
    %152 = vector.extract_strided_slice %0 {offsets = [0, 0], sizes = [8, 14], strides = [1, 1]} : vector<8x768xf32> to vector<8x14xf32>
    %153 = tpu.concatenate %151, %152 in 1 : vector<8x754xf32>, vector<8x14xf32> -> vector<8x768xf32>
    %154 = vector.extract_strided_slice %2 {offsets = [15, 0], sizes = [1, 768], strides = [1, 1]} : vector<25x768xf32> to vector<1x768xf32>
    %155 = vector.broadcast %154 : vector<1x768xf32> to vector<8x768xf32>
    %156 = arith.mulf %153, %155 : vector<8x768xf32>
    %157 = arith.truncf %156 : vector<8x768xf32> to vector<8x768xbf16>
    %158 = vector.extract_strided_slice %1 {offsets = [0, 120], sizes = [16, 8], strides = [1, 1]} : vector<16x200xbf16> to vector<16x8xbf16>
    %cst_20 = arith.constant dense<0.000000e+00> : vector<16x768xf32>
    %159 = tpu.matmul %158, %157, %cst_20 {dimension_numbers = #tpu.dot_dimension_numbers<[1], [0], [0], [1], [0, 0, 1, 1], [], []>} : vector<16x8xbf16>, vector<8x768xbf16>, vector<16x768xf32> -> vector<16x768xf32>
    %160 = arith.addf %150, %159 : vector<16x768xf32>
    %161 = vector.extract_strided_slice %0 {offsets = [0, 15], sizes = [8, 753], strides = [1, 1]} : vector<8x768xf32> to vector<8x753xf32>
    %162 = vector.extract_strided_slice %0 {offsets = [0, 0], sizes = [8, 15], strides = [1, 1]} : vector<8x768xf32> to vector<8x15xf32>
    %163 = tpu.concatenate %161, %162 in 1 : vector<8x753xf32>, vector<8x15xf32> -> vector<8x768xf32>
    %164 = vector.extract_strided_slice %2 {offsets = [16, 0], sizes = [1, 768], strides = [1, 1]} : vector<25x768xf32> to vector<1x768xf32>
    %165 = vector.broadcast %164 : vector<1x768xf32> to vector<8x768xf32>
    %166 = arith.mulf %163, %165 : vector<8x768xf32>
    %167 = arith.truncf %166 : vector<8x768xf32> to vector<8x768xbf16>
    %168 = vector.extract_strided_slice %1 {offsets = [0, 128], sizes = [16, 8], strides = [1, 1]} : vector<16x200xbf16> to vector<16x8xbf16>
    %cst_21 = arith.constant dense<0.000000e+00> : vector<16x768xf32>
    %169 = tpu.matmul %168, %167, %cst_21 {dimension_numbers = #tpu.dot_dimension_numbers<[1], [0], [0], [1], [0, 0, 1, 1], [], []>} : vector<16x8xbf16>, vector<8x768xbf16>, vector<16x768xf32> -> vector<16x768xf32>
    %170 = arith.addf %160, %169 : vector<16x768xf32>
    %171 = vector.extract_strided_slice %0 {offsets = [0, 16], sizes = [8, 752], strides = [1, 1]} : vector<8x768xf32> to vector<8x752xf32>
    %172 = vector.extract_strided_slice %0 {offsets = [0, 0], sizes = [8, 16], strides = [1, 1]} : vector<8x768xf32> to vector<8x16xf32>
    %173 = tpu.concatenate %171, %172 in 1 : vector<8x752xf32>, vector<8x16xf32> -> vector<8x768xf32>
    %174 = vector.extract_strided_slice %2 {offsets = [17, 0], sizes = [1, 768], strides = [1, 1]} : vector<25x768xf32> to vector<1x768xf32>
    %175 = vector.broadcast %174 : vector<1x768xf32> to vector<8x768xf32>
    %176 = arith.mulf %173, %175 : vector<8x768xf32>
    %177 = arith.truncf %176 : vector<8x768xf32> to vector<8x768xbf16>
    %178 = vector.extract_strided_slice %1 {offsets = [0, 136], sizes = [16, 8], strides = [1, 1]} : vector<16x200xbf16> to vector<16x8xbf16>
    %cst_22 = arith.constant dense<0.000000e+00> : vector<16x768xf32>
    %179 = tpu.matmul %178, %177, %cst_22 {dimension_numbers = #tpu.dot_dimension_numbers<[1], [0], [0], [1], [0, 0, 1, 1], [], []>} : vector<16x8xbf16>, vector<8x768xbf16>, vector<16x768xf32> -> vector<16x768xf32>
    %180 = arith.addf %170, %179 : vector<16x768xf32>
    %181 = vector.extract_strided_slice %0 {offsets = [0, 17], sizes = [8, 751], strides = [1, 1]} : vector<8x768xf32> to vector<8x751xf32>
    %182 = vector.extract_strided_slice %0 {offsets = [0, 0], sizes = [8, 17], strides = [1, 1]} : vector<8x768xf32> to vector<8x17xf32>
    %183 = tpu.concatenate %181, %182 in 1 : vector<8x751xf32>, vector<8x17xf32> -> vector<8x768xf32>
    %184 = vector.extract_strided_slice %2 {offsets = [18, 0], sizes = [1, 768], strides = [1, 1]} : vector<25x768xf32> to vector<1x768xf32>
    %185 = vector.broadcast %184 : vector<1x768xf32> to vector<8x768xf32>
    %186 = arith.mulf %183, %185 : vector<8x768xf32>
    %187 = arith.truncf %186 : vector<8x768xf32> to vector<8x768xbf16>
    %188 = vector.extract_strided_slice %1 {offsets = [0, 144], sizes = [16, 8], strides = [1, 1]} : vector<16x200xbf16> to vector<16x8xbf16>
    %cst_23 = arith.constant dense<0.000000e+00> : vector<16x768xf32>
    %189 = tpu.matmul %188, %187, %cst_23 {dimension_numbers = #tpu.dot_dimension_numbers<[1], [0], [0], [1], [0, 0, 1, 1], [], []>} : vector<16x8xbf16>, vector<8x768xbf16>, vector<16x768xf32> -> vector<16x768xf32>
    %190 = arith.addf %180, %189 : vector<16x768xf32>
    %191 = vector.extract_strided_slice %0 {offsets = [0, 18], sizes = [8, 750], strides = [1, 1]} : vector<8x768xf32> to vector<8x750xf32>
    %192 = vector.extract_strided_slice %0 {offsets = [0, 0], sizes = [8, 18], strides = [1, 1]} : vector<8x768xf32> to vector<8x18xf32>
    %193 = tpu.concatenate %191, %192 in 1 : vector<8x750xf32>, vector<8x18xf32> -> vector<8x768xf32>
    %194 = vector.extract_strided_slice %2 {offsets = [19, 0], sizes = [1, 768], strides = [1, 1]} : vector<25x768xf32> to vector<1x768xf32>
    %195 = vector.broadcast %194 : vector<1x768xf32> to vector<8x768xf32>
    %196 = arith.mulf %193, %195 : vector<8x768xf32>
    %197 = arith.truncf %196 : vector<8x768xf32> to vector<8x768xbf16>
    %198 = vector.extract_strided_slice %1 {offsets = [0, 152], sizes = [16, 8], strides = [1, 1]} : vector<16x200xbf16> to vector<16x8xbf16>
    %cst_24 = arith.constant dense<0.000000e+00> : vector<16x768xf32>
    %199 = tpu.matmul %198, %197, %cst_24 {dimension_numbers = #tpu.dot_dimension_numbers<[1], [0], [0], [1], [0, 0, 1, 1], [], []>} : vector<16x8xbf16>, vector<8x768xbf16>, vector<16x768xf32> -> vector<16x768xf32>
    %200 = arith.addf %190, %199 : vector<16x768xf32>
    %201 = vector.extract_strided_slice %0 {offsets = [0, 30], sizes = [8, 738], strides = [1, 1]} : vector<8x768xf32> to vector<8x738xf32>
    %202 = vector.extract_strided_slice %0 {offsets = [0, 0], sizes = [8, 30], strides = [1, 1]} : vector<8x768xf32> to vector<8x30xf32>
    %203 = tpu.concatenate %201, %202 in 1 : vector<8x738xf32>, vector<8x30xf32> -> vector<8x768xf32>
    %204 = vector.extract_strided_slice %2 {offsets = [20, 0], sizes = [1, 768], strides = [1, 1]} : vector<25x768xf32> to vector<1x768xf32>
    %205 = vector.broadcast %204 : vector<1x768xf32> to vector<8x768xf32>
    %206 = arith.mulf %203, %205 : vector<8x768xf32>
    %207 = arith.truncf %206 : vector<8x768xf32> to vector<8x768xbf16>
    %208 = vector.extract_strided_slice %1 {offsets = [0, 160], sizes = [16, 8], strides = [1, 1]} : vector<16x200xbf16> to vector<16x8xbf16>
    %cst_25 = arith.constant dense<0.000000e+00> : vector<16x768xf32>
    %209 = tpu.matmul %208, %207, %cst_25 {dimension_numbers = #tpu.dot_dimension_numbers<[1], [0], [0], [1], [0, 0, 1, 1], [], []>} : vector<16x8xbf16>, vector<8x768xbf16>, vector<16x768xf32> -> vector<16x768xf32>
    %210 = arith.addf %200, %209 : vector<16x768xf32>
    %211 = vector.extract_strided_slice %0 {offsets = [0, 31], sizes = [8, 737], strides = [1, 1]} : vector<8x768xf32> to vector<8x737xf32>
    %212 = vector.extract_strided_slice %0 {offsets = [0, 0], sizes = [8, 31], strides = [1, 1]} : vector<8x768xf32> to vector<8x31xf32>
    %213 = tpu.concatenate %211, %212 in 1 : vector<8x737xf32>, vector<8x31xf32> -> vector<8x768xf32>
    %214 = vector.extract_strided_slice %2 {offsets = [21, 0], sizes = [1, 768], strides = [1, 1]} : vector<25x768xf32> to vector<1x768xf32>
    %215 = vector.broadcast %214 : vector<1x768xf32> to vector<8x768xf32>
    %216 = arith.mulf %213, %215 : vector<8x768xf32>
    %217 = arith.truncf %216 : vector<8x768xf32> to vector<8x768xbf16>
    %218 = vector.extract_strided_slice %1 {offsets = [0, 168], sizes = [16, 8], strides = [1, 1]} : vector<16x200xbf16> to vector<16x8xbf16>
    %cst_26 = arith.constant dense<0.000000e+00> : vector<16x768xf32>
    %219 = tpu.matmul %218, %217, %cst_26 {dimension_numbers = #tpu.dot_dimension_numbers<[1], [0], [0], [1], [0, 0, 1, 1], [], []>} : vector<16x8xbf16>, vector<8x768xbf16>, vector<16x768xf32> -> vector<16x768xf32>
    %220 = arith.addf %210, %219 : vector<16x768xf32>
    %221 = vector.extract_strided_slice %0 {offsets = [0, 32], sizes = [8, 736], strides = [1, 1]} : vector<8x768xf32> to vector<8x736xf32>
    %222 = vector.extract_strided_slice %0 {offsets = [0, 0], sizes = [8, 32], strides = [1, 1]} : vector<8x768xf32> to vector<8x32xf32>
    %223 = tpu.concatenate %221, %222 in 1 : vector<8x736xf32>, vector<8x32xf32> -> vector<8x768xf32>
    %224 = vector.extract_strided_slice %2 {offsets = [22, 0], sizes = [1, 768], strides = [1, 1]} : vector<25x768xf32> to vector<1x768xf32>
    %225 = vector.broadcast %224 : vector<1x768xf32> to vector<8x768xf32>
    %226 = arith.mulf %223, %225 : vector<8x768xf32>
    %227 = arith.truncf %226 : vector<8x768xf32> to vector<8x768xbf16>
    %228 = vector.extract_strided_slice %1 {offsets = [0, 176], sizes = [16, 8], strides = [1, 1]} : vector<16x200xbf16> to vector<16x8xbf16>
    %cst_27 = arith.constant dense<0.000000e+00> : vector<16x768xf32>
    %229 = tpu.matmul %228, %227, %cst_27 {dimension_numbers = #tpu.dot_dimension_numbers<[1], [0], [0], [1], [0, 0, 1, 1], [], []>} : vector<16x8xbf16>, vector<8x768xbf16>, vector<16x768xf32> -> vector<16x768xf32>
    %230 = arith.addf %220, %229 : vector<16x768xf32>
    %231 = vector.extract_strided_slice %0 {offsets = [0, 33], sizes = [8, 735], strides = [1, 1]} : vector<8x768xf32> to vector<8x735xf32>
    %232 = vector.extract_strided_slice %0 {offsets = [0, 0], sizes = [8, 33], strides = [1, 1]} : vector<8x768xf32> to vector<8x33xf32>
    %233 = tpu.concatenate %231, %232 in 1 : vector<8x735xf32>, vector<8x33xf32> -> vector<8x768xf32>
    %234 = vector.extract_strided_slice %2 {offsets = [23, 0], sizes = [1, 768], strides = [1, 1]} : vector<25x768xf32> to vector<1x768xf32>
    %235 = vector.broadcast %234 : vector<1x768xf32> to vector<8x768xf32>
    %236 = arith.mulf %233, %235 : vector<8x768xf32>
    %237 = arith.truncf %236 : vector<8x768xf32> to vector<8x768xbf16>
    %238 = vector.extract_strided_slice %1 {offsets = [0, 184], sizes = [16, 8], strides = [1, 1]} : vector<16x200xbf16> to vector<16x8xbf16>
    %cst_28 = arith.constant dense<0.000000e+00> : vector<16x768xf32>
    %239 = tpu.matmul %238, %237, %cst_28 {dimension_numbers = #tpu.dot_dimension_numbers<[1], [0], [0], [1], [0, 0, 1, 1], [], []>} : vector<16x8xbf16>, vector<8x768xbf16>, vector<16x768xf32> -> vector<16x768xf32>
    %240 = arith.addf %230, %239 : vector<16x768xf32>
    %241 = vector.extract_strided_slice %0 {offsets = [0, 34], sizes = [8, 734], strides = [1, 1]} : vector<8x768xf32> to vector<8x734xf32>
    %242 = vector.extract_strided_slice %0 {offsets = [0, 0], sizes = [8, 34], strides = [1, 1]} : vector<8x768xf32> to vector<8x34xf32>
    %243 = tpu.concatenate %241, %242 in 1 : vector<8x734xf32>, vector<8x34xf32> -> vector<8x768xf32>
    %244 = vector.extract_strided_slice %2 {offsets = [24, 0], sizes = [1, 768], strides = [1, 1]} : vector<25x768xf32> to vector<1x768xf32>
    %245 = vector.broadcast %244 : vector<1x768xf32> to vector<8x768xf32>
    %246 = arith.mulf %243, %245 : vector<8x768xf32>
    %247 = arith.truncf %246 : vector<8x768xf32> to vector<8x768xbf16>
    %248 = vector.extract_strided_slice %1 {offsets = [0, 192], sizes = [16, 8], strides = [1, 1]} : vector<16x200xbf16> to vector<16x8xbf16>
    %cst_29 = arith.constant dense<0.000000e+00> : vector<16x768xf32>
    %249 = tpu.matmul %248, %247, %cst_29 {dimension_numbers = #tpu.dot_dimension_numbers<[1], [0], [0], [1], [0, 0, 1, 1], [], []>} : vector<16x8xbf16>, vector<8x768xbf16>, vector<16x768xf32> -> vector<16x768xf32>
    %250 = arith.addf %240, %249 : vector<16x768xf32>
    %c0_30 = arith.constant 0 : index
    %c0_31 = arith.constant 0 : index
    %251 = vector.load %arg2[%c0_30, %c0_31] : memref<16x1xf32, #tpu.memory_space<vmem>>, vector<16x1xf32>
    %252 = vector.broadcast %251 : vector<16x1xf32> to vector<16x768xf32>
    %253 = arith.addf %250, %252 : vector<16x768xf32>
    %cst_32 = arith.constant 0.000000e+00 : f32
    %254 = vector.broadcast %cst_32 : f32 to vector<16x768xf32>
    %255 = arith.maximumf %253, %254 : vector<16x768xf32>
    %c0_33 = arith.constant 0 : index
    %c0_34 = arith.constant 0 : index
    %256 = vector.load %arg3[%c0_33, %c0_34] : memref<16x144xbf16, #tpu.memory_space<vmem>>, vector<16x144xbf16>
    %c0_35 = arith.constant 0 : index
    %c0_36 = arith.constant 0 : index
    %257 = vector.load %arg10[%c0_35, %c0_36] : memref<9x768xf32, #tpu.memory_space<vmem>>, vector<9x768xf32>
    %cst_37 = arith.constant 0.000000e+00 : f32
    %258 = vector.broadcast %cst_37 : f32 to vector<16x768xf32>
    %259 = vector.extract_strided_slice %255 {offsets = [0, 751], sizes = [16, 17], strides = [1, 1]} : vector<16x768xf32> to vector<16x17xf32>
    %260 = vector.extract_strided_slice %255 {offsets = [0, 0], sizes = [16, 751], strides = [1, 1]} : vector<16x768xf32> to vector<16x751xf32>
    %261 = tpu.concatenate %259, %260 in 1 : vector<16x17xf32>, vector<16x751xf32> -> vector<16x768xf32>
    %262 = vector.extract_strided_slice %257 {offsets = [0, 0], sizes = [1, 768], strides = [1, 1]} : vector<9x768xf32> to vector<1x768xf32>
    %263 = vector.broadcast %262 : vector<1x768xf32> to vector<16x768xf32>
    %264 = arith.mulf %261, %263 : vector<16x768xf32>
    %265 = arith.truncf %264 : vector<16x768xf32> to vector<16x768xbf16>
    %266 = vector.extract_strided_slice %256 {offsets = [0, 0], sizes = [16, 16], strides = [1, 1]} : vector<16x144xbf16> to vector<16x16xbf16>
    %cst_38 = arith.constant dense<0.000000e+00> : vector<16x768xf32>
    %267 = tpu.matmul %266, %265, %cst_38 {dimension_numbers = #tpu.dot_dimension_numbers<[1], [0], [0], [1], [0, 0, 1, 1], [], []>} : vector<16x16xbf16>, vector<16x768xbf16>, vector<16x768xf32> -> vector<16x768xf32>
    %268 = arith.addf %258, %267 : vector<16x768xf32>
    %269 = vector.extract_strided_slice %255 {offsets = [0, 752], sizes = [16, 16], strides = [1, 1]} : vector<16x768xf32> to vector<16x16xf32>
    %270 = vector.extract_strided_slice %255 {offsets = [0, 0], sizes = [16, 752], strides = [1, 1]} : vector<16x768xf32> to vector<16x752xf32>
    %271 = tpu.concatenate %269, %270 in 1 : vector<16x16xf32>, vector<16x752xf32> -> vector<16x768xf32>
    %272 = vector.extract_strided_slice %257 {offsets = [1, 0], sizes = [1, 768], strides = [1, 1]} : vector<9x768xf32> to vector<1x768xf32>
    %273 = vector.broadcast %272 : vector<1x768xf32> to vector<16x768xf32>
    %274 = arith.mulf %271, %273 : vector<16x768xf32>
    %275 = arith.truncf %274 : vector<16x768xf32> to vector<16x768xbf16>
    %276 = vector.extract_strided_slice %256 {offsets = [0, 16], sizes = [16, 16], strides = [1, 1]} : vector<16x144xbf16> to vector<16x16xbf16>
    %cst_39 = arith.constant dense<0.000000e+00> : vector<16x768xf32>
    %277 = tpu.matmul %276, %275, %cst_39 {dimension_numbers = #tpu.dot_dimension_numbers<[1], [0], [0], [1], [0, 0, 1, 1], [], []>} : vector<16x16xbf16>, vector<16x768xbf16>, vector<16x768xf32> -> vector<16x768xf32>
    %278 = arith.addf %268, %277 : vector<16x768xf32>
    %279 = vector.extract_strided_slice %255 {offsets = [0, 753], sizes = [16, 15], strides = [1, 1]} : vector<16x768xf32> to vector<16x15xf32>
    %280 = vector.extract_strided_slice %255 {offsets = [0, 0], sizes = [16, 753], strides = [1, 1]} : vector<16x768xf32> to vector<16x753xf32>
    %281 = tpu.concatenate %279, %280 in 1 : vector<16x15xf32>, vector<16x753xf32> -> vector<16x768xf32>
    %282 = vector.extract_strided_slice %257 {offsets = [2, 0], sizes = [1, 768], strides = [1, 1]} : vector<9x768xf32> to vector<1x768xf32>
    %283 = vector.broadcast %282 : vector<1x768xf32> to vector<16x768xf32>
    %284 = arith.mulf %281, %283 : vector<16x768xf32>
    %285 = arith.truncf %284 : vector<16x768xf32> to vector<16x768xbf16>
    %286 = vector.extract_strided_slice %256 {offsets = [0, 32], sizes = [16, 16], strides = [1, 1]} : vector<16x144xbf16> to vector<16x16xbf16>
    %cst_40 = arith.constant dense<0.000000e+00> : vector<16x768xf32>
    %287 = tpu.matmul %286, %285, %cst_40 {dimension_numbers = #tpu.dot_dimension_numbers<[1], [0], [0], [1], [0, 0, 1, 1], [], []>} : vector<16x16xbf16>, vector<16x768xbf16>, vector<16x768xf32> -> vector<16x768xf32>
    %288 = arith.addf %278, %287 : vector<16x768xf32>
    %289 = vector.extract_strided_slice %255 {offsets = [0, 767], sizes = [16, 1], strides = [1, 1]} : vector<16x768xf32> to vector<16x1xf32>
    %290 = vector.extract_strided_slice %255 {offsets = [0, 0], sizes = [16, 767], strides = [1, 1]} : vector<16x768xf32> to vector<16x767xf32>
    %291 = tpu.concatenate %289, %290 in 1 : vector<16x1xf32>, vector<16x767xf32> -> vector<16x768xf32>
    %292 = vector.extract_strided_slice %257 {offsets = [3, 0], sizes = [1, 768], strides = [1, 1]} : vector<9x768xf32> to vector<1x768xf32>
    %293 = vector.broadcast %292 : vector<1x768xf32> to vector<16x768xf32>
    %294 = arith.mulf %291, %293 : vector<16x768xf32>
    %295 = arith.truncf %294 : vector<16x768xf32> to vector<16x768xbf16>
    %296 = vector.extract_strided_slice %256 {offsets = [0, 48], sizes = [16, 16], strides = [1, 1]} : vector<16x144xbf16> to vector<16x16xbf16>
    %cst_41 = arith.constant dense<0.000000e+00> : vector<16x768xf32>
    %297 = tpu.matmul %296, %295, %cst_41 {dimension_numbers = #tpu.dot_dimension_numbers<[1], [0], [0], [1], [0, 0, 1, 1], [], []>} : vector<16x16xbf16>, vector<16x768xbf16>, vector<16x768xf32> -> vector<16x768xf32>
    %298 = arith.addf %288, %297 : vector<16x768xf32>
    %299 = vector.extract_strided_slice %257 {offsets = [4, 0], sizes = [1, 768], strides = [1, 1]} : vector<9x768xf32> to vector<1x768xf32>
    %300 = vector.broadcast %299 : vector<1x768xf32> to vector<16x768xf32>
    %301 = arith.mulf %255, %300 : vector<16x768xf32>
    %302 = arith.truncf %301 : vector<16x768xf32> to vector<16x768xbf16>
    %303 = vector.extract_strided_slice %256 {offsets = [0, 64], sizes = [16, 16], strides = [1, 1]} : vector<16x144xbf16> to vector<16x16xbf16>
    %cst_42 = arith.constant dense<0.000000e+00> : vector<16x768xf32>
    %304 = tpu.matmul %303, %302, %cst_42 {dimension_numbers = #tpu.dot_dimension_numbers<[1], [0], [0], [1], [0, 0, 1, 1], [], []>} : vector<16x16xbf16>, vector<16x768xbf16>, vector<16x768xf32> -> vector<16x768xf32>
    %305 = arith.addf %298, %304 : vector<16x768xf32>
    %306 = vector.extract_strided_slice %255 {offsets = [0, 1], sizes = [16, 767], strides = [1, 1]} : vector<16x768xf32> to vector<16x767xf32>
    %307 = vector.extract_strided_slice %255 {offsets = [0, 0], sizes = [16, 1], strides = [1, 1]} : vector<16x768xf32> to vector<16x1xf32>
    %308 = tpu.concatenate %306, %307 in 1 : vector<16x767xf32>, vector<16x1xf32> -> vector<16x768xf32>
    %309 = vector.extract_strided_slice %257 {offsets = [5, 0], sizes = [1, 768], strides = [1, 1]} : vector<9x768xf32> to vector<1x768xf32>
    %310 = vector.broadcast %309 : vector<1x768xf32> to vector<16x768xf32>
    %311 = arith.mulf %308, %310 : vector<16x768xf32>
    %312 = arith.truncf %311 : vector<16x768xf32> to vector<16x768xbf16>
    %313 = vector.extract_strided_slice %256 {offsets = [0, 80], sizes = [16, 16], strides = [1, 1]} : vector<16x144xbf16> to vector<16x16xbf16>
    %cst_43 = arith.constant dense<0.000000e+00> : vector<16x768xf32>
    %314 = tpu.matmul %313, %312, %cst_43 {dimension_numbers = #tpu.dot_dimension_numbers<[1], [0], [0], [1], [0, 0, 1, 1], [], []>} : vector<16x16xbf16>, vector<16x768xbf16>, vector<16x768xf32> -> vector<16x768xf32>
    %315 = arith.addf %305, %314 : vector<16x768xf32>
    %316 = vector.extract_strided_slice %255 {offsets = [0, 15], sizes = [16, 753], strides = [1, 1]} : vector<16x768xf32> to vector<16x753xf32>
    %317 = vector.extract_strided_slice %255 {offsets = [0, 0], sizes = [16, 15], strides = [1, 1]} : vector<16x768xf32> to vector<16x15xf32>
    %318 = tpu.concatenate %316, %317 in 1 : vector<16x753xf32>, vector<16x15xf32> -> vector<16x768xf32>
    %319 = vector.extract_strided_slice %257 {offsets = [6, 0], sizes = [1, 768], strides = [1, 1]} : vector<9x768xf32> to vector<1x768xf32>
    %320 = vector.broadcast %319 : vector<1x768xf32> to vector<16x768xf32>
    %321 = arith.mulf %318, %320 : vector<16x768xf32>
    %322 = arith.truncf %321 : vector<16x768xf32> to vector<16x768xbf16>
    %323 = vector.extract_strided_slice %256 {offsets = [0, 96], sizes = [16, 16], strides = [1, 1]} : vector<16x144xbf16> to vector<16x16xbf16>
    %cst_44 = arith.constant dense<0.000000e+00> : vector<16x768xf32>
    %324 = tpu.matmul %323, %322, %cst_44 {dimension_numbers = #tpu.dot_dimension_numbers<[1], [0], [0], [1], [0, 0, 1, 1], [], []>} : vector<16x16xbf16>, vector<16x768xbf16>, vector<16x768xf32> -> vector<16x768xf32>
    %325 = arith.addf %315, %324 : vector<16x768xf32>
    %326 = vector.extract_strided_slice %255 {offsets = [0, 16], sizes = [16, 752], strides = [1, 1]} : vector<16x768xf32> to vector<16x752xf32>
    %327 = vector.extract_strided_slice %255 {offsets = [0, 0], sizes = [16, 16], strides = [1, 1]} : vector<16x768xf32> to vector<16x16xf32>
    %328 = tpu.concatenate %326, %327 in 1 : vector<16x752xf32>, vector<16x16xf32> -> vector<16x768xf32>
    %329 = vector.extract_strided_slice %257 {offsets = [7, 0], sizes = [1, 768], strides = [1, 1]} : vector<9x768xf32> to vector<1x768xf32>
    %330 = vector.broadcast %329 : vector<1x768xf32> to vector<16x768xf32>
    %331 = arith.mulf %328, %330 : vector<16x768xf32>
    %332 = arith.truncf %331 : vector<16x768xf32> to vector<16x768xbf16>
    %333 = vector.extract_strided_slice %256 {offsets = [0, 112], sizes = [16, 16], strides = [1, 1]} : vector<16x144xbf16> to vector<16x16xbf16>
    %cst_45 = arith.constant dense<0.000000e+00> : vector<16x768xf32>
    %334 = tpu.matmul %333, %332, %cst_45 {dimension_numbers = #tpu.dot_dimension_numbers<[1], [0], [0], [1], [0, 0, 1, 1], [], []>} : vector<16x16xbf16>, vector<16x768xbf16>, vector<16x768xf32> -> vector<16x768xf32>
    %335 = arith.addf %325, %334 : vector<16x768xf32>
    %336 = vector.extract_strided_slice %255 {offsets = [0, 17], sizes = [16, 751], strides = [1, 1]} : vector<16x768xf32> to vector<16x751xf32>
    %337 = vector.extract_strided_slice %255 {offsets = [0, 0], sizes = [16, 17], strides = [1, 1]} : vector<16x768xf32> to vector<16x17xf32>
    %338 = tpu.concatenate %336, %337 in 1 : vector<16x751xf32>, vector<16x17xf32> -> vector<16x768xf32>
    %339 = vector.extract_strided_slice %257 {offsets = [8, 0], sizes = [1, 768], strides = [1, 1]} : vector<9x768xf32> to vector<1x768xf32>
    %340 = vector.broadcast %339 : vector<1x768xf32> to vector<16x768xf32>
    %341 = arith.mulf %338, %340 : vector<16x768xf32>
    %342 = arith.truncf %341 : vector<16x768xf32> to vector<16x768xbf16>
    %343 = vector.extract_strided_slice %256 {offsets = [0, 128], sizes = [16, 16], strides = [1, 1]} : vector<16x144xbf16> to vector<16x16xbf16>
    %cst_46 = arith.constant dense<0.000000e+00> : vector<16x768xf32>
    %344 = tpu.matmul %343, %342, %cst_46 {dimension_numbers = #tpu.dot_dimension_numbers<[1], [0], [0], [1], [0, 0, 1, 1], [], []>} : vector<16x16xbf16>, vector<16x768xbf16>, vector<16x768xf32> -> vector<16x768xf32>
    %345 = arith.addf %335, %344 : vector<16x768xf32>
    %c0_47 = arith.constant 0 : index
    %c0_48 = arith.constant 0 : index
    %346 = vector.load %arg4[%c0_47, %c0_48] : memref<16x1xf32, #tpu.memory_space<vmem>>, vector<16x1xf32>
    %347 = vector.broadcast %346 : vector<16x1xf32> to vector<16x768xf32>
    %348 = arith.addf %345, %347 : vector<16x768xf32>
    %cst_49 = arith.constant 0.000000e+00 : f32
    %349 = vector.broadcast %cst_49 : f32 to vector<16x768xf32>
    %350 = arith.maximumf %348, %349 : vector<16x768xf32>
    %351 = vector.extract_strided_slice %350 {offsets = [0, 1], sizes = [16, 767], strides = [1, 1]} : vector<16x768xf32> to vector<16x767xf32>
    %352 = vector.extract_strided_slice %350 {offsets = [0, 0], sizes = [16, 1], strides = [1, 1]} : vector<16x768xf32> to vector<16x1xf32>
    %353 = tpu.concatenate %351, %352 in 1 : vector<16x767xf32>, vector<16x1xf32> -> vector<16x768xf32>
    %354 = arith.maximumf %350, %353 : vector<16x768xf32>
    %355 = vector.extract_strided_slice %350 {offsets = [0, 16], sizes = [16, 752], strides = [1, 1]} : vector<16x768xf32> to vector<16x752xf32>
    %356 = vector.extract_strided_slice %350 {offsets = [0, 0], sizes = [16, 16], strides = [1, 1]} : vector<16x768xf32> to vector<16x16xf32>
    %357 = tpu.concatenate %355, %356 in 1 : vector<16x752xf32>, vector<16x16xf32> -> vector<16x768xf32>
    %358 = arith.maximumf %354, %357 : vector<16x768xf32>
    %359 = vector.extract_strided_slice %350 {offsets = [0, 17], sizes = [16, 751], strides = [1, 1]} : vector<16x768xf32> to vector<16x751xf32>
    %360 = vector.extract_strided_slice %350 {offsets = [0, 0], sizes = [16, 17], strides = [1, 1]} : vector<16x768xf32> to vector<16x17xf32>
    %361 = tpu.concatenate %359, %360 in 1 : vector<16x751xf32>, vector<16x17xf32> -> vector<16x768xf32>
    %362 = arith.maximumf %358, %361 : vector<16x768xf32>
    %363 = arith.truncf %362 : vector<16x768xf32> to vector<16x768xbf16>
    %c0_50 = arith.constant 0 : index
    %c0_51 = arith.constant 0 : index
    %364 = vector.load %arg12[%c0_50, %c0_51] : memref<768x192xbf16, #tpu.memory_space<vmem>>, vector<768x192xbf16>
    %cst_52 = arith.constant dense<0.000000e+00> : vector<16x192xf32>
    %365 = tpu.matmul %363, %364, %cst_52 {dimension_numbers = #tpu.dot_dimension_numbers<[1], [0], [0], [1], [0, 0, 1, 1], [], []>} : vector<16x768xbf16>, vector<768x192xbf16>, vector<16x192xf32> -> vector<16x192xf32>
    %c0_53 = arith.constant 0 : index
    %c0_54 = arith.constant 0 : index
    %366 = vector.load %arg5[%c0_53, %c0_54] : memref<16x144xbf16, #tpu.memory_space<vmem>>, vector<16x144xbf16>
    %c0_55 = arith.constant 0 : index
    %c0_56 = arith.constant 0 : index
    %367 = vector.load %arg11[%c0_55, %c0_56] : memref<9x192xf32, #tpu.memory_space<vmem>>, vector<9x192xf32>
    %cst_57 = arith.constant 0.000000e+00 : f32
    %368 = vector.broadcast %cst_57 : f32 to vector<16x192xf32>
    %369 = vector.extract_strided_slice %365 {offsets = [0, 183], sizes = [16, 9], strides = [1, 1]} : vector<16x192xf32> to vector<16x9xf32>
    %370 = vector.extract_strided_slice %365 {offsets = [0, 0], sizes = [16, 183], strides = [1, 1]} : vector<16x192xf32> to vector<16x183xf32>
    %371 = tpu.concatenate %369, %370 in 1 : vector<16x9xf32>, vector<16x183xf32> -> vector<16x192xf32>
    %372 = vector.extract_strided_slice %367 {offsets = [0, 0], sizes = [1, 192], strides = [1, 1]} : vector<9x192xf32> to vector<1x192xf32>
    %373 = vector.broadcast %372 : vector<1x192xf32> to vector<16x192xf32>
    %374 = arith.mulf %371, %373 : vector<16x192xf32>
    %375 = arith.truncf %374 : vector<16x192xf32> to vector<16x192xbf16>
    %376 = vector.extract_strided_slice %366 {offsets = [0, 0], sizes = [16, 16], strides = [1, 1]} : vector<16x144xbf16> to vector<16x16xbf16>
    %cst_58 = arith.constant dense<0.000000e+00> : vector<16x192xf32>
    %377 = tpu.matmul %376, %375, %cst_58 {dimension_numbers = #tpu.dot_dimension_numbers<[1], [0], [0], [1], [0, 0, 1, 1], [], []>} : vector<16x16xbf16>, vector<16x192xbf16>, vector<16x192xf32> -> vector<16x192xf32>
    %378 = arith.addf %368, %377 : vector<16x192xf32>
    %379 = vector.extract_strided_slice %365 {offsets = [0, 184], sizes = [16, 8], strides = [1, 1]} : vector<16x192xf32> to vector<16x8xf32>
    %380 = vector.extract_strided_slice %365 {offsets = [0, 0], sizes = [16, 184], strides = [1, 1]} : vector<16x192xf32> to vector<16x184xf32>
    %381 = tpu.concatenate %379, %380 in 1 : vector<16x8xf32>, vector<16x184xf32> -> vector<16x192xf32>
    %382 = vector.extract_strided_slice %367 {offsets = [1, 0], sizes = [1, 192], strides = [1, 1]} : vector<9x192xf32> to vector<1x192xf32>
    %383 = vector.broadcast %382 : vector<1x192xf32> to vector<16x192xf32>
    %384 = arith.mulf %381, %383 : vector<16x192xf32>
    %385 = arith.truncf %384 : vector<16x192xf32> to vector<16x192xbf16>
    %386 = vector.extract_strided_slice %366 {offsets = [0, 16], sizes = [16, 16], strides = [1, 1]} : vector<16x144xbf16> to vector<16x16xbf16>
    %cst_59 = arith.constant dense<0.000000e+00> : vector<16x192xf32>
    %387 = tpu.matmul %386, %385, %cst_59 {dimension_numbers = #tpu.dot_dimension_numbers<[1], [0], [0], [1], [0, 0, 1, 1], [], []>} : vector<16x16xbf16>, vector<16x192xbf16>, vector<16x192xf32> -> vector<16x192xf32>
    %388 = arith.addf %378, %387 : vector<16x192xf32>
    %389 = vector.extract_strided_slice %365 {offsets = [0, 185], sizes = [16, 7], strides = [1, 1]} : vector<16x192xf32> to vector<16x7xf32>
    %390 = vector.extract_strided_slice %365 {offsets = [0, 0], sizes = [16, 185], strides = [1, 1]} : vector<16x192xf32> to vector<16x185xf32>
    %391 = tpu.concatenate %389, %390 in 1 : vector<16x7xf32>, vector<16x185xf32> -> vector<16x192xf32>
    %392 = vector.extract_strided_slice %367 {offsets = [2, 0], sizes = [1, 192], strides = [1, 1]} : vector<9x192xf32> to vector<1x192xf32>
    %393 = vector.broadcast %392 : vector<1x192xf32> to vector<16x192xf32>
    %394 = arith.mulf %391, %393 : vector<16x192xf32>
    %395 = arith.truncf %394 : vector<16x192xf32> to vector<16x192xbf16>
    %396 = vector.extract_strided_slice %366 {offsets = [0, 32], sizes = [16, 16], strides = [1, 1]} : vector<16x144xbf16> to vector<16x16xbf16>
    %cst_60 = arith.constant dense<0.000000e+00> : vector<16x192xf32>
    %397 = tpu.matmul %396, %395, %cst_60 {dimension_numbers = #tpu.dot_dimension_numbers<[1], [0], [0], [1], [0, 0, 1, 1], [], []>} : vector<16x16xbf16>, vector<16x192xbf16>, vector<16x192xf32> -> vector<16x192xf32>
    %398 = arith.addf %388, %397 : vector<16x192xf32>
    %399 = vector.extract_strided_slice %365 {offsets = [0, 191], sizes = [16, 1], strides = [1, 1]} : vector<16x192xf32> to vector<16x1xf32>
    %400 = vector.extract_strided_slice %365 {offsets = [0, 0], sizes = [16, 191], strides = [1, 1]} : vector<16x192xf32> to vector<16x191xf32>
    %401 = tpu.concatenate %399, %400 in 1 : vector<16x1xf32>, vector<16x191xf32> -> vector<16x192xf32>
    %402 = vector.extract_strided_slice %367 {offsets = [3, 0], sizes = [1, 192], strides = [1, 1]} : vector<9x192xf32> to vector<1x192xf32>
    %403 = vector.broadcast %402 : vector<1x192xf32> to vector<16x192xf32>
    %404 = arith.mulf %401, %403 : vector<16x192xf32>
    %405 = arith.truncf %404 : vector<16x192xf32> to vector<16x192xbf16>
    %406 = vector.extract_strided_slice %366 {offsets = [0, 48], sizes = [16, 16], strides = [1, 1]} : vector<16x144xbf16> to vector<16x16xbf16>
    %cst_61 = arith.constant dense<0.000000e+00> : vector<16x192xf32>
    %407 = tpu.matmul %406, %405, %cst_61 {dimension_numbers = #tpu.dot_dimension_numbers<[1], [0], [0], [1], [0, 0, 1, 1], [], []>} : vector<16x16xbf16>, vector<16x192xbf16>, vector<16x192xf32> -> vector<16x192xf32>
    %408 = arith.addf %398, %407 : vector<16x192xf32>
    %409 = vector.extract_strided_slice %367 {offsets = [4, 0], sizes = [1, 192], strides = [1, 1]} : vector<9x192xf32> to vector<1x192xf32>
    %410 = vector.broadcast %409 : vector<1x192xf32> to vector<16x192xf32>
    %411 = arith.mulf %365, %410 : vector<16x192xf32>
    %412 = arith.truncf %411 : vector<16x192xf32> to vector<16x192xbf16>
    %413 = vector.extract_strided_slice %366 {offsets = [0, 64], sizes = [16, 16], strides = [1, 1]} : vector<16x144xbf16> to vector<16x16xbf16>
    %cst_62 = arith.constant dense<0.000000e+00> : vector<16x192xf32>
    %414 = tpu.matmul %413, %412, %cst_62 {dimension_numbers = #tpu.dot_dimension_numbers<[1], [0], [0], [1], [0, 0, 1, 1], [], []>} : vector<16x16xbf16>, vector<16x192xbf16>, vector<16x192xf32> -> vector<16x192xf32>
    %415 = arith.addf %408, %414 : vector<16x192xf32>
    %416 = vector.extract_strided_slice %365 {offsets = [0, 1], sizes = [16, 191], strides = [1, 1]} : vector<16x192xf32> to vector<16x191xf32>
    %417 = vector.extract_strided_slice %365 {offsets = [0, 0], sizes = [16, 1], strides = [1, 1]} : vector<16x192xf32> to vector<16x1xf32>
    %418 = tpu.concatenate %416, %417 in 1 : vector<16x191xf32>, vector<16x1xf32> -> vector<16x192xf32>
    %419 = vector.extract_strided_slice %367 {offsets = [5, 0], sizes = [1, 192], strides = [1, 1]} : vector<9x192xf32> to vector<1x192xf32>
    %420 = vector.broadcast %419 : vector<1x192xf32> to vector<16x192xf32>
    %421 = arith.mulf %418, %420 : vector<16x192xf32>
    %422 = arith.truncf %421 : vector<16x192xf32> to vector<16x192xbf16>
    %423 = vector.extract_strided_slice %366 {offsets = [0, 80], sizes = [16, 16], strides = [1, 1]} : vector<16x144xbf16> to vector<16x16xbf16>
    %cst_63 = arith.constant dense<0.000000e+00> : vector<16x192xf32>
    %424 = tpu.matmul %423, %422, %cst_63 {dimension_numbers = #tpu.dot_dimension_numbers<[1], [0], [0], [1], [0, 0, 1, 1], [], []>} : vector<16x16xbf16>, vector<16x192xbf16>, vector<16x192xf32> -> vector<16x192xf32>
    %425 = arith.addf %415, %424 : vector<16x192xf32>
    %426 = vector.extract_strided_slice %365 {offsets = [0, 7], sizes = [16, 185], strides = [1, 1]} : vector<16x192xf32> to vector<16x185xf32>
    %427 = vector.extract_strided_slice %365 {offsets = [0, 0], sizes = [16, 7], strides = [1, 1]} : vector<16x192xf32> to vector<16x7xf32>
    %428 = tpu.concatenate %426, %427 in 1 : vector<16x185xf32>, vector<16x7xf32> -> vector<16x192xf32>
    %429 = vector.extract_strided_slice %367 {offsets = [6, 0], sizes = [1, 192], strides = [1, 1]} : vector<9x192xf32> to vector<1x192xf32>
    %430 = vector.broadcast %429 : vector<1x192xf32> to vector<16x192xf32>
    %431 = arith.mulf %428, %430 : vector<16x192xf32>
    %432 = arith.truncf %431 : vector<16x192xf32> to vector<16x192xbf16>
    %433 = vector.extract_strided_slice %366 {offsets = [0, 96], sizes = [16, 16], strides = [1, 1]} : vector<16x144xbf16> to vector<16x16xbf16>
    %cst_64 = arith.constant dense<0.000000e+00> : vector<16x192xf32>
    %434 = tpu.matmul %433, %432, %cst_64 {dimension_numbers = #tpu.dot_dimension_numbers<[1], [0], [0], [1], [0, 0, 1, 1], [], []>} : vector<16x16xbf16>, vector<16x192xbf16>, vector<16x192xf32> -> vector<16x192xf32>
    %435 = arith.addf %425, %434 : vector<16x192xf32>
    %436 = vector.extract_strided_slice %365 {offsets = [0, 8], sizes = [16, 184], strides = [1, 1]} : vector<16x192xf32> to vector<16x184xf32>
    %437 = vector.extract_strided_slice %365 {offsets = [0, 0], sizes = [16, 8], strides = [1, 1]} : vector<16x192xf32> to vector<16x8xf32>
    %438 = tpu.concatenate %436, %437 in 1 : vector<16x184xf32>, vector<16x8xf32> -> vector<16x192xf32>
    %439 = vector.extract_strided_slice %367 {offsets = [7, 0], sizes = [1, 192], strides = [1, 1]} : vector<9x192xf32> to vector<1x192xf32>
    %440 = vector.broadcast %439 : vector<1x192xf32> to vector<16x192xf32>
    %441 = arith.mulf %438, %440 : vector<16x192xf32>
    %442 = arith.truncf %441 : vector<16x192xf32> to vector<16x192xbf16>
    %443 = vector.extract_strided_slice %366 {offsets = [0, 112], sizes = [16, 16], strides = [1, 1]} : vector<16x144xbf16> to vector<16x16xbf16>
    %cst_65 = arith.constant dense<0.000000e+00> : vector<16x192xf32>
    %444 = tpu.matmul %443, %442, %cst_65 {dimension_numbers = #tpu.dot_dimension_numbers<[1], [0], [0], [1], [0, 0, 1, 1], [], []>} : vector<16x16xbf16>, vector<16x192xbf16>, vector<16x192xf32> -> vector<16x192xf32>
    %445 = arith.addf %435, %444 : vector<16x192xf32>
    %446 = vector.extract_strided_slice %365 {offsets = [0, 9], sizes = [16, 183], strides = [1, 1]} : vector<16x192xf32> to vector<16x183xf32>
    %447 = vector.extract_strided_slice %365 {offsets = [0, 0], sizes = [16, 9], strides = [1, 1]} : vector<16x192xf32> to vector<16x9xf32>
    %448 = tpu.concatenate %446, %447 in 1 : vector<16x183xf32>, vector<16x9xf32> -> vector<16x192xf32>
    %449 = vector.extract_strided_slice %367 {offsets = [8, 0], sizes = [1, 192], strides = [1, 1]} : vector<9x192xf32> to vector<1x192xf32>
    %450 = vector.broadcast %449 : vector<1x192xf32> to vector<16x192xf32>
    %451 = arith.mulf %448, %450 : vector<16x192xf32>
    %452 = arith.truncf %451 : vector<16x192xf32> to vector<16x192xbf16>
    %453 = vector.extract_strided_slice %366 {offsets = [0, 128], sizes = [16, 16], strides = [1, 1]} : vector<16x144xbf16> to vector<16x16xbf16>
    %cst_66 = arith.constant dense<0.000000e+00> : vector<16x192xf32>
    %454 = tpu.matmul %453, %452, %cst_66 {dimension_numbers = #tpu.dot_dimension_numbers<[1], [0], [0], [1], [0, 0, 1, 1], [], []>} : vector<16x16xbf16>, vector<16x192xbf16>, vector<16x192xf32> -> vector<16x192xf32>
    %455 = arith.addf %445, %454 : vector<16x192xf32>
    %c0_67 = arith.constant 0 : index
    %c0_68 = arith.constant 0 : index
    %456 = vector.load %arg6[%c0_67, %c0_68] : memref<16x1xf32, #tpu.memory_space<vmem>>, vector<16x1xf32>
    %457 = vector.broadcast %456 : vector<16x1xf32> to vector<16x192xf32>
    %458 = arith.addf %455, %457 : vector<16x192xf32>
    %cst_69 = arith.constant 0.000000e+00 : f32
    %459 = vector.broadcast %cst_69 : f32 to vector<16x192xf32>
    %460 = arith.maximumf %458, %459 : vector<16x192xf32>
    %c0_70 = arith.constant 0 : index
    %c0_71 = arith.constant 0 : index
    %461 = vector.load %arg7[%c0_70, %c0_71] : memref<16x144xbf16, #tpu.memory_space<vmem>>, vector<16x144xbf16>
    %c0_72 = arith.constant 0 : index
    %c0_73 = arith.constant 0 : index
    %462 = vector.load %arg11[%c0_72, %c0_73] : memref<9x192xf32, #tpu.memory_space<vmem>>, vector<9x192xf32>
    %cst_74 = arith.constant 0.000000e+00 : f32
    %463 = vector.broadcast %cst_74 : f32 to vector<16x192xf32>
    %464 = vector.extract_strided_slice %460 {offsets = [0, 183], sizes = [16, 9], strides = [1, 1]} : vector<16x192xf32> to vector<16x9xf32>
    %465 = vector.extract_strided_slice %460 {offsets = [0, 0], sizes = [16, 183], strides = [1, 1]} : vector<16x192xf32> to vector<16x183xf32>
    %466 = tpu.concatenate %464, %465 in 1 : vector<16x9xf32>, vector<16x183xf32> -> vector<16x192xf32>
    %467 = vector.extract_strided_slice %462 {offsets = [0, 0], sizes = [1, 192], strides = [1, 1]} : vector<9x192xf32> to vector<1x192xf32>
    %468 = vector.broadcast %467 : vector<1x192xf32> to vector<16x192xf32>
    %469 = arith.mulf %466, %468 : vector<16x192xf32>
    %470 = arith.truncf %469 : vector<16x192xf32> to vector<16x192xbf16>
    %471 = vector.extract_strided_slice %461 {offsets = [0, 0], sizes = [16, 16], strides = [1, 1]} : vector<16x144xbf16> to vector<16x16xbf16>
    %cst_75 = arith.constant dense<0.000000e+00> : vector<16x192xf32>
    %472 = tpu.matmul %471, %470, %cst_75 {dimension_numbers = #tpu.dot_dimension_numbers<[1], [0], [0], [1], [0, 0, 1, 1], [], []>} : vector<16x16xbf16>, vector<16x192xbf16>, vector<16x192xf32> -> vector<16x192xf32>
    %473 = arith.addf %463, %472 : vector<16x192xf32>
    %474 = vector.extract_strided_slice %460 {offsets = [0, 184], sizes = [16, 8], strides = [1, 1]} : vector<16x192xf32> to vector<16x8xf32>
    %475 = vector.extract_strided_slice %460 {offsets = [0, 0], sizes = [16, 184], strides = [1, 1]} : vector<16x192xf32> to vector<16x184xf32>
    %476 = tpu.concatenate %474, %475 in 1 : vector<16x8xf32>, vector<16x184xf32> -> vector<16x192xf32>
    %477 = vector.extract_strided_slice %462 {offsets = [1, 0], sizes = [1, 192], strides = [1, 1]} : vector<9x192xf32> to vector<1x192xf32>
    %478 = vector.broadcast %477 : vector<1x192xf32> to vector<16x192xf32>
    %479 = arith.mulf %476, %478 : vector<16x192xf32>
    %480 = arith.truncf %479 : vector<16x192xf32> to vector<16x192xbf16>
    %481 = vector.extract_strided_slice %461 {offsets = [0, 16], sizes = [16, 16], strides = [1, 1]} : vector<16x144xbf16> to vector<16x16xbf16>
    %cst_76 = arith.constant dense<0.000000e+00> : vector<16x192xf32>
    %482 = tpu.matmul %481, %480, %cst_76 {dimension_numbers = #tpu.dot_dimension_numbers<[1], [0], [0], [1], [0, 0, 1, 1], [], []>} : vector<16x16xbf16>, vector<16x192xbf16>, vector<16x192xf32> -> vector<16x192xf32>
    %483 = arith.addf %473, %482 : vector<16x192xf32>
    %484 = vector.extract_strided_slice %460 {offsets = [0, 185], sizes = [16, 7], strides = [1, 1]} : vector<16x192xf32> to vector<16x7xf32>
    %485 = vector.extract_strided_slice %460 {offsets = [0, 0], sizes = [16, 185], strides = [1, 1]} : vector<16x192xf32> to vector<16x185xf32>
    %486 = tpu.concatenate %484, %485 in 1 : vector<16x7xf32>, vector<16x185xf32> -> vector<16x192xf32>
    %487 = vector.extract_strided_slice %462 {offsets = [2, 0], sizes = [1, 192], strides = [1, 1]} : vector<9x192xf32> to vector<1x192xf32>
    %488 = vector.broadcast %487 : vector<1x192xf32> to vector<16x192xf32>
    %489 = arith.mulf %486, %488 : vector<16x192xf32>
    %490 = arith.truncf %489 : vector<16x192xf32> to vector<16x192xbf16>
    %491 = vector.extract_strided_slice %461 {offsets = [0, 32], sizes = [16, 16], strides = [1, 1]} : vector<16x144xbf16> to vector<16x16xbf16>
    %cst_77 = arith.constant dense<0.000000e+00> : vector<16x192xf32>
    %492 = tpu.matmul %491, %490, %cst_77 {dimension_numbers = #tpu.dot_dimension_numbers<[1], [0], [0], [1], [0, 0, 1, 1], [], []>} : vector<16x16xbf16>, vector<16x192xbf16>, vector<16x192xf32> -> vector<16x192xf32>
    %493 = arith.addf %483, %492 : vector<16x192xf32>
    %494 = vector.extract_strided_slice %460 {offsets = [0, 191], sizes = [16, 1], strides = [1, 1]} : vector<16x192xf32> to vector<16x1xf32>
    %495 = vector.extract_strided_slice %460 {offsets = [0, 0], sizes = [16, 191], strides = [1, 1]} : vector<16x192xf32> to vector<16x191xf32>
    %496 = tpu.concatenate %494, %495 in 1 : vector<16x1xf32>, vector<16x191xf32> -> vector<16x192xf32>
    %497 = vector.extract_strided_slice %462 {offsets = [3, 0], sizes = [1, 192], strides = [1, 1]} : vector<9x192xf32> to vector<1x192xf32>
    %498 = vector.broadcast %497 : vector<1x192xf32> to vector<16x192xf32>
    %499 = arith.mulf %496, %498 : vector<16x192xf32>
    %500 = arith.truncf %499 : vector<16x192xf32> to vector<16x192xbf16>
    %501 = vector.extract_strided_slice %461 {offsets = [0, 48], sizes = [16, 16], strides = [1, 1]} : vector<16x144xbf16> to vector<16x16xbf16>
    %cst_78 = arith.constant dense<0.000000e+00> : vector<16x192xf32>
    %502 = tpu.matmul %501, %500, %cst_78 {dimension_numbers = #tpu.dot_dimension_numbers<[1], [0], [0], [1], [0, 0, 1, 1], [], []>} : vector<16x16xbf16>, vector<16x192xbf16>, vector<16x192xf32> -> vector<16x192xf32>
    %503 = arith.addf %493, %502 : vector<16x192xf32>
    %504 = vector.extract_strided_slice %462 {offsets = [4, 0], sizes = [1, 192], strides = [1, 1]} : vector<9x192xf32> to vector<1x192xf32>
    %505 = vector.broadcast %504 : vector<1x192xf32> to vector<16x192xf32>
    %506 = arith.mulf %460, %505 : vector<16x192xf32>
    %507 = arith.truncf %506 : vector<16x192xf32> to vector<16x192xbf16>
    %508 = vector.extract_strided_slice %461 {offsets = [0, 64], sizes = [16, 16], strides = [1, 1]} : vector<16x144xbf16> to vector<16x16xbf16>
    %cst_79 = arith.constant dense<0.000000e+00> : vector<16x192xf32>
    %509 = tpu.matmul %508, %507, %cst_79 {dimension_numbers = #tpu.dot_dimension_numbers<[1], [0], [0], [1], [0, 0, 1, 1], [], []>} : vector<16x16xbf16>, vector<16x192xbf16>, vector<16x192xf32> -> vector<16x192xf32>
    %510 = arith.addf %503, %509 : vector<16x192xf32>
    %511 = vector.extract_strided_slice %460 {offsets = [0, 1], sizes = [16, 191], strides = [1, 1]} : vector<16x192xf32> to vector<16x191xf32>
    %512 = vector.extract_strided_slice %460 {offsets = [0, 0], sizes = [16, 1], strides = [1, 1]} : vector<16x192xf32> to vector<16x1xf32>
    %513 = tpu.concatenate %511, %512 in 1 : vector<16x191xf32>, vector<16x1xf32> -> vector<16x192xf32>
    %514 = vector.extract_strided_slice %462 {offsets = [5, 0], sizes = [1, 192], strides = [1, 1]} : vector<9x192xf32> to vector<1x192xf32>
    %515 = vector.broadcast %514 : vector<1x192xf32> to vector<16x192xf32>
    %516 = arith.mulf %513, %515 : vector<16x192xf32>
    %517 = arith.truncf %516 : vector<16x192xf32> to vector<16x192xbf16>
    %518 = vector.extract_strided_slice %461 {offsets = [0, 80], sizes = [16, 16], strides = [1, 1]} : vector<16x144xbf16> to vector<16x16xbf16>
    %cst_80 = arith.constant dense<0.000000e+00> : vector<16x192xf32>
    %519 = tpu.matmul %518, %517, %cst_80 {dimension_numbers = #tpu.dot_dimension_numbers<[1], [0], [0], [1], [0, 0, 1, 1], [], []>} : vector<16x16xbf16>, vector<16x192xbf16>, vector<16x192xf32> -> vector<16x192xf32>
    %520 = arith.addf %510, %519 : vector<16x192xf32>
    %521 = vector.extract_strided_slice %460 {offsets = [0, 7], sizes = [16, 185], strides = [1, 1]} : vector<16x192xf32> to vector<16x185xf32>
    %522 = vector.extract_strided_slice %460 {offsets = [0, 0], sizes = [16, 7], strides = [1, 1]} : vector<16x192xf32> to vector<16x7xf32>
    %523 = tpu.concatenate %521, %522 in 1 : vector<16x185xf32>, vector<16x7xf32> -> vector<16x192xf32>
    %524 = vector.extract_strided_slice %462 {offsets = [6, 0], sizes = [1, 192], strides = [1, 1]} : vector<9x192xf32> to vector<1x192xf32>
    %525 = vector.broadcast %524 : vector<1x192xf32> to vector<16x192xf32>
    %526 = arith.mulf %523, %525 : vector<16x192xf32>
    %527 = arith.truncf %526 : vector<16x192xf32> to vector<16x192xbf16>
    %528 = vector.extract_strided_slice %461 {offsets = [0, 96], sizes = [16, 16], strides = [1, 1]} : vector<16x144xbf16> to vector<16x16xbf16>
    %cst_81 = arith.constant dense<0.000000e+00> : vector<16x192xf32>
    %529 = tpu.matmul %528, %527, %cst_81 {dimension_numbers = #tpu.dot_dimension_numbers<[1], [0], [0], [1], [0, 0, 1, 1], [], []>} : vector<16x16xbf16>, vector<16x192xbf16>, vector<16x192xf32> -> vector<16x192xf32>
    %530 = arith.addf %520, %529 : vector<16x192xf32>
    %531 = vector.extract_strided_slice %460 {offsets = [0, 8], sizes = [16, 184], strides = [1, 1]} : vector<16x192xf32> to vector<16x184xf32>
    %532 = vector.extract_strided_slice %460 {offsets = [0, 0], sizes = [16, 8], strides = [1, 1]} : vector<16x192xf32> to vector<16x8xf32>
    %533 = tpu.concatenate %531, %532 in 1 : vector<16x184xf32>, vector<16x8xf32> -> vector<16x192xf32>
    %534 = vector.extract_strided_slice %462 {offsets = [7, 0], sizes = [1, 192], strides = [1, 1]} : vector<9x192xf32> to vector<1x192xf32>
    %535 = vector.broadcast %534 : vector<1x192xf32> to vector<16x192xf32>
    %536 = arith.mulf %533, %535 : vector<16x192xf32>
    %537 = arith.truncf %536 : vector<16x192xf32> to vector<16x192xbf16>
    %538 = vector.extract_strided_slice %461 {offsets = [0, 112], sizes = [16, 16], strides = [1, 1]} : vector<16x144xbf16> to vector<16x16xbf16>
    %cst_82 = arith.constant dense<0.000000e+00> : vector<16x192xf32>
    %539 = tpu.matmul %538, %537, %cst_82 {dimension_numbers = #tpu.dot_dimension_numbers<[1], [0], [0], [1], [0, 0, 1, 1], [], []>} : vector<16x16xbf16>, vector<16x192xbf16>, vector<16x192xf32> -> vector<16x192xf32>
    %540 = arith.addf %530, %539 : vector<16x192xf32>
    %541 = vector.extract_strided_slice %460 {offsets = [0, 9], sizes = [16, 183], strides = [1, 1]} : vector<16x192xf32> to vector<16x183xf32>
    %542 = vector.extract_strided_slice %460 {offsets = [0, 0], sizes = [16, 9], strides = [1, 1]} : vector<16x192xf32> to vector<16x9xf32>
    %543 = tpu.concatenate %541, %542 in 1 : vector<16x183xf32>, vector<16x9xf32> -> vector<16x192xf32>
    %544 = vector.extract_strided_slice %462 {offsets = [8, 0], sizes = [1, 192], strides = [1, 1]} : vector<9x192xf32> to vector<1x192xf32>
    %545 = vector.broadcast %544 : vector<1x192xf32> to vector<16x192xf32>
    %546 = arith.mulf %543, %545 : vector<16x192xf32>
    %547 = arith.truncf %546 : vector<16x192xf32> to vector<16x192xbf16>
    %548 = vector.extract_strided_slice %461 {offsets = [0, 128], sizes = [16, 16], strides = [1, 1]} : vector<16x144xbf16> to vector<16x16xbf16>
    %cst_83 = arith.constant dense<0.000000e+00> : vector<16x192xf32>
    %549 = tpu.matmul %548, %547, %cst_83 {dimension_numbers = #tpu.dot_dimension_numbers<[1], [0], [0], [1], [0, 0, 1, 1], [], []>} : vector<16x16xbf16>, vector<16x192xbf16>, vector<16x192xf32> -> vector<16x192xf32>
    %550 = arith.addf %540, %549 : vector<16x192xf32>
    %c0_84 = arith.constant 0 : index
    %c0_85 = arith.constant 0 : index
    %551 = vector.load %arg8[%c0_84, %c0_85] : memref<16x1xf32, #tpu.memory_space<vmem>>, vector<16x1xf32>
    %552 = vector.broadcast %551 : vector<16x1xf32> to vector<16x192xf32>
    %553 = arith.addf %550, %552 : vector<16x192xf32>
    %cst_86 = arith.constant 0.000000e+00 : f32
    %554 = vector.broadcast %cst_86 : f32 to vector<16x192xf32>
    %555 = arith.maximumf %553, %554 : vector<16x192xf32>
    %556 = vector.extract_strided_slice %555 {offsets = [0, 1], sizes = [16, 191], strides = [1, 1]} : vector<16x192xf32> to vector<16x191xf32>
    %557 = vector.extract_strided_slice %555 {offsets = [0, 0], sizes = [16, 1], strides = [1, 1]} : vector<16x192xf32> to vector<16x1xf32>
    %558 = tpu.concatenate %556, %557 in 1 : vector<16x191xf32>, vector<16x1xf32> -> vector<16x192xf32>
    %559 = arith.maximumf %555, %558 : vector<16x192xf32>
    %560 = vector.extract_strided_slice %555 {offsets = [0, 8], sizes = [16, 184], strides = [1, 1]} : vector<16x192xf32> to vector<16x184xf32>
    %561 = vector.extract_strided_slice %555 {offsets = [0, 0], sizes = [16, 8], strides = [1, 1]} : vector<16x192xf32> to vector<16x8xf32>
    %562 = tpu.concatenate %560, %561 in 1 : vector<16x184xf32>, vector<16x8xf32> -> vector<16x192xf32>
    %563 = arith.maximumf %559, %562 : vector<16x192xf32>
    %564 = vector.extract_strided_slice %555 {offsets = [0, 9], sizes = [16, 183], strides = [1, 1]} : vector<16x192xf32> to vector<16x183xf32>
    %565 = vector.extract_strided_slice %555 {offsets = [0, 0], sizes = [16, 9], strides = [1, 1]} : vector<16x192xf32> to vector<16x9xf32>
    %566 = tpu.concatenate %564, %565 in 1 : vector<16x183xf32>, vector<16x9xf32> -> vector<16x192xf32>
    %567 = arith.maximumf %563, %566 : vector<16x192xf32>
    %568 = arith.truncf %567 : vector<16x192xf32> to vector<16x192xbf16>
    %c0_87 = arith.constant 0 : index
    %c0_88 = arith.constant 0 : index
    %569 = vector.load %arg13[%c0_87, %c0_88] : memref<192x48xbf16, #tpu.memory_space<vmem>>, vector<192x48xbf16>
    %cst_89 = arith.constant dense<0.000000e+00> : vector<16x48xf32>
    %570 = tpu.matmul %568, %569, %cst_89 {dimension_numbers = #tpu.dot_dimension_numbers<[1], [0], [0], [1], [0, 0, 1, 1], [], []>} : vector<16x192xbf16>, vector<192x48xbf16>, vector<16x48xf32> -> vector<16x48xf32>
    %571 = vector.extract_strided_slice %570 {offsets = [0, 0], sizes = [1, 16], strides = [1, 1]} : vector<16x48xf32> to vector<1x16xf32>
    %572 = vector.extract_strided_slice %570 {offsets = [1, 0], sizes = [1, 16], strides = [1, 1]} : vector<16x48xf32> to vector<1x16xf32>
    %573 = vector.extract_strided_slice %570 {offsets = [2, 0], sizes = [1, 16], strides = [1, 1]} : vector<16x48xf32> to vector<1x16xf32>
    %574 = vector.extract_strided_slice %570 {offsets = [3, 0], sizes = [1, 16], strides = [1, 1]} : vector<16x48xf32> to vector<1x16xf32>
    %575 = vector.extract_strided_slice %570 {offsets = [4, 0], sizes = [1, 16], strides = [1, 1]} : vector<16x48xf32> to vector<1x16xf32>
    %576 = vector.extract_strided_slice %570 {offsets = [5, 0], sizes = [1, 16], strides = [1, 1]} : vector<16x48xf32> to vector<1x16xf32>
    %577 = vector.extract_strided_slice %570 {offsets = [6, 0], sizes = [1, 16], strides = [1, 1]} : vector<16x48xf32> to vector<1x16xf32>
    %578 = vector.extract_strided_slice %570 {offsets = [7, 0], sizes = [1, 16], strides = [1, 1]} : vector<16x48xf32> to vector<1x16xf32>
    %579 = vector.extract_strided_slice %570 {offsets = [8, 0], sizes = [1, 16], strides = [1, 1]} : vector<16x48xf32> to vector<1x16xf32>
    %580 = vector.extract_strided_slice %570 {offsets = [9, 0], sizes = [1, 16], strides = [1, 1]} : vector<16x48xf32> to vector<1x16xf32>
    %581 = vector.extract_strided_slice %570 {offsets = [10, 0], sizes = [1, 16], strides = [1, 1]} : vector<16x48xf32> to vector<1x16xf32>
    %582 = vector.extract_strided_slice %570 {offsets = [11, 0], sizes = [1, 16], strides = [1, 1]} : vector<16x48xf32> to vector<1x16xf32>
    %583 = vector.extract_strided_slice %570 {offsets = [12, 0], sizes = [1, 16], strides = [1, 1]} : vector<16x48xf32> to vector<1x16xf32>
    %584 = vector.extract_strided_slice %570 {offsets = [13, 0], sizes = [1, 16], strides = [1, 1]} : vector<16x48xf32> to vector<1x16xf32>
    %585 = vector.extract_strided_slice %570 {offsets = [14, 0], sizes = [1, 16], strides = [1, 1]} : vector<16x48xf32> to vector<1x16xf32>
    %586 = vector.extract_strided_slice %570 {offsets = [15, 0], sizes = [1, 16], strides = [1, 1]} : vector<16x48xf32> to vector<1x16xf32>
    %587 = tpu.concatenate %571, %572, %573, %574, %575, %576, %577, %578, %579, %580, %581, %582, %583, %584, %585, %586 in 1 : vector<1x16xf32>, vector<1x16xf32>, vector<1x16xf32>, vector<1x16xf32>, vector<1x16xf32>, vector<1x16xf32>, vector<1x16xf32>, vector<1x16xf32>, vector<1x16xf32>, vector<1x16xf32>, vector<1x16xf32>, vector<1x16xf32>, vector<1x16xf32>, vector<1x16xf32>, vector<1x16xf32>, vector<1x16xf32> -> vector<1x256xf32>
    %588 = vector.extract_strided_slice %570 {offsets = [0, 16], sizes = [1, 16], strides = [1, 1]} : vector<16x48xf32> to vector<1x16xf32>
    %589 = vector.extract_strided_slice %570 {offsets = [1, 16], sizes = [1, 16], strides = [1, 1]} : vector<16x48xf32> to vector<1x16xf32>
    %590 = vector.extract_strided_slice %570 {offsets = [2, 16], sizes = [1, 16], strides = [1, 1]} : vector<16x48xf32> to vector<1x16xf32>
    %591 = vector.extract_strided_slice %570 {offsets = [3, 16], sizes = [1, 16], strides = [1, 1]} : vector<16x48xf32> to vector<1x16xf32>
    %592 = vector.extract_strided_slice %570 {offsets = [4, 16], sizes = [1, 16], strides = [1, 1]} : vector<16x48xf32> to vector<1x16xf32>
    %593 = vector.extract_strided_slice %570 {offsets = [5, 16], sizes = [1, 16], strides = [1, 1]} : vector<16x48xf32> to vector<1x16xf32>
    %594 = vector.extract_strided_slice %570 {offsets = [6, 16], sizes = [1, 16], strides = [1, 1]} : vector<16x48xf32> to vector<1x16xf32>
    %595 = vector.extract_strided_slice %570 {offsets = [7, 16], sizes = [1, 16], strides = [1, 1]} : vector<16x48xf32> to vector<1x16xf32>
    %596 = vector.extract_strided_slice %570 {offsets = [8, 16], sizes = [1, 16], strides = [1, 1]} : vector<16x48xf32> to vector<1x16xf32>
    %597 = vector.extract_strided_slice %570 {offsets = [9, 16], sizes = [1, 16], strides = [1, 1]} : vector<16x48xf32> to vector<1x16xf32>
    %598 = vector.extract_strided_slice %570 {offsets = [10, 16], sizes = [1, 16], strides = [1, 1]} : vector<16x48xf32> to vector<1x16xf32>
    %599 = vector.extract_strided_slice %570 {offsets = [11, 16], sizes = [1, 16], strides = [1, 1]} : vector<16x48xf32> to vector<1x16xf32>
    %600 = vector.extract_strided_slice %570 {offsets = [12, 16], sizes = [1, 16], strides = [1, 1]} : vector<16x48xf32> to vector<1x16xf32>
    %601 = vector.extract_strided_slice %570 {offsets = [13, 16], sizes = [1, 16], strides = [1, 1]} : vector<16x48xf32> to vector<1x16xf32>
    %602 = vector.extract_strided_slice %570 {offsets = [14, 16], sizes = [1, 16], strides = [1, 1]} : vector<16x48xf32> to vector<1x16xf32>
    %603 = vector.extract_strided_slice %570 {offsets = [15, 16], sizes = [1, 16], strides = [1, 1]} : vector<16x48xf32> to vector<1x16xf32>
    %604 = tpu.concatenate %588, %589, %590, %591, %592, %593, %594, %595, %596, %597, %598, %599, %600, %601, %602, %603 in 1 : vector<1x16xf32>, vector<1x16xf32>, vector<1x16xf32>, vector<1x16xf32>, vector<1x16xf32>, vector<1x16xf32>, vector<1x16xf32>, vector<1x16xf32>, vector<1x16xf32>, vector<1x16xf32>, vector<1x16xf32>, vector<1x16xf32>, vector<1x16xf32>, vector<1x16xf32>, vector<1x16xf32>, vector<1x16xf32> -> vector<1x256xf32>
    %605 = vector.extract_strided_slice %570 {offsets = [0, 32], sizes = [1, 16], strides = [1, 1]} : vector<16x48xf32> to vector<1x16xf32>
    %606 = vector.extract_strided_slice %570 {offsets = [1, 32], sizes = [1, 16], strides = [1, 1]} : vector<16x48xf32> to vector<1x16xf32>
    %607 = vector.extract_strided_slice %570 {offsets = [2, 32], sizes = [1, 16], strides = [1, 1]} : vector<16x48xf32> to vector<1x16xf32>
    %608 = vector.extract_strided_slice %570 {offsets = [3, 32], sizes = [1, 16], strides = [1, 1]} : vector<16x48xf32> to vector<1x16xf32>
    %609 = vector.extract_strided_slice %570 {offsets = [4, 32], sizes = [1, 16], strides = [1, 1]} : vector<16x48xf32> to vector<1x16xf32>
    %610 = vector.extract_strided_slice %570 {offsets = [5, 32], sizes = [1, 16], strides = [1, 1]} : vector<16x48xf32> to vector<1x16xf32>
    %611 = vector.extract_strided_slice %570 {offsets = [6, 32], sizes = [1, 16], strides = [1, 1]} : vector<16x48xf32> to vector<1x16xf32>
    %612 = vector.extract_strided_slice %570 {offsets = [7, 32], sizes = [1, 16], strides = [1, 1]} : vector<16x48xf32> to vector<1x16xf32>
    %613 = vector.extract_strided_slice %570 {offsets = [8, 32], sizes = [1, 16], strides = [1, 1]} : vector<16x48xf32> to vector<1x16xf32>
    %614 = vector.extract_strided_slice %570 {offsets = [9, 32], sizes = [1, 16], strides = [1, 1]} : vector<16x48xf32> to vector<1x16xf32>
    %615 = vector.extract_strided_slice %570 {offsets = [10, 32], sizes = [1, 16], strides = [1, 1]} : vector<16x48xf32> to vector<1x16xf32>
    %616 = vector.extract_strided_slice %570 {offsets = [11, 32], sizes = [1, 16], strides = [1, 1]} : vector<16x48xf32> to vector<1x16xf32>
    %617 = vector.extract_strided_slice %570 {offsets = [12, 32], sizes = [1, 16], strides = [1, 1]} : vector<16x48xf32> to vector<1x16xf32>
    %618 = vector.extract_strided_slice %570 {offsets = [13, 32], sizes = [1, 16], strides = [1, 1]} : vector<16x48xf32> to vector<1x16xf32>
    %619 = vector.extract_strided_slice %570 {offsets = [14, 32], sizes = [1, 16], strides = [1, 1]} : vector<16x48xf32> to vector<1x16xf32>
    %620 = vector.extract_strided_slice %570 {offsets = [15, 32], sizes = [1, 16], strides = [1, 1]} : vector<16x48xf32> to vector<1x16xf32>
    %621 = tpu.concatenate %605, %606, %607, %608, %609, %610, %611, %612, %613, %614, %615, %616, %617, %618, %619, %620 in 1 : vector<1x16xf32>, vector<1x16xf32>, vector<1x16xf32>, vector<1x16xf32>, vector<1x16xf32>, vector<1x16xf32>, vector<1x16xf32>, vector<1x16xf32>, vector<1x16xf32>, vector<1x16xf32>, vector<1x16xf32>, vector<1x16xf32>, vector<1x16xf32>, vector<1x16xf32>, vector<1x16xf32>, vector<1x16xf32> -> vector<1x256xf32>
    %622 = tpu.concatenate %587, %604, %621 in 0 : vector<1x256xf32>, vector<1x256xf32>, vector<1x256xf32> -> vector<3x256xf32>
    %623 = arith.truncf %622 : vector<3x256xf32> to vector<3x256xbf16>
    %c0_90 = arith.constant 0 : index
    %c0_91 = arith.constant 0 : index
    %624 = vector.load %arg14[%c0_90, %c0_91] : memref<256x64xbf16, #tpu.memory_space<vmem>>, vector<256x64xbf16>
    %cst_92 = arith.constant dense<0.000000e+00> : vector<3x64xf32>
    %625 = tpu.matmul %623, %624, %cst_92 {dimension_numbers = #tpu.dot_dimension_numbers<[1], [0], [0], [1], [0, 0, 1, 1], [], []>} : vector<3x256xbf16>, vector<256x64xbf16>, vector<3x64xf32> -> vector<3x64xf32>
    %c0_93 = arith.constant 0 : index
    %c0_94 = arith.constant 0 : index
    %626 = vector.load %arg15[%c0_93, %c0_94] : memref<1x64xf32, #tpu.memory_space<vmem>>, vector<1x64xf32>
    %627 = vector.broadcast %626 : vector<1x64xf32> to vector<3x64xf32>
    %628 = arith.addf %625, %627 : vector<3x64xf32>
    %cst_95 = arith.constant 0.000000e+00 : f32
    %629 = vector.broadcast %cst_95 : f32 to vector<3x64xf32>
    %630 = arith.maximumf %628, %629 : vector<3x64xf32>
    %631 = arith.truncf %630 : vector<3x64xf32> to vector<3x64xbf16>
    %c0_96 = arith.constant 0 : index
    %c0_97 = arith.constant 0 : index
    %632 = vector.load %arg16[%c0_96, %c0_97] : memref<64x32xbf16, #tpu.memory_space<vmem>>, vector<64x32xbf16>
    %cst_98 = arith.constant dense<0.000000e+00> : vector<3x32xf32>
    %633 = tpu.matmul %631, %632, %cst_98 {dimension_numbers = #tpu.dot_dimension_numbers<[1], [0], [0], [1], [0, 0, 1, 1], [], []>} : vector<3x64xbf16>, vector<64x32xbf16>, vector<3x32xf32> -> vector<3x32xf32>
    %c0_99 = arith.constant 0 : index
    %c0_100 = arith.constant 0 : index
    %634 = vector.load %arg17[%c0_99, %c0_100] : memref<1x32xf32, #tpu.memory_space<vmem>>, vector<1x32xf32>
    %635 = vector.broadcast %634 : vector<1x32xf32> to vector<3x32xf32>
    %636 = arith.addf %633, %635 : vector<3x32xf32>
    %cst_101 = arith.constant 0.000000e+00 : f32
    %637 = vector.broadcast %cst_101 : f32 to vector<3x32xf32>
    %638 = arith.maximumf %636, %637 : vector<3x32xf32>
    %639 = arith.truncf %638 : vector<3x32xf32> to vector<3x32xbf16>
    %c0_102 = arith.constant 0 : index
    %c0_103 = arith.constant 0 : index
    %640 = vector.load %arg18[%c0_102, %c0_103] : memref<32x16xbf16, #tpu.memory_space<vmem>>, vector<32x16xbf16>
    %cst_104 = arith.constant dense<0.000000e+00> : vector<3x16xf32>
    %641 = tpu.matmul %639, %640, %cst_104 {dimension_numbers = #tpu.dot_dimension_numbers<[1], [0], [0], [1], [0, 0, 1, 1], [], []>} : vector<3x32xbf16>, vector<32x16xbf16>, vector<3x16xf32> -> vector<3x16xf32>
    %c0_105 = arith.constant 0 : index
    %c0_106 = arith.constant 0 : index
    %642 = vector.load %arg19[%c0_105, %c0_106] : memref<1x16xf32, #tpu.memory_space<vmem>>, vector<1x16xf32>
    %643 = vector.broadcast %642 : vector<1x16xf32> to vector<3x16xf32>
    %644 = arith.addf %641, %643 : vector<3x16xf32>
    %c0_107 = arith.constant 0 : index
    %c0_108 = arith.constant 0 : index
    %645 = vector.load %arg20[%c0_107, %c0_108] : memref<3x16xf32, #tpu.memory_space<vmem>>, vector<3x16xf32>
    %646 = arith.addf %644, %645 : vector<3x16xf32>
    %cst_109 = arith.constant 1.000000e+00 : f32
    %647 = vector.broadcast %cst_109 : f32 to vector<3x16xf32>
    %648 = arith.divf %646, %647 : vector<3x16xf32>
    %cst_110 = arith.constant dense<0xFF800000> : vector<3xf32>
    %649 = vector.multi_reduction <maximumf>, %648, %cst_110 [1] : vector<3x16xf32> to vector<3xf32>
    %650 = vector.shape_cast %649 : vector<3xf32> to vector<3x1xf32>
    %651 = tpu.iota {dimensions = array<i32: 1>} : vector<3x16xi32>
    %652 = vector.broadcast %650 : vector<3x1xf32> to vector<3x16xf32>
    %653 = arith.cmpf oeq, %648, %652 : vector<3x16xf32>
    %c16_i32 = arith.constant 16 : i32
    %654 = vector.broadcast %c16_i32 : i32 to vector<3x16xi32>
    %655 = arith.select %653, %651, %654 : vector<3x16xi1>, vector<3x16xi32>
    %cst_111 = arith.constant dense<2147483647> : vector<3xi32>
    %656 = vector.multi_reduction <minsi>, %655, %cst_111 [1] : vector<3x16xi32> to vector<3xi32>
    %657 = vector.shape_cast %656 : vector<3xi32> to vector<3x1xi32>
    %658 = vector.broadcast %657 : vector<3x1xi32> to vector<3x16xi32>
    %659 = arith.cmpi eq, %651, %658 : vector<3x16xi32>
    %660 = arith.extui %659 : vector<3x16xi1> to vector<3x16xi32>
    %661 = arith.sitofp %660 : vector<3x16xi32> to vector<3x16xf32>
    %c0_112 = arith.constant 0 : index
    %c0_113 = arith.constant 0 : index
    %662 = vector.load %arg21[%c0_112, %c0_113] : memref<3x16xf32, #tpu.memory_space<vmem>>, vector<3x16xf32>
    tpu.vector_store %arg21[%c0_112, %c0_113], %661 {strides = array<i32>} : memref<3x16xf32, #tpu.memory_space<vmem>>, vector<3x16xf32>,
    return
  }
}

</mosaic_0001>

<bundles_post_ra>
// kernel: classifier_forward.1
= control target key start
LH: loop header
LB: loop body
LE: loop exit
PB: predicated region body
PF: predicated region fallthrough
CT: control target
= control target key end

     0   :  { %s16551_s0 = inlined_call_operand.vmem [shape: f32[8,768], index: 0, kind: input, shape index: {}]   ;;  %s16552_s1 = inlined_call_operand.vmem [shape: bf16[16,200], index: 1, kind: input, shape index: {}]   ;;  %s16553_s2 = inlined_call_operand.vmem [shape: f32[16,1], index: 2, kind: input, shape index: {}]   ;;  %s16554_s3 = inlined_call_operand.vmem [shape: bf16[16,144], index: 3, kind: input, shape index: {}]   ;;  %s16555_s4 = inlined_call_operand.vmem [shape: f32[16,1], index: 4, kind: input, shape index: {}]   ;;  %s16556_s5 = inlined_call_operand.vmem [shape: bf16[16,144], index: 5, kind: input, shape index: {}]   ;;  %s16557_s6 = inlined_call_operand.vmem [shape: f32[16,1], index: 6, kind: input, shape index: {}]   ;;  %s16558_s7 = inlined_call_operand.vmem [shape: bf16[16,144], index: 7, kind: input, shape index: {}]   ;;  %s16559_s8 = inlined_call_operand.vmem [shape: f32[16,1], index: 8, kind: input, shape index: {}]   ;;  %s16560_s9 = inlined_call_operand.vmem [shape: f32[25,768], index: 9, kind: input, shape index: {}]   ;;  %s16561_s10 = inlined_call_operand.vmem [shape: f32[9,768], index: 10, kind: input, shape index: {}]   ;;  %s16562_s11 = inlined_call_operand.vmem [shape: f32[9,192], index: 11, kind: input, shape index: {}]   ;;  %s16563_s12 = inlined_call_operand.vmem [shape: bf16[768,192], index: 12, kind: input, shape index: {}]   ;;  %s16564_s13 = inlined_call_operand.vmem [shape: bf16[192,48], index: 13, kind: input, shape index: {}]   ;;  %s16565_s14 = inlined_call_operand.vmem [shape: bf16[256,64], index: 14, kind: input, shape index: {}]   ;;  %s16566_s15 = inlined_call_operand.vmem [shape: f32[1,64], index: 15, kind: input, shape index: {}]   ;;  %s16567_s16 = inlined_call_operand.vmem [shape: bf16[64,32], index: 16, kind: input, shape index: {}]   ;;  %s16568_s17 = inlined_call_operand.vmem [shape: f32[1,32], index: 17, kind: input, shape index: {}]   ;;  %s16569_s18 = inlined_call_operand.vmem [shape: bf16[32,16], index: 18, kind: input, shape index: {}]   ;;  %s16570_s19 = inlined_call_operand.vmem [shape: f32[1,16], index: 19, kind: input, shape index: {}]   ;;  %s16571_s20 = inlined_call_operand.vmem [shape: f32[3,16], index: 20, kind: input, shape index: {}]   ;;  %s16572_s21 = inlined_call_operand.hbm [shape: f32[3,16], index: 21, kind: output, shape index: {}]  }
   0x1   :  { %16684 = sst [smem:[#allocation31_spill]] %s16551_s0 }
   0x2   :  { %16685 = sst [smem:[#allocation32_spill]] %s16552_s1 }
   0x3   :  { %16686 = sst [smem:[#allocation33_spill]] %s16553_s2 }
   0x4   :  { %16687 = sst [smem:[#allocation34_spill]] %s16554_s3 }
   0x5   :  { %16688 = sst [smem:[#allocation35_spill]] %s16555_s4 }
   0x6   :  { %16689 = sst [smem:[#allocation36_spill]] %s16556_s5 }
   0x7   :  { %16690 = sst [smem:[#allocation37_spill]] %s16572_s21 }
   0x8   :  { %s16691_s26 = sld [smem:[#allocation31_spill]]  ;;  %s12048_s28 = smov 33   ;;  %v16601_v4 = vmov 0  }
   0x9   :  { %294 = vmatprep.mubr.bf16.mxu0 %v16601_v4  ;;  %337 = vmatprep.mubr.bf16.mxu1 %v16601_v4  ;;  %s16692_s25 = sld [smem:[#allocation32_spill]]  ;;  %s12050_s27 = smov 34  }
   0xa   :  { %11576 = vset.pattern.permute.xlu1 %v16601_v4  ;;  %11577 = vset.pattern.permute.xlu0 %v16601_v4  ;;  %s16596_s3 = smov 120   ;;  %s16588_s29 = smov 32  }
   0xb   :  { %s12054_s0 = smov 31   ;;  %s12055_s4 = smov 30  }
   0xc   :  { %s12056_s30 = smov 104   ;;  %s16627_s5 = smov 96  }
   0xd   :  { %s12058_s22 = smov 18  }
   0xe   :  { %v12210_v0 = vld [vmem:[%s16691_s26 + $0x28] sm:$0xff]  ;;  %v12222_v2 = vld [vmem:[%s16691_s26 + $0x18] sm:$0xff]  ;;  %v12227_v3 = vld [vmem:[%s16691_s26] sm:$0xff] }
   0xf   :  { %v12215_v1 = vld [vmem:[%s16691_s26 + $0x8] sm:$0xff]  ;;  %170 = vrot.lane.b32.xlu0 %v12210_v0, %s12048_s28  ;;  %v12238_v5 = vld [vmem:[%s16691_s26 + $0x10] sm:$0xff]  ;;  %v12243_v6 = vld [vmem:[%s16691_s26 + $0x20] sm:$0xff] }
  0x10   :  { %175 = vrot.lane.b32.xlu1 %v12215_v1, %s12048_s28  ;;  %v12248_v7 = vld [vmem:[%s16692_s25] ss:$8 sps:$4 sm:$0xff]  }
  0x13   :  { %173 = vrot.lane.b32.xlu0 %v12227_v3, %s12048_s28 }
  0x14   :  { %179 = vrot.lane.b32.xlu1 %v12222_v2, %s12048_s28 }
  0x17   :  { %181 = vrot.lane.b32.xlu0 %v12243_v6, %s12048_s28 }
  0x18   :  { %177 = vrot.lane.b32.xlu1 %v12238_v5, %s12048_s28  ;;  %s16674_s28 = smov 112  }
  0x1b   :  { %237 = vrot.lane.b32.xlu0 %v12248_v7, %s16596_s3 }
  0x1c   :  { %113 = vrot.lane.b32.xlu1 %v12215_v1, %s12050_s27 }
  0x1f   :  { %115 = vrot.lane.b32.xlu0 %v12238_v5, %s12050_s27 }
  0x20   :  { %117 = vrot.lane.b32.xlu1 %v12222_v2, %s12050_s27 }
  0x23   :  { %103 = vrot.lane.b32.xlu0 %v12210_v0, %s12050_s27 }
  0x24   :  { %111 = vrot.lane.b32.xlu1 %v12227_v3, %s12050_s27 }
  0x27   :  { %541 = vrot.lane.b32.xlu0 %v12210_v0, %s16588_s29 }
  0x28   :  { %544 = vrot.lane.b32.xlu1 %v12227_v3, %s16588_s29 }
  0x2b   :  { %546 = vrot.lane.b32.xlu0 %v12215_v1, %s16588_s29 }
  0x2c   :  { %119 = vrot.lane.b32.xlu1 %v12243_v6, %s12050_s27 }
  0x2f   :  { %550 = vrot.lane.b32.xlu0 %v12222_v2, %s16588_s29 }
  0x30   :  { %552 = vrot.lane.b32.xlu1 %v12243_v6, %s16588_s29 }
  0x33   :  { %548 = vrot.lane.b32.xlu0 %v12238_v5, %s16588_s29 }
  0x34   :  { %603 = vrot.lane.b32.xlu1 %v12248_v7, %s16674_s28 }
  0x37   :  { %772 = vrot.lane.b32.xlu0 %v12215_v1, %s12054_s0 }
  0x38   :  { %774 = vrot.lane.b32.xlu1 %v12238_v5, %s12054_s0 }
  0x3b   :  { %776 = vrot.lane.b32.xlu0 %v12222_v2, %s12054_s0 }
  0x3c   :  { %767 = vrot.lane.b32.xlu1 %v12210_v0, %s12054_s0 }
  0x3f   :  { %770 = vrot.lane.b32.xlu0 %v12227_v3, %s12054_s0 }
  0x40   :  { %993 = vrot.lane.b32.xlu1 %v12210_v0, %s12055_s4 }
  0x43   :  { %996 = vrot.lane.b32.xlu0 %v12227_v3, %s12055_s4 }
  0x44   :  { %998 = vrot.lane.b32.xlu1 %v12215_v1, %s12055_s4 }
  0x47   :  { %778 = vrot.lane.b32.xlu0 %v12243_v6, %s12054_s0 }
  0x48   :  { %829 = vrot.lane.b32.xlu1 %v12248_v7, %s12056_s30 }
  0x4b   :  { %1002 = vrot.lane.b32.xlu0 %v12222_v2, %s12055_s4 }
  0x4c   :  { %1004 = vrot.lane.b32.xlu1 %v12243_v6, %s12055_s4 }
  0x4f   :  { %1000 = vrot.lane.b32.xlu0 %v12238_v5, %s12055_s4 }
  0x50   :  { %1055 = vrot.lane.b32.xlu1 %v12248_v7, %s16627_s5 }
  0x53   :  { %1224 = vrot.lane.b32.xlu0 %v12215_v1, %s12058_s22 }
  0x54   :  { %1226 = vrot.lane.b32.xlu1 %v12238_v5, %s12058_s22 }
  0x55   :  { %26 = vsyncpa [#allocation3], 0  ;;  %s16579_s23 = smov 17   ;;  %s16585_s1 = smov 88   ;;  %v16600_v8 = vlaneseq  ;;  %v12341_v11 = vld [vmem:[%s16560_s9 + $0x8] sm:$0xff]  ;;  %v12346_v12 = vld [vmem:[%s16560_s9] sm:$0xff] }
  0x56   :  { %s16581_s24 = smov 80   ;;  %s16625_s2 = smov 16   ;;  %vm183_vm0 = vcmask 269312   ;;  %v12355_v15 = vld [vmem:[%s16560_s9 + $0x20] sm:$0xff]  ;;  %v12360_v16 = vld [vmem:[%s16560_s9 + $0x28] sm:$0xff]  ;;  %v12369_v19 = vld [vmem:[%s16560_s9 + $0x18] sm:$0xff] }
  0x57   :  { %1228 = vrot.lane.b32.xlu0 %v12222_v2, %s12058_s22  ;;  %s16592_s27 = smov 15   ;;  %v12329_v9 = vshrl.u32 %v16600_v8, 7  ;;  %s16583_s0 = smov 72   ;;  %v12374_v22 = vld [vmem:[%s16560_s9 + $0x10] sm:$0xff]  ;;  %vm243_vm1 = vcmask 1043456   ;;  %vm239_vm2 = vcmask 64512  }
  0x58   :  { %1219 = vrot.lane.b32.xlu1 %v12210_v0, %s12058_s22  ;;  %s16621_s4 = smov 64   ;;  %vm121_vm3 = vcmask 277504   ;;  %vm554_vm4 = vcmask 261120   ;;  %vm780_vm5 = vcmask 252928   ;;  %vm1006_vm6 = vcmask 244736   ;;  %s16817_s21 = smov 65  }
  0x59   :  { %v12336_v10 = vsub.s32 1, %v12329_v9  ;;  %v12391_v35 = vsub.s32 0, %v12329_v9  ;;  %v12429_v63 = vsub.s32 2, %v12329_v9  ;;  %vm1232_vm7 = vcmask 146432  }
  0x5a   :  { %vm1458_vm8 = vcmask 138240   ;;  %vm1684_vm9 = vcmask 130048   ;;  %vm1910_vm10 = vcmask 121856   ;;  %vm2136_vm11 = vcmask 113664  }
  0x5b   :  { %1222 = vrot.lane.b32.xlu0 %v12227_v3, %s12058_s22  ;;  %16693 = vst [vmem:[#allocation5_spill] sm:$0xff] %v12336_v10  ;;  %v203_v17 = vrot.slane %v12341_v11, %v12336_v10  ;;  %v199_v18 = vrot.slane %v12346_v12, %v12336_v10  ;;  %v215_v24 = vrot.slane %v12355_v15, %v12336_v10  ;;  %16694 = vst [vmem:[#allocation6_spill] sm:$0xff] %v12391_v35  ;;  %vm2362_vm12 = vcmask 15360  }
  0x5c   :  { %1445 = vrot.lane.b32.xlu1 %v12210_v0, %s16579_s23  ;;  %v219_v25 = vrot.slane %v12360_v16, %v12336_v10  ;;  %v211_v29 = vrot.slane %v12369_v19, %v12336_v10  ;;  %v207_v30 = vrot.slane %v12374_v22, %v12336_v10  ;;  %v145_v52 = vrot.slane %v12374_v22, %v12391_v35 }
  0x5d   :  { %v149_v53 = vrot.slane %v12369_v19, %v12391_v35  ;;  %v141_v61 = vrot.slane %v12341_v11, %v12391_v35  ;;  %v137_v62 = vrot.slane %v12346_v12, %v12391_v35  ;;  %16695 = vst [vmem:[#allocation7_spill] sm:$0xff] %v12429_v63  ;;  %vm2588_vm13 = vcmask 7168  }
  0x5e   :  { %vm3013_vm14 = vcmask 1039360   ;;  %vm3239_vm15 = vcmask 1031168  }
  0x5f   :  { %1448 = vrot.lane.b32.xlu0 %v12227_v3, %s16579_s23 }
  0x60   :  { %1450 = vrot.lane.b32.xlu1 %v12215_v1, %s16579_s23 }
  0x63   :  { %1230 = vrot.lane.b32.xlu0 %v12243_v6, %s12058_s22  ;;  %s12066_s22 = smov 14  }
  0x64   :  { %1281 = vrot.lane.b32.xlu1 %v12248_v7, %s16585_s1  ;;  %s16590_s1 = smov 48  }
  0x67   :  { %1454 = vrot.lane.b32.xlu0 %v12222_v2, %s16579_s23 }
  0x68   :  { %1456 = vrot.lane.b32.xlu1 %v12243_v6, %s16579_s23 }
  0x6b   :  { %1452 = vrot.lane.b32.xlu0 %v12238_v5, %s16579_s23  ;;  %s12067_s23 = smov 2  }
  0x6c   :  { %1507 = vrot.lane.b32.xlu1 %v12248_v7, %s16581_s24  ;;  %s16586_s24 = smov 56  }
  0x6f   :  { %1676 = vrot.lane.b32.xlu0 %v12215_v1, %s16625_s2 }
  0x70   :  { %1678 = vrot.lane.b32.xlu1 %v12238_v5, %s16625_s2 }
  0x73   :  { %1680 = vrot.lane.b32.xlu0 %v12222_v2, %s16625_s2 }
  0x74   :  { %1671 = vrot.lane.b32.xlu1 %v12210_v0, %s16625_s2 }
  0x77   :  { %1674 = vrot.lane.b32.xlu0 %v12227_v3, %s16625_s2 }
  0x78   :  { %1897 = vrot.lane.b32.xlu1 %v12210_v0, %s16592_s27 }
  0x7b   :  { %1900 = vrot.lane.b32.xlu0 %v12227_v3, %s16592_s27 }
  0x7c   :  { %1902 = vrot.lane.b32.xlu1 %v12215_v1, %s16592_s27 }
  0x7f   :  { %1682 = vrot.lane.b32.xlu0 %v12243_v6, %s16625_s2 }
  0x80   :  { %1733 = vrot.lane.b32.xlu1 %v12248_v7, %s16583_s0  ;;  %s16594_s0 = smov 1  }
  0x81   :  { %v171_v13 = vpop.permute.xlu0 %170 }
  0x82   :  { %v176_v14 = vpop.permute.xlu1 %175 }
  0x83   :  { %1906 = vrot.lane.b32.xlu0 %v12222_v2, %s16592_s27 }
  0x84   :  { %1908 = vrot.lane.b32.xlu1 %v12243_v6, %s16592_s27 }
  0x85   :  { %v174_v21 = vpop.permute.xlu0 %173 }
  0x86   :  { %v180_v20 = vpop.permute.xlu1 %179  ;;  %v195_v23 = vsel %vm183_vm0, %v171_v13, %v174_v21  ;;  %v184_v26 = vsel %vm183_vm0, %v174_v21, %v176_v14 }
  0x87   :  { %1904 = vrot.lane.b32.xlu0 %v12238_v5, %s16592_s27  ;;  %v221_v27 = vmul.f32 %v203_v17, %v184_v26  ;;  %v220_v28 = vmul.f32 %v199_v18, %v195_v23  ;;  %v570_v26 = vrot.slane %v12346_v12, %v12429_v63  ;;  %s12074_s27 = smov 24  }
  0x88   :  { %1959 = vrot.lane.b32.xlu1 %v12248_v7, %s16621_s4 }
  0x89   :  { %v182_v32 = vpop.permute.xlu0 %181  ;;  %v227_v33 = vpack.c.bf16 %v221_v27, %v221_v27  ;;  %v226_v34 = vpack.c.bf16 %v220_v28, %v220_v28 }
  0x8a   :  { %v178_v31 = vpop.permute.xlu1 %177  ;;  %v187_v37 = vsel %vm183_vm0, %v180_v20, %v182_v32  ;;  %v188_v38 = vsel %vm183_vm0, %v182_v32, %v171_v13 }
  0x8b   :  { %v185_v36 = vsel %vm183_vm0, %v176_v14, %v178_v31  ;;  %v186_v39 = vsel %vm183_vm0, %v178_v31, %v180_v20  ;;  %v224_v40 = vmul.f32 %v215_v24, %v187_v37  ;;  %v225_v41 = vmul.f32 %v219_v25, %v188_v38  ;;  %2128 = vrot.lane.b32.xlu0 %v12215_v1, %s12066_s22 }
  0x8c   :  { %2130 = vrot.lane.b32.xlu1 %v12238_v5, %s12066_s22  ;;  %v245_v42 = vsel %vm243_vm1, %v226_v34, 0  ;;  %v223_v43 = vmul.f32 %v211_v29, %v186_v39  ;;  %11124 = vmatprep.subr.msk.bf16.mxu0 %vm243_vm1, %v227_v33  ;;  %v222_v44 = vmul.f32 %v207_v30, %v185_v36  ;;  %v153_v33 = vrot.slane %v12355_v15, %v12391_v35 }
  0x8d   :  { %v230_v45 = vpack.c.bf16 %v224_v40, %v224_v40  ;;  %v231_v46 = vpack.c.bf16 %v225_v41, %v225_v41  ;;  %277 = vmatpush1.bf16.msra.mxu0 %v245_v42  ;;  %v238_v48 = vpop.permute.xlu0 %237  ;;  %v157_v34 = vrot.slane %v12360_v16, %v12391_v35  ;;  %v574_v36 = vrot.slane %v12341_v11, %v12429_v63 }
  0x8e   :  { %v114_v47 = vpop.permute.xlu1 %113  ;;  %v229_v49 = vpack.c.bf16 %v223_v43, %v223_v43  ;;  %v228_v50 = vpack.c.bf16 %v222_v44, %v222_v44  ;;  %v590_v40 = vrot.slane %v12360_v16, %v12429_v63  ;;  %v586_v44 = vrot.slane %v12355_v15, %v12429_v63 }
  0x8f   :  { %v257_v51 = vsel %vm243_vm1, %v230_v45, 0  ;;  %2132 = vrot.lane.b32.xlu0 %v12222_v2, %s12066_s22  ;;  %11128 = vmatprep.subr.msk.bf16.mxu0 %vm243_vm1, %v231_v46  ;;  %vm3465_vm0 = vcmask 932864  }
  0x90   :  { %11126 = vmatprep.subr.msk.bf16.mxu1 %vm243_vm1, %v229_v49  ;;  %2123 = vrot.lane.b32.xlu1 %v12210_v0, %s12066_s22  ;;  %v251_v54 = vsel %vm243_vm1, %v228_v50, 0 }
  0x91   :  { %11125 = vmatmul.mubr.msk.bf16.vlgmr.msra.gmra.mxu0 %vm239_vm2, %v238_v48  ;;  %320 = vmatpush1.bf16.msra.mxu1 %v251_v54  ;;  %v116_v56 = vpop.permute.xlu0 %115 }
  0x92   :  { %v118_v55 = vpop.permute.xlu1 %117  ;;  %363 = vmatpush1.bf16.msra.mxu0 %v257_v51  ;;  %v123_v57 = vsel %vm121_vm3, %v114_v47, %v116_v56  ;;  %380 = vmatprep.mubr.bf16.mxu0 %v16601_v4 }
  0x93   :  { %v124_v58 = vsel %vm121_vm3, %v116_v56, %v118_v55  ;;  %v160_v59 = vmul.f32 %v145_v52, %v123_v57  ;;  %2126 = vrot.lane.b32.xlu0 %v12227_v3, %s12066_s22  ;;  %v578_v56 = vrot.slane %v12374_v22, %v12429_v63  ;;  %v582_v57 = vrot.slane %v12369_v19, %v12429_v63 }
  0x94   :  { %v161_v60 = vmul.f32 %v149_v53, %v124_v58  ;;  %2349 = vrot.lane.b32.xlu1 %v12210_v0, %s12067_s23  ;;  %11127 = vmatmul.mubr.msk.bf16.vlgmr.msra.gmra.mxu1 %vm239_vm2, %v238_v48 }
  0x95   :  { %v166_v13 = vpack.c.bf16 %v160_v59, %v160_v59  ;;  %v104_v18 = vpop.permute.xlu0 %103  ;;  %444 = vmatprep.mubr.bf16.mxu1 %v16601_v4 }
  0x96   :  { %v167_v14 = vpack.c.bf16 %v161_v60, %v161_v60  ;;  %v112_v17 = vpop.permute.xlu1 %111 }
  0x97   :  { %v122_v20 = vsel %vm121_vm3, %v112_v17, %v114_v47  ;;  %v133_v21 = vsel %vm121_vm3, %v104_v18, %v112_v17  ;;  %v401_v25 = vsel %vm243_vm1, %v166_v13, 0  ;;  %2352 = vrot.lane.b32.xlu0 %v12227_v3, %s12067_s23 }
  0x98   :  { %v159_v23 = vmul.f32 %v141_v61, %v122_v20  ;;  %v158_v24 = vmul.f32 %v137_v62, %v133_v21  ;;  %2354 = vrot.lane.b32.xlu1 %v12215_v1, %s12067_s23  ;;  %11132 = vmatprep.subr.msk.bf16.mxu0 %vm243_vm1, %v167_v14  ;;  %v12485_v61 = vsub.s32 3, %v12329_v9 }
  0x99   :  { %11129 = vmatmul.mubr.msk.bf16.vlgmr.msra.gmra.mxu0 %vm239_vm2, %v238_v48  ;;  %v542_v30 = vpop.permute.xlu0 %541 }
  0x9a   :  { %v165_v27 = vpack.c.bf16 %v159_v23, %v159_v23  ;;  %v164_v28 = vpack.c.bf16 %v158_v24, %v158_v24  ;;  %470 = vmatpush1.bf16.msra.mxu0 %v401_v25  ;;  %v545_v29 = vpop.permute.xlu1 %544  ;;  %487 = vmatprep.mubr.bf16.mxu0 %v16601_v4  ;;  %16696 = vst [vmem:[#allocation8_spill] sm:$0xff] %v12485_v61 }
  0x9b   :  { %v566_v31 = vsel %vm554_vm4, %v542_v30, %v545_v29  ;;  %2134 = vrot.lane.b32.xlu0 %v12243_v6, %s12066_s22  ;;  %s12071_s22 = smov 40  }
  0x9c   :  { %2185 = vrot.lane.b32.xlu1 %v12248_v7, %s16586_s24  ;;  %11130 = vmatprep.subr.msk.bf16.mxu1 %vm243_vm1, %v165_v27  ;;  %v395_v32 = vsel %vm243_vm1, %v164_v28, 0  ;;  %v591_v37 = vmul.f32 %v570_v26, %v566_v31  ;;  %v804_v26 = vrot.slane %v12374_v22, %v12485_v61  ;;  %s12075_s24 = smov 114  }
  0x9d   :  { %427 = vmatpush1.bf16.msra.mxu1 %v395_v32  ;;  %v547_v39 = vpop.permute.xlu0 %546 }
  0x9e   :  { %v120_v38 = vpop.permute.xlu1 %119  ;;  %v555_v43 = vsel %vm554_vm4, %v545_v29, %v547_v39  ;;  %v597_v48 = vpack.c.bf16 %v591_v37, %v591_v37 }
  0x9f   :  { %v125_v41 = vsel %vm121_vm3, %v118_v55, %v120_v38  ;;  %v126_v42 = vsel %vm121_vm3, %v120_v38, %v104_v18  ;;  %v592_v47 = vmul.f32 %v574_v36, %v555_v43  ;;  %2358 = vrot.lane.b32.xlu0 %v12222_v2, %s12067_s23  ;;  %v12517_v38 = vsub.s32 4, %v12329_v9 }
  0xa0   :  { %v162_v45 = vmul.f32 %v153_v33, %v125_v41  ;;  %v163_v46 = vmul.f32 %v157_v34, %v126_v42  ;;  %2360 = vrot.lane.b32.xlu1 %v12243_v6, %s12067_s23  ;;  %11131 = vmatmul.mubr.msk.bf16.vlgmr.msra.gmra.mxu1 %vm239_vm2, %v12248_v7  ;;  %v609_v62 = vsel %vm243_vm1, %v597_v48, 0  ;;  %v808_v33 = vrot.slane %v12369_v19, %v12485_v61 }
  0xa1   :  { %11133 = vmatmul.mubr.msk.bf16.vlgmr.msra.gmra.mxu0 %vm239_vm2, %v12248_v7  ;;  %v598_v51 = vpack.c.bf16 %v592_v47, %v592_v47  ;;  %v551_v53 = vpop.permute.xlu0 %550  ;;  %530 = vmatprep.mubr.bf16.mxu1 %v16601_v4  ;;  %16697 = vst [vmem:[#allocation9_spill] sm:$0xff] %v12517_v38  ;;  %v800_v41 = vrot.slane %v12341_v11, %v12485_v61  ;;  %vm3691_vm3 = vcmask 924672  }
  0xa2   :  { %v168_v49 = vpack.c.bf16 %v162_v45, %v162_v45  ;;  %v169_v50 = vpack.c.bf16 %v163_v46, %v163_v46  ;;  %v553_v52 = vpop.permute.xlu1 %552  ;;  %658 = vmatprep.mubr.bf16.mxu0 %v16601_v4  ;;  %v1022_v47 = vrot.slane %v12346_v12, %v12517_v38 }
  0xa3   :  { %v559_v54 = vsel %vm554_vm4, %v553_v52, %v542_v30  ;;  %v558_v55 = vsel %vm554_vm4, %v551_v53, %v553_v52  ;;  %2356 = vrot.lane.b32.xlu0 %v12238_v5, %s12067_s23  ;;  %11136 = vmatprep.subr.msk.bf16.mxu0 %vm243_vm1, %v598_v51  ;;  %v1026_v51 = vrot.slane %v12341_v11, %v12517_v38  ;;  %s16629_s23 = smov 127  }
  0xa4   :  { %v596_v58 = vmul.f32 %v590_v40, %v559_v54  ;;  %v595_v59 = vmul.f32 %v586_v44, %v558_v55  ;;  %2411 = vrot.lane.b32.xlu1 %v12248_v7, %s16590_s1  ;;  %11134 = vmatprep.subr.msk.bf16.mxu1 %vm243_vm1, %v169_v50  ;;  %v407_v60 = vsel %vm243_vm1, %v168_v49, 0  ;;  %v796_v40 = vrot.slane %v12346_v12, %v12485_v61  ;;  %s12078_s1 = smov 111  }
  0xa5   :  { %513 = vmatpush1.bf16.msra.mxu1 %v407_v60  ;;  %641 = vmatpush1.bf16.msra.mxu0 %v609_v62  ;;  %v549_v18 = vpop.permute.xlu0 %548  ;;  %v816_v62 = vrot.slane %v12360_v16, %v12485_v61 }
  0xa6   :  { %v602_v13 = vpack.c.bf16 %v596_v58, %v596_v58  ;;  %v601_v14 = vpack.c.bf16 %v595_v59, %v595_v59  ;;  %v604_v17 = vpop.permute.xlu1 %603  ;;  %v556_v20 = vsel %vm554_vm4, %v547_v39, %v549_v18  ;;  %v557_v21 = vsel %vm554_vm4, %v549_v18, %v551_v53 }
  0xa7   :  { %v593_v23 = vmul.f32 %v578_v56, %v556_v20  ;;  %v594_v24 = vmul.f32 %v582_v57, %v557_v21  ;;  %2580 = vrot.lane.b32.xlu0 %v12215_v1, %s16594_s0  ;;  %v812_v58 = vrot.slane %v12355_v15, %v12485_v61 }
  0xa8   :  { %2582 = vrot.lane.b32.xlu1 %v12238_v5, %s16594_s0  ;;  %11140 = vmatprep.subr.msk.bf16.mxu0 %vm243_vm1, %v602_v13  ;;  %v621_v25 = vsel %vm243_vm1, %v601_v14, 0 }
  0xa9   :  { %11135 = vmatmul.mubr.msk.bf16.vlgmr.msra.gmra.mxu1 %vm239_vm2, %v12248_v7  ;;  %v599_v27 = vpack.c.bf16 %v593_v23, %v593_v23  ;;  %v600_v28 = vpack.c.bf16 %v594_v24, %v594_v24  ;;  %11137 = vmatmul.mubr.msk.bf16.vlgmr.msra.gmra.mxu0 %vm239_vm2, %v604_v17  ;;  %v773_v30 = vpop.permute.xlu0 %772 }
  0xaa   :  { %v775_v29 = vpop.permute.xlu1 %774  ;;  %701 = vmatprep.mubr.bf16.mxu1 %v16601_v4  ;;  %727 = vmatpush1.bf16.msra.mxu0 %v621_v25  ;;  %v1038_v25 = vrot.slane %v12355_v15, %v12517_v38 }
  0xab   :  { %v782_v31 = vsel %vm780_vm5, %v773_v30, %v775_v29  ;;  %744 = vmatprep.mubr.bf16.mxu0 %v16601_v4  ;;  %11138 = vmatprep.subr.msk.bf16.mxu1 %vm243_vm1, %v600_v28  ;;  %v615_v1 = vsel %vm243_vm1, %v599_v27, 0 }
  0xac   :  { %v819_v32 = vmul.f32 %v804_v26, %v782_v31  ;;  %2575 = vrot.lane.b32.xlu1 %v12210_v0, %s16594_s0  ;;  %2584 = vrot.lane.b32.xlu0 %v12222_v2, %s16594_s0  ;;  %v1030_v31 = vrot.slane %v12374_v22, %v12517_v38 }
  0xad   :  { %684 = vmatpush1.bf16.msra.mxu1 %v615_v1  ;;  %v777_v36 = vpop.permute.xlu0 %776 }
  0xae   :  { %v768_v34 = vpop.permute.xlu1 %767  ;;  %v783_v37 = vsel %vm780_vm5, %v775_v29, %v777_v36  ;;  %v825_v39 = vpack.c.bf16 %v819_v32, %v819_v32  ;;  %v1034_v32 = vrot.slane %v12369_v19, %v12517_v38 }
  0xaf   :  { %v820_v0 = vmul.f32 %v808_v33, %v783_v37  ;;  %v12579_v33 = vld [vmem:[%s16691_s26] sm:$0xff]  ;;  %v12591_v37 = vld [vmem:[%s16691_s26 + $0x8] sm:$0xff] }
  0xb0   :  { %2586 = vrot.lane.b32.xlu1 %v12243_v6, %s16594_s0  ;;  %2578 = vrot.lane.b32.xlu0 %v12227_v3, %s16594_s0  ;;  %v841_v50 = vsel %vm243_vm1, %v825_v39, 0  ;;  %s16598_s0 = smov 8  }
  0xb1   :  { %11139 = vmatmul.mubr.msk.bf16.vlgmr.msra.gmra.mxu1 %vm239_vm2, %v604_v17  ;;  %v826_v42 = vpack.c.bf16 %v820_v0, %v820_v0  ;;  %11141 = vmatmul.mubr.msk.bf16.vlgmr.msra.gmra.mxu0 %vm239_vm2, %v604_v17  ;;  %v771_v44 = vpop.permute.xlu0 %770 }
  0xb2   :  { %v994_v43 = vpop.permute.xlu1 %993  ;;  %884 = vmatprep.mubr.bf16.mxu1 %v16601_v4  ;;  %v781_v45 = vsel %vm780_vm5, %v771_v44, %v773_v30  ;;  %v792_v46 = vsel %vm780_vm5, %v768_v34, %v771_v44  ;;  %927 = vmatprep.mubr.bf16.mxu0 %v16601_v4 }
  0xb3   :  { %v817_v48 = vmul.f32 %v796_v40, %v792_v46  ;;  %v818_v49 = vmul.f32 %v800_v41, %v781_v45  ;;  %11144 = vmatprep.subr.msk.bf16.mxu0 %vm243_vm1, %v826_v42  ;;  %v12601_v46 = vld [vmem:[%s16691_s26 + $0x10] sm:$0xff] }
  0xb4   :  { %2837 = vrot.lane.b32.xlu1 %v12248_v7, %s16588_s29  ;;  %2637 = vrot.lane.b32.xlu0 %v12248_v7, %s12071_s22  ;;  %s12073_s29 = smov 126   ;;  %s16701_s22 = smov 88  }
  0xb5   :  { %910 = vmatpush1.bf16.msra.mxu0 %v841_v50  ;;  %v823_v52 = vpack.c.bf16 %v817_v48, %v817_v48  ;;  %v824_v53 = vpack.c.bf16 %v818_v49, %v818_v49  ;;  %v997_v55 = vpop.permute.xlu0 %996 }
  0xb6   :  { %v999_v54 = vpop.permute.xlu1 %998  ;;  %v1018_v57 = vsel %vm1006_vm6, %v994_v43, %v997_v55 }
  0xb7   :  { %v1007_v56 = vsel %vm1006_vm6, %v997_v55, %v999_v54  ;;  %v1043_v59 = vmul.f32 %v1022_v47, %v1018_v57  ;;  %11142 = vmatprep.subr.msk.bf16.mxu1 %vm243_vm1, %v824_v53  ;;  %v835_v7 = vsel %vm243_vm1, %v823_v52, 0  ;;  %v12618_v55 = vld [vmem:[%s16692_s25] ss:$8 sps:$4 sm:$0xff]  }
  0xb8   :  { %v1044_v60 = vmul.f32 %v1026_v51, %v1007_v56  ;;  %3007 = vrot.lane.b32.xlu1 %v12222_v2, %s16629_s23  ;;  %3005 = vrot.lane.b32.xlu0 %v12238_v5, %s16629_s23  ;;  %v1042_v2 = vrot.slane %v12360_v16, %v12517_v38 }
  0xb9   :  { %867 = vmatpush1.bf16.msra.mxu1 %v835_v7  ;;  %v1049_v13 = vpack.c.bf16 %v1043_v59, %v1043_v59  ;;  %v779_v18 = vpop.permute.xlu0 %778 }
  0xba   :  { %v1050_v14 = vpack.c.bf16 %v1044_v60, %v1044_v60  ;;  %v830_v17 = vpop.permute.xlu1 %829  ;;  %v784_v20 = vsel %vm780_vm5, %v777_v36, %v779_v18  ;;  %v785_v21 = vsel %vm780_vm5, %v779_v18, %v768_v34  ;;  %v12586_v36 = vsub.s32 5, %v12329_v9 }
  0xbb   :  { %11145 = vmatmul.mubr.msk.bf16.vlgmr.msra.gmra.mxu0 %vm239_vm2, %v830_v17  ;;  %v821_v23 = vmul.f32 %v812_v58, %v784_v20  ;;  %v822_v24 = vmul.f32 %v816_v62, %v785_v21  ;;  %v1061_v5 = vsel %vm243_vm1, %v1049_v13, 0  ;;  %v12628_v58 = vld [vmem:[%s16691_s26 + $0x28] sm:$0xff]  ;;  %v12637_v13 = vsub.s32 6, %v12329_v9  ;;  %v12647_v20 = vld [vmem:[%s16691_s26 + $0x20] sm:$0xff] }
  0xbc   :  { %3001 = vrot.lane.b32.xlu1 %v12227_v3, %s16629_s23  ;;  %11143 = vmatmul.mubr.msk.bf16.vlgmr.msra.gmra.mxu1 %vm239_vm2, %v830_v17  ;;  %16698 = vst [vmem:[#allocation10_spill] sm:$0xff] %v12586_v36  ;;  %v1256_v48 = vrot.slane %v12374_v22, %v12586_v36  ;;  %v1260_v57 = vrot.slane %v12369_v19, %v12586_v36  ;;  %vm3918_vm5 = vcmask 916480  }
  0xbd   :  { %3009 = vrot.lane.b32.xlu0 %v12243_v6, %s16629_s23  ;;  %11148 = vmatprep.subr.msk.bf16.mxu0 %vm243_vm1, %v1050_v14  ;;  %v827_v26 = vpack.c.bf16 %v821_v23, %v821_v23  ;;  %v828_v27 = vpack.c.bf16 %v822_v24, %v822_v24  ;;  %v1003_v29 = vpop.permute.xlu0 %1002  ;;  %v1248_v62 = vrot.slane %v12346_v12, %v12586_v36 }
  0xbe   :  { %1093 = vmatpush1.bf16.msra.mxu0 %v1061_v5  ;;  %v1005_v28 = vpop.permute.xlu1 %1004  ;;  %1110 = vmatprep.mubr.bf16.mxu0 %v16601_v4  ;;  %16699 = vst [vmem:[#allocation11_spill] sm:$0xff] %v12637_v13  ;;  %v1252_v18 = vrot.slane %v12341_v11, %v12586_v36 }
  0xbf   :  { %v1011_v3 = vsel %vm1006_vm6, %v1005_v28, %v994_v43  ;;  %v1010_v30 = vsel %vm1006_vm6, %v1003_v29, %v1005_v28  ;;  %970 = vmatprep.mubr.bf16.mxu1 %v16601_v4  ;;  %11146 = vmatprep.subr.msk.bf16.mxu1 %vm243_vm1, %v828_v27  ;;  %v847_v34 = vsel %vm243_vm1, %v827_v26, 0 }
  0xc0   :  { %v1048_v6 = vmul.f32 %v1042_v2, %v1011_v3  ;;  %v1047_v1 = vmul.f32 %v1038_v25, %v1010_v30  ;;  %3227 = vrot.lane.b32.xlu1 %v12579_v33, %s12073_s29  ;;  %953 = vmatpush1.bf16.msra.mxu1 %v847_v34  ;;  %v1474_v25 = vrot.slane %v12346_v12, %v12637_v13  ;;  %v12666_v3 = vld [vmem:[%s16691_s26 + $0x18] sm:$0xff] }
  0xc1   :  { %3003 = vrot.lane.b32.xlu0 %v12591_v37, %s16629_s23  ;;  %v1001_v41 = vpop.permute.xlu0 %1000 }
  0xc2   :  { %v1054_v39 = vpack.c.bf16 %v1048_v6, %v1048_v6  ;;  %v1053_v0 = vpack.c.bf16 %v1047_v1, %v1047_v1  ;;  %v1056_v40 = vpop.permute.xlu1 %1055  ;;  %v1008_v42 = vsel %vm1006_vm6, %v999_v54, %v1001_v41  ;;  %v1009_v43 = vsel %vm1006_vm6, %v1001_v41, %v1003_v29 }
  0xc3   :  { %11149 = vmatmul.mubr.msk.bf16.vlgmr.msra.gmra.mxu0 %vm239_vm2, %v1056_v40  ;;  %v1045_v44 = vmul.f32 %v1030_v31, %v1008_v42  ;;  %v1046_v45 = vmul.f32 %v1034_v32, %v1009_v43  ;;  %v1478_v29 = vrot.slane %v12341_v11, %v12637_v13  ;;  %v1268_v42 = vrot.slane %v12360_v16, %v12586_v36 }
  0xc4   :  { %3231 = vrot.lane.b32.xlu1 %v12601_v46, %s12073_s29  ;;  %11147 = vmatmul.mubr.msk.bf16.vlgmr.msra.gmra.mxu1 %vm239_vm2, %v830_v17  ;;  %v1073_v47 = vsel %vm243_vm1, %v1053_v0, 0  ;;  %vm4144_vm6 = vcmask 908288  }
  0xc5   :  { %3229 = vrot.lane.b32.xlu0 %v12591_v37, %s12073_s29  ;;  %11152 = vmatprep.subr.msk.bf16.mxu0 %vm243_vm1, %v1054_v39  ;;  %v1051_v49 = vpack.c.bf16 %v1045_v44, %v1045_v44  ;;  %v1052_v50 = vpack.c.bf16 %v1046_v45, %v1046_v45  ;;  %v1225_v52 = vpop.permute.xlu0 %1224  ;;  %v1264_v39 = vrot.slane %v12355_v15, %v12586_v36 }
  0xc6   :  { %1179 = vmatpush1.bf16.msra.mxu0 %v1073_v47  ;;  %v1227_v51 = vpop.permute.xlu1 %1226  ;;  %1196 = vmatprep.mubr.bf16.mxu0 %v16601_v4 }
  0xc7   :  { %v1234_v53 = vsel %vm1232_vm7, %v1225_v52, %v1227_v51  ;;  %1153 = vmatprep.mubr.bf16.mxu1 %v16601_v4  ;;  %11150 = vmatprep.subr.msk.bf16.mxu1 %vm243_vm1, %v1052_v50  ;;  %v1067_v56 = vsel %vm243_vm1, %v1051_v49, 0  ;;  %v1494_v50 = vrot.slane %v12360_v16, %v12637_v13 }
  0xc8   :  { %v1271_v54 = vmul.f32 %v1256_v48, %v1234_v53  ;;  %3063 = vrot.lane.b32.xlu1 %v12618_v55, %s12074_s27  ;;  %1136 = vmatpush1.bf16.msra.mxu1 %v1067_v56  ;;  %s16662_s27 = smov 65  }
  0xc9   :  { %3011 = vrot.lane.b32.xlu0 %v12628_v58, %s16629_s23  ;;  %v1229_v60 = vpop.permute.xlu0 %1228 }
  0xca   :  { %v1220_v59 = vpop.permute.xlu1 %1219  ;;  %v1235_v7 = vsel %vm1232_vm7, %v1227_v51, %v1229_v60  ;;  %v1277_v14 = vpack.c.bf16 %v1271_v54, %v1271_v54  ;;  %v1490_v54 = vrot.slane %v12355_v15, %v12637_v13 }
  0xcb   :  { %11153 = vmatmul.mubr.msk.bf16.vlgmr.msra.gmra.mxu0 %vm239_vm2, %v1056_v40  ;;  %v1272_v17 = vmul.f32 %v1260_v57, %v1235_v7 }
  0xcc   :  { %3237 = vrot.lane.b32.xlu1 %v12628_v58, %s12073_s29  ;;  %11151 = vmatmul.mubr.msk.bf16.vlgmr.msra.gmra.mxu1 %vm239_vm2, %v1056_v40  ;;  %v1293_v28 = vsel %vm243_vm1, %v1277_v14, 0  ;;  %v1482_v14 = vrot.slane %v12374_v22, %v12637_v13 }
  0xcd   :  { %3235 = vrot.lane.b32.xlu0 %v12647_v20, %s12073_s29  ;;  %1379 = vmatprep.mubr.bf16.mxu0 %v16601_v4  ;;  %v1278_v21 = vpack.c.bf16 %v1272_v17, %v1272_v17  ;;  %v1223_v23 = vpop.permute.xlu0 %1222  ;;  %v1486_v17 = vrot.slane %v12369_v19, %v12637_v13 }
  0xce   :  { %v1446_v2 = vpop.permute.xlu1 %1445  ;;  %1336 = vmatprep.mubr.bf16.mxu1 %v16601_v4  ;;  %v1233_v24 = vsel %vm1232_vm7, %v1223_v23, %v1225_v52  ;;  %v1244_v5 = vsel %vm1232_vm7, %v1220_v59, %v1223_v23  ;;  %v12709_v23 = vsub.s32 7, %v12329_v9 }
  0xcf   :  { %v1269_v26 = vmul.f32 %v1248_v62, %v1244_v5  ;;  %v1270_v27 = vmul.f32 %v1252_v18, %v1233_v24  ;;  %11156 = vmatprep.subr.msk.bf16.mxu0 %vm243_vm1, %v1278_v21 }
  0xd0   :  { %3289 = vrot.lane.b32.xlu1 %v12618_v55, %s16625_s2  ;;  %1362 = vmatpush1.bf16.msra.mxu0 %v1293_v28  ;;  %16700 = vst [vmem:[#allocation12_spill] sm:$0xff] %v12709_v23 }
  0xd1   :  { %3233 = vrot.lane.b32.xlu0 %v12666_v3, %s12073_s29  ;;  %v1275_v30 = vpack.c.bf16 %v1269_v26, %v1269_v26  ;;  %v1276_v31 = vpack.c.bf16 %v1270_v27, %v1270_v27  ;;  %v1449_v6 = vpop.permute.xlu0 %1448  ;;  %s12076_s29 = smov 113  }
  0xd2   :  { %v1451_v32 = vpop.permute.xlu1 %1450  ;;  %v1470_v34 = vsel %vm1458_vm8, %v1446_v2, %v1449_v6 }
  0xd3   :  { %v1459_v1 = vsel %vm1458_vm8, %v1449_v6, %v1451_v32  ;;  %v1495_v0 = vmul.f32 %v1474_v25, %v1470_v34  ;;  %11154 = vmatprep.subr.msk.bf16.mxu1 %vm243_vm1, %v1276_v31  ;;  %v1287_v41 = vsel %vm243_vm1, %v1275_v30, 0  ;;  %v1708_v31 = vrot.slane %v12374_v22, %v12709_v23 }
  0xd4   :  { %v1496_v40 = vmul.f32 %v1478_v29, %v1459_v1  ;;  %3459 = vrot.lane.b32.xlu1 %v12666_v3, %s12075_s24  ;;  %1319 = vmatpush1.bf16.msra.mxu1 %v1287_v41 }
  0xd5   :  { %3457 = vrot.lane.b32.xlu0 %v12601_v46, %s12075_s24  ;;  %v1501_v43 = vpack.c.bf16 %v1495_v0, %v1495_v0  ;;  %v1231_v47 = vpop.permute.xlu0 %1230 }
  0xd6   :  { %v1502_v44 = vpack.c.bf16 %v1496_v40, %v1496_v40  ;;  %v1282_v45 = vpop.permute.xlu1 %1281  ;;  %v1236_v48 = vsel %vm1232_vm7, %v1229_v60, %v1231_v47  ;;  %v1237_v49 = vsel %vm1232_vm7, %v1231_v47, %v1220_v59  ;;  %v1712_v40 = vrot.slane %v12369_v19, %v12709_v23  ;;  %v12748_v47 = vld [vmem:[%s16560_s9 + $0x30] sm:$0xff] }
  0xd7   :  { %11157 = vmatmul.mubr.msk.bf16.vlgmr.msra.gmra.mxu0 %vm239_vm2, %v1282_v45  ;;  %v1273_v51 = vmul.f32 %v1264_v39, %v1236_v48  ;;  %v1274_v52 = vmul.f32 %v1268_v42, %v1237_v49  ;;  %11155 = vmatmul.mubr.msk.bf16.vlgmr.msra.gmra.mxu1 %vm239_vm2, %v1282_v45  ;;  %v1513_v53 = vsel %vm243_vm1, %v1501_v43, 0  ;;  %v1704_v19 = vrot.slane %v12341_v11, %v12709_v23 }
  0xd8   :  { %3453 = vrot.lane.b32.xlu1 %v12579_v33, %s12075_s24  ;;  %11160 = vmatprep.subr.msk.bf16.mxu0 %vm243_vm1, %v1502_v44  ;;  %vm4370_vm7 = vcmask 900096  }
  0xd9   :  { %3461 = vrot.lane.b32.xlu0 %v12647_v20, %s12075_s24  ;;  %v1279_v56 = vpack.c.bf16 %v1273_v51, %v1273_v51  ;;  %v1280_v57 = vpack.c.bf16 %v1274_v52, %v1274_v52  ;;  %1545 = vmatpush1.bf16.msra.mxu0 %v1513_v53  ;;  %v1455_v60 = vpop.permute.xlu0 %1454  ;;  %v1926_v52 = vrot.slane %v12748_v47, %v12391_v35 }
  0xda   :  { %v1457_v59 = vpop.permute.xlu1 %1456  ;;  %1562 = vmatprep.mubr.bf16.mxu0 %v16601_v4  ;;  %1422 = vmatprep.mubr.bf16.mxu1 %v16601_v4 }
  0xdb   :  { %v1463_v7 = vsel %vm1458_vm8, %v1457_v59, %v1446_v2  ;;  %v1462_v62 = vsel %vm1458_vm8, %v1455_v60, %v1457_v59  ;;  %11158 = vmatprep.subr.msk.bf16.mxu1 %vm243_vm1, %v1280_v57  ;;  %v1299_v2 = vsel %vm243_vm1, %v1279_v56, 0 }
  0xdc   :  { %v1500_v18 = vmul.f32 %v1494_v50, %v1463_v7  ;;  %v1499_v21 = vmul.f32 %v1490_v54, %v1462_v62  ;;  %3679 = vrot.lane.b32.xlu1 %v12579_v33, %s12076_s29  ;;  %1405 = vmatpush1.bf16.msra.mxu1 %v1299_v2 }
  0xdd   :  { %3455 = vrot.lane.b32.xlu0 %v12591_v37, %s12075_s24  ;;  %v1453_v26 = vpop.permute.xlu0 %1452 }
  0xde   :  { %v1506_v24 = vpack.c.bf16 %v1500_v18, %v1500_v18  ;;  %v1505_v5 = vpack.c.bf16 %v1499_v21, %v1499_v21  ;;  %v1508_v25 = vpop.permute.xlu1 %1507  ;;  %v1460_v27 = vsel %vm1458_vm8, %v1451_v32, %v1453_v26  ;;  %v1461_v28 = vsel %vm1458_vm8, %v1453_v26, %v1455_v60 }
  0xdf   :  { %11161 = vmatmul.mubr.msk.bf16.vlgmr.msra.gmra.mxu0 %vm239_vm2, %v1508_v25  ;;  %v1497_v29 = vmul.f32 %v1482_v14, %v1460_v27  ;;  %v1498_v30 = vmul.f32 %v1486_v17, %v1461_v28  ;;  %11159 = vmatmul.mubr.msk.bf16.vlgmr.msra.gmra.mxu1 %vm239_vm2, %v1282_v45  ;;  %v1716_v18 = vrot.slane %v12355_v15, %v12709_v23  ;;  %v12791_v15 = vld [vmem:[%s16560_s9 + $0x50] sm:$0xff] }
  0xe0   :  { %3683 = vrot.lane.b32.xlu1 %v12601_v46, %s12076_s29  ;;  %v1525_v9 = vsel %vm243_vm1, %v1505_v5, 0  ;;  %11164 = vmatprep.subr.msk.bf16.mxu0 %vm243_vm1, %v1506_v24  ;;  %v1720_v5 = vrot.slane %v12360_v16, %v12709_v23 }
  0xe1   :  { %3681 = vrot.lane.b32.xlu0 %v12591_v37, %s12076_s29  ;;  %v1503_v32 = vpack.c.bf16 %v1497_v29, %v1497_v29  ;;  %v1504_v6 = vpack.c.bf16 %v1498_v30, %v1498_v30  ;;  %1631 = vmatpush1.bf16.msra.mxu0 %v1525_v9  ;;  %v1677_v34 = vpop.permute.xlu0 %1676 }
  0xe2   :  { %v1679_v1 = vpop.permute.xlu1 %1678  ;;  %1648 = vmatprep.mubr.bf16.mxu0 %v16601_v4  ;;  %1605 = vmatprep.mubr.bf16.mxu1 %v16601_v4 }
  0xe3   :  { %v1686_v39 = vsel %vm1684_vm9, %v1677_v34, %v1679_v1  ;;  %11162 = vmatprep.subr.msk.bf16.mxu1 %vm243_vm1, %v1504_v6  ;;  %v1519_v22 = vsel %vm243_vm1, %v1503_v32, 0 }
  0xe4   :  { %v1723_v0 = vmul.f32 %v1708_v31, %v1686_v39  ;;  %3515 = vrot.lane.b32.xlu1 %v12618_v55, %s16598_s0  ;;  %1588 = vmatpush1.bf16.msra.mxu1 %v1519_v22  ;;  %v1700_v55 = vrot.slane %v12346_v12, %v12709_v23  ;;  %v12755_v12 = vld [vmem:[%s16560_s9 + $0x38] sm:$0xff]  ;;  %v12815_v39 = vld [vmem:[%s16560_s9 + $0x48] sm:$0xff]  ;;  %s16719_s0 = smov 17  }
  0xe5   :  { %3463 = vrot.lane.b32.xlu0 %v12628_v58, %s12075_s24  ;;  %v1681_v42 = vpop.permute.xlu0 %1680  ;;  %v1930_v57 = vrot.slane %v12755_v12, %v12391_v35  ;;  %s12080_s24 = smov 98  }
  0xe6   :  { %v1672_v41 = vpop.permute.xlu1 %1671  ;;  %v1687_v43 = vsel %vm1684_vm9, %v1679_v1, %v1681_v42  ;;  %v1729_v44 = vpack.c.bf16 %v1723_v0, %v1723_v0  ;;  %v1942_v1 = vrot.slane %v12791_v15, %v12391_v35 }
  0xe7   :  { %11165 = vmatmul.mubr.msk.bf16.vlgmr.msra.gmra.mxu0 %vm239_vm2, %v1508_v25  ;;  %v1724_v45 = vmul.f32 %v1712_v40, %v1687_v43  ;;  %11163 = vmatmul.mubr.msk.bf16.vlgmr.msra.gmra.mxu1 %vm239_vm2, %v1508_v25  ;;  %v12784_v25 = vld [vmem:[%s16560_s9 + $0x58] sm:$0xff] }
  0xe8   :  { %3689 = vrot.lane.b32.xlu1 %v12628_v58, %s12076_s29  ;;  %1831 = vmatprep.mubr.bf16.mxu0 %v16601_v4  ;;  %v1745_v56 = vsel %vm243_vm1, %v1729_v44, 0  ;;  %v1946_v9 = vrot.slane %v12784_v25, %v12391_v35 }
  0xe9   :  { %3687 = vrot.lane.b32.xlu0 %v12647_v20, %s12076_s29  ;;  %v1730_v48 = vpack.c.bf16 %v1724_v45, %v1724_v45  ;;  %v1675_v50 = vpop.permute.xlu0 %1674  ;;  %1788 = vmatprep.mubr.bf16.mxu1 %v16601_v4 }
  0xea   :  { %v1898_v49 = vpop.permute.xlu1 %1897  ;;  %v1685_v11 = vsel %vm1684_vm9, %v1675_v50, %v1677_v34  ;;  %v1696_v51 = vsel %vm1684_vm9, %v1672_v41, %v1675_v50  ;;  %v12807_v34 = vld [vmem:[%s16560_s9 + $0x40] sm:$0xff] }
  0xeb   :  { %v1721_v53 = vmul.f32 %v1700_v55, %v1696_v51  ;;  %v1722_v54 = vmul.f32 %v1704_v19, %v1685_v11  ;;  %11168 = vmatprep.subr.msk.bf16.mxu0 %vm243_vm1, %v1730_v48  ;;  %v1934_v55 = vrot.slane %v12807_v34, %v12391_v35  ;;  %v1938_v48 = vrot.slane %v12815_v39, %v12391_v35 }
  0xec   :  { %3910 = vrot.lane.b32.xlu1 %v12601_v46, %s16674_s28  ;;  %1814 = vmatpush1.bf16.msra.mxu0 %v1745_v56 }
  0xed   :  { %3685 = vrot.lane.b32.xlu0 %v12666_v3, %s12076_s29  ;;  %v1727_v59 = vpack.c.bf16 %v1721_v53, %v1721_v53  ;;  %v1728_v60 = vpack.c.bf16 %v1722_v54, %v1722_v54  ;;  %v1901_v62 = vpop.permute.xlu0 %1900 }
  0xee   :  { %v1903_v7 = vpop.permute.xlu1 %1902  ;;  %v1922_v17 = vsel %vm1910_vm10, %v1898_v49, %v1901_v62 }
  0xef   :  { %v1911_v14 = vsel %vm1910_vm10, %v1901_v62, %v1903_v7  ;;  %v1947_v21 = vmul.f32 %v1926_v52, %v1922_v17  ;;  %11166 = vmatprep.subr.msk.bf16.mxu1 %vm243_vm1, %v1728_v60  ;;  %v1739_v24 = vsel %vm243_vm1, %v1727_v59, 0  ;;  %v2160_v59 = vrot.slane %v12807_v34, %v12336_v10  ;;  %v12846_v60 = vld [vmem:[%s16692_s25 + $0x4] ss:$8 sps:$4 sm:$0xff]   ;;  %s12079_s25 = smov 110  }
  0xf0   :  { %v1948_v2 = vmul.f32 %v1930_v57, %v1911_v14  ;;  %3914 = vrot.lane.b32.xlu1 %v12647_v20, %s16674_s28  ;;  %1771 = vmatpush1.bf16.msra.mxu1 %v1739_v24  ;;  %v2164_v24 = vrot.slane %v12815_v39, %v12336_v10 }
  0xf1   :  { %3912 = vrot.lane.b32.xlu0 %v12666_v3, %s16674_s28  ;;  %v1953_v26 = vpack.c.bf16 %v1947_v21, %v1947_v21  ;;  %v1683_v29 = vpop.permute.xlu0 %1682 }
  0xf2   :  { %v1954_v27 = vpack.c.bf16 %v1948_v2, %v1948_v2  ;;  %v1734_v28 = vpop.permute.xlu1 %1733  ;;  %v1688_v16 = vsel %vm1684_vm9, %v1681_v42, %v1683_v29  ;;  %v1689_v30 = vsel %vm1684_vm9, %v1683_v29, %v1672_v41 }
  0xf3   :  { %11169 = vmatmul.mubr.msk.bf16.vlgmr.msra.gmra.mxu0 %vm239_vm2, %v1734_v28  ;;  %v1725_v31 = vmul.f32 %v1716_v18, %v1688_v16  ;;  %v1726_v32 = vmul.f32 %v1720_v5, %v1689_v30  ;;  %11167 = vmatmul.mubr.msk.bf16.vlgmr.msra.gmra.mxu1 %vm239_vm2, %v1734_v28  ;;  %v1965_v6 = vsel %vm243_vm1, %v1953_v26, 0  ;;  %v2156_v30 = vrot.slane %v12755_v12, %v12336_v10 }
  0xf4   :  { %3908 = vrot.lane.b32.xlu1 %v12591_v37, %s16674_s28  ;;  %11172 = vmatprep.subr.msk.bf16.mxu0 %vm243_vm1, %v1954_v27 }
  0xf5   :  { %3906 = vrot.lane.b32.xlu0 %v12579_v33, %s16674_s28  ;;  %v1731_v0 = vpack.c.bf16 %v1725_v31, %v1725_v31  ;;  %v1732_v22 = vpack.c.bf16 %v1726_v32, %v1726_v32  ;;  %1997 = vmatpush1.bf16.msra.mxu0 %v1965_v6  ;;  %v1907_v41 = vpop.permute.xlu0 %1906 }
  0xf6   :  { %v1909_v40 = vpop.permute.xlu1 %1908  ;;  %2014 = vmatprep.mubr.bf16.mxu0 %v16601_v4  ;;  %1874 = vmatprep.mubr.bf16.mxu1 %v16601_v4 }
  0xf7   :  { %v1915_v42 = vsel %vm1910_vm10, %v1909_v40, %v1898_v49  ;;  %v1914_v43 = vsel %vm1910_vm10, %v1907_v41, %v1909_v40  ;;  %11170 = vmatprep.subr.msk.bf16.mxu1 %vm243_vm1, %v1732_v22  ;;  %v1751_v19 = vsel %vm243_vm1, %v1731_v0, 0  ;;  %v2378_v0 = vrot.slane %v12748_v47, %v12429_v63 }
  0xf8   :  { %v1952_v44 = vmul.f32 %v1946_v9, %v1915_v42  ;;  %v1951_v45 = vmul.f32 %v1942_v1, %v1914_v43  ;;  %4134 = vrot.lane.b32.xlu1 %v12591_v37, %s12078_s1  ;;  %1857 = vmatpush1.bf16.msra.mxu1 %v1751_v19  ;;  %v2382_v42 = vrot.slane %v12755_v12, %v12429_v63 }
  0xf9   :  { %4132 = vrot.lane.b32.xlu0 %v12579_v33, %s12078_s1  ;;  %v1905_v51 = vpop.permute.xlu0 %1904 }
  0xfa   :  { %v1958_v49 = vpack.c.bf16 %v1952_v44, %v1952_v44  ;;  %v1957_v50 = vpack.c.bf16 %v1951_v45, %v1951_v45  ;;  %v1960_v11 = vpop.permute.xlu1 %1959  ;;  %v1912_v52 = vsel %vm1910_vm10, %v1903_v7, %v1905_v51  ;;  %v1913_v53 = vsel %vm1910_vm10, %v1905_v51, %v1907_v41 }
  0xfb   :  { %11173 = vmatmul.mubr.msk.bf16.vlgmr.msra.gmra.mxu0 %vm239_vm2, %v1960_v11  ;;  %v1949_v54 = vmul.f32 %v1934_v55, %v1912_v52  ;;  %v1950_v56 = vmul.f32 %v1938_v48, %v1913_v53  ;;  %11171 = vmatmul.mubr.msk.bf16.vlgmr.msra.gmra.mxu1 %vm239_vm2, %v1734_v28  ;;  %v2152_v28 = vrot.slane %v12748_v47, %v12336_v10 }
  0xfc   :  { %3916 = vrot.lane.b32.xlu1 %v12628_v58, %s16674_s28  ;;  %v1977_v57 = vsel %vm243_vm1, %v1957_v50, 0  ;;  %11176 = vmatprep.subr.msk.bf16.mxu0 %vm243_vm1, %v1958_v49  ;;  %v2168_v49 = vrot.slane %v12791_v15, %v12336_v10  ;;  %v2172_v52 = vrot.slane %v12784_v25, %v12336_v10 }
  0xfd   :  { %4136 = vrot.lane.b32.xlu0 %v12601_v46, %s12078_s1  ;;  %v1955_v7 = vpack.c.bf16 %v1949_v54, %v1949_v54  ;;  %v1956_v62 = vpack.c.bf16 %v1950_v56, %v1950_v56  ;;  %2083 = vmatpush1.bf16.msra.mxu0 %v1977_v57  ;;  %v2129_v17 = vpop.permute.xlu0 %2128 }
  0xfe   :  { %v2131_v14 = vpop.permute.xlu1 %2130  ;;  %2100 = vmatprep.mubr.bf16.mxu0 %v16601_v4  ;;  %2057 = vmatprep.mubr.bf16.mxu1 %v16601_v4 }
  0xff   :  { %v2138_v18 = vsel %vm2136_vm11, %v2129_v17, %v2131_v14  ;;  %11174 = vmatprep.subr.msk.bf16.mxu1 %vm243_vm1, %v1956_v62  ;;  %v1971_v21 = vsel %vm243_vm1, %v1955_v7, 0  ;;  %v2398_v62 = vrot.slane %v12784_v25, %v12429_v63 }
 0x100   :  { %4140 = vrot.lane.b32.xlu1 %v12647_v20, %s12078_s1  ;;  %v2175_v2 = vmul.f32 %v2160_v59, %v2138_v18  ;;  %2040 = vmatpush1.bf16.msra.mxu1 %v1971_v21  ;;  %v2394_v21 = vrot.slane %v12791_v15, %v12429_v63 }
 0x101   :  { %3968 = vrot.lane.b32.xlu0 %v12846_v60, %s16596_s3  ;;  %v2133_v26 = vpop.permute.xlu0 %2132  ;;  %s12083_s3 = smov 94  }
 0x102   :  { %v2124_v5 = vpop.permute.xlu1 %2123  ;;  %v2139_v27 = vsel %vm2136_vm11, %v2131_v14, %v2133_v26  ;;  %v2181_v29 = vpack.c.bf16 %v2175_v2, %v2175_v2 }
 0x103   :  { %11177 = vmatmul.mubr.msk.bf16.vlgmr.msra.gmra.mxu0 %vm239_vm2, %v1960_v11  ;;  %11175 = vmatmul.mubr.msk.bf16.vlgmr.msra.gmra.mxu1 %vm239_vm2, %v1960_v11  ;;  %v2176_v16 = vmul.f32 %v2164_v24, %v2139_v27 }
 0x104   :  { %4138 = vrot.lane.b32.xlu1 %v12666_v3, %s12078_s1  ;;  %2283 = vmatprep.mubr.bf16.mxu0 %v16601_v4  ;;  %v2197_v41 = vsel %vm243_vm1, %v2181_v29, 0 }
 0x105   :  { %4142 = vrot.lane.b32.xlu0 %v12628_v58, %s12078_s1  ;;  %2240 = vmatprep.mubr.bf16.mxu1 %v16601_v4  ;;  %v2182_v31 = vpack.c.bf16 %v2176_v16, %v2176_v16  ;;  %v2127_v32 = vpop.permute.xlu0 %2126 }
 0x106   :  { %v2350_v9 = vpop.permute.xlu1 %2349  ;;  %v2137_v6 = vsel %vm2136_vm11, %v2127_v32, %v2129_v17  ;;  %v2148_v1 = vsel %vm2136_vm11, %v2124_v5, %v2127_v32 }
 0x107   :  { %v2173_v22 = vmul.f32 %v2152_v28, %v2148_v1  ;;  %v2174_v40 = vmul.f32 %v2156_v30, %v2137_v6  ;;  %11180 = vmatprep.subr.msk.bf16.mxu0 %vm243_vm1, %v2182_v31  ;;  %v2386_v31 = vrot.slane %v12807_v34, %v12429_v63 }
 0x108   :  { %4362 = vrot.lane.b32.xlu1 %v12601_v46, %s12079_s25  ;;  %2266 = vmatpush1.bf16.msra.mxu0 %v2197_v41 }
 0x109   :  { %4194 = vrot.lane.b32.xlu0 %v12846_v60, %s16674_s28  ;;  %v2179_v55 = vpack.c.bf16 %v2173_v22, %v2173_v22  ;;  %v2180_v44 = vpack.c.bf16 %v2174_v40, %v2174_v40  ;;  %v2353_v45 = vpop.permute.xlu0 %2352 }
 0x10a   :  { %v2355_v43 = vpop.permute.xlu1 %2354  ;;  %v2374_v48 = vsel %vm2362_vm12, %v2350_v9, %v2353_v45 }
 0x10b   :  { %v2363_v19 = vsel %vm2362_vm12, %v2353_v45, %v2355_v43  ;;  %v2399_v50 = vmul.f32 %v2378_v0, %v2374_v48  ;;  %11178 = vmatprep.subr.msk.bf16.mxu1 %vm243_vm1, %v2180_v44  ;;  %v2191_v51 = vsel %vm243_vm1, %v2179_v55, 0  ;;  %v2808_v45 = vrot.slane %v12755_v12, %v12517_v38 }
 0x10c   :  { %4366 = vrot.lane.b32.xlu1 %v12647_v20, %s12079_s25  ;;  %v2400_v11 = vmul.f32 %v2382_v42, %v2363_v19  ;;  %2223 = vmatpush1.bf16.msra.mxu1 %v2191_v51  ;;  %v2804_v19 = vrot.slane %v12748_v47, %v12517_v38 }
 0x10d   :  { %4364 = vrot.lane.b32.xlu0 %v12666_v3, %s12079_s25  ;;  %v2405_v54 = vpack.c.bf16 %v2399_v50, %v2399_v50  ;;  %v2135_v57 = vpop.permute.xlu0 %2134 }
 0x10e   :  { %v2186_v53 = vpop.permute.xlu1 %2185  ;;  %v2406_v56 = vpack.c.bf16 %v2400_v11, %v2400_v11  ;;  %v2140_v59 = vsel %vm2136_vm11, %v2133_v26, %v2135_v57  ;;  %v2141_v7 = vsel %vm2136_vm11, %v2135_v57, %v2124_v5  ;;  %v2825_v57 = vmul.f32 %v12579_v33, %v2804_v19 }
 0x10f   :  { %11181 = vmatmul.mubr.msk.bf16.vlgmr.msra.gmra.mxu0 %vm239_vm2, %v2186_v53  ;;  %v2177_v14 = vmul.f32 %v2168_v49, %v2140_v59  ;;  %v2178_v17 = vmul.f32 %v2172_v52, %v2141_v7  ;;  %11179 = vmatmul.mubr.msk.bf16.vlgmr.msra.gmra.mxu1 %vm239_vm2, %v2186_v53  ;;  %v2417_v18 = vsel %vm243_vm1, %v2405_v54, 0  ;;  %v2620_v7 = vrot.slane %v12791_v15, %v12485_v61 }
 0x110   :  { %4360 = vrot.lane.b32.xlu1 %v12591_v37, %s12079_s25  ;;  %2466 = vmatprep.mubr.bf16.mxu0 %v16601_v4  ;;  %vm4596_vm11 = vcmask 801792  }
 0x111   :  { %4358 = vrot.lane.b32.xlu0 %v12579_v33, %s12079_s25  ;;  %11184 = vmatprep.subr.msk.bf16.mxu0 %vm243_vm1, %v2406_v56  ;;  %v2183_v24 = vpack.c.bf16 %v2177_v14, %v2177_v14  ;;  %v2184_v5 = vpack.c.bf16 %v2178_v17, %v2178_v17  ;;  %v2359_v27 = vpop.permute.xlu0 %2358  ;;  %v2826_v56 = vmul.f32 %v12591_v37, %v2808_v45 }
 0x112   :  { %v2361_v2 = vpop.permute.xlu1 %2360  ;;  %2326 = vmatprep.mubr.bf16.mxu1 %v16601_v4  ;;  %2449 = vmatpush1.bf16.msra.mxu0 %v2417_v18  ;;  %v2624_v14 = vrot.slane %v12784_v25, %v12485_v61  ;;  %v2604_v17 = vrot.slane %v12748_v47, %v12485_v61 }
 0x113   :  { %v2367_v26 = vsel %vm2362_vm12, %v2361_v2, %v2350_v9  ;;  %v2366_v29 = vsel %vm2362_vm12, %v2359_v27, %v2361_v2  ;;  %11182 = vmatprep.subr.msk.bf16.mxu1 %vm243_vm1, %v2184_v5  ;;  %v2203_v30 = vsel %vm243_vm1, %v2183_v24, 0  ;;  %v2390_v9 = vrot.slane %v12815_v39, %v12429_v63 }
 0x114   :  { %v2404_v28 = vmul.f32 %v2398_v62, %v2367_v26  ;;  %4586 = vrot.lane.b32.xlu1 %v12591_v37, %s12080_s24  ;;  %v2403_v16 = vmul.f32 %v2394_v21, %v2366_v29  ;;  %2309 = vmatpush1.bf16.msra.mxu1 %v2203_v30  ;;  %v2608_v2 = vrot.slane %v12755_v12, %v12485_v61 }
 0x115   :  { %4584 = vrot.lane.b32.xlu0 %v12579_v33, %s12080_s24  ;;  %v2357_v0 = vpop.permute.xlu0 %2356  ;;  %v2832_v5 = vpack.c.bf16 %v2826_v56, %v2826_v56  ;;  %v2831_v26 = vpack.c.bf16 %v2825_v57, %v2825_v57 }
 0x116   :  { %v2410_v32 = vpack.c.bf16 %v2404_v28, %v2404_v28  ;;  %v2412_v6 = vpop.permute.xlu1 %2411  ;;  %v2409_v1 = vpack.c.bf16 %v2403_v16, %v2403_v16  ;;  %v2364_v22 = vsel %vm2362_vm12, %v2355_v43, %v2357_v0  ;;  %v2365_v40 = vsel %vm2362_vm12, %v2357_v0, %v2359_v27 }
 0x117   :  { %11185 = vmatmul.mubr.msk.bf16.vlgmr.msra.gmra.mxu0 %vm239_vm2, %v2412_v6  ;;  %v2401_v41 = vmul.f32 %v2386_v31, %v2364_v22  ;;  %v2402_v42 = vmul.f32 %v2390_v9, %v2365_v40  ;;  %11183 = vmatmul.mubr.msk.bf16.vlgmr.msra.gmra.mxu1 %vm239_vm2, %v2186_v53  ;;  %v2612_v43 = vrot.slane %v12807_v34, %v12485_v61  ;;  %vm4822_vm12 = vcmask 793600  }
 0x118   :  { %4368 = vrot.lane.b32.xlu1 %v12628_v58, %s12079_s25  ;;  %11188 = vmatprep.subr.msk.bf16.mxu0 %vm243_vm1, %v2410_v32  ;;  %v2429_v55 = vsel %vm243_vm1, %v2409_v1, 0  ;;  %v2616_v53 = vrot.slane %v12815_v39, %v12485_v61  ;;  %v2824_v27 = vrot.slane %v12784_v25, %v12517_v38  ;;  %v2816_v31 = vrot.slane %v12815_v39, %v12517_v38  ;;  %s16703_s25 = smov 72  }
 0x119   :  { %4588 = vrot.lane.b32.xlu0 %v12601_v46, %s12080_s24  ;;  %2535 = vmatpush1.bf16.msra.mxu0 %v2429_v55  ;;  %v2407_v48 = vpack.c.bf16 %v2401_v41, %v2401_v41  ;;  %v2408_v49 = vpack.c.bf16 %v2402_v42, %v2402_v42  ;;  %v2581_v50 = vpop.permute.xlu0 %2580  ;;  %v2820_v1 = vrot.slane %v12791_v15, %v12517_v38 }
 0x11a   :  { %v2583_v44 = vpop.permute.xlu1 %2582  ;;  %2552 = vmatprep.mubr.bf16.mxu0 %v16601_v4  ;;  %2509 = vmatprep.mubr.bf16.mxu1 %v16601_v4  ;;  %v2830_v55 = vmul.f32 %v12628_v58, %v2824_v27  ;;  %v2828_v19 = vmul.f32 %v12666_v3, %v2816_v31 }
 0x11b   :  { %v2590_v11 = vsel %vm2588_vm13, %v2581_v50, %v2583_v44  ;;  %11186 = vmatprep.subr.msk.bf16.mxu1 %vm243_vm1, %v2408_v49  ;;  %v2423_v52 = vsel %vm243_vm1, %v2407_v48, 0  ;;  %v2812_v48 = vrot.slane %v12807_v34, %v12517_v38  ;;  %v2843_v49 = vsel %vm243_vm1, %v2831_v26, 0 }
 0x11c   :  { %4592 = vrot.lane.b32.xlu1 %v12647_v20, %s12080_s24  ;;  %v2627_v51 = vmul.f32 %v2612_v43, %v2590_v11  ;;  %2492 = vmatpush1.bf16.msra.mxu1 %v2423_v52  ;;  %v2834_v57 = vpack.c.bf16 %v2828_v19, %v2828_v19 }
 0x11d   :  { %4420 = vrot.lane.b32.xlu0 %v12846_v60, %s12056_s30  ;;  %s12081_s30 = smov 97  }
 0x11e   :  { %v2576_v54 = vpop.permute.xlu1 %2575  ;;  %v2585_v59 = vpop.permute.xlu0 %2584  ;;  %v2633_v18 = vpack.c.bf16 %v2627_v51, %v2627_v51 }
 0x11f   :  { %11189 = vmatmul.mubr.msk.bf16.vlgmr.msra.gmra.mxu0 %vm239_vm2, %v2412_v6  ;;  %v2591_v62 = vsel %vm2588_vm13, %v2583_v44, %v2585_v59  ;;  %11187 = vmatmul.mubr.msk.bf16.vlgmr.msra.gmra.mxu1 %vm239_vm2, %v2412_v6 }
 0x120   :  { %4590 = vrot.lane.b32.xlu1 %v12666_v3, %s12080_s24  ;;  %2735 = vmatprep.mubr.bf16.mxu0 %v16601_v4  ;;  %v2628_v21 = vmul.f32 %v2616_v53, %v2591_v62  ;;  %v2649_v41 = vsel %vm243_vm1, %v2633_v18, 0 }
 0x121   :  { %4594 = vrot.lane.b32.xlu0 %v12628_v58, %s12080_s24  ;;  %2692 = vmatprep.mubr.bf16.mxu1 %v16601_v4  ;;  %s12082_s24 = smov 95  }
 0x122   :  { %v2587_v24 = vpop.permute.xlu1 %2586  ;;  %v2634_v28 = vpack.c.bf16 %v2628_v21, %v2628_v21  ;;  %v2579_v30 = vpop.permute.xlu0 %2578 }
 0x123   :  { %v2592_v29 = vsel %vm2588_vm13, %v2585_v59, %v2587_v24  ;;  %v2593_v16 = vsel %vm2588_vm13, %v2587_v24, %v2576_v54  ;;  %v2589_v32 = vsel %vm2588_vm13, %v2579_v30, %v2581_v50  ;;  %v2600_v6 = vsel %vm2588_vm13, %v2576_v54, %v2579_v30 }
 0x124   :  { %v2629_v9 = vmul.f32 %v2620_v7, %v2592_v29  ;;  %4814 = vrot.lane.b32.xlu1 %v12601_v46, %s12081_s30  ;;  %v2630_v0 = vmul.f32 %v2624_v14, %v2593_v16  ;;  %v2625_v22 = vmul.f32 %v2604_v17, %v2600_v6  ;;  %v2626_v40 = vmul.f32 %v2608_v2, %v2589_v32 }
 0x125   :  { %4646 = vrot.lane.b32.xlu0 %v12846_v60, %s16627_s5  ;;  %11192 = vmatprep.subr.msk.bf16.mxu0 %vm243_vm1, %v2634_v28  ;;  %v2829_v50 = vmul.f32 %v12647_v20, %v2820_v1  ;;  %v2836_v54 = vpack.c.bf16 %v2830_v55, %v2830_v55  ;;  %v2827_v59 = vmul.f32 %v12601_v46, %v2812_v48 }
 0x126   :  { %2718 = vmatpush1.bf16.msra.mxu0 %v2649_v41  ;;  %v12986_v42 = vpop.permute.xlu1 %2837  ;;  %v2631_v43 = vpack.c.bf16 %v2625_v22, %v2625_v22  ;;  %v2632_v44 = vpack.c.bf16 %v2626_v40, %v2626_v40  ;;  %v2638_v45 = vpop.permute.xlu0 %2637  ;;  %v2635_v11 = vpack.c.bf16 %v2629_v9, %v2629_v9  ;;  %v2636_v51 = vpack.c.bf16 %v2630_v0, %v2630_v0 }
 0x127   :  { %11196 = vmatprep.subr.msk.bf16.mxu0 %vm243_vm1, %v2832_v5  ;;  %v2835_v7 = vpack.c.bf16 %v2829_v50, %v2829_v50  ;;  %v3042_v14 = vrot.slane %v12815_v39, %v12586_v36  ;;  %v3038_v17 = vrot.slane %v12807_v34, %v12586_v36  ;;  %v2833_v24 = vpack.c.bf16 %v2827_v59, %v2827_v59 }
 0x128   :  { %4818 = vrot.lane.b32.xlu1 %v12647_v20, %s12081_s30  ;;  %11190 = vmatprep.subr.msk.bf16.mxu1 %vm243_vm1, %v2632_v44  ;;  %v2643_v52 = vsel %vm243_vm1, %v2631_v43, 0  ;;  %v2655_v62 = vsel %vm243_vm1, %v2635_v11, 0  ;;  %v3030_v28 = vrot.slane %v12748_v47, %v12586_v36  ;;  %v3034_v29 = vrot.slane %v12755_v12, %v12586_v36 }
 0x129   :  { %4816 = vrot.lane.b32.xlu0 %v12666_v3, %s12081_s30  ;;  %11193 = vmatmul.mubr.msk.bf16.vlgmr.msra.gmra.mxu0 %vm239_vm2, %v2638_v45  ;;  %v2855_v26 = vsel %vm243_vm1, %v2835_v7, 0  ;;  %v3260_v0 = vrot.slane %v12755_v12, %v12637_v13  ;;  %v3256_v41 = vrot.slane %v12748_v47, %v12637_v13 }
 0x12a   :  { %2675 = vmatpush1.bf16.msra.mxu1 %v2643_v52  ;;  %v3008_v53 = vpop.permute.xlu1 %3007  ;;  %v3006_v56 = vpop.permute.xlu0 %3005  ;;  %2875 = vmatpush1.bf16.msra.mxu0 %v2843_v49  ;;  %v3050_v49 = vrot.slane %v12784_v25, %v12586_v36 }
 0x12b   :  { %11194 = vmatprep.subr.msk.bf16.mxu1 %vm243_vm1, %v2636_v51  ;;  %2892 = vmatprep.mubr.bf16.mxu0 %v16601_v4  ;;  %v3016_v21 = vsel %vm3013_vm14, %v3006_v56, %v3008_v53 }
 0x12c   :  { %4812 = vrot.lane.b32.xlu1 %v12591_v37, %s12081_s30  ;;  %11200 = vmatprep.subr.msk.bf16.mxu0 %vm243_vm1, %v2836_v54  ;;  %v3053_v16 = vmul.f32 %v3038_v17, %v3016_v21 }
 0x12d   :  { %4810 = vrot.lane.b32.xlu0 %v12579_v33, %s12081_s30  ;;  %11191 = vmatmul.mubr.msk.bf16.vlgmr.msra.gmra.mxu1 %vm239_vm2, %v2638_v45 }
 0x12e   :  { %2761 = vmatpush1.bf16.msra.mxu1 %v2655_v62  ;;  %v3002_v18 = vpop.permute.xlu1 %3001  ;;  %2778 = vmatprep.mubr.bf16.mxu1 %v16601_v4  ;;  %v3059_v22 = vpack.c.bf16 %v3053_v16, %v3053_v16 }
 0x12f   :  { %v3010_v2 = vpop.permute.xlu0 %3009  ;;  %11198 = vmatprep.subr.msk.bf16.mxu1 %vm243_vm1, %v2834_v57  ;;  %v3276_v57 = vrot.slane %v12784_v25, %v12637_v13 }
 0x130   :  { %v3017_v5 = vsel %vm3013_vm14, %v3008_v53, %v3010_v2  ;;  %5038 = vrot.lane.b32.xlu1 %v12591_v37, %s16627_s5  ;;  %v2849_v37 = vsel %vm243_vm1, %v2833_v24, 0  ;;  %v3075_v11 = vsel %vm243_vm1, %v3059_v22, 0 }
 0x131   :  { %v3054_v27 = vmul.f32 %v3042_v14, %v3017_v5  ;;  %5036 = vrot.lane.b32.xlu0 %v12579_v33, %s16627_s5  ;;  %11197 = vmatmul.mubr.msk.bf16.vlgmr.msra.gmra.mxu0 %vm239_vm2, %v12986_v42 }
 0x132   :  { %v3228_v30 = vpop.permute.xlu1 %3227  ;;  %2961 = vmatpush1.bf16.msra.mxu0 %v2855_v26  ;;  %2978 = vmatprep.mubr.bf16.mxu0 %v16601_v4 }
 0x133   :  { %v3060_v31 = vpack.c.bf16 %v3054_v27, %v3054_v27  ;;  %v3004_v9 = vpop.permute.xlu0 %3003  ;;  %v3264_v27 = vrot.slane %v12807_v34, %v12637_v13 }
 0x134   :  { %v3014_v33 = vsel %vm3013_vm14, %v3002_v18, %v3004_v9  ;;  %v3015_v32 = vsel %vm3013_vm14, %v3004_v9, %v3006_v56  ;;  %4820 = vrot.lane.b32.xlu1 %v12628_v58, %s12081_s30  ;;  %s16702_s30 = smov 80  }
 0x135   :  { %v3051_v6 = vmul.f32 %v3030_v28, %v3014_v33  ;;  %v3052_v1 = vmul.f32 %v3034_v29, %v3015_v32  ;;  %5040 = vrot.lane.b32.xlu0 %v12601_v46, %s16627_s5  ;;  %11195 = vmatmul.mubr.msk.bf16.vlgmr.msra.gmra.mxu1 %vm239_vm2, %v2638_v45  ;;  %v3046_v45 = vrot.slane %v12791_v15, %v12586_v36 }
 0x136   :  { %11204 = vmatprep.subr.msk.bf16.mxu0 %vm243_vm1, %v3060_v31  ;;  %v3232_v40 = vpop.permute.xlu1 %3231  ;;  %2918 = vmatpush1.bf16.msra.mxu1 %v2849_v37  ;;  %v3268_v28 = vrot.slane %v12815_v39, %v12637_v13 }
 0x137   :  { %v3058_v55 = vpack.c.bf16 %v3052_v1, %v3052_v1  ;;  %v3230_v43 = vpop.permute.xlu0 %3229  ;;  %2935 = vmatprep.mubr.bf16.mxu1 %v16601_v4  ;;  %v3057_v19 = vpack.c.bf16 %v3051_v6, %v3051_v6 }
 0x138   :  { %v3240_v46 = vsel %vm3239_vm15, %v3228_v30, %v3230_v43  ;;  %v3241_v44 = vsel %vm3239_vm15, %v3230_v43, %v3232_v40  ;;  %5044 = vrot.lane.b32.xlu1 %v12647_v20, %s16627_s5 }
 0x139   :  { %v3278_v48 = vmul.f32 %v3260_v0, %v3241_v44  ;;  %4872 = vrot.lane.b32.xlu0 %v12846_v60, %s16701_s22  ;;  %11202 = vmatprep.subr.msk.bf16.mxu1 %vm243_vm1, %v3058_v55  ;;  %v3277_v50 = vmul.f32 %v3256_v41, %v3240_v46  ;;  %v3069_v62 = vsel %vm243_vm1, %v3057_v19, 0  ;;  %v12017_v46 = vld [vmem:[%s16691_s26] sm:$0xff]  ;;  %s16737_s22 = smov 48  }
 0x13a   :  { %11201 = vmatmul.mubr.msk.bf16.vlgmr.msra.gmra.mxu0 %vm239_vm2, %v12986_v42  ;;  %v13060_v51 = vpop.permute.xlu1 %3063 }
 0x13b   :  { %v3284_v52 = vpack.c.bf16 %v3278_v48, %v3278_v48  ;;  %3144 = vmatpush1.bf16.msra.mxu0 %v3075_v11  ;;  %v3012_v53 = vpop.permute.xlu0 %3011  ;;  %3161 = vmatprep.mubr.bf16.mxu0 %v16601_v4  ;;  %v3283_v14 = vpack.c.bf16 %v3277_v50, %v3277_v50  ;;  %v3482_v11 = vrot.slane %v12748_v47, %v12709_v23 }
 0x13c   :  { %v3018_v54 = vsel %vm3013_vm14, %v3010_v2, %v3012_v53  ;;  %v3026_v56 = vsel %vm3013_vm14, %v3012_v53, %v3002_v18  ;;  %5042 = vrot.lane.b32.xlu1 %v12666_v3, %s16627_s5  ;;  %v3272_v18 = vrot.slane %v12791_v15, %v12637_v13  ;;  %v13147_v53 = vld [vmem:[%s16560_s9 + $0x60] sm:$0xff] }
 0x13d   :  { %v3055_v59 = vmul.f32 %v3046_v45, %v3018_v54  ;;  %v3056_v7 = vmul.f32 %v3050_v49, %v3026_v56  ;;  %5046 = vrot.lane.b32.xlu0 %v12628_v58, %s16627_s5  ;;  %11199 = vmatmul.mubr.msk.bf16.vlgmr.msra.gmra.mxu1 %vm239_vm2, %v12986_v42  ;;  %v13083_v42 = vld [vmem:[%s16691_s26 + $0x10] sm:$0xff] }
 0x13e   :  { %3101 = vmatpush1.bf16.msra.mxu1 %v3069_v62  ;;  %11208 = vmatprep.subr.msk.bf16.mxu0 %vm243_vm1, %v3284_v52  ;;  %v3238_v17 = vpop.permute.xlu1 %3237  ;;  %v3486_v52 = vrot.slane %v12755_v12, %v12709_v23  ;;  %v3708_v62 = vrot.slane %v13147_v53, %v12391_v35 }
 0x13f   :  { %v3062_v21 = vpack.c.bf16 %v3056_v7, %v3056_v7  ;;  %v3252_v2 = vsel %vm3239_vm15, %v3238_v17, %v3228_v30  ;;  %v3236_v24 = vpop.permute.xlu0 %3235  ;;  %3118 = vmatprep.mubr.bf16.mxu1 %v16601_v4  ;;  %v3061_v26 = vpack.c.bf16 %v3055_v59, %v3055_v59  ;;  %v3295_v30 = vsel %vm243_vm1, %v3283_v14, 0  ;;  %v12018_v7 = vld [vmem:[%s16691_s26 + $0x28] sm:$0xff] }
 0x140   :  { %v3282_v58 = vmul.f32 %v3276_v57, %v3252_v2  ;;  %v3244_v5 = vsel %vm3239_vm15, %v3236_v24, %v3238_v17  ;;  %5266 = vrot.lane.b32.xlu1 %v13083_v42, %s12082_s24 }
 0x141   :  { %5098 = vrot.lane.b32.xlu0 %v12846_v60, %s16702_s30  ;;  %11206 = vmatprep.subr.msk.bf16.mxu1 %vm243_vm1, %v3062_v21  ;;  %v3281_v16 = vmul.f32 %v3272_v18, %v3244_v5  ;;  %v3081_v1 = vsel %vm243_vm1, %v3061_v26, 0 }
 0x142   :  { %v3288_v29 = vpack.c.bf16 %v3282_v58, %v3282_v58  ;;  %11205 = vmatmul.mubr.msk.bf16.vlgmr.msra.gmra.mxu0 %vm239_vm2, %v13060_v51  ;;  %v13097_v31 = vpop.permute.xlu1 %3289 }
 0x143   :  { %3327 = vmatpush1.bf16.msra.mxu0 %v3295_v30  ;;  %v3234_v9 = vpop.permute.xlu0 %3233  ;;  %3344 = vmatprep.mubr.bf16.mxu0 %v16601_v4  ;;  %v3287_v0 = vpack.c.bf16 %v3281_v16, %v3281_v16 }
 0x144   :  { %v3242_v37 = vsel %vm3239_vm15, %v3232_v40, %v3234_v9  ;;  %v3243_v33 = vsel %vm3239_vm15, %v3234_v9, %v3236_v24  ;;  %5270 = vrot.lane.b32.xlu1 %v12647_v20, %s12082_s24  ;;  %11212 = vmatprep.subr.msk.bf16.mxu0 %vm243_vm1, %v3288_v29  ;;  %v3490_v40 = vrot.slane %v12807_v34, %v12709_v23  ;;  %v12019_v29 = vld [vmem:[%s16691_s26 + $0x20] sm:$0xff]  ;;  %vm5048_vm15 = vcmask 785408  }
 0x145   :  { %v3279_v32 = vmul.f32 %v3264_v27, %v3242_v37  ;;  %v3280_v6 = vmul.f32 %v3268_v28, %v3243_v33  ;;  %5268 = vrot.lane.b32.xlu0 %v12666_v3, %s12082_s24  ;;  %11203 = vmatmul.mubr.msk.bf16.vlgmr.msra.gmra.mxu1 %vm239_vm2, %v13060_v51  ;;  %v12016_v3 = vld [vmem:[%s16691_s26 + $0x8] sm:$0xff]  ;;  %v3494_v34 = vrot.slane %v12815_v39, %v12709_v23  ;;  %v3307_v45 = vsel %vm243_vm1, %v3287_v0, 0 }
 0x146   :  { %3187 = vmatpush1.bf16.msra.mxu1 %v3081_v1  ;;  %v3460_v22 = vpop.permute.xlu1 %3459  ;;  %3204 = vmatprep.mubr.bf16.mxu1 %v16601_v4  ;;  %v3498_v1 = vrot.slane %v12791_v15, %v12709_v23  ;;  %v3502_v0 = vrot.slane %v12784_v25, %v12709_v23  ;;  %v12020_v15 = vld [vmem:[%s16691_s26 + $0x18] sm:$0xff]  ;;  %s16704_s26 = sld [smem:[#allocation33_spill]] }
 0x147   :  { %v3286_v20 = vpack.c.bf16 %v3280_v6, %v3280_v6  ;;  %v3458_v41 = vpop.permute.xlu0 %3457  ;;  %v3285_v43 = vpack.c.bf16 %v3279_v32, %v3279_v32  ;;  %v13201_v32 = vld [vmem:[%s16560_s9 + $0x88] sm:$0xff] }
 0x148   :  { %v3468_v55 = vsel %vm3465_vm0, %v3458_v41, %v3460_v22  ;;  %5264 = vrot.lane.b32.xlu1 %v12016_v3, %s12082_s24  ;;  %v3728_v25 = vrot.slane %v13201_v32, %v12391_v35 }
 0x149   :  { %5262 = vrot.lane.b32.xlu0 %v12017_v46, %s12082_s24  ;;  %11210 = vmatprep.subr.msk.bf16.mxu1 %vm243_vm1, %v3286_v20  ;;  %v3505_v44 = vmul.f32 %v3490_v40, %v3468_v55  ;;  %v3301_v50 = vsel %vm243_vm1, %v3285_v43, 0 }
 0x14a   :  { %11209 = vmatmul.mubr.msk.bf16.vlgmr.msra.gmra.mxu0 %vm239_vm2, %v13097_v31  ;;  %v13128_v19 = vpop.permute.xlu1 %3453 }
 0x14b   :  { %3413 = vmatpush1.bf16.msra.mxu0 %v3307_v45  ;;  %v13130_v48 = vpop.permute.xlu0 %3461  ;;  %3430 = vmatprep.mubr.bf16.mxu0 %v16601_v4  ;;  %v3511_v54 = vpack.c.bf16 %v3505_v44, %v3505_v44 }
 0x14c   :  { %v3469_v49 = vsel %vm3465_vm0, %v3460_v22, %v13130_v48  ;;  %5490 = vrot.lane.b32.xlu1 %v12016_v3, %s12083_s3 }
 0x14d   :  { %v3506_v39 = vmul.f32 %v3494_v34, %v3469_v49  ;;  %5488 = vrot.lane.b32.xlu0 %v12017_v46, %s12083_s3  ;;  %11207 = vmatmul.mubr.msk.bf16.vlgmr.msra.gmra.mxu1 %vm239_vm2, %v13060_v51  ;;  %v13154_v51 = vld [vmem:[%s16560_s9 + $0x68] sm:$0xff]  ;;  %v3527_v2 = vsel %vm243_vm1, %v3511_v54, 0 }
 0x14e   :  { %3370 = vmatpush1.bf16.msra.mxu1 %v3301_v50  ;;  %v13149_v56 = vpop.permute.xlu1 %3679  ;;  %3387 = vmatprep.mubr.bf16.mxu1 %v16601_v4  ;;  %v3712_v21 = vrot.slane %v13154_v51, %v12391_v35 }
 0x14f   :  { %v3512_v47 = vpack.c.bf16 %v3506_v39, %v3506_v39  ;;  %v3456_v57 = vpop.permute.xlu0 %3455 }
 0x150   :  { %v3466_v12 = vsel %vm3465_vm0, %v13128_v19, %v3456_v57  ;;  %v3467_v59 = vsel %vm3465_vm0, %v3456_v57, %v3458_v41  ;;  %5272 = vrot.lane.b32.xlu1 %v12018_v7, %s12082_s24  ;;  %v13218_v41 = vld [vmem:[%s16560_s9 + $0x80] sm:$0xff]  ;;  %s16723_s24 = smov 15  }
 0x151   :  { %v3503_v14 = vmul.f32 %v3482_v11, %v3466_v12  ;;  %v3504_v17 = vmul.f32 %v3486_v52, %v3467_v59  ;;  %v13166_v18 = vpop.f32.mrf.mxu0  ;;  %5492 = vrot.lane.b32.xlu0 %v13083_v42, %s12083_s3  ;;  %11216 = vmatprep.subr.msk.bf16.mxu0 %vm243_vm1, %v3512_v47  ;;  %v13253_v52 = vld [vmem:[%s16560_s9 + $0x78] sm:$0xff] }
 0x152   :  { %11213 = vmatmul.mubr.msk.bf16.vlgmr.msra.gmra.mxu0 %vm239_vm2, %v13097_v31  ;;  %v13176_v24 = vpop.permute.xlu1 %3683 }
 0x153   :  { %v3509_v58 = vpack.c.bf16 %v3503_v14, %v3503_v14  ;;  %v3510_v5 = vpack.c.bf16 %v3504_v17, %v3504_v17  ;;  %3596 = vmatpush1.bf16.msra.mxu0 %v3527_v2  ;;  %v13178_v26 = vpop.f32.mrf.mxu0  ;;  %v3682_v27 = vpop.permute.xlu0 %3681  ;;  %3613 = vmatprep.mubr.bf16.mxu0 %v16601_v4 }
 0x154   :  { %v3692_v42 = vsel %vm3691_vm3, %v13149_v56, %v3682_v27  ;;  %v3693_v28 = vsel %vm3691_vm3, %v3682_v27, %v13176_v24  ;;  %5496 = vrot.lane.b32.xlu1 %v12019_v29, %s12083_s3  ;;  %v13191_v37 = vpop.f32.mrf.mxu1 }
 0x155   :  { %v3729_v16 = vmul.f32 %v3708_v62, %v3692_v42  ;;  %v3730_v30 = vmul.f32 %v3712_v21, %v3693_v28  ;;  %v13189_v9 = vpop.f32.mrf.mxu0  ;;  %5324 = vrot.lane.b32.xlu0 %v12846_v60, %s16703_s25  ;;  %11211 = vmatmul.mubr.msk.bf16.vlgmr.msra.gmra.mxu1 %vm239_vm2, %v13097_v31  ;;  %v3521_v33 = vsel %vm243_vm1, %v3509_v58, 0  ;;  %v3720_v58 = vrot.slane %v13253_v52, %v12391_v35 }
 0x156   :  { %11214 = vmatprep.subr.msk.bf16.mxu1 %vm243_vm1, %v3510_v5  ;;  %v13204_v6 = vpop.permute.xlu1 %3515  ;;  %3570 = vmatprep.mubr.bf16.mxu1 %v16601_v4  ;;  %v13213_v20 = vpop.f32.mrf.mxu1 }
 0x157   :  { %v3735_v31 = vpack.c.bf16 %v3729_v16, %v3729_v16  ;;  %v3736_v22 = vpack.c.bf16 %v3730_v30, %v3730_v30  ;;  %3553 = vmatpush1.bf16.msra.mxu1 %v3521_v33  ;;  %v13211_v40 = vpop.f32.mrf.mxu0  ;;  %v3464_v55 = vpop.permute.xlu0 %3463 }
 0x158   :  { %5494 = vrot.lane.b32.xlu1 %v12020_v15, %s12083_s3  ;;  %v3470_v3 = vsel %vm3465_vm0, %v13130_v48, %v3464_v55  ;;  %v3478_v43 = vsel %vm3465_vm0, %v3464_v55, %v13128_v19  ;;  %v13235_v49 = vpop.f32.mrf.mxu1  ;;  %v3724_v48 = vrot.slane %v13218_v41, %v12391_v35  ;;  %v13244_v19 = vld [vmem:[%s16560_s9 + $0x70] sm:$0xff]  ;;  %vm5274_vm0 = vcmask 777216  }
 0x159   :  { %v13230_v46 = vpop.f32.mrf.mxu0  ;;  %5498 = vrot.lane.b32.xlu0 %v12018_v7, %s12083_s3  ;;  %11221 = vmatprep.subr.msk.bf16.mxu0 %vm243_vm1, %v3736_v22  ;;  %v3748_v34 = vsel %vm243_vm1, %v3735_v31, 0  ;;  %v3507_v44 = vmul.f32 %v3498_v1, %v3470_v3  ;;  %v3508_v45 = vmul.f32 %v3502_v0, %v3478_v43  ;;  %v3943_v29 = vrot.slane %v13244_v19, %v12336_v10  ;;  %s16722_s3 = smov 1  }
 0x15a   :  { %11217 = vmatmul.mubr.msk.bf16.vlgmr.msra.gmra.mxu0 %vm239_vm2, %v13204_v6  ;;  %v3690_v39 = vpop.permute.xlu1 %3689  ;;  %v345_v14 = vpop.f32.mrf.mxu1  ;;  %v3947_v0 = vrot.slane %v13253_v52, %v12336_v10 }
 0x15b   :  { %3780 = vmatpush1.bf16.msra.mxu0 %v3748_v34  ;;  %v3704_v50 = vsel %vm3691_vm3, %v3690_v39, %v13149_v56  ;;  %v13248_v11 = vpop.f32.mrf.mxu0  ;;  %3797 = vmatprep.mubr.bf16.mxu0 %v16601_v4  ;;  %v3513_v54 = vpack.c.bf16 %v3507_v44, %v3507_v44  ;;  %v3514_v47 = vpack.c.bf16 %v3508_v45, %v3508_v45  ;;  %v3688_v12 = vpop.permute.xlu0 %3687 }
 0x15c   :  { %v3734_v57 = vmul.f32 %v3728_v25, %v3704_v50  ;;  %v3696_v59 = vsel %vm3691_vm3, %v3688_v12, %v3690_v39  ;;  %v3716_v56 = vrot.slane %v13244_v19, %v12391_v35  ;;  %v3939_v39 = vrot.slane %v13154_v51, %v12336_v10 }
 0x15d   :  { %v13257_v7 = vpop.f32.mrf.mxu0  ;;  %5550 = vrot.lane.b32.xlu0 %v12846_v60, %s16621_s4  ;;  %11215 = vmatmul.mubr.msk.bf16.vlgmr.msra.gmra.mxu1 %vm239_vm2, %v13204_v6  ;;  %v3733_v17 = vmul.f32 %v3724_v48, %v3696_v59  ;;  %v3533_v21 = vsel %vm243_vm1, %v3513_v54, 0 }
 0x15e   :  { %v3740_v62 = vpack.c.bf16 %v3734_v57, %v3734_v57  ;;  %11218 = vmatprep.subr.msk.bf16.mxu1 %vm243_vm1, %v3514_v47  ;;  %v3911_v2 = vpop.permute.xlu1 %3910  ;;  %3656 = vmatprep.mubr.bf16.mxu1 %v16601_v4 }
 0x15f   :  { %3639 = vmatpush1.bf16.msra.mxu1 %v3533_v21  ;;  %v13270_v5 = vpop.f32.mrf.mxu0  ;;  %v3739_v27 = vpack.c.bf16 %v3733_v17, %v3733_v17  ;;  %v3686_v42 = vpop.permute.xlu0 %3685 }
 0x160   :  { %v446_v28 = vpop.f32.mrf.mxu1  ;;  %11225 = vmatprep.subr.msk.bf16.mxu0 %vm243_vm1, %v3740_v62  ;;  %v3694_v16 = vsel %vm3691_vm3, %v13176_v24, %v3686_v42  ;;  %v3695_v30 = vsel %vm3691_vm3, %v3686_v42, %v3688_v12 }
 0x161   :  { %v447_v33 = vadd.f32 %v446_v28, %v13166_v18  ;;  %v489_v1 = vpop.f32.mrf.mxu0  ;;  %v3731_v31 = vmul.f32 %v3716_v56, %v3694_v16  ;;  %v3732_v22 = vmul.f32 %v3720_v58, %v3695_v30  ;;  %v3760_v15 = vsel %vm243_vm1, %v3739_v27, 0 }
 0x162   :  { %v13282_v55 = vadd.f32 %v489_v1, %v13191_v37  ;;  %11222 = vmatmul.mubr.msk.bf16.vlgmr.msra.gmra.mxu0 %vm239_vm2, %v12846_v60  ;;  %v13287_v25 = vpop.permute.xlu1 %3914  ;;  %v448_v24 = vpop.f32.mrf.mxu1  ;;  %v4161_v16 = vrot.slane %v13147_v53, %v12429_v63 }
 0x163   :  { %3866 = vmatpush1.bf16.msra.mxu0 %v3760_v15  ;;  %v449_v18 = vadd.f32 %v448_v24, %v13178_v26  ;;  %v491_v3 = vpop.f32.mrf.mxu0  ;;  %3883 = vmatprep.mubr.bf16.mxu0 %v16601_v4  ;;  %v3737_v43 = vpack.c.bf16 %v3731_v31, %v3731_v31  ;;  %v3738_v34 = vpack.c.bf16 %v3732_v22, %v3732_v22  ;;  %v3913_v37 = vpop.permute.xlu0 %3912 }
 0x164   :  { %v13292_v44 = vadd.f32 %v491_v3, %v13213_v20  ;;  %v450_v45 = vpop.f32.mrf.mxu1  ;;  %v3921_v48 = vsel %vm3918_vm5, %v3911_v2, %v3913_v37  ;;  %v3922_v50 = vsel %vm3918_vm5, %v3913_v37, %v13287_v25  ;;  %v3935_v20 = vrot.slane %v13147_v53, %v12336_v10 }
 0x165   :  { %v451_v26 = vadd.f32 %v450_v45, %v13189_v9  ;;  %v493_v54 = vpop.f32.mrf.mxu0  ;;  %11219 = vmatmul.mubr.msk.bf16.vlgmr.msra.gmra.mxu1 %vm239_vm2, %v13204_v6  ;;  %v3958_v47 = vmul.f32 %v3943_v29, %v3921_v48  ;;  %v3959_v57 = vmul.f32 %v3947_v0, %v3922_v50  ;;  %11223 = vmatprep.subr.msk.bf16.mxu1 %vm243_vm1, %v3738_v34  ;;  %v3754_v59 = vsel %vm243_vm1, %v3737_v43, 0 }
 0x166   :  { %v13305_v12 = vadd.f32 %v493_v54, %v13235_v49  ;;  %v3909_v56 = vpop.permute.xlu1 %3908  ;;  %v452_v62 = vpop.f32.mrf.mxu1  ;;  %3840 = vmatprep.mubr.bf16.mxu1 %v16601_v4  ;;  %3823 = vmatpush1.bf16.msra.mxu1 %v3754_v59  ;;  %v3951_v43 = vrot.slane %v13218_v41, %v12336_v10  ;;  %v3955_v34 = vrot.slane %v13201_v32, %v12336_v10 }
 0x167   :  { %v3920_v9 = vsel %vm3918_vm5, %v3909_v56, %v3911_v2  ;;  %v453_v6 = vadd.f32 %v452_v62, %v13211_v40  ;;  %v495_v17 = vpop.f32.mrf.mxu0  ;;  %v3964_v21 = vpack.c.bf16 %v3958_v47, %v3958_v47  ;;  %v3965_v58 = vpack.c.bf16 %v3959_v57, %v3959_v57  ;;  %v3907_v49 = vpop.permute.xlu0 %3906 }
 0x168   :  { %v3957_v27 = vmul.f32 %v3939_v39, %v3920_v9  ;;  %v13312_v42 = vadd.f32 %v495_v17, %v345_v14  ;;  %v3919_v28 = vsel %vm3918_vm5, %v3907_v49, %v3909_v56 }
 0x169   :  { %v532_v29 = vpop.f32.mrf.mxu1  ;;  %v3956_v1 = vmul.f32 %v3935_v20, %v3919_v28  ;;  %v660_v0 = vpop.f32.mrf.mxu0  ;;  %11229 = vmatprep.subr.msk.bf16.mxu0 %vm243_vm1, %v3965_v58  ;;  %v3980_v40 = vsel %vm243_vm1, %v3964_v21, 0  ;;  %v4165_v20 = vrot.slane %v13154_v51, %v12429_v63 }
 0x16a   :  { %v3963_v30 = vpack.c.bf16 %v3957_v27, %v3957_v27  ;;  %v533_v2 = vadd.f32 %v532_v29, %v13230_v46  ;;  %11226 = vmatmul.mubr.msk.bf16.vlgmr.msra.gmra.mxu0 %vm239_vm2, %v12846_v60  ;;  %v4135_v14 = vpop.permute.xlu1 %4134  ;;  %v13322_v31 = vadd.f32 %v660_v0, %v447_v33 }
 0x16b   :  { %4049 = vmatpush1.bf16.msra.mxu0 %v3980_v40  ;;  %v534_v22 = vpop.f32.mrf.mxu1  ;;  %4066 = vmatprep.mubr.bf16.mxu0 %v16601_v4  ;;  %v3962_v15 = vpack.c.bf16 %v3956_v1, %v3956_v1  ;;  %v662_v3 = vpop.f32.mrf.mxu0 }
 0x16c   :  { %v535_v24 = vadd.f32 %v534_v22, %v13248_v11  ;;  %v13326_v46 = vpop.permute.xlu0 %4132  ;;  %11227 = vmatprep.subr.msk.bf16.mxu1 %vm243_vm1, %v3963_v30  ;;  %v13333_v33 = vadd.f32 %v662_v3, %v449_v18 }
 0x16d   :  { %v4145_v37 = vsel %vm4144_vm6, %v13326_v46, %v4135_v14  ;;  %v536_v45 = vpop.f32.mrf.mxu1  ;;  %11224 = vmatmul.mubr.msk.bf16.vlgmr.msra.gmra.mxu1 %vm239_vm2, %v12846_v60  ;;  %v664_v48 = vpop.f32.mrf.mxu0  ;;  %v3974_v50 = vsel %vm243_vm1, %v3962_v15, 0 }
 0x16e   :  { %v4182_v11 = vmul.f32 %v4161_v16, %v4145_v37  ;;  %v537_v39 = vadd.f32 %v536_v45, %v13257_v7  ;;  %v3917_v54 = vpop.permute.xlu1 %3916  ;;  %4023 = vmatprep.mubr.bf16.mxu1 %v16601_v4  ;;  %v13344_v18 = vadd.f32 %v664_v48, %v451_v26  ;;  %4006 = vmatpush1.bf16.msra.mxu1 %v3974_v50 }
 0x16f   :  { %v3923_v47 = vsel %vm3918_vm5, %v13287_v25, %v3917_v54  ;;  %v3931_v60 = vsel %vm3918_vm5, %v3917_v54, %v3907_v49  ;;  %v538_v57 = vpop.f32.mrf.mxu1  ;;  %v666_v62 = vpop.f32.mrf.mxu0  ;;  %v4177_v37 = vrot.slane %v13218_v41, %v12429_v63 }
 0x170   :  { %v3960_v59 = vmul.f32 %v3951_v43, %v3923_v47  ;;  %v3961_v7 = vmul.f32 %v3955_v34, %v3931_v60  ;;  %v539_v56 = vadd.f32 %v538_v57, %v13270_v5  ;;  %v4137_v9 = vpop.permute.xlu0 %4136  ;;  %v4188_v17 = vpack.c.bf16 %v4182_v11, %v4182_v11 }
 0x171   :  { %v13350_v21 = vadd.f32 %v666_v62, %v453_v6  ;;  %v4146_v58 = vsel %vm4144_vm6, %v4135_v14, %v4137_v9  ;;  %v703_v26 = vpop.f32.mrf.mxu1  ;;  %v746_v16 = vpop.f32.mrf.mxu0  ;;  %v4169_v5 = vrot.slane %v13244_v19, %v12429_v63 }
 0x172   :  { %v3966_v27 = vpack.c.bf16 %v3960_v59, %v3960_v59  ;;  %v3967_v28 = vpack.c.bf16 %v3961_v7, %v3961_v7  ;;  %v4183_v29 = vmul.f32 %v4165_v20, %v4146_v58  ;;  %v757_v25 = vadd.f32 %v703_v26, %v13282_v55  ;;  %v4141_v49 = vpop.permute.xlu1 %4140 }
 0x173   :  { %v13354_v30 = vadd.f32 %v746_v16, %v533_v2  ;;  %v705_v1 = vpop.f32.mrf.mxu1  ;;  %v748_v40 = vpop.f32.mrf.mxu0  ;;  %v4173_v55 = vrot.slane %v13253_v52, %v12429_v63 }
 0x174   :  { %v4189_v0 = vpack.c.bf16 %v4183_v29, %v4183_v29  ;;  %v758_v6 = vadd.f32 %v705_v1, %v13292_v44  ;;  %v3969_v22 = vpop.permute.xlu0 %3968  ;;  %11231 = vmatprep.subr.msk.bf16.mxu1 %vm243_vm1, %v3967_v28  ;;  %v3986_v14 = vsel %vm243_vm1, %v3966_v27, 0  ;;  %v13363_v15 = vadd.f32 %v748_v40, %v535_v24 }
 0x175   :  { %11230 = vmatmul.mubr.msk.bf16.vlgmr.msra.gmra.mxu0 %vm239_vm2, %v3969_v22  ;;  %v707_v2 = vpop.f32.mrf.mxu1  ;;  %11228 = vmatmul.mubr.msk.bf16.vlgmr.msra.gmra.mxu1 %vm239_vm2, %v3969_v22  ;;  %v750_v43 = vpop.f32.mrf.mxu0  ;;  %v4200_v44 = vsel %vm243_vm1, %v4188_v17, 0  ;;  %v4181_v24 = vrot.slane %v13201_v32, %v12429_v63  ;;  %v4395_v40 = vrot.slane %v13244_v19, %v12485_v61 }
 0x176   :  { %v763_v3 = vadd.f32 %v707_v2, %v13305_v12  ;;  %11233 = vmatprep.subr.msk.bf16.mxu0 %vm243_vm1, %v4189_v0  ;;  %4092 = vmatpush1.bf16.msra.mxu1 %v3986_v14  ;;  %v4139_v34 = vpop.permute.xlu1 %4138  ;;  %v13374_v45 = vadd.f32 %v750_v43, %v537_v39  ;;  %v4391_v43 = vrot.slane %v13154_v51, %v12485_v61 }
 0x177   :  { %4232 = vmatpush1.bf16.msra.mxu0 %v4200_v44  ;;  %v4147_v11 = vsel %vm4144_vm6, %v4137_v9, %v4139_v34  ;;  %v4148_v12 = vsel %vm4144_vm6, %v4139_v34, %v4141_v49  ;;  %v709_v48 = vpop.f32.mrf.mxu1  ;;  %4249 = vmatprep.mubr.bf16.mxu0 %v16601_v4  ;;  %v752_v47 = vpop.f32.mrf.mxu0 }
 0x178   :  { %v4184_v50 = vmul.f32 %v4169_v5, %v4147_v11  ;;  %v4185_v54 = vmul.f32 %v4173_v55, %v4148_v12  ;;  %v764_v20 = vadd.f32 %v709_v48, %v13312_v42  ;;  %v4143_v60 = vpop.permute.xlu0 %4142  ;;  %4109 = vmatprep.mubr.bf16.mxu1 %v16601_v4  ;;  %v13381_v57 = vadd.f32 %v752_v47, %v539_v56 }
 0x179   :  { %v4149_v39 = vsel %vm4144_vm6, %v4141_v49, %v4143_v60  ;;  %v4157_v59 = vsel %vm4144_vm6, %v4143_v60, %v13326_v46 }
 0x17a   :  { %v4190_v7 = vpack.c.bf16 %v4184_v50, %v4184_v50  ;;  %v4191_v62 = vpack.c.bf16 %v4185_v54, %v4185_v54  ;;  %v4186_v9 = vmul.f32 %v4177_v37, %v4149_v39  ;;  %v4187_v17 = vmul.f32 %v4181_v24, %v4157_v59  ;;  %v4363_v58 = vpop.permute.xlu1 %4362 }
 0x17b   :  { %v929_v26 = vpop.f32.mrf.mxu0  ;;  %v4387_v50 = vrot.slane %v13147_v53, %v12485_v61 }
 0x17c   :  { %v4192_v27 = vpack.c.bf16 %v4186_v9, %v4186_v9  ;;  %v4193_v28 = vpack.c.bf16 %v4187_v17, %v4187_v17  ;;  %v4195_v42 = vpop.permute.xlu0 %4194  ;;  %v13386_v29 = vadd.f32 %v929_v26, %v757_v25  ;;  %v886_v16 = vpop.f32.mrf.mxu1  ;;  %11235 = vmatprep.subr.msk.bf16.mxu1 %vm243_vm1, %v4191_v62  ;;  %v4206_v56 = vsel %vm243_vm1, %v4190_v7, 0 }
 0x17d   :  { %11234 = vmatmul.mubr.msk.bf16.vlgmr.msra.gmra.mxu0 %vm239_vm2, %v4195_v42  ;;  %v981_v46 = vadd.f32 %v886_v16, %v13322_v31  ;;  %11232 = vmatmul.mubr.msk.bf16.vlgmr.msra.gmra.mxu1 %vm239_vm2, %v3969_v22  ;;  %v931_v49 = vpop.f32.mrf.mxu0  ;;  %v4399_v31 = vrot.slane %v13253_v52, %v12485_v61 }
 0x17e   :  { %11237 = vmatprep.subr.msk.bf16.mxu0 %vm243_vm1, %v4193_v28  ;;  %v13394_v1 = vadd.f32 %v931_v49, %v758_v6  ;;  %4275 = vmatpush1.bf16.msra.mxu1 %v4206_v56  ;;  %v4212_v25 = vsel %vm243_vm1, %v4192_v27, 0  ;;  %v13397_v5 = vpop.permute.xlu1 %4366  ;;  %v888_v0 = vpop.f32.mrf.mxu1 }
 0x17f   :  { %4318 = vmatpush1.bf16.msra.mxu0 %v4212_v25  ;;  %v982_v22 = vadd.f32 %v888_v0, %v13333_v33  ;;  %v933_v14 = vpop.f32.mrf.mxu0  ;;  %4335 = vmatprep.mubr.bf16.mxu0 %v16601_v4 }
 0x180   :  { %v4365_v6 = vpop.permute.xlu0 %4364  ;;  %v13405_v55 = vadd.f32 %v933_v14, %v763_v3  ;;  %v890_v2 = vpop.f32.mrf.mxu1  ;;  %4292 = vmatprep.mubr.bf16.mxu1 %v16601_v4 }
 0x181   :  { %v4373_v44 = vsel %vm4370_vm7, %v4363_v58, %v4365_v6  ;;  %v4374_v34 = vsel %vm4370_vm7, %v4365_v6, %v13397_v5  ;;  %v987_v37 = vadd.f32 %v890_v2, %v13344_v18  ;;  %v935_v33 = vpop.f32.mrf.mxu0 }
 0x182   :  { %v4410_v24 = vmul.f32 %v4395_v40, %v4373_v44  ;;  %v4411_v11 = vmul.f32 %v4399_v31, %v4374_v34  ;;  %v13414_v12 = vadd.f32 %v935_v33, %v764_v20  ;;  %v4361_v3 = vpop.permute.xlu1 %4360  ;;  %v892_v48 = vpop.f32.mrf.mxu1  ;;  %v4403_v31 = vrot.slane %v13218_v41, %v12485_v61 }
 0x183   :  { %v4372_v54 = vsel %vm4370_vm7, %v4361_v3, %v4363_v58  ;;  %v988_v47 = vadd.f32 %v892_v48, %v13350_v21  ;;  %v1112_v60 = vpop.f32.mrf.mxu0  ;;  %v4613_v21 = vrot.slane %v13147_v53, %v12517_v38  ;;  %v4617_v33 = vrot.slane %v13154_v51, %v12517_v38 }
 0x184   :  { %v4416_v39 = vpack.c.bf16 %v4410_v24, %v4410_v24  ;;  %v4417_v59 = vpack.c.bf16 %v4411_v11, %v4411_v11  ;;  %v4409_v7 = vmul.f32 %v4391_v43, %v4372_v54  ;;  %v4359_v62 = vpop.permute.xlu0 %4358  ;;  %v13420_v18 = vadd.f32 %v1112_v60, %v981_v46  ;;  %v972_v9 = vpop.f32.mrf.mxu1 }
 0x185   :  { %v4371_v20 = vsel %vm4370_vm7, %v4359_v62, %v4361_v3  ;;  %11238 = vmatmul.mubr.msk.bf16.vlgmr.msra.gmra.mxu0 %vm239_vm2, %v4195_v42  ;;  %v985_v17 = vadd.f32 %v972_v9, %v13354_v30  ;;  %11236 = vmatmul.mubr.msk.bf16.vlgmr.msra.gmra.mxu1 %vm239_vm2, %v4195_v42  ;;  %v1114_v26 = vpop.f32.mrf.mxu0 }
 0x186   :  { %v4415_v58 = vpack.c.bf16 %v4409_v7, %v4409_v7  ;;  %v4408_v27 = vmul.f32 %v4387_v50, %v4371_v20  ;;  %11241 = vmatprep.subr.msk.bf16.mxu0 %vm243_vm1, %v4417_v59  ;;  %v13429_v28 = vadd.f32 %v1114_v26, %v982_v22  ;;  %v4432_v16 = vsel %vm243_vm1, %v4416_v39, 0  ;;  %v4587_v56 = vpop.permute.xlu1 %4586  ;;  %v974_v46 = vpop.f32.mrf.mxu1  ;;  %4475 = vmatprep.mubr.bf16.mxu1 %v16601_v4 }
 0x187   :  { %4501 = vmatpush1.bf16.msra.mxu0 %v4432_v16  ;;  %v986_v30 = vadd.f32 %v974_v46, %v13363_v15  ;;  %v1116_v42 = vpop.f32.mrf.mxu0  ;;  %4518 = vmatprep.mubr.bf16.mxu0 %v16601_v4  ;;  %v4407_v22 = vrot.slane %v13201_v32, %v12485_v61 }
 0x188   :  { %v4414_v49 = vpack.c.bf16 %v4408_v27, %v4408_v27  ;;  %v13435_v25 = vpop.permute.xlu0 %4584  ;;  %v13437_v0 = vadd.f32 %v1116_v42, %v987_v37  ;;  %v976_v40 = vpop.f32.mrf.mxu1  ;;  %11239 = vmatprep.subr.msk.bf16.mxu1 %vm243_vm1, %v4415_v58 }
 0x189   :  { %v4597_v15 = vsel %vm4596_vm11, %v13435_v25, %v4587_v56  ;;  %v991_v14 = vadd.f32 %v976_v40, %v13374_v45  ;;  %v1118_v6 = vpop.f32.mrf.mxu0 }
 0x18a   :  { %v4634_v2 = vmul.f32 %v4613_v21, %v4597_v15  ;;  %v13447_v43 = vadd.f32 %v1118_v6, %v988_v47  ;;  %v4426_v44 = vsel %vm243_vm1, %v4414_v49, 0  ;;  %v4369_v34 = vpop.permute.xlu1 %4368  ;;  %v978_v37 = vpop.f32.mrf.mxu1  ;;  %v4633_v6 = vrot.slane %v13201_v32, %v12517_v38 }
 0x18b   :  { %4458 = vmatpush1.bf16.msra.mxu1 %v4426_v44  ;;  %v4375_v24 = vsel %vm4370_vm7, %v13397_v5, %v4369_v34  ;;  %v4383_v11 = vsel %vm4370_vm7, %v4369_v34, %v4359_v62  ;;  %v992_v3 = vadd.f32 %v978_v37, %v13381_v57  ;;  %v1198_v45 = vpop.f32.mrf.mxu0  ;;  %vm5500_vm7 = vcmask 769024  }
 0x18c   :  { %v4412_v48 = vmul.f32 %v4403_v31, %v4375_v24  ;;  %v4413_v50 = vmul.f32 %v4407_v22, %v4383_v11  ;;  %v4589_v54 = vpop.permute.xlu0 %4588  ;;  %v13456_v47 = vadd.f32 %v1198_v45, %v985_v17  ;;  %v1155_v60 = vpop.f32.mrf.mxu1  ;;  %v4640_v39 = vpack.c.bf16 %v4634_v2, %v4634_v2 }
 0x18d   :  { %v4598_v59 = vsel %vm4596_vm11, %v4587_v56, %v4589_v54  ;;  %v1209_v7 = vadd.f32 %v1155_v60, %v13386_v29  ;;  %v1200_v9 = vpop.f32.mrf.mxu0  ;;  %v4621_v17 = vrot.slane %v13244_v19, %v12517_v38 }
 0x18e   :  { %v4418_v20 = vpack.c.bf16 %v4412_v48, %v4412_v48  ;;  %v4419_v26 = vpack.c.bf16 %v4413_v50, %v4413_v50  ;;  %v4635_v5 = vmul.f32 %v4617_v33, %v4598_v59  ;;  %v13460_v21 = vadd.f32 %v1200_v9, %v986_v30  ;;  %v4593_v62 = vpop.permute.xlu1 %4592  ;;  %v1157_v57 = vpop.f32.mrf.mxu1 }
 0x18f   :  { %v1210_v58 = vadd.f32 %v1157_v57, %v13394_v1  ;;  %v1202_v27 = vpop.f32.mrf.mxu0  ;;  %v4625_v30 = vrot.slane %v13253_v52, %v12517_v38  ;;  %v4652_v31 = vsel %vm243_vm1, %v4640_v39, 0 }
 0x190   :  { %v4641_v16 = vpack.c.bf16 %v4635_v5, %v4635_v5  ;;  %v4421_v46 = vpop.permute.xlu0 %4420  ;;  %v13465_v42 = vadd.f32 %v1202_v27, %v991_v14  ;;  %v1159_v56 = vpop.f32.mrf.mxu1  ;;  %11243 = vmatprep.subr.msk.bf16.mxu1 %vm243_vm1, %v4419_v26  ;;  %v4438_v29 = vsel %vm243_vm1, %v4418_v20, 0  ;;  %v4629_v14 = vrot.slane %v13218_v41, %v12517_v38 }
 0x191   :  { %11240 = vmatmul.mubr.msk.bf16.vlgmr.msra.gmra.mxu1 %vm239_vm2, %v4421_v46  ;;  %11242 = vmatmul.mubr.msk.bf16.vlgmr.msra.gmra.mxu0 %vm239_vm2, %v4421_v46  ;;  %v1215_v1 = vadd.f32 %v1159_v56, %v13405_v55  ;;  %v1204_v49 = vpop.f32.mrf.mxu0 }
 0x192   :  { %11245 = vmatprep.subr.msk.bf16.mxu0 %vm243_vm1, %v4641_v16  ;;  %v13475_v40 = vadd.f32 %v1204_v49, %v992_v3  ;;  %4544 = vmatpush1.bf16.msra.mxu1 %v4438_v29  ;;  %v4591_v22 = vpop.permute.xlu1 %4590  ;;  %v1161_v15 = vpop.f32.mrf.mxu1  ;;  %v4847_v16 = vrot.slane %v13244_v19, %v12586_v36 }
 0x193   :  { %4684 = vmatpush1.bf16.msra.mxu0 %v4652_v31  ;;  %v4599_v2 = vsel %vm4596_vm11, %v4589_v54, %v4591_v22  ;;  %v4600_v55 = vsel %vm4596_vm11, %v4591_v22, %v4593_v62  ;;  %v1216_v44 = vadd.f32 %v1161_v15, %v13414_v12  ;;  %4561 = vmatprep.mubr.bf16.mxu1 %v16601_v4  ;;  %v5714_v12 = vld [vmem:[%s16704_s26] sm:$0xff] }
 0x194   :  { %v4636_v34 = vmul.f32 %v4621_v17, %v4599_v2  ;;  %v4637_v37 = vmul.f32 %v4625_v30, %v4600_v55  ;;  %v4595_v33 = vpop.permute.xlu0 %4594  ;;  %4701 = vmatprep.mubr.bf16.mxu0 %v16601_v4  ;;  %5718 = vperm.xlu1 %11576, %v5714_v12   ;;  %v4843_v31 = vrot.slane %v13154_v51, %v12586_v36 }
 0x195   :  { %v4601_v24 = vsel %vm4596_vm11, %v4593_v62, %v4595_v33  ;;  %v4609_v11 = vsel %vm4596_vm11, %v4595_v33, %v13435_v25  ;;  %vm9418_vm11 = vcmask 457728  }
 0x196   :  { %v4642_v3 = vpack.c.bf16 %v4636_v34, %v4636_v34  ;;  %v4643_v45 = vpack.c.bf16 %v4637_v37, %v4637_v37  ;;  %v4638_v48 = vmul.f32 %v4629_v14, %v4601_v24  ;;  %v4639_v50 = vmul.f32 %v4633_v6, %v4609_v11  ;;  %v4815_v54 = vpop.permute.xlu1 %4814 }
 0x197   :  { %v1381_v60 = vpop.f32.mrf.mxu0  ;;  %v1338_v26 = vpop.f32.mrf.mxu1  ;;  %v4839_v37 = vrot.slane %v13147_v53, %v12586_v36 }
 0x198   :  { %v4644_v39 = vpack.c.bf16 %v4638_v48, %v4638_v48  ;;  %v4645_v59 = vpack.c.bf16 %v4639_v50, %v4639_v50  ;;  %v4647_v9 = vpop.permute.xlu0 %4646  ;;  %v13493_v20 = vadd.f32 %v1381_v60, %v1209_v7  ;;  %11247 = vmatprep.subr.msk.bf16.mxu1 %vm243_vm1, %v4643_v45  ;;  %v4658_v25 = vsel %vm243_vm1, %v4642_v3, 0 }
 0x199   :  { %11244 = vmatmul.mubr.msk.bf16.vlgmr.msra.gmra.mxu1 %vm239_vm2, %v4421_v46  ;;  %11246 = vmatmul.mubr.msk.bf16.vlgmr.msra.gmra.mxu0 %vm239_vm2, %v4647_v9  ;;  %v1433_v5 = vadd.f32 %v1338_v26, %v13420_v18  ;;  %v1383_v62 = vpop.f32.mrf.mxu0  ;;  %v1340_v17 = vpop.f32.mrf.mxu1  ;;  %v4851_v46 = vrot.slane %v13253_v52, %v12586_v36 }
 0x19a   :  { %11249 = vmatprep.subr.msk.bf16.mxu0 %vm243_vm1, %v4645_v59  ;;  %v13501_v57 = vadd.f32 %v1383_v62, %v1210_v58  ;;  %4727 = vmatpush1.bf16.msra.mxu1 %v4658_v25  ;;  %v4664_v7 = vsel %vm243_vm1, %v4644_v39, 0  ;;  %v13504_v27 = vpop.permute.xlu1 %4818  ;;  %v1434_v18 = vadd.f32 %v1340_v17, %v13429_v28  ;;  %v5715_v58 = vld [vmem:[%s16704_s26 + $0x8] sm:$0xff]  ;;  %s16705_s26 = sld [smem:[#allocation34_spill]] }
 0x19b   :  { %4770 = vmatpush1.bf16.msra.mxu0 %v4664_v7  ;;  %v1385_v56 = vpop.f32.mrf.mxu0  ;;  %4744 = vmatprep.mubr.bf16.mxu1 %v16601_v4  ;;  %v1342_v49 = vpop.f32.mrf.mxu1 }
 0x19c   :  { %v4817_v29 = vpop.permute.xlu0 %4816  ;;  %v13515_v30 = vadd.f32 %v1385_v56, %v1215_v1  ;;  %4787 = vmatprep.mubr.bf16.mxu0 %v16601_v4  ;;  %5723 = vperm.xlu0 %11577, %v5715_v58   ;;  %v1439_v15 = vadd.f32 %v1342_v49, %v13437_v0 }
 0x19d   :  { %v4825_v22 = vsel %vm4822_vm12, %v4815_v54, %v4817_v29  ;;  %v4826_v28 = vsel %vm4822_vm12, %v4817_v29, %v13504_v27  ;;  %v1387_v14 = vpop.f32.mrf.mxu0  ;;  %v1344_v34 = vpop.f32.mrf.mxu1 }
 0x19e   :  { %v4862_v6 = vmul.f32 %v4847_v16, %v4825_v22  ;;  %v4863_v2 = vmul.f32 %v4851_v46, %v4826_v28  ;;  %v13524_v55 = vadd.f32 %v1387_v14, %v1216_v44  ;;  %v4813_v1 = vpop.permute.xlu1 %4812  ;;  %v1440_v24 = vadd.f32 %v1344_v34, %v13447_v43 }
 0x19f   :  { %v4824_v33 = vsel %vm4822_vm12, %v4813_v1, %v4815_v54  ;;  %v1564_v11 = vpop.f32.mrf.mxu0  ;;  %v1424_v60 = vpop.f32.mrf.mxu1  ;;  %v5065_v43 = vrot.slane %v13147_v53, %v12637_v13  ;;  %v4855_v46 = vrot.slane %v13218_v41, %v12586_v36 }
 0x1a0   :  { %v4868_v3 = vpack.c.bf16 %v4862_v6, %v4862_v6  ;;  %v4869_v45 = vpack.c.bf16 %v4863_v2, %v4863_v2  ;;  %v4861_v48 = vmul.f32 %v4843_v31, %v4824_v33  ;;  %v4811_v50 = vpop.permute.xlu0 %4810  ;;  %v13530_v0 = vadd.f32 %v1564_v11, %v1433_v5 }
 0x1a1   :  { %v4823_v44 = vsel %vm4822_vm12, %v4811_v50, %v4813_v1  ;;  %11248 = vmatmul.mubr.msk.bf16.vlgmr.msra.gmra.mxu1 %vm239_vm2, %v4647_v9  ;;  %11250 = vmatmul.mubr.msk.bf16.vlgmr.msra.gmra.mxu0 %vm239_vm2, %v4647_v9  ;;  %v1437_v12 = vadd.f32 %v1424_v60, %v13456_v47  ;;  %v1566_v39 = vpop.f32.mrf.mxu0  ;;  %v1426_v62 = vpop.f32.mrf.mxu1 }
 0x1a2   :  { %v4867_v54 = vpack.c.bf16 %v4861_v48, %v4861_v48  ;;  %v4860_v59 = vmul.f32 %v4839_v37, %v4823_v44  ;;  %11253 = vmatprep.subr.msk.bf16.mxu0 %vm243_vm1, %v4869_v45  ;;  %v13539_v26 = vadd.f32 %v1566_v39, %v1434_v18  ;;  %v4884_v25 = vsel %vm243_vm1, %v4868_v3, 0  ;;  %v5039_v5 = vpop.permute.xlu1 %5038  ;;  %4927 = vmatprep.mubr.bf16.mxu1 %v16601_v4 }
 0x1a3   :  { %4953 = vmatpush1.bf16.msra.mxu0 %v4884_v25  ;;  %v1438_v47 = vadd.f32 %v1426_v62, %v13460_v21  ;;  %v1568_v9 = vpop.f32.mrf.mxu0  ;;  %4970 = vmatprep.mubr.bf16.mxu0 %v16601_v4  ;;  %v1428_v16 = vpop.f32.mrf.mxu1  ;;  %v4859_v18 = vrot.slane %v13201_v32, %v12586_v36  ;;  %v5077_v62 = vrot.slane %v13253_v52, %v12637_v13 }
 0x1a4   :  { %v4866_v7 = vpack.c.bf16 %v4860_v59, %v4860_v59  ;;  %v13545_v53 = vpop.permute.xlu0 %5036  ;;  %v13547_v17 = vadd.f32 %v1568_v9, %v1439_v15  ;;  %11251 = vmatprep.subr.msk.bf16.mxu1 %vm243_vm1, %v4867_v54  ;;  %v1443_v56 = vadd.f32 %v1428_v16, %v13465_v42  ;;  %v5069_v15 = vrot.slane %v13154_v51, %v12637_v13 }
 0x1a5   :  { %v5049_v21 = vsel %vm5048_vm15, %v13545_v53, %v5039_v5  ;;  %v1570_v58 = vpop.f32.mrf.mxu0  ;;  %v1430_v28 = vpop.f32.mrf.mxu1  ;;  %v5085_v16 = vrot.slane %v13201_v32, %v12637_v13 }
 0x1a6   :  { %v5086_v29 = vmul.f32 %v5065_v43, %v5049_v21  ;;  %v13557_v49 = vadd.f32 %v1570_v58, %v1440_v24  ;;  %v4878_v31 = vsel %vm243_vm1, %v4866_v7, 0  ;;  %v4821_v22 = vpop.permute.xlu1 %4820  ;;  %v13566_v2 = vadd.f32 %v1430_v28, %v13475_v40 }
 0x1a7   :  { %4910 = vmatpush1.bf16.msra.mxu1 %v4878_v31  ;;  %v4827_v14 = vsel %vm4822_vm12, %v13504_v27, %v4821_v22  ;;  %v4835_v6 = vsel %vm4822_vm12, %v4821_v22, %v4811_v50  ;;  %v1650_v42 = vpop.f32.mrf.mxu0  ;;  %v1607_v24 = vpop.f32.mrf.mxu1  ;;  %v5081_v7 = vrot.slane %v13218_v41, %v12637_v13  ;;  %vm9405_vm12 = vcmask 982016  }
 0x1a8   :  { %v4864_v1 = vmul.f32 %v4855_v46, %v4827_v14  ;;  %v4865_v34 = vmul.f32 %v4859_v18, %v4835_v6  ;;  %v5041_v37 = vpop.permute.xlu0 %5040  ;;  %v13568_v33 = vadd.f32 %v1650_v42, %v1437_v12  ;;  %v5092_v11 = vpack.c.bf16 %v5086_v29, %v5086_v29 }
 0x1a9   :  { %v5050_v3 = vsel %vm5048_vm15, %v5039_v5, %v5041_v37  ;;  %v1661_v51 = vadd.f32 %v1607_v24, %v13493_v20  ;;  %v1652_v45 = vpop.f32.mrf.mxu0  ;;  %v1609_v44 = vpop.f32.mrf.mxu1  ;;  %v5073_v12 = vrot.slane %v13244_v19, %v12637_v13 }
 0x1aa   :  { %v4870_v48 = vpack.c.bf16 %v4864_v1, %v4864_v1  ;;  %v4871_v27 = vpack.c.bf16 %v4865_v34, %v4865_v34  ;;  %v5087_v60 = vmul.f32 %v5069_v15, %v5050_v3  ;;  %v13572_v50 = vadd.f32 %v1652_v45, %v1438_v47  ;;  %v5045_v40 = vpop.permute.xlu1 %5044 }
 0x1ab   :  { %v1662_v39 = vadd.f32 %v1609_v44, %v13501_v57  ;;  %v1654_v43 = vpop.f32.mrf.mxu0  ;;  %v1611_v5 = vpop.f32.mrf.mxu1  ;;  %v5104_v47 = vsel %vm243_vm1, %v5092_v11, 0 }
 0x1ac   :  { %v5093_v54 = vpack.c.bf16 %v5087_v60, %v5087_v60  ;;  %v4873_v59 = vpop.permute.xlu0 %4872  ;;  %v13577_v25 = vadd.f32 %v1654_v43, %v1443_v56  ;;  %11255 = vmatprep.subr.msk.bf16.mxu1 %vm243_vm1, %v4871_v27  ;;  %v4890_v20 = vsel %vm243_vm1, %v4870_v48, 0  ;;  %v1667_v57 = vadd.f32 %v1611_v5, %v13515_v30 }
 0x1ad   :  { %11252 = vmatmul.mubr.msk.bf16.vlgmr.msra.gmra.mxu1 %vm239_vm2, %v4873_v59  ;;  %11254 = vmatmul.mubr.msk.bf16.vlgmr.msra.gmra.mxu0 %vm239_vm2, %v4873_v59  ;;  %v13596_v58 = vpop.f32.mrf.mxu0  ;;  %v13601_v22 = vpop.f32.mrf.mxu1  ;;  %v5299_v60 = vrot.slane %v13244_v19, %v12709_v23 }
 0x1ae   :  { %11257 = vmatprep.subr.msk.bf16.mxu0 %vm243_vm1, %v5093_v54  ;;  %4996 = vmatpush1.bf16.msra.mxu1 %v4890_v20  ;;  %v5043_v9 = vpop.permute.xlu1 %5042  ;;  %v12021_v54 = vld [vmem:[%s16560_s9 + $0x68] sm:$0xff] }
 0x1af   :  { %5136 = vmatpush1.bf16.msra.mxu0 %v5104_v47  ;;  %v5051_v46 = vsel %vm5048_vm15, %v5041_v37, %v5043_v9  ;;  %v5052_v18 = vsel %vm5048_vm15, %v5043_v9, %v5045_v40  ;;  %5013 = vmatprep.mubr.bf16.mxu1 %v16601_v4  ;;  %v12022_v9 = vld [vmem:[%s16560_s9 + $0x60] sm:$0xff] }
 0x1b0   :  { %v5088_v30 = vmul.f32 %v5073_v12, %v5051_v46  ;;  %v5089_v21 = vmul.f32 %v5077_v62, %v5052_v18  ;;  %v5047_v56 = vpop.permute.xlu0 %5046  ;;  %5153 = vmatprep.mubr.bf16.mxu0 %v16601_v4 }
 0x1b1   :  { %v5053_v29 = vsel %vm5048_vm15, %v5045_v40, %v5047_v56  ;;  %v5061_v41 = vsel %vm5048_vm15, %v5047_v56, %v13545_v53  ;;  %v5303_v40 = vrot.slane %v13253_v52, %v12709_v23 }
 0x1b2   :  { %v5094_v32 = vpack.c.bf16 %v5088_v30, %v5088_v30  ;;  %v5095_v31 = vpack.c.bf16 %v5089_v21, %v5089_v21  ;;  %v5090_v28 = vmul.f32 %v5081_v7, %v5053_v29  ;;  %v5091_v15 = vmul.f32 %v5085_v16, %v5061_v41  ;;  %v5267_v14 = vpop.permute.xlu1 %5266 }
 0x1b3   :  { %v1833_v6 = vpop.f32.mrf.mxu0  ;;  %v1790_v24 = vpop.f32.mrf.mxu1  ;;  %v5291_v7 = vrot.slane %v12022_v9, %v12709_v23 }
 0x1b4   :  { %v5096_v42 = vpack.c.bf16 %v5090_v28, %v5090_v28  ;;  %v5097_v1 = vpack.c.bf16 %v5091_v15, %v5091_v15  ;;  %v5099_v34 = vpop.permute.xlu0 %5098  ;;  %v13603_v37 = vadd.f32 %v1833_v6, %v1661_v51  ;;  %11259 = vmatprep.subr.msk.bf16.mxu1 %vm243_vm1, %v5095_v31  ;;  %v5110_v11 = vsel %vm243_vm1, %v5094_v32, 0 }
 0x1b5   :  { %11256 = vmatmul.mubr.msk.bf16.vlgmr.msra.gmra.mxu1 %vm239_vm2, %v4873_v59  ;;  %11258 = vmatmul.mubr.msk.bf16.vlgmr.msra.gmra.mxu0 %vm239_vm2, %v5099_v34  ;;  %v1885_v53 = vadd.f32 %v1790_v24, %v13530_v0  ;;  %v1835_v3 = vpop.f32.mrf.mxu0  ;;  %v1792_v27 = vpop.f32.mrf.mxu1  ;;  %v5295_v59 = vrot.slane %v12021_v54, %v12709_v23 }
 0x1b6   :  { %11261 = vmatprep.subr.msk.bf16.mxu0 %vm243_vm1, %v5097_v1  ;;  %v13611_v45 = vadd.f32 %v1835_v3, %v1662_v39  ;;  %5179 = vmatpush1.bf16.msra.mxu1 %v5110_v11  ;;  %v5116_v51 = vsel %vm243_vm1, %v5096_v42, 0  ;;  %v13614_v48 = vpop.permute.xlu1 %5270  ;;  %v1886_v0 = vadd.f32 %v1792_v27, %v13539_v26  ;;  %v12023_v27 = vld [vmem:[%s16560_s9 + $0x80] sm:$0xff] }
 0x1b7   :  { %5222 = vmatpush1.bf16.msra.mxu0 %v5116_v51  ;;  %v1837_v44 = vpop.f32.mrf.mxu0  ;;  %5196 = vmatprep.mubr.bf16.mxu1 %v16601_v4  ;;  %v1794_v12 = vpop.f32.mrf.mxu1 }
 0x1b8   :  { %v5269_v39 = vpop.permute.xlu0 %5268  ;;  %v13622_v43 = vadd.f32 %v1837_v44, %v1667_v57  ;;  %5239 = vmatprep.mubr.bf16.mxu0 %v16601_v4  ;;  %v1891_v26 = vadd.f32 %v1794_v12, %v13547_v17 }
 0x1b9   :  { %v5277_v19 = vsel %vm5274_vm0, %v5267_v14, %v5269_v39  ;;  %v5278_v52 = vsel %vm5274_vm0, %v5269_v39, %v13614_v48  ;;  %v13633_v5 = vpop.f32.mrf.mxu0  ;;  %v13635_v47 = vpop.f32.mrf.mxu1 }
 0x1ba   :  { %v5314_v20 = vmul.f32 %v5299_v60, %v5277_v19  ;;  %v5315_v62 = vmul.f32 %v5303_v40, %v5278_v52  ;;  %v5265_v57 = vpop.permute.xlu1 %5264  ;;  %v12024_v60 = vld [vmem:[%s16560_s9 + $0x88] sm:$0xff] }
 0x1bb   :  { %v5276_v16 = vsel %vm5274_vm0, %v5265_v57, %v5267_v14  ;;  %v2016_v46 = vpop.f32.mrf.mxu0  ;;  %v1876_v29 = vpop.f32.mrf.mxu1  ;;  %v5311_v40 = vrot.slane %v12024_v60, %v12709_v23  ;;  %v11274_v60 = vld [vmem:[%s16560_s9 + $0xb8] ss:$0 sm:$0xff] }
 0x1bc   :  { %v5320_v18 = vpack.c.bf16 %v5314_v20, %v5314_v20  ;;  %v5321_v30 = vpack.c.bf16 %v5315_v62, %v5315_v62  ;;  %v5313_v21 = vmul.f32 %v5295_v59, %v5276_v16  ;;  %v5263_v17 = vpop.permute.xlu0 %5262  ;;  %v13642_v56 = vadd.f32 %v2016_v46, %v1885_v53  ;;  %v11270_v20 = vld [vmem:[%s16560_s9 + $0x98] ss:$0 sm:$0xff] }
 0x1bd   :  { %v5275_v41 = vsel %vm5274_vm0, %v5263_v17, %v5265_v57  ;;  %11260 = vmatmul.mubr.msk.bf16.vlgmr.msra.gmra.mxu1 %vm239_vm2, %v5099_v34  ;;  %11262 = vmatmul.mubr.msk.bf16.vlgmr.msra.gmra.mxu0 %vm239_vm2, %v5099_v34  ;;  %v1889_v32 = vadd.f32 %v1876_v29, %v13568_v33  ;;  %v2018_v31 = vpop.f32.mrf.mxu0  ;;  %v1878_v1 = vpop.f32.mrf.mxu1  ;;  %v11269_v33 = vld [vmem:[%s16560_s9 + $0x90] ss:$0 sm:$0xff] }
 0x1be   :  { %v5319_v28 = vpack.c.bf16 %v5313_v21, %v5313_v21  ;;  %v5312_v15 = vmul.f32 %v5291_v7, %v5275_v41  ;;  %11265 = vmatprep.subr.msk.bf16.mxu0 %vm243_vm1, %v5321_v30  ;;  %v13649_v14 = vadd.f32 %v2018_v31, %v1886_v0  ;;  %v5336_v6 = vsel %vm243_vm1, %v5320_v18, 0  ;;  %v5491_v42 = vpop.permute.xlu1 %5490  ;;  %5379 = vmatprep.mubr.bf16.mxu1 %v16601_v4 }
 0x1bf   :  { %5405 = vmatpush1.bf16.msra.mxu0 %v5336_v6  ;;  %v1890_v24 = vadd.f32 %v1878_v1, %v13572_v50  ;;  %v2020_v34 = vpop.f32.mrf.mxu0  ;;  %5422 = vmatprep.mubr.bf16.mxu0 %v16601_v4  ;;  %v1880_v51 = vpop.f32.mrf.mxu1  ;;  %v5307_v50 = vrot.slane %v12023_v27, %v12709_v23 }
 0x1c0   :  { %v5318_v11 = vpack.c.bf16 %v5312_v15, %v5312_v15  ;;  %v13658_v53 = vpop.permute.xlu0 %5488  ;;  %v13660_v3 = vadd.f32 %v2020_v34, %v1891_v26  ;;  %11263 = vmatprep.subr.msk.bf16.mxu1 %vm243_vm1, %v5319_v28  ;;  %v1895_v44 = vadd.f32 %v1880_v51, %v13577_v25 }
 0x1c1   :  { %v5501_v0 = vsel %vm5500_vm7, %v13658_v53, %v5491_v42  ;;  %v13674_v39 = vpop.f32.mrf.mxu0  ;;  %v13677_v19 = vpop.f32.mrf.mxu1 }
 0x1c2   :  { %v5538_v12 = vmul.f32 %v11269_v33, %v5501_v0  ;;  %v5330_v54 = vsel %vm243_vm1, %v5318_v11, 0  ;;  %v5273_v59 = vpop.permute.xlu1 %5272 }
 0x1c3   :  { %5362 = vmatpush1.bf16.msra.mxu1 %v5330_v54  ;;  %v5279_v52 = vsel %vm5274_vm0, %v13614_v48, %v5273_v59  ;;  %v5287_v26 = vsel %vm5274_vm0, %v5273_v59, %v5263_v17  ;;  %v2102_v62 = vpop.f32.mrf.mxu0  ;;  %v2059_v16 = vpop.f32.mrf.mxu1  ;;  %vm9508_vm0 = vcmask 449536  }
 0x1c4   :  { %v5316_v25 = vmul.f32 %v5307_v50, %v5279_v52  ;;  %v5317_v57 = vmul.f32 %v5311_v40, %v5287_v26  ;;  %v5493_v9 = vpop.permute.xlu0 %5492  ;;  %v13685_v7 = vadd.f32 %v2102_v62, %v1889_v32  ;;  %v5544_v46 = vpack.c.bf16 %v5538_v12, %v5538_v12 }
 0x1c5   :  { %v5502_v18 = vsel %vm5500_vm7, %v5491_v42, %v5493_v9  ;;  %v2113_v30 = vadd.f32 %v2059_v16, %v13603_v37  ;;  %v2104_v21 = vpop.f32.mrf.mxu0  ;;  %v2061_v28 = vpop.f32.mrf.mxu1 }
 0x1c6   :  { %v5322_v48 = vpack.c.bf16 %v5316_v25, %v5316_v25  ;;  %v5323_v29 = vpack.c.bf16 %v5317_v57, %v5317_v57  ;;  %v5539_v17 = vmul.f32 %v11270_v20, %v5502_v18  ;;  %v13689_v41 = vadd.f32 %v2104_v21, %v1890_v24  ;;  %v5497_v31 = vpop.permute.xlu1 %5496  ;;  %v11272_v24 = vld [vmem:[%s16560_s9 + $0xa8] ss:$0 sm:$0xff] }
 0x1c7   :  { %v2114_v15 = vadd.f32 %v2061_v28, %v13611_v45  ;;  %v2106_v6 = vpop.f32.mrf.mxu0  ;;  %v2063_v34 = vpop.f32.mrf.mxu1  ;;  %v11271_v45 = vld [vmem:[%s16560_s9 + $0xa0] ss:$0 sm:$0xff]  ;;  %v5556_v11 = vsel %vm243_vm1, %v5544_v46, 0 }
 0x1c8   :  { %v5545_v1 = vpack.c.bf16 %v5539_v17, %v5539_v17  ;;  %v5325_v32 = vpop.permute.xlu0 %5324  ;;  %v13692_v33 = vadd.f32 %v2106_v6, %v1895_v44  ;;  %11267 = vmatprep.subr.msk.bf16.mxu1 %vm243_vm1, %v5323_v29  ;;  %v5342_v37 = vsel %vm243_vm1, %v5322_v48, 0  ;;  %v2119_v42 = vadd.f32 %v2063_v34, %v13622_v43  ;;  %v11273_v43 = vld [vmem:[%s16560_s9 + $0xb0] ss:$0 sm:$0xff]  ;;  %s16739_s9 = smov 32  }
 0x1c9   :  { %11264 = vmatmul.mubr.msk.bf16.vlgmr.msra.gmra.mxu1 %vm239_vm2, %v5325_v32  ;;  %11266 = vmatmul.mubr.msk.bf16.vlgmr.msra.gmra.mxu0 %vm239_vm2, %v5325_v32  ;;  %v13717_v12 = vpop.f32.mrf.mxu0  ;;  %v13722_v25 = vpop.f32.mrf.mxu1 }
 0x1ca   :  { %11275 = vmatprep.subr.msk.bf16.mxu0 %vm243_vm1, %v5545_v1  ;;  %5448 = vmatpush1.bf16.msra.mxu1 %v5342_v37  ;;  %v5495_v51 = vpop.permute.xlu1 %5494 }
 0x1cb   :  { %5588 = vmatpush1.bf16.msra.mxu0 %v5556_v11  ;;  %v5503_v27 = vsel %vm5500_vm7, %v5493_v9, %v5495_v51  ;;  %v5504_v50 = vsel %vm5500_vm7, %v5495_v51, %v5497_v31  ;;  %5465 = vmatprep.mubr.bf16.mxu1 %v16601_v4 }
 0x1cc   :  { %v5540_v40 = vmul.f32 %v11271_v45, %v5503_v27  ;;  %v5541_v0 = vmul.f32 %v11272_v24, %v5504_v50  ;;  %v5499_v44 = vpop.permute.xlu0 %5498  ;;  %5605 = vmatprep.mubr.bf16.mxu0 %v16601_v4 }
 0x1cd   :  { %v5505_v54 = vsel %vm5500_vm7, %v5497_v31, %v5499_v44  ;;  %v5513_v59 = vsel %vm5500_vm7, %v5499_v44, %v13658_v53  ;;  %vm9495_vm7 = vcmask 973824  }
 0x1ce   :  { %v5546_v52 = vpack.c.bf16 %v5540_v40, %v5540_v40  ;;  %v5547_v26 = vpack.c.bf16 %v5541_v0, %v5541_v0  ;;  %v5542_v20 = vmul.f32 %v11273_v43, %v5505_v54  ;;  %v5543_v62 = vmul.f32 %v11274_v60, %v5513_v59 }
 0x1cf   :  { %v2285_v57 = vpop.f32.mrf.mxu0  ;;  %v2242_v53 = vpop.f32.mrf.mxu1 }
 0x1d0   :  { %v5548_v9 = vpack.c.bf16 %v5542_v20, %v5542_v20  ;;  %v5549_v16 = vpack.c.bf16 %v5543_v62, %v5543_v62  ;;  %v5551_v46 = vpop.permute.xlu0 %5550  ;;  %v2339_v18 = vadd.f32 %v2285_v57, %v2113_v30  ;;  %11277 = vmatprep.subr.msk.bf16.mxu1 %vm243_vm1, %v5547_v26  ;;  %v5562_v21 = vsel %vm243_vm1, %v5546_v52, 0 }
 0x1d1   :  { %11268 = vmatmul.mubr.msk.bf16.vlgmr.msra.gmra.mxu1 %vm239_vm2, %v5325_v32  ;;  %11276 = vmatmul.mubr.msk.bf16.vlgmr.msra.gmra.mxu0 %vm239_vm2, %v5551_v46  ;;  %v2287_v48 = vpop.f32.mrf.mxu0  ;;  %v2337_v29 = vadd.f32 %v2242_v53, %v13642_v56  ;;  %v2244_v30 = vpop.f32.mrf.mxu1 }
 0x1d2   :  { %11279 = vmatprep.subr.msk.bf16.mxu0 %vm243_vm1, %v5549_v16  ;;  %v2340_v17 = vadd.f32 %v2287_v48, %v2114_v15  ;;  %5631 = vmatpush1.bf16.msra.mxu1 %v5562_v21  ;;  %v5568_v31 = vsel %vm243_vm1, %v5548_v9, 0  ;;  %v2338_v6 = vadd.f32 %v2244_v30, %v13649_v14  ;;  %vm8817_vm1 = vcmask 72704  }
 0x1d3   :  { %5674 = vmatpush1.bf16.msra.mxu0 %v5568_v31  ;;  %v2289_v28 = vpop.f32.mrf.mxu0  ;;  %5648 = vmatprep.mubr.bf16.mxu1 %v16601_v4  ;;  %v2246_v32 = vpop.f32.mrf.mxu1 }
 0x1d4   :  { %v2345_v1 = vadd.f32 %v2289_v28, %v2119_v42  ;;  %5691 = vmatprep.mubr.bf16.mxu0 %v16601_v4  ;;  %v2343_v56 = vadd.f32 %v2246_v32, %v13660_v3 }
 0x1d5   :  { %v13734_v34 = vpop.f32.mrf.mxu0  ;;  %v13737_v37 = vpop.f32.mrf.mxu1 }
 0x1d7   :  { %v2468_v15 = vpop.f32.mrf.mxu0  ;;  %v2328_v24 = vpop.f32.mrf.mxu1 }
 0x1d8   :  { %v2563_v45 = vadd.f32 %v2468_v15, %v2337_v29  ;;  %v2341_v14 = vadd.f32 %v2328_v24, %v13685_v7 }
 0x1d9   :  { %11278 = vmatmul.mubr.msk.bf16.vlgmr.msra.gmra.mxu1 %vm239_vm2, %v5551_v46  ;;  %11280 = vmatmul.mubr.msk.bf16.vlgmr.msra.gmra.mxu0 %vm239_vm2, %v5551_v46  ;;  %v2470_v11 = vpop.f32.mrf.mxu0  ;;  %v2330_v51 = vpop.f32.mrf.mxu1 }
 0x1da   :  { %v2564_v42 = vadd.f32 %v2470_v11, %v2338_v6  ;;  %6045 = vmatprep.mubr.bf16.mxu0 %v16601_v4  ;;  %6002 = vmatprep.mubr.bf16.mxu1 %v16601_v4  ;;  %v2342_v3 = vadd.f32 %v2330_v51, %v13689_v41 }
 0x1db   :  { %v2472_v27 = vpop.f32.mrf.mxu0  ;;  %v2332_v43 = vpop.f32.mrf.mxu1 }
 0x1dc   :  { %v2569_v50 = vadd.f32 %v2472_v27, %v2343_v56  ;;  %v2347_v40 = vadd.f32 %v2332_v43, %v13692_v33 }
 0x1dd   :  { %v13745_v60 = vpop.f32.mrf.mxu0  ;;  %v13748_v0 = vpop.f32.mrf.mxu1 }
 0x1df   :  { %v2554_v44 = vpop.f32.mrf.mxu0  ;;  %v2511_v7 = vpop.f32.mrf.mxu1 }
 0x1e0   :  { %v2567_v54 = vadd.f32 %v2554_v44, %v2341_v14  ;;  %v2565_v52 = vadd.f32 %v2511_v7, %v2339_v18 }
 0x1e1   :  { %v2556_v59 = vpop.f32.mrf.mxu0  ;;  %v2513_v20 = vpop.f32.mrf.mxu1 }
 0x1e2   :  { %v2568_v26 = vadd.f32 %v2556_v59, %v2342_v3  ;;  %v2566_v57 = vadd.f32 %v2513_v20, %v2340_v17 }
 0x1e3   :  { %v2558_v62 = vpop.f32.mrf.mxu0  ;;  %v2515_v16 = vpop.f32.mrf.mxu1 }
 0x1e4   :  { %v2573_v9 = vadd.f32 %v2558_v62, %v2347_v40  ;;  %v2571_v41 = vadd.f32 %v2515_v16, %v2345_v1 }
 0x1e5   :  { %v13750_v46 = vpop.f32.mrf.mxu0  ;;  %v13752_v53 = vpop.f32.mrf.mxu1 }
 0x1e9   :  { %v2737_v21 = vpop.f32.mrf.mxu0 }
 0x1ea   :  { %v2791_v33 = vadd.f32 %v2737_v21, %v2565_v52 }
 0x1eb   :  { %v2739_v48 = vpop.f32.mrf.mxu0 }
 0x1ec   :  { %v2792_v29 = vadd.f32 %v2739_v48, %v2566_v57 }
 0x1ed   :  { %v2694_v31 = vpop.f32.mrf.mxu1  ;;  %v2741_v28 = vpop.f32.mrf.mxu0 }
 0x1ee   :  { %v2789_v30 = vadd.f32 %v2694_v31, %v2563_v45  ;;  %v2797_v6 = vadd.f32 %v2741_v28, %v2571_v41 }
 0x1ef   :  { %v2696_v18 = vpop.f32.mrf.mxu1  ;;  %v13754_v56 = vpop.f32.mrf.mxu0 }
 0x1f0   :  { %v2790_v32 = vadd.f32 %v2696_v18, %v2564_v42 }
 0x1f1   :  { %v2698_v17 = vpop.f32.mrf.mxu1  ;;  %v2894_v24 = vpop.f32.mrf.mxu0 }
 0x1f2   :  { %v2795_v15 = vadd.f32 %v2698_v17, %v2569_v50  ;;  %v2989_v1 = vadd.f32 %v2894_v24, %v2789_v30 }
 0x1f3   :  { %v13756_v11 = vpop.f32.mrf.mxu1  ;;  %v2896_v14 = vpop.f32.mrf.mxu0 }
 0x1f4   :  { %v2990_v51 = vadd.f32 %v2896_v14, %v2790_v32 }
 0x1f5   :  { %v2780_v27 = vpop.f32.mrf.mxu1  ;;  %v2898_v43 = vpop.f32.mrf.mxu0 }
 0x1f6   :  { %v2793_v3 = vadd.f32 %v2780_v27, %v2567_v54  ;;  %v2995_v40 = vadd.f32 %v2898_v43, %v2795_v15 }
 0x1f7   :  { %v2782_v44 = vpop.f32.mrf.mxu1  ;;  %v13758_v7 = vpop.f32.mrf.mxu0 }
 0x1f8   :  { %v2794_v45 = vadd.f32 %v2782_v44, %v2568_v26 }
 0x1f9   :  { %v2784_v59 = vpop.f32.mrf.mxu1 }
 0x1fa   :  { %v2799_v42 = vadd.f32 %v2784_v59, %v2573_v9  ;;  %v2980_v52 = vpop.f32.mrf.mxu0 }
 0x1fb   :  { %v2993_v20 = vadd.f32 %v2980_v52, %v2793_v3  ;;  %v13760_v62 = vpop.f32.mrf.mxu1 }
 0x1fc   :  { %v2982_v50 = vpop.f32.mrf.mxu0 }
 0x1fd   :  { %v2994_v57 = vadd.f32 %v2982_v50, %v2794_v45  ;;  %v2937_v16 = vpop.f32.mrf.mxu1 }
 0x1fe   :  { %v2991_v41 = vadd.f32 %v2937_v16, %v2791_v33  ;;  %v2984_v21 = vpop.f32.mrf.mxu0 }
 0x1ff   :  { %v2999_v48 = vadd.f32 %v2984_v21, %v2799_v42  ;;  %v2939_v31 = vpop.f32.mrf.mxu1 }
 0x200   :  { %v2992_v54 = vadd.f32 %v2939_v31, %v2792_v29  ;;  %v13762_v30 = vpop.f32.mrf.mxu0 }
 0x201   :  { %v2941_v28 = vpop.f32.mrf.mxu1 }
 0x202   :  { %v2997_v26 = vadd.f32 %v2941_v28, %v2797_v6  ;;  %v3163_v18 = vpop.f32.mrf.mxu0 }
 0x203   :  { %v3217_v32 = vadd.f32 %v3163_v18, %v2991_v41  ;;  %v13764_v17 = vpop.f32.mrf.mxu1 }
 0x204   :  { %v3165_v9 = vpop.f32.mrf.mxu0 }
 0x205   :  { %v3218_v15 = vadd.f32 %v3165_v9, %v2992_v54  ;;  %v3120_v24 = vpop.f32.mrf.mxu1 }
 0x206   :  { %v3215_v14 = vadd.f32 %v3120_v24, %v2989_v1  ;;  %v3167_v27 = vpop.f32.mrf.mxu0  ;;  %v13773_v1 = vld [vmem:[%s16705_s26] ss:$8 sps:$4 sm:$0xff]  }
 0x207   :  { %v3223_v3 = vadd.f32 %v3167_v27, %v2997_v26  ;;  %v3122_v43 = vpop.f32.mrf.mxu1  ;;  %16706 = vst [vmem:[#allocation13_spill] sm:$0xff] %v13773_v1  ;;  %6323 = vrot.lane.b32.xlu1 %v13773_v1, %s16627_s5  ;;  %5965 = vrot.lane.b32.xlu0 %v13773_v1, %s16674_s28  ;;  %s16780_s5 = smov 127  }
 0x208   :  { %v3216_v33 = vadd.f32 %v3122_v43, %v2990_v51  ;;  %v13766_v44 = vpop.f32.mrf.mxu0 }
 0x209   :  { %v3124_v45 = vpop.f32.mrf.mxu1 }
 0x20a   :  { %v3221_v29 = vadd.f32 %v3124_v45, %v2995_v40  ;;  %v3346_v59 = vpop.f32.mrf.mxu0 }
 0x20b   :  { %v3441_v42 = vadd.f32 %v3346_v59, %v3215_v14  ;;  %v13768_v52 = vpop.f32.mrf.mxu1  ;;  %6749 = vrot.lane.b32.xlu1 %v13773_v1, %s16621_s4  ;;  %6561 = vrot.lane.b32.xlu0 %v13773_v1, %s16702_s30  ;;  %s16794_s4 = smov 64  }
 0x20c   :  { %v3348_v6 = vpop.f32.mrf.mxu0 }
 0x20d   :  { %v3442_v50 = vadd.f32 %v3348_v6, %v3216_v33  ;;  %v3206_v16 = vpop.f32.mrf.mxu1 }
 0x20e   :  { %v3219_v41 = vadd.f32 %v3206_v16, %v2993_v20  ;;  %v3350_v21 = vpop.f32.mrf.mxu0 }
 0x20f   :  { %v3447_v31 = vadd.f32 %v3350_v21, %v3221_v29  ;;  %v3208_v54 = vpop.f32.mrf.mxu1 }
 0x210   :  { %v3220_v51 = vadd.f32 %v3208_v54, %v2994_v57  ;;  %v13775_v28 = vpop.f32.mrf.mxu0 }
 0x211   :  { %v3210_v40 = vpop.f32.mrf.mxu1 }
 0x212   :  { %v3225_v26 = vadd.f32 %v3210_v40, %v2999_v48  ;;  %v3432_v20 = vpop.f32.mrf.mxu0 }
 0x213   :  { %v3445_v18 = vadd.f32 %v3432_v20, %v3219_v41  ;;  %v13781_v9 = vpop.f32.mrf.mxu1 }
 0x214   :  { %v3434_v24 = vpop.f32.mrf.mxu0 }
 0x215   :  { %v3446_v14 = vadd.f32 %v3434_v24, %v3220_v51  ;;  %v3389_v27 = vpop.f32.mrf.mxu1 }
 0x216   :  { %v3443_v57 = vadd.f32 %v3389_v27, %v3217_v32  ;;  %v3436_v43 = vpop.f32.mrf.mxu0 }
 0x217   :  { %v3451_v33 = vadd.f32 %v3436_v43, %v3225_v26  ;;  %v3391_v45 = vpop.f32.mrf.mxu1 }
 0x218   :  { %v3444_v29 = vadd.f32 %v3391_v45, %v3218_v15  ;;  %v13787_v59 = vpop.f32.mrf.mxu0 }
 0x219   :  { %v3393_v48 = vpop.f32.mrf.mxu1 }
 0x21a   :  { %v3449_v6 = vadd.f32 %v3393_v48, %v3223_v3  ;;  %v3615_v16 = vpop.f32.mrf.mxu0 }
 0x21b   :  { %v3669_v41 = vadd.f32 %v3615_v16, %v3443_v57  ;;  %v13789_v21 = vpop.f32.mrf.mxu1 }
 0x21c   :  { %v3617_v54 = vpop.f32.mrf.mxu0 }
 0x21d   :  { %v3670_v51 = vadd.f32 %v3617_v54, %v3444_v29  ;;  %v3572_v40 = vpop.f32.mrf.mxu1 }
 0x21e   :  { %v3667_v20 = vadd.f32 %v3572_v40, %v3441_v42  ;;  %v3619_v24 = vpop.f32.mrf.mxu0 }
 0x21f   :  { %v3675_v8 = vadd.f32 %v3619_v24, %v3449_v6  ;;  %v3574_v4 = vpop.f32.mrf.mxu1 }
 0x220   :  { %v3668_v32 = vadd.f32 %v3574_v4, %v3442_v50  ;;  %v13791_v27 = vpop.f32.mrf.mxu0 }
 0x221   :  { %v3576_v26 = vpop.f32.mrf.mxu1 }
 0x222   :  { %v3673_v15 = vadd.f32 %v3576_v26, %v3447_v31  ;;  %v3799_v43 = vpop.f32.mrf.mxu0 }
 0x223   :  { %v3894_v45 = vadd.f32 %v3799_v43, %v3667_v20  ;;  %v13793_v23 = vpop.f32.mrf.mxu1 }
 0x224   :  { %v3801_v3 = vpop.f32.mrf.mxu0 }
 0x225   :  { %v3895_v57 = vadd.f32 %v3801_v3, %v3668_v32  ;;  %v3658_v48 = vpop.f32.mrf.mxu1 }
 0x226   :  { %v3671_v16 = vadd.f32 %v3658_v48, %v3445_v18  ;;  %v3803_v13 = vpop.f32.mrf.mxu0 }
 0x227   :  { %v3900_v29 = vadd.f32 %v3803_v13, %v3673_v15  ;;  %v3660_v54 = vpop.f32.mrf.mxu1 }
 0x228   :  { %v3672_v42 = vadd.f32 %v3660_v54, %v3446_v14  ;;  %v13795_v40 = vpop.f32.mrf.mxu0 }
 0x229   :  { %v3662_v6 = vpop.f32.mrf.mxu1 }
 0x22a   :  { %v3677_v4 = vadd.f32 %v3662_v6, %v3451_v33  ;;  %v3885_v50 = vpop.f32.mrf.mxu0 }
 0x22b   :  { %v3898_v24 = vadd.f32 %v3885_v50, %v3671_v16  ;;  %v13797_v36 = vpop.f32.mrf.mxu1 }
 0x22c   :  { %v3887_v31 = vpop.f32.mrf.mxu0 }
 0x22d   :  { %v3899_v20 = vadd.f32 %v3887_v31, %v3672_v42  ;;  %v3842_v26 = vpop.f32.mrf.mxu1 }
 0x22e   :  { %v3896_v43 = vadd.f32 %v3842_v26, %v3669_v41  ;;  %v3889_v38 = vpop.f32.mrf.mxu0 }
 0x22f   :  { %v3904_v32 = vadd.f32 %v3889_v38, %v3677_v4  ;;  %v3844_v3 = vpop.f32.mrf.mxu1 }
 0x230   :  { %v3897_v18 = vadd.f32 %v3844_v3, %v3670_v51  ;;  %v13799_v15 = vpop.f32.mrf.mxu0 }
 0x231   :  { %v3846_v48 = vpop.f32.mrf.mxu1 }
 0x232   :  { %v3902_v13 = vadd.f32 %v3846_v48, %v3675_v8 }
 0x233   :  { %v13801_v14 = vpop.f32.mrf.mxu1 }
 0x235   :  { %v4068_v54 = vpop.f32.mrf.mxu0  ;;  %v4025_v33 = vpop.f32.mrf.mxu1 }
 0x236   :  { %v13803_v6 = vadd.f32 %v4068_v54, %v3896_v43  ;;  %v13805_v16 = vadd.f32 %v4025_v33, %v3894_v45 }
 0x237   :  { %v4070_v50 = vpop.f32.mrf.mxu0  ;;  %v4027_v42 = vpop.f32.mrf.mxu1 }
 0x238   :  { %16707 = vst [vmem:[#allocation14_spill] sm:$0xff] %v13803_v6  ;;  %v4123_v31 = vadd.f32 %v4070_v50, %v3897_v18  ;;  %v4121_v41 = vadd.f32 %v4027_v42, %v3895_v57 }
 0x239   :  { %v4072_v26 = vpop.f32.mrf.mxu0  ;;  %v4029_v38 = vpop.f32.mrf.mxu1 }
 0x23a   :  { %v4128_v4 = vadd.f32 %v4072_v26, %v3902_v13  ;;  %v4126_v51 = vadd.f32 %v4029_v38, %v3900_v29 }
 0x23b   :  { %v13807_v3 = vpop.f32.mrf.mxu0  ;;  %v13809_v8 = vpop.f32.mrf.mxu1 }
 0x23d   :  { %v13811_v48 = vpop.f32.mrf.mxu0  ;;  %v4111_v61 = vpop.f32.mrf.mxu1 }
 0x23e   :  { %16708 = vst [vmem:[#allocation15_spill] sm:$0xff] %v13811_v48  ;;  %v4124_v63 = vadd.f32 %v4111_v61, %v3898_v24 }
 0x23f   :  { %v4253_v43 = vpop.f32.mrf.mxu0  ;;  %v4113_v54 = vpop.f32.mrf.mxu1 }
 0x240   :  { %v4347_v45 = vadd.f32 %v4253_v43, %v4121_v41  ;;  %v4125_v33 = vadd.f32 %v4113_v54, %v3899_v20 }
 0x241   :  { %v4255_v35 = vpop.f32.mrf.mxu0  ;;  %v4115_v10 = vpop.f32.mrf.mxu1 }
 0x242   :  { %v4352_v18 = vadd.f32 %v4255_v35, %v4126_v51  ;;  %v4130_v57 = vadd.f32 %v4115_v10, %v3904_v32 }
 0x243   :  { %v13813_v50 = vpop.f32.mrf.mxu0  ;;  %v13815_v13 = vpop.f32.mrf.mxu1 }
 0x245   :  { %v4337_v29 = vpop.f32.mrf.mxu0  ;;  %v13817_v42 = vpop.f32.mrf.mxu1 }
 0x246   :  { %16709 = vst [vmem:[#allocation16_spill] sm:$0xff] %v13817_v42  ;;  %v4350_v26 = vadd.f32 %v4337_v29, %v4124_v63 }
 0x247   :  { %v4339_v38 = vpop.f32.mrf.mxu0  ;;  %v4296_v1 = vpop.f32.mrf.mxu1 }
 0x248   :  { %v4351_v6 = vadd.f32 %v4339_v38, %v4125_v33  ;;  %v4349_v61 = vadd.f32 %v4296_v1, %v4123_v31  ;;  %v1668_v31 = vadd.f32 %v13601_v22, %v13524_v55 }
 0x249   :  { %v4341_v24 = vpop.f32.mrf.mxu0  ;;  %v4298_v48 = vpop.f32.mrf.mxu1 }
 0x24a   :  { %v4356_v41 = vadd.f32 %v4341_v24, %v4130_v57  ;;  %v4354_v20 = vadd.f32 %v4298_v48, %v4128_v4  ;;  %v1894_v38 = vadd.f32 %v13633_v5, %v1668_v31 }
 0x24b   :  { %v13819_v43 = vpop.f32.mrf.mxu0  ;;  %v13821_v35 = vpop.f32.mrf.mxu1 }
 0x251   :  { %v13823_v10 = vpop.f32.mrf.mxu1  ;;  %v13825_v32 = vpop.f32.mrf.mxu0 }
 0x252   :  { %16710 = vst [vmem:[#allocation17_spill] sm:$0xff] %v13825_v32 }
 0x253   :  { %v4479_v51 = vpop.f32.mrf.mxu1  ;;  %v4522_v54 = vpop.f32.mrf.mxu0 }
 0x254   :  { %v13827_v42 = vadd.f32 %v4479_v51, %v4347_v45  ;;  %v13829_v63 = vadd.f32 %v4522_v54, %v4349_v61  ;;  %v2120_v45 = vadd.f32 %v13722_v25, %v1894_v38 }
 0x255   :  { %v4481_v33 = vpop.f32.mrf.mxu1  ;;  %v4524_v1 = vpop.f32.mrf.mxu0 }
 0x256   :  { %16711 = vst [vmem:[#allocation18_spill] sm:$0xff] %v13827_v42  ;;  %16712 = vst [vmem:[#allocation19_spill] sm:$0xff] %v13829_v63  ;;  %v4578_v4 = vadd.f32 %v4481_v33, %v4352_v18  ;;  %v4580_v48 = vadd.f32 %v4524_v1, %v4354_v20  ;;  %v2346_v63 = vadd.f32 %v13734_v34, %v2120_v45 }
 0x257   :  { %v13833_v57 = vpop.f32.mrf.mxu1  ;;  %v4526_v29 = vpop.f32.mrf.mxu0  ;;  %v1892_v18 = vadd.f32 %v13635_v47, %v13557_v49  ;;  %v1670_v47 = vadd.f32 %v13596_v58, %v13566_v2 }
 0x258   :  { %v2572_v20 = vadd.f32 %v13752_v53, %v2346_v63 }
 0x259   :  { %v4563_v24 = vpop.f32.mrf.mxu1  ;;  %v13836_v32 = vpop.f32.mrf.mxu0 }
 0x25a   :  { %v4576_v51 = vadd.f32 %v4563_v24, %v4350_v26  ;;  %v2118_v26 = vadd.f32 %v13674_v39, %v1892_v18  ;;  %v2798_v31 = vadd.f32 %v13754_v56, %v2572_v20  ;;  %v1896_v56 = vadd.f32 %v13677_v19, %v1670_v47 }
 0x25b   :  { %v4565_v61 = vpop.f32.mrf.mxu1  ;;  %v13839_v54 = vpop.f32.mrf.mxu0 }
 0x25c   :  { %v4577_v42 = vadd.f32 %v4565_v61, %v4351_v6  ;;  %v2344_v6 = vadd.f32 %v13737_v37, %v2118_v26  ;;  %v2998_v24 = vadd.f32 %v13764_v17, %v2798_v31  ;;  %v2122_v2 = vadd.f32 %v13717_v12, %v1896_v56 }
 0x25d   :  { %v4567_v55 = vpop.f32.mrf.mxu1  ;;  %v4707_v22 = vpop.f32.mrf.mxu0 }
 0x25e   :  { %v4582_v5 = vadd.f32 %v4567_v55, %v4356_v41  ;;  %v13845_v33 = vadd.f32 %v4707_v22, %v4578_v4  ;;  %v2570_v63 = vadd.f32 %v13745_v60, %v2344_v6  ;;  %v3224_v39 = vadd.f32 %v13766_v44, %v2998_v24 }
 0x25f   :  { %v13847_v1 = vpop.f32.mrf.mxu1  ;;  %v4709_v25 = vpop.f32.mrf.mxu0  ;;  %v2348_v44 = vadd.f32 %v13748_v0, %v2122_v2 }
 0x260   :  { %v2796_v37 = vadd.f32 %v13756_v11, %v2570_v63  ;;  %v3450_v17 = vadd.f32 %v13789_v21, %v3224_v39 }
 0x261   :  { %v13851_v38 = vpop.f32.mrf.mxu1  ;;  %v4789_v34 = vpop.f32.mrf.mxu0  ;;  %v2574_v11 = vadd.f32 %v13750_v46, %v2348_v44 }
 0x262   :  { %v4802_v49 = vadd.f32 %v4789_v34, %v4576_v51  ;;  %v2996_v58 = vadd.f32 %v13758_v7, %v2796_v37  ;;  %v3676_v60 = vadd.f32 %v13791_v27, %v3450_v17 }
 0x263   :  { %v13857_v53 = vpop.f32.mrf.mxu1  ;;  %v4791_v41 = vpop.f32.mrf.mxu0  ;;  %v2800_v7 = vadd.f32 %v13760_v62, %v2574_v11 }
 0x264   :  { %v4803_v4 = vadd.f32 %v4791_v41, %v4577_v42  ;;  %v3222_v42 = vadd.f32 %v13768_v52, %v2996_v58  ;;  %v3903_v19 = vadd.f32 %v13801_v14, %v3676_v60 }
 0x265   :  { %v4750_v45 = vpop.f32.mrf.mxu1  ;;  %v4793_v61 = vpop.f32.mrf.mxu0 }
 0x266   :  { %v13864_v51 = vadd.f32 %v4750_v45, %v4580_v48  ;;  %v4808_v55 = vadd.f32 %v4793_v61, %v4582_v5  ;;  %v3448_v21 = vadd.f32 %v13775_v28, %v3222_v42  ;;  %v4129_v48 = vadd.f32 %v13807_v3, %v3903_v19 }
 0x267   :  { %v4752_v22 = vpop.f32.mrf.mxu1  ;;  %v4795_v18 = vpop.f32.mrf.mxu0  ;;  %v3000_v5 = vadd.f32 %v13762_v30, %v2800_v7 }
 0x268   :  { %v3674_v27 = vadd.f32 %v13793_v23, %v3448_v21  ;;  %v4355_v0 = vadd.f32 %v13821_v35, %v4129_v48 }
 0x269   :  { %v3226_v31 = vadd.f32 %v13781_v9, %v3000_v5 }
 0x26a   :  { %v3901_v46 = vadd.f32 %v13795_v40, %v3674_v27  ;;  %v4581_v28 = vadd.f32 %v4526_v29, %v4355_v0 }
 0x26b   :  { %v3452_v6 = vadd.f32 %v13787_v59, %v3226_v31 }
 0x26c   :  { %v4127_v62 = vadd.f32 %v13809_v8, %v3901_v46  ;;  %v4807_v23 = vadd.f32 %v4752_v22, %v4581_v28 }
 0x26d   :  { %v4929_v20 = vpop.f32.mrf.mxu1  ;;  %v13875_v12 = vpop.f32.mrf.mxu0  ;;  %v3678_v29 = vadd.f32 %v13797_v36, %v3452_v6 }
 0x26e   :  { %v4353_v24 = vadd.f32 %v13813_v50, %v4127_v62 }
 0x26f   :  { %v13880_v52 = vpop.f32.mrf.mxu1  ;;  %v13882_v14 = vpop.f32.mrf.mxu0  ;;  %v3905_v8 = vadd.f32 %v13799_v15, %v3678_v29  ;;  %v16716_v29 = vld [vmem:[#allocation17_spill] sm:$0xff] }
 0x270   :  { %v4579_v41 = vadd.f32 %v13833_v57, %v4353_v24 }
 0x271   :  { %v13886_v26 = vpop.f32.mrf.mxu1  ;;  %v13888_v3 = vpop.f32.mrf.mxu0  ;;  %v4131_v50 = vadd.f32 %v13815_v13, %v3905_v8 }
 0x272   :  { %v4805_v56 = vadd.f32 %v4709_v25, %v4579_v41 }
 0x273   :  { %v4935_v34 = vpop.f32.mrf.mxu1  ;;  %v4978_v35 = vpop.f32.mrf.mxu0  ;;  %v4357_v36 = vadd.f32 %v13819_v43, %v4131_v50  ;;  %v16713_v43 = vld [vmem:[#allocation15_spill] sm:$0xff] }
 0x274   :  { %v13894_v47 = vadd.f32 %v4978_v35, %v4807_v23  ;;  %v5031_v37 = vadd.f32 %v4935_v34, %v4805_v56  ;;  %v4346_v7 = vadd.f32 %v16713_v43, %v13805_v16  ;;  %v16714_v34 = vld [vmem:[#allocation14_spill] sm:$0xff]  ;;  %v16715_v35 = vld [vmem:[#allocation16_spill] sm:$0xff] }
 0x275   :  { %v5015_v30 = vpop.f32.mrf.mxu1  ;;  %v5155_v40 = vpop.f32.mrf.mxu0  ;;  %v4583_v44 = vadd.f32 %v13847_v1, %v4357_v36  ;;  %v4348_v6 = vadd.f32 %v16715_v35, %v16714_v34 }
 0x276   :  { %v5028_v63 = vadd.f32 %v5015_v30, %v4802_v49  ;;  %v4572_v1 = vadd.f32 %v13823_v10, %v4346_v7  ;;  %v13988_v34 = vpop.permute.xlu0 %5723 }
 0x277   :  { %v5017_v39 = vpop.f32.mrf.mxu1  ;;  %v13898_v9 = vpop.f32.mrf.mxu0  ;;  %v4809_v42 = vadd.f32 %v4795_v18, %v4583_v44  ;;  %v4574_v10 = vadd.f32 %v16716_v29, %v4348_v6  ;;  %v16718_v44 = vld [vmem:[#allocation18_spill] sm:$0xff] }
 0x278   :  { %v5029_v45 = vadd.f32 %v5017_v39, %v4803_v4  ;;  %v4798_v18 = vadd.f32 %v13836_v32, %v4572_v1 }
 0x279   :  { %v5019_v61 = vpop.f32.mrf.mxu1  ;;  %v13901_v59 = vpop.f32.mrf.mxu0 }
 0x27a   :  { %v5034_v17 = vadd.f32 %v5019_v61, %v4808_v55  ;;  %v5024_v31 = vadd.f32 %v4929_v20, %v4798_v18  ;;  %v4800_v20 = vadd.f32 %v13851_v38, %v4574_v10 }
 0x27b   :  { %v5021_v2 = vpop.f32.mrf.mxu1  ;;  %v5161_v58 = vpop.f32.mrf.mxu0 }
 0x27c   :  { %v13905_v57 = vadd.f32 %v5161_v58, %v5031_v37  ;;  %v5035_v11 = vadd.f32 %v5021_v2, %v4809_v42  ;;  %v5250_v24 = vadd.f32 %v5155_v40, %v5024_v31  ;;  %v5026_v61 = vadd.f32 %v13875_v12, %v4800_v20 }
 0x27d   :  { %v5198_v49 = vpop.f32.mrf.mxu1  ;;  %v5241_v60 = vpop.f32.mrf.mxu0  ;;  %v4799_v12 = vadd.f32 %v13839_v54, %v16718_v44 }
 0x27e   :  { %v5254_v15 = vadd.f32 %v5241_v60, %v5028_v63  ;;  %v13927_v63 = vpop.permute.xlu1 %5718 }
 0x27f   :  { %v5200_v25 = vpop.f32.mrf.mxu1  ;;  %v5243_v4 = vpop.f32.mrf.mxu0 }
 0x280   :  { %v5255_v19 = vadd.f32 %v5243_v4, %v5029_v45  ;;  %v5025_v4 = vadd.f32 %v13880_v52, %v4799_v12 }
 0x281   :  { %v5245_v22 = vpop.f32.mrf.mxu0  ;;  %v13908_v21 = vpop.f32.mrf.mxu1 }
 0x282   :  { %v5260_v13 = vadd.f32 %v5245_v22, %v5034_v17  ;;  %v5252_v17 = vadd.f32 %v5198_v49, %v5026_v61  ;;  %v16720_v49 = vld [vmem:[#allocation19_spill] sm:$0xff]  ;;  %v5251_v22 = vadd.f32 %v13898_v9, %v5025_v4  ;;  %v14113_v4 = vpop.permute.xlu0 %5965 }
 0x283   :  { %v5247_v55 = vpop.f32.mrf.mxu0  ;;  %v13914_v27 = vpop.f32.mrf.mxu1 }
 0x284   :  { %v13910_v48 = vadd.f32 %v5247_v55, %v5035_v11  ;;  %v5259_v29 = vadd.f32 %v13914_v27, %v13894_v47 }
 0x289   :  { %v5381_v0 = vpop.f32.mrf.mxu1  ;;  %v5424_v5 = vpop.f32.mrf.mxu0 }
 0x28a   :  { %v5476_v41 = vadd.f32 %v5381_v0, %v5250_v24  ;;  %v5478_v60 = vadd.f32 %v5424_v5, %v5252_v17  ;;  %v5030_v0 = vadd.f32 %v13886_v26, %v13845_v33 }
 0x28b   :  { %v5383_v46 = vpop.f32.mrf.mxu1  ;;  %v5426_v28 = vpop.f32.mrf.mxu0 }
 0x28c   :  { %v5477_v43 = vadd.f32 %v5383_v46, %v5251_v22  ;;  %v5256_v5 = vadd.f32 %v13901_v59, %v5030_v0 }
 0x28d   :  { %v5385_v62 = vpop.f32.mrf.mxu1  ;;  %v13918_v23 = vpop.f32.mrf.mxu0 }
 0x28e   :  { %v5482_v31 = vadd.f32 %v5385_v62, %v5256_v5 }
 0x28f   :  { %v13922_v30 = vpop.f32.mrf.mxu1  ;;  %v13924_v16 = vpop.f32.mrf.mxu0 }
 0x290   :  { %v5483_v24 = vadd.f32 %v13922_v30, %v13905_v57 }
 0x291   :  { %v5467_v32 = vpop.f32.mrf.mxu1  ;;  %v5607_v39 = vpop.f32.mrf.mxu0 }
 0x292   :  { %v13930_v8 = vadd.f32 %v5467_v32, %v5254_v15  ;;  %v5702_v56 = vadd.f32 %v5607_v39, %v5476_v41  ;;  %v5485_v32 = vadd.f32 %v13924_v16, %v5259_v29 }
 0x293   :  { %v5469_v45 = vpop.f32.mrf.mxu1 }
 0x294   :  { %v5726_v40 = vadd.f32 %v13927_v63, %v5702_v56  ;;  %v13934_v50 = vadd.f32 %v5469_v45, %v5255_v19  ;;  %v4801_v19 = vadd.f32 %v13857_v53, %v16720_v49  ;;  %v14125_v49 = vpop.permute.xlu0 %6561 }
 0x295   :  { %v5471_v37 = vpop.f32.mrf.mxu1  ;;  %16736 = vst [vmem:[#allocation28_spill] sm:$0xff] %v14125_v49 }
 0x296   :  { %v13936_v2 = vmax.f32 %v5726_v40, 0.0  ;;  %v13938_v58 = vadd.f32 %v5471_v37, %v5260_v13  ;;  %v5609_v13 = vpop.f32.mrf.mxu0  ;;  %v5027_v55 = vadd.f32 %v13882_v14, %v4801_v19 }
 0x297   :  { %v13940_v36 = vpop.f32.mrf.mxu1  ;;  %v5703_v52 = vadd.f32 %v5609_v13, %v5477_v43 }
 0x298   :  { %16717 = vst [vmem:[#allocation15_spill] sm:$0xff] %v13936_v2  ;;  %5874 = vrot.lane.b32.xlu1 %v13936_v2, %s16625_s2  ;;  %v5253_v54 = vadd.f32 %v5200_v25, %v5027_v55  ;;  %v5611_v46 = vpop.f32.mrf.mxu0  ;;  %v16738_v55 = vld [vmem:[#allocation13_spill] sm:$0xff] }
 0x299   :  { %v5650_v38 = vpop.f32.mrf.mxu1  ;;  %v5727_v53 = vadd.f32 %v13927_v63, %v5703_v52  ;;  %v5708_v26 = vadd.f32 %v5611_v46, %v5482_v31 }
 0x29a   :  { %v5704_v15 = vadd.f32 %v5650_v38, %v5478_v60  ;;  %v5479_v1 = vadd.f32 %v5426_v28, %v5253_v54  ;;  %v5032_v28 = vadd.f32 %v13888_v3, %v13864_v51  ;;  %v5613_v6 = vpop.f32.mrf.mxu0  ;;  %v5487_v38 = vadd.f32 %v13940_v36, %v13910_v48  ;;  %v14101_v36 = vpop.permute.xlu1 %6323 }
 0x29b   :  { %v5652_v7 = vpop.f32.mrf.mxu1  ;;  %v13969_v9 = vmax.f32 %v5727_v53, 0.0  ;;  %v5732_v51 = vadd.f32 %v13988_v34, %v5708_v26  ;;  %v5709_v10 = vadd.f32 %v5613_v6, %v5483_v24  ;;  %16734 = vst [vmem:[#allocation26_spill] sm:$0xff] %v14101_v36  ;;  %v16741_v6 = vld [vmem:[#allocation5_spill] sm:$0xff] }
 0x29c   :  { %v5728_v42 = vadd.f32 %v13927_v63, %v5704_v15  ;;  %5782 = vrot.lane.b32.xlu1 %v13936_v2, %s16719_s0  ;;  %v5705_v14 = vadd.f32 %v5652_v7, %v5479_v1  ;;  %v5258_v33 = vadd.f32 %v13908_v21, %v5032_v28  ;;  %v5693_v39 = vpop.f32.mrf.mxu0 }
 0x29d   :  { %16724 = vst [vmem:[#allocation16_spill] sm:$0xff] %v13969_v9  ;;  %v5654_v35 = vpop.f32.mrf.mxu1  ;;  %v14000_v21 = vmax.f32 %v5732_v51, 0.0  ;;  %v5733_v57 = vadd.f32 %v13988_v34, %v5709_v10  ;;  %v5706_v20 = vadd.f32 %v5693_v39, %v13930_v8 }
 0x29e   :  { %v13953_v11 = vmax.f32 %v5728_v42, 0.0  ;;  %v5729_v25 = vadd.f32 %v13927_v63, %v5705_v14  ;;  %v5484_v59 = vadd.f32 %v13918_v23, %v5258_v33  ;;  %v5695_v45 = vpop.f32.mrf.mxu0  ;;  %v14111_v15 = vpop.permute.xlu1 %6749 }
 0x29f   :  { %16726 = vst [vmem:[#allocation18_spill] sm:$0xff] %v14000_v21  ;;  %v5656_v41 = vpop.f32.mrf.mxu1  ;;  %v14027_v47 = vmax.f32 %v5733_v57, 0.0  ;;  %v5730_v56 = vadd.f32 %v13927_v63, %v5706_v20  ;;  %v5707_v40 = vadd.f32 %v5695_v45, %v13934_v50  ;;  %16735 = vst [vmem:[#allocation27_spill] sm:$0xff] %v14111_v15 }
 0x2a0   :  { %16721 = vst [vmem:[#allocation14_spill] sm:$0xff] %v13953_v11  ;;  %5878 = vrot.lane.b32.xlu0 %v13953_v11, %s16625_s2  ;;  %5786 = vrot.lane.b32.xlu1 %v13953_v11, %s16719_s0  ;;  %v13979_v18 = vmax.f32 %v5729_v25, 0.0  ;;  %v5710_v3 = vadd.f32 %v5654_v35, %v5484_v59  ;;  %v5711_v30 = vadd.f32 %v5656_v41, %v5485_v32  ;;  %v5697_v37 = vpop.f32.mrf.mxu0  ;;  %v14229_v32 = vld [vmem:[%s16561_s10 + $0x18] sm:$0xff] }
 0x2a1   :  { %16728 = vst [vmem:[#allocation20_spill] sm:$0xff] %v14027_v47  ;;  %v14050_v61 = vmax.f32 %v5730_v56, 0.0  ;;  %v5731_v8 = vadd.f32 %v13927_v63, %v5707_v40  ;;  %v5712_v60 = vadd.f32 %v5697_v37, %v13938_v58  ;;  %v5933_v39 = vrot.slane %v14229_v32, %v16741_v6 }
 0x2a2   :  { %16725 = vst [vmem:[#allocation17_spill] sm:$0xff] %v13979_v18  ;;  %v5734_v62 = vadd.f32 %v13988_v34, %v5710_v3  ;;  %v5735_v27 = vadd.f32 %v13988_v34, %v5711_v30  ;;  %v5699_v63 = vpop.f32.mrf.mxu0  ;;  %v14236_v30 = vld [vmem:[%s16561_s10 + $0x10] sm:$0xff] }
 0x2a3   :  { %16730 = vst [vmem:[#allocation22_spill] sm:$0xff] %v14050_v61  ;;  %v14062_v17 = vmax.f32 %v5731_v8, 0.0  ;;  %v5736_v50 = vadd.f32 %v13988_v34, %v5712_v60  ;;  %v5713_v58 = vadd.f32 %v5699_v63, %v5487_v38  ;;  %v5929_v45 = vrot.slane %v14236_v30, %v16741_v6  ;;  %v16742_v8 = vld [vmem:[#allocation6_spill] sm:$0xff] }
 0x2a4   :  { %6475 = vrot.lane.b32.xlu0 %v13936_v2, %s16722_s3  ;;  %6237 = vrot.lane.b32.xlu1 %v13936_v2, %s16723_s24  ;;  %v14007_v23 = vmax.f32 %v5734_v62, 0.0  ;;  %v14034_v16 = vmax.f32 %v5735_v27, 0.0  ;;  %v14214_v62 = vld [vmem:[%s16561_s10 + $0x8] sm:$0xff] }
 0x2a5   :  { %16731 = vst [vmem:[#allocation23_spill] sm:$0xff] %v14062_v17  ;;  %v14076_v44 = vmax.f32 %v5736_v50, 0.0  ;;  %v5737_v12 = vadd.f32 %v13988_v34, %v5713_v58  ;;  %v5925_v24 = vrot.slane %v14214_v62, %v16741_v6  ;;  %v5833_v37 = vrot.slane %v14214_v62, %v16742_v8 }
 0x2a6   :  { %16727 = vst [vmem:[#allocation19_spill] sm:$0xff] %v14007_v23  ;;  %16729 = vst [vmem:[#allocation21_spill] sm:$0xff] %v14034_v16 }
 0x2a7   :  { %16732 = vst [vmem:[#allocation24_spill] sm:$0xff] %v14076_v44  ;;  %v14087_v48 = vmax.f32 %v5737_v12, 0.0 }
 0x2a8   :  { %6479 = vrot.lane.b32.xlu0 %v13953_v11, %s16722_s3  ;;  %6241 = vrot.lane.b32.xlu1 %v13953_v11, %s16723_s24 }
 0x2a9   :  { %16733 = vst [vmem:[#allocation25_spill] sm:$0xff] %v14087_v48 }
 0x2ac   :  { %5784 = vrot.lane.b32.xlu0 %v13969_v9, %s16719_s0  ;;  %5876 = vrot.lane.b32.xlu1 %v13969_v9, %s16625_s2 }
 0x2b0   :  { %5788 = vrot.lane.b32.xlu0 %v13979_v18, %s16719_s0  ;;  %5880 = vrot.lane.b32.xlu1 %v13979_v18, %s16625_s2 }
 0x2b4   :  { %6239 = vrot.lane.b32.xlu0 %v13969_v9, %s16723_s24  ;;  %6477 = vrot.lane.b32.xlu1 %v13969_v9, %s16722_s3 }
 0x2b8   :  { %6243 = vrot.lane.b32.xlu0 %v13979_v18, %s16723_s24  ;;  %6481 = vrot.lane.b32.xlu1 %v13979_v18, %s16722_s3 }
 0x2bc   :  { %6897 = vrot.lane.b32.xlu0 %v13969_v9, %s16629_s23  ;;  %5792 = vrot.lane.b32.xlu1 %v14000_v21, %s16719_s0 }
 0x2c0   :  { %5796 = vrot.lane.b32.xlu1 %v14007_v23, %s16719_s0  ;;  %5884 = vrot.lane.b32.xlu0 %v14000_v21, %s16625_s2 }
 0x2c4   :  { %6247 = vrot.lane.b32.xlu1 %v14000_v21, %s16723_s24  ;;  %5888 = vrot.lane.b32.xlu0 %v14007_v23, %s16625_s2 }
 0x2c8   :  { %6251 = vrot.lane.b32.xlu1 %v14007_v23, %s16723_s24  ;;  %6485 = vrot.lane.b32.xlu0 %v14000_v21, %s16722_s3 }
 0x2cc   :  { %6489 = vrot.lane.b32.xlu0 %v14007_v23, %s16722_s3  ;;  %5886 = vrot.lane.b32.xlu1 %v14027_v47, %s16625_s2 }
 0x2d0   :  { %5794 = vrot.lane.b32.xlu0 %v14027_v47, %s16719_s0  ;;  %5890 = vrot.lane.b32.xlu1 %v14034_v16, %s16625_s2 }
 0x2d4   :  { %5798 = vrot.lane.b32.xlu0 %v14034_v16, %s16719_s0  ;;  %6487 = vrot.lane.b32.xlu1 %v14027_v47, %s16722_s3 }
 0x2d8   :  { %6249 = vrot.lane.b32.xlu0 %v14027_v47, %s16723_s24  ;;  %6491 = vrot.lane.b32.xlu1 %v14034_v16, %s16722_s3 }
 0x2dc   :  { %6253 = vrot.lane.b32.xlu0 %v14034_v16, %s16723_s24  ;;  %5790 = vrot.lane.b32.xlu1 %v14050_v61, %s16719_s0 }
 0x2e0   :  { %5882 = vrot.lane.b32.xlu0 %v14050_v61, %s16625_s2  ;;  %6245 = vrot.lane.b32.xlu1 %v14050_v61, %s16723_s24 }
 0x2e4   :  { %6483 = vrot.lane.b32.xlu0 %v14050_v61, %s16722_s3  ;;  %5766 = vrot.lane.b32.xlu1 %v14062_v17, %s16719_s0 }
 0x2e8   :  { %5868 = vrot.lane.b32.xlu0 %v14062_v17, %s16625_s2  ;;  %6231 = vrot.lane.b32.xlu1 %v14062_v17, %s16723_s24 }
 0x2ec   :  { %6469 = vrot.lane.b32.xlu0 %v14062_v17, %s16722_s3  ;;  %5892 = vrot.lane.b32.xlu1 %v14076_v44, %s16625_s2 }
 0x2f0   :  { %5800 = vrot.lane.b32.xlu0 %v14076_v44, %s16719_s0  ;;  %6493 = vrot.lane.b32.xlu1 %v14076_v44, %s16722_s3 }
 0x2f4   :  { %6255 = vrot.lane.b32.xlu0 %v14076_v44, %s16723_s24  ;;  %5870 = vrot.lane.b32.xlu1 %v14087_v48, %s16625_s2 }
 0x2f8   :  { %6909 = vrot.lane.b32.xlu0 %v14027_v47, %s16629_s23  ;;  %6899 = vrot.lane.b32.xlu1 %v13953_v11, %s16629_s23 }
 0x2fc   :  { %6895 = vrot.lane.b32.xlu0 %v13936_v2, %s16629_s23  ;;  %6911 = vrot.lane.b32.xlu1 %v14007_v23, %s16629_s23 }
 0x300   :  { %6901 = vrot.lane.b32.xlu0 %v13979_v18, %s16629_s23  ;;  %6907 = vrot.lane.b32.xlu1 %v14000_v21, %s16629_s23 }
 0x304   :  { %5768 = vrot.lane.b32.xlu0 %v14087_v48, %s16719_s0  ;;  %6903 = vrot.lane.b32.xlu1 %v14050_v61, %s16629_s23  ;;  %s16666_s0 = smov 121  }
 0x308   :  { %6913 = vrot.lane.b32.xlu0 %v14034_v16, %s16629_s23  ;;  %6915 = vrot.lane.b32.xlu1 %v14076_v44, %s16629_s23 }
 0x30a   :  { %v14119_v42 = vpop.permute.xlu1 %5874 }
 0x30c   :  { %6905 = vrot.lane.b32.xlu0 %v14062_v17, %s16629_s23  ;;  %7135 = vrot.lane.b32.xlu1 %v13969_v9, %s12076_s29 }
 0x30e   :  { %v14127_v19 = vpop.permute.xlu1 %5782 }
 0x310   :  { %6233 = vrot.lane.b32.xlu0 %v14087_v48, %s16723_s24  ;;  %7147 = vrot.lane.b32.xlu1 %v14027_v47, %s12076_s29  ;;  %s16745_s24 = sld [smem:[#allocation35_spill]] }
 0x312   :  { %v5879_v22 = vpop.permute.xlu0 %5878  ;;  %v14133_v13 = vpop.permute.xlu1 %5786 }
 0x314   :  { %6987 = vrot.lane.b32.xlu0 %v16738_v55, %s16737_s22  ;;  %7133 = vrot.lane.b32.xlu1 %v13936_v2, %s12076_s29 }
 0x316   :  { %v14139_v43 = vpop.permute.xlu0 %6475  ;;  %v14141_v54 = vpop.permute.xlu1 %6237 }
 0x318   :  { %7137 = vrot.lane.b32.xlu0 %v13953_v11, %s12076_s29  ;;  %6471 = vrot.lane.b32.xlu1 %v14087_v48, %s16722_s3 }
 0x31a   :  { %v14147_v52 = vpop.permute.xlu0 %6479  ;;  %v14149_v7 = vpop.permute.xlu1 %6241 }
 0x31c   :  { %7149 = vrot.lane.b32.xlu0 %v14007_v23, %s12076_s29  ;;  %7139 = vrot.lane.b32.xlu1 %v13979_v18, %s12076_s29 }
 0x31e   :  { %v14155_v1 = vpop.permute.xlu0 %5784  ;;  %v5877_v53 = vpop.permute.xlu1 %5876 }
 0x31f   :  { %v5894_v29 = vsel %vm1684_vm9, %v14119_v42, %v5877_v53  ;;  %v5895_v60 = vsel %vm1684_vm9, %v5877_v53, %v5879_v22  ;;  %v5802_v58 = vsel %vm1458_vm8, %v14127_v19, %v14155_v1 }
 0x320   :  { %7145 = vrot.lane.b32.xlu0 %v14000_v21, %s12076_s29  ;;  %7151 = vrot.lane.b32.xlu1 %v14034_v16, %s12076_s29  ;;  %v5943_v27 = vmul.f32 %v5925_v24, %v5894_v29  ;;  %v5944_v53 = vmul.f32 %v5929_v45, %v5895_v60 }
 0x322   :  { %v14161_v14 = vpop.permute.xlu0 %5788  ;;  %v14163_v25 = vpop.permute.xlu1 %5880 }
 0x323   :  { %v5896_v40 = vsel %vm1684_vm9, %v5879_v22, %v14163_v25  ;;  %v5804_v36 = vsel %vm1458_vm8, %v14133_v13, %v14161_v14 }
 0x324   :  { %7141 = vrot.lane.b32.xlu0 %v14050_v61, %s12076_s29  ;;  %7143 = vrot.lane.b32.xlu1 %v14062_v17, %s12076_s29 }
 0x326   :  { %v14169_v0 = vpop.permute.xlu0 %6239  ;;  %v14171_v5 = vpop.permute.xlu1 %6477 }
 0x328   :  { %7153 = vrot.lane.b32.xlu0 %v14076_v44, %s12076_s29  ;;  %7225 = vrot.lane.b32.xlu1 %v16738_v55, %s16739_s9 }
 0x32a   :  { %v14177_v46 = vpop.permute.xlu0 %6243  ;;  %v14179_v28 = vpop.permute.xlu1 %6481 }
 0x32c   :  { %7373 = vrot.lane.b32.xlu0 %v13969_v9, %s16674_s28  ;;  %7375 = vrot.lane.b32.xlu1 %v13953_v11, %s16674_s28 }
 0x32e   :  { %v14185_v31 = vpop.permute.xlu0 %6897  ;;  %v14187_v33 = vpop.permute.xlu1 %5792 }
 0x32f   :  { %16740 = vst [vmem:[#allocation13_spill] sm:$0xff] %v14185_v31 }
 0x330   :  { %7385 = vrot.lane.b32.xlu0 %v14027_v47, %s16674_s28  ;;  %7387 = vrot.lane.b32.xlu1 %v14007_v23, %s16674_s28 }
 0x332   :  { %v14193_v26 = vpop.permute.xlu1 %5796  ;;  %v14195_v34 = vpop.permute.xlu0 %5884 }
 0x334   :  { %7371 = vrot.lane.b32.xlu0 %v13936_v2, %s16674_s28  ;;  %7383 = vrot.lane.b32.xlu1 %v14000_v21, %s16674_s28 }
 0x336   :  { %v14201_v35 = vpop.permute.xlu1 %6247  ;;  %v5889_v59 = vpop.permute.xlu0 %5888 }
 0x338   :  { %7377 = vrot.lane.b32.xlu0 %v13979_v18, %s16674_s28  ;;  %6917 = vrot.lane.b32.xlu1 %v14087_v48, %s16629_s23  ;;  %s16658_s23 = smov 73  }
 0x33a   :  { %v14207_v51 = vpop.permute.xlu1 %6251  ;;  %v14209_v3 = vpop.permute.xlu0 %6485 }
 0x33c   :  { %7389 = vrot.lane.b32.xlu0 %v14034_v16, %s16674_s28  ;;  %7379 = vrot.lane.b32.xlu1 %v14050_v61, %s16674_s28 }
 0x33e   :  { %v14224_v10 = vpop.permute.xlu0 %6489  ;;  %v5887_v41 = vpop.permute.xlu1 %5886 }
 0x33f   :  { %v5899_v57 = vsel %vm1684_vm9, %v14195_v34, %v5887_v41  ;;  %v5900_v20 = vsel %vm1684_vm9, %v5887_v41, %v5889_v59  ;;  %v5945_v41 = vmul.f32 %v5933_v39, %v5896_v40 }
 0x340   :  { %v5949_v56 = vmul.f32 %v5925_v24, %v5899_v57  ;;  %7381 = vrot.lane.b32.xlu0 %v14062_v17, %s16674_s28  ;;  %7391 = vrot.lane.b32.xlu1 %v14076_v44, %s16674_s28  ;;  %v5950_v12 = vmul.f32 %v5929_v45, %v5900_v20 }
 0x342   :  { %v14252_v50 = vpop.permute.xlu0 %5794  ;;  %v14254_v63 = vpop.permute.xlu1 %5890  ;;  %v5955_v38 = vpack.c.bf16 %v5949_v56, %v5943_v27  ;;  %v5851_v27 = vmul.f32 %v5833_v37, %v5802_v58  ;;  %v5956_v31 = vpack.c.bf16 %v5950_v12, %v5944_v53 }
 0x343   :  { %v5807_v24 = vsel %vm1458_vm8, %v14187_v33, %v14252_v50  ;;  %v5901_v29 = vsel %vm1684_vm9, %v5889_v59, %v14254_v63 }
 0x344   :  { %v5857_v57 = vmul.f32 %v5833_v37, %v5807_v24  ;;  %v5951_v22 = vmul.f32 %v5933_v39, %v5901_v29  ;;  %5984 = vmatprep.subr.bf16.mxu1 %v5955_v38  ;;  %7463 = vrot.lane.b32.xlu0 %v16738_v55, %s16625_s2  ;;  %s16656_s2 = smov 63  }
 0x345   :  { %7611 = vrot.lane.b32.xlu1 %v13969_v9, %s12078_s1 }
 0x346   :  { %v14268_v20 = vpop.permute.xlu0 %5798  ;;  %v14270_v56 = vpop.permute.xlu1 %6487  ;;  %v5957_v15 = vpack.c.bf16 %v5951_v22, %v5945_v41  ;;  %v5863_v59 = vpack.c.bf16 %v5857_v57, %v5851_v27  ;;  %v7848_v41 = vld [vmem:[%s16745_s24] sm:$0xff]  ;;  %v7849_v57 = vld [vmem:[%s16745_s24 + $0x8] sm:$0xff]  ;;  %s16792_s24 = smov 96  }
 0x347   :  { %v14332_v27 = vld [vmem:[%s16561_s10] sm:$0xff] }
 0x348   :  { %6027 = vmatprep.subr.bf16.mxu0 %v5957_v15  ;;  %7155 = vrot.lane.b32.xlu0 %v14087_v48, %s12076_s29  ;;  %v16743_v15 = vmov 0   ;;  %s16791_s29 = sld [smem:[#allocation36_spill]] }
 0x349   :  { %7623 = vrot.lane.b32.xlu1 %v14027_v47, %s12078_s1  ;;  %6028 = vmatpush1.bf16.msra.mxu0 %v5956_v31 }
 0x34a   :  { %v14276_v55 = vpop.permute.xlu0 %6249  ;;  %6116 = vmatprep.subr.bf16.mxu0 %v5863_v59  ;;  %v14278_v39 = vpop.permute.xlu1 %6491  ;;  %v14337_v59 = vld [vmem:[%s16561_s10 + $0x28] sm:$0xff] }
 0x34c   :  { %11283 = vmatmul.mubr.msk.bf16.vlgmr.msra.gmra.mxu0 %vm1684_vm9, %v14113_v4  ;;  %7613 = vrot.lane.b32.xlu0 %v13953_v11, %s12078_s1 }
 0x34d   :  { %7609 = vrot.lane.b32.xlu1 %v13936_v2, %s12078_s1  ;;  %6134 = vmatprep.mubr.bf16.mxu0 %v16743_v15 }
 0x34e   :  { %v14287_v45 = vpop.permute.xlu0 %6253  ;;  %v14289_v40 = vpop.permute.xlu1 %5790 }
 0x350   :  { %7625 = vrot.lane.b32.xlu0 %v14007_v23, %s12078_s1 }
 0x351   :  { %7393 = vrot.lane.b32.xlu1 %v14087_v48, %s16674_s28 }
 0x352   :  { %v5883_v31 = vpop.permute.xlu0 %5882  ;;  %v14295_v37 = vpop.permute.xlu1 %6245 }
 0x353   :  { %v5897_v47 = vsel %vm1684_vm9, %v14163_v25, %v5883_v31 }
 0x354   :  { %7621 = vrot.lane.b32.xlu0 %v14000_v21, %s12078_s1 }
 0x355   :  { %7615 = vrot.lane.b32.xlu1 %v13979_v18, %s12078_s1 }
 0x356   :  { %v14301_v60 = vpop.permute.xlu0 %6483  ;;  %v14303_v38 = vpop.permute.xlu1 %5766 }
 0x357   :  { %16744 = vst [vmem:[#allocation29_spill] sm:$0xff] %v14301_v60 }
 0x358   :  { %7617 = vrot.lane.b32.xlu0 %v14050_v61, %s12078_s1  ;;  %v5941_v61 = vrot.slane %v14337_v59, %v16741_v6 }
 0x359   :  { %7627 = vrot.lane.b32.xlu1 %v14034_v16, %s12078_s1 }
 0x35a   :  { %v5869_v58 = vpop.permute.xlu0 %5868  ;;  %v14309_v12 = vpop.permute.xlu1 %6231 }
 0x35b   :  { %v5898_v11 = vsel %vm1684_vm9, %v5883_v31, %v5869_v58  ;;  %v5916_v23 = vsel %vm1684_vm9, %v5869_v58, %v14119_v42 }
 0x35c   :  { %7629 = vrot.lane.b32.xlu0 %v14076_v44, %s12078_s1  ;;  %v14346_v44 = vld [vmem:[%s16561_s10 + $0x20] sm:$0xff]  ;;  %v5947_v42 = vmul.f32 %v5941_v61, %v5898_v11 }
 0x35d   :  { %7619 = vrot.lane.b32.xlu1 %v14062_v17, %s12078_s1  ;;  %v5937_v17 = vrot.slane %v14346_v44, %v16741_v6 }
 0x35e   :  { %v14315_v24 = vpop.permute.xlu0 %6469  ;;  %v5893_v29 = vpop.permute.xlu1 %5892 }
 0x35f   :  { %v5902_v49 = vsel %vm1684_vm9, %v14254_v63, %v5893_v29 }
 0x360   :  { %7631 = vrot.lane.b32.xlu0 %v14087_v48, %s12078_s1  ;;  %v5952_v63 = vmul.f32 %v5937_v17, %v5902_v49  ;;  %v5808_v49 = vsel %vm1458_vm8, %v14252_v50, %v14193_v26 }
 0x361   :  { %7852 = vperm.xlu1 %11576, %v7848_v41   ;;  %v5921_v41 = vrot.slane %v14332_v27, %v16741_v6  ;;  %v5841_v6 = vrot.slane %v14229_v32, %v16742_v8 }
 0x362   :  { %v14325_v22 = vpop.permute.xlu0 %5800  ;;  %v14327_v53 = vpop.permute.xlu1 %6493 }
 0x363   :  { %16746 = vst [vmem:[#allocation30_spill] sm:$0xff] %v14327_v53  ;;  %v5942_v16 = vmul.f32 %v5921_v41, %v5916_v23 }
 0x364   :  { %7857 = vperm.xlu0 %11577, %v7849_v57   ;;  %v5809_v57 = vsel %vm1458_vm8, %v14193_v26, %v14268_v20  ;;  %v5803_v26 = vsel %vm1458_vm8, %v14155_v1, %v14133_v13  ;;  %v5824_v13 = vsel %vm1458_vm8, %v14303_v38, %v14127_v19  ;;  %v5806_v1 = vsel %vm1458_vm8, %v14289_v40, %v14303_v38 }
 0x365   :  { %v5859_v11 = vmul.f32 %v5841_v6, %v5809_v57  ;;  %v5810_v19 = vsel %vm1458_vm8, %v14268_v20, %v14325_v22  ;;  %v5805_v20 = vsel %vm1458_vm8, %v14161_v14, %v14289_v40  ;;  %v6258_v40 = vsel %vm1910_vm10, %v14169_v0, %v14149_v7 }
 0x366   :  { %v14353_v2 = vpop.permute.xlu0 %6255  ;;  %v5871_v48 = vpop.permute.xlu1 %5870 }
 0x367   :  { %v5903_v21 = vsel %vm1684_vm9, %v5893_v29, %v5871_v48  ;;  %v5917_v18 = vsel %vm1684_vm9, %v5871_v48, %v14195_v34  ;;  %v6257_v34 = vsel %vm1910_vm10, %v14141_v54, %v14169_v0  ;;  %v16748_v0 = vld [vmem:[#allocation8_spill] sm:$0xff] }
 0x368   :  { %v5948_v58 = vmul.f32 %v5921_v41, %v5917_v18  ;;  %v5953_v9 = vmul.f32 %v5941_v61, %v5903_v21  ;;  %v5946_v18 = vmul.f32 %v5937_v17, %v5897_v47  ;;  %v5853_v21 = vmul.f32 %v5841_v6, %v5804_v36  ;;  %v16747_v17 = vld [vmem:[#allocation7_spill] sm:$0xff] }
 0x369   :  { %v5837_v47 = vrot.slane %v14236_v30, %v16742_v8  ;;  %v6288_v36 = vrot.slane %v14214_v62, %v16747_v17  ;;  %v5829_v41 = vrot.slane %v14332_v27, %v16742_v8  ;;  %v6292_v14 = vrot.slane %v14236_v30, %v16747_v17 }
 0x36a   :  { %v5954_v53 = vpack.c.bf16 %v5948_v58, %v5942_v16  ;;  %v14370_v29 = vpop.permute.xlu0 %6909  ;;  %v14372_v60 = vpop.permute.xlu1 %6899  ;;  %v5959_v23 = vpack.c.bf16 %v5953_v9, %v5947_v42  ;;  %v5958_v61 = vpack.c.bf16 %v5952_v63, %v5946_v18  ;;  %v6262_v16 = vsel %vm1910_vm10, %v14201_v35, %v14276_v55 }
 0x36b   :  { %v5865_v9 = vpack.c.bf16 %v5859_v11, %v5853_v21  ;;  %v5858_v6 = vmul.f32 %v5837_v47, %v5808_v49  ;;  %v6312_v50 = vmul.f32 %v6288_v36, %v6262_v16  ;;  %v5852_v57 = vmul.f32 %v5837_v47, %v5803_v26 }
 0x36c   :  { %5985 = vmatpush1.bf16.msra.mxu1 %v5954_v53  ;;  %v6306_v42 = vmul.f32 %v6288_v36, %v6257_v34  ;;  %v5849_v58 = vrot.slane %v14337_v59, %v16742_v8  ;;  %v5845_v11 = vrot.slane %v14346_v44, %v16742_v8  ;;  %v5850_v49 = vmul.f32 %v5829_v41, %v5824_v13 }
 0x36d   :  { %6070 = vmatprep.subr.bf16.mxu1 %v5959_v23  ;;  %v5864_v63 = vpack.c.bf16 %v5858_v6, %v5852_v57  ;;  %v6264_v23 = vsel %vm1910_vm10, %v14207_v51, %v14287_v45  ;;  %v6296_v26 = vrot.slane %v14229_v32, %v16747_v17 }
 0x36e   :  { %v14374_v48 = vpop.permute.xlu0 %6895  ;;  %v14376_v25 = vpop.permute.xlu1 %6911  ;;  %v5854_v57 = vmul.f32 %v5845_v11, %v5805_v20  ;;  %v6502_v20 = vsel %vm2588_vm13, %v14224_v10, %v14278_v39 }
 0x36f   :  { %11282 = vmatmul.mubr.msk.bf16.vlgmr.msra.gmra.mxu1 %vm1684_vm9, %v14113_v4 }
 0x370   :  { %6071 = vmatpush1.bf16.msra.mxu1 %v5958_v61  ;;  %6088 = vmatprep.mubr.bf16.mxu1 %v16743_v15  ;;  %v6318_v61 = vpack.c.bf16 %v6312_v50, %v6306_v42 }
 0x371   :  { %6159 = vmatprep.subr.bf16.mxu1 %v5865_v9  ;;  %v5855_v9 = vmul.f32 %v5849_v58, %v5806_v1 }
 0x372   :  { %v14397_v31 = vpop.permute.xlu0 %6901  ;;  %v14399_v53 = vpop.permute.xlu1 %6907 }
 0x376   :  { %v5769_v18 = vpop.permute.xlu0 %5768  ;;  %v14416_v21 = vpop.permute.xlu1 %6903 }
 0x377   :  { %v5811_v38 = vsel %vm1458_vm8, %v14325_v22, %v5769_v18  ;;  %v5825_v16 = vsel %vm1458_vm8, %v5769_v18, %v14187_v33  ;;  %11284 = vmatmul.mubr.msk.bf16.vlgmr.msra.gmra.mxu1 %vm1684_vm9, %v14113_v4  ;;  %v6259_v33 = vsel %vm1910_vm10, %v14149_v7, %v14177_v46  ;;  %v5860_v22 = vmul.f32 %v5845_v11, %v5810_v19  ;;  %v12025_v11 = vld [vmem:[%s16705_s26] ss:$8 sps:$4 sm:$0xff]  }
 0x378   :  { %v5856_v47 = vmul.f32 %v5829_v41, %v5825_v16  ;;  %v5861_v36 = vmul.f32 %v5849_v58, %v5811_v38  ;;  %6160 = vmatpush1.bf16.msra.mxu1 %v5864_v63  ;;  %6177 = vmatprep.mubr.bf16.mxu1 %v16743_v15  ;;  %v6314_v41 = vmul.f32 %v6296_v26, %v6264_v23  ;;  %vm8989_vm8 = vcmask 56320  }
 0x379   :  { %6342 = vmatprep.subr.bf16.mxu1 %v6318_v61  ;;  %v6308_v42 = vmul.f32 %v6296_v26, %v6259_v33  ;;  %v5866_v58 = vpack.c.bf16 %v5860_v22, %v5854_v57  ;;  %v6500_v63 = vsel %vm2588_vm13, %v14209_v3, %v14270_v56  ;;  %v6263_v23 = vsel %vm1910_vm10, %v14276_v55, %v14207_v51 }
 0x37a   :  { %v5862_v4 = vpack.c.bf16 %v5856_v47, %v5850_v49  ;;  %v14436_v34 = vpop.permute.xlu0 %6913  ;;  %v14438_v6 = vpop.permute.xlu1 %6915  ;;  %v5867_v50 = vpack.c.bf16 %v5861_v36, %v5855_v9  ;;  %v6526_v18 = vrot.slane %v14214_v62, %v16748_v0  ;;  %v6284_v61 = vrot.slane %v14332_v27, %v16747_v17 }
 0x37b   :  { %v6320_v7 = vpack.c.bf16 %v6314_v41, %v6308_v42  ;;  %v6304_v49 = vrot.slane %v14337_v59, %v16747_v17  ;;  %v6300_v51 = vrot.slane %v14346_v44, %v16747_v17  ;;  %v6261_v55 = vsel %vm1910_vm10, %v14295_v37, %v14309_v12 }
 0x37c   :  { %6117 = vmatpush1.bf16.msra.mxu0 %v5862_v4  ;;  %v6279_v19 = vsel %vm1910_vm10, %v14309_v12, %v14141_v54  ;;  %v6307_v38 = vmul.f32 %v6292_v14, %v6258_v40  ;;  %v6495_v16 = vsel %vm2588_vm13, %v14139_v43, %v14171_v5  ;;  %v6550_v9 = vmul.f32 %v6526_v18, %v6500_v63 }
 0x37d   :  { %6202 = vmatprep.subr.bf16.mxu0 %v5867_v50  ;;  %v6313_v47 = vmul.f32 %v6292_v14, %v6263_v23  ;;  %v6265_v54 = vsel %vm1910_vm10, %v14287_v45, %v14353_v2  ;;  %v6305_v22 = vmul.f32 %v6284_v61, %v6279_v19  ;;  %v6310_v4 = vmul.f32 %v6304_v49, %v6261_v55  ;;  %v16749_v19 = vld [vmem:[#allocation29_spill] sm:$0xff] }
 0x37e   :  { %v14445_v13 = vpop.permute.xlu0 %6905  ;;  %v14447_v1 = vpop.permute.xlu1 %7135  ;;  %v6544_v57 = vmul.f32 %v6526_v18, %v6495_v16  ;;  %v6534_v42 = vrot.slane %v14229_v32, %v16748_v0  ;;  %v6497_v14 = vsel %vm2588_vm13, %v14147_v52, %v14179_v28  ;;  %v6260_v45 = vsel %vm1910_vm10, %v14177_v46, %v14295_v37 }
 0x37f   :  { %11285 = vmatmul.mubr.msk.bf16.vlgmr.msra.gmra.mxu0 %vm1684_vm9, %v12025_v11  ;;  %11286 = vmatmul.mubr.msk.bf16.vlgmr.msra.gmra.mxu1 %vm1684_vm9, %v12025_v11  ;;  %v6315_v40 = vmul.f32 %v6300_v51, %v6265_v54  ;;  %v6522_v18 = vrot.slane %v14332_v27, %v16748_v0  ;;  %v6542_v55 = vrot.slane %v14337_v59, %v16748_v0  ;;  %v16751_v54 = vld [vmem:[#allocation26_spill] sm:$0xff] }
 0x380   :  { %6203 = vmatpush1.bf16.msra.mxu0 %v5866_v58  ;;  %6220 = vmatprep.mubr.bf16.mxu0 %v16743_v15  ;;  %v6517_v46 = vsel %vm2588_vm13, %v14315_v24, %v14139_v43  ;;  %v6546_v37 = vmul.f32 %v6534_v42, %v6497_v14 }
 0x381   :  { %6385 = vmatprep.subr.bf16.mxu0 %v6320_v7  ;;  %6360 = vmatprep.mubr.bf16.mxu1 %v16743_v15  ;;  %v6552_v7 = vmul.f32 %v6534_v42, %v6502_v20 }
 0x382   :  { %v6234_v36 = vpop.permute.xlu0 %6233  ;;  %v14479_v26 = vpop.permute.xlu1 %7147 }
 0x383   :  { %v6266_v12 = vsel %vm1910_vm10, %v14353_v2, %v6234_v36  ;;  %v6280_v33 = vsel %vm1910_vm10, %v6234_v36, %v14201_v35  ;;  %v6319_v2 = vpack.c.bf16 %v6313_v47, %v6307_v38  ;;  %v6499_v38 = vsel %vm2588_vm13, %v16749_v19, %v14315_v24  ;;  %v16750_v36 = vld [vmem:[#allocation30_spill] sm:$0xff] }
 0x384   :  { %v6311_v50 = vmul.f32 %v6284_v61, %v6280_v33  ;;  %v6316_v41 = vmul.f32 %v6304_v49, %v6266_v12  ;;  %v6556_v61 = vpack.c.bf16 %v6550_v9, %v6544_v57  ;;  %v6309_v49 = vmul.f32 %v6300_v51, %v6260_v45 }
 0x385   :  { %v6501_v51 = vsel %vm2588_vm13, %v14270_v56, %v14224_v10  ;;  %v6543_v47 = vmul.f32 %v6522_v18, %v6517_v46  ;;  %v6558_v12 = vpack.c.bf16 %v6552_v7, %v6546_v37  ;;  %v6548_v33 = vmul.f32 %v6542_v55, %v6499_v38  ;;  %v16755_v37 = vld [vmem:[#allocation21_spill] sm:$0xff] }
 0x386   :  { %v6317_v58 = vpack.c.bf16 %v6311_v50, %v6305_v22  ;;  %v14499_v35 = vpop.permute.xlu0 %6987  ;;  %v14501_v63 = vpop.permute.xlu1 %7133  ;;  %v6322_v23 = vpack.c.bf16 %v6316_v41, %v6310_v4  ;;  %v6321_v16 = vpack.c.bf16 %v6315_v40, %v6309_v49  ;;  %v6496_v56 = vsel %vm2588_vm13, %v14171_v5, %v14147_v52  ;;  %v16752_v4 = vld [vmem:[#allocation9_spill] sm:$0xff] }
 0x387   :  { %11287 = vmatmul.mubr.msk.bf16.vlgmr.msra.gmra.mxu0 %vm1684_vm9, %v12025_v11  ;;  %v6530_v11 = vrot.slane %v14236_v30, %v16748_v0  ;;  %v6714_v50 = vrot.slane %v14214_v62, %v16752_v4  ;;  %v6503_v45 = vsel %vm2588_vm13, %v14278_v39, %v16750_v36  ;;  %v6538_v40 = vrot.slane %v14346_v44, %v16748_v0 }
 0x388   :  { %6386 = vmatpush1.bf16.msra.mxu0 %v6319_v2  ;;  %6343 = vmatpush1.bf16.msra.mxu1 %v6317_v58  ;;  %v16753_v2 = vld [vmem:[#allocation20_spill] sm:$0xff]  ;;  %v6498_v58 = vsel %vm2588_vm13, %v14179_v28, %v16749_v19  ;;  %v6722_v39 = vrot.slane %v14229_v32, %v16752_v4  ;;  %v6710_v28 = vrot.slane %v14332_v27, %v16752_v4  ;;  %v16756_v19 = vld [vmem:[#allocation17_spill] sm:$0xff]  ;;  %vm9238_vm10 = vcmask 515072  }
 0x389   :  { %6580 = vmatprep.subr.bf16.mxu0 %v6556_v61  ;;  %6428 = vmatprep.subr.bf16.mxu1 %v6322_v23  ;;  %v6551_v41 = vmul.f32 %v6530_v11, %v6501_v51  ;;  %v6738_v52 = vmul.f32 %v6714_v50, %v16753_v2  ;;  %v6545_v5 = vmul.f32 %v6530_v11, %v6496_v56  ;;  %v16754_v23 = vld [vmem:[#allocation16_spill] sm:$0xff]  ;;  %v16760_v56 = vld [vmem:[#allocation15_spill] sm:$0xff] }
 0x38a   :  { %v14519_v9 = vpop.permute.xlu0 %7137  ;;  %v6472_v43 = vpop.permute.xlu1 %6471  ;;  %6403 = vmatprep.mubr.bf16.mxu0 %v16743_v15  ;;  %v6732_v7 = vmul.f32 %v6714_v50, %v16754_v23  ;;  %v6553_v61 = vmul.f32 %v6538_v40, %v6503_v45  ;;  %v6740_v38 = vmul.f32 %v6722_v39, %v16755_v37  ;;  %v6547_v11 = vmul.f32 %v6538_v40, %v6498_v58  ;;  %v16762_v45 = vld [vmem:[#allocation23_spill] sm:$0xff]  ;;  %v16765_v37 = vld [vmem:[#allocation14_spill] sm:$0xff] }
 0x38b   :  { %v6504_v20 = vsel %vm2588_vm13, %v16750_v36, %v6472_v43  ;;  %v6518_v24 = vsel %vm2588_vm13, %v6472_v43, %v14209_v3  ;;  %11288 = vmatmul.mubr.msk.bf16.vlgmr.msra.gmra.mxu1 %vm1684_vm9, %v16751_v54  ;;  %v6734_v51 = vmul.f32 %v6722_v39, %v16756_v19  ;;  %v16757_v36 = vld [vmem:[#allocation18_spill] sm:$0xff]  ;;  %v6731_v50 = vmul.f32 %v6710_v28, %v16760_v56  ;;  %v16764_v23 = vld [vmem:[#allocation19_spill] sm:$0xff] }
 0x38c   :  { %v6549_v22 = vmul.f32 %v6522_v18, %v6518_v24  ;;  %v6554_v10 = vmul.f32 %v6542_v55, %v6504_v20  ;;  %6429 = vmatpush1.bf16.msra.mxu1 %v6321_v16  ;;  %6446 = vmatprep.mubr.bf16.mxu1 %v16743_v15  ;;  %v6557_v18 = vpack.c.bf16 %v6551_v41, %v6545_v5 }
 0x38d   :  { %6623 = vmatprep.subr.bf16.mxu1 %v6558_v12  ;;  %v6744_v46 = vpack.c.bf16 %v6738_v52, %v6732_v7  ;;  %v6730_v16 = vrot.slane %v14337_v59, %v16752_v4  ;;  %v6559_v43 = vpack.c.bf16 %v6553_v61, %v6547_v11  ;;  %v6737_v20 = vmul.f32 %v6710_v28, %v16757_v36  ;;  %v16763_v52 = vld [vmem:[#allocation13_spill] sm:$0xff]  ;;  %v16766_v36 = vld [vmem:[#allocation24_spill] sm:$0xff] }
 0x38e   :  { %v6555_v3 = vpack.c.bf16 %v6549_v22, %v6543_v47  ;;  %v14534_v57 = vpop.permute.xlu0 %7149  ;;  %v14536_v42 = vpop.permute.xlu1 %7139  ;;  %v6560_v14 = vpack.c.bf16 %v6554_v10, %v6548_v33  ;;  %v6746_v12 = vpack.c.bf16 %v6740_v38, %v6734_v51  ;;  %v16759_v33 = vld [vmem:[#allocation25_spill] sm:$0xff]  ;;  %v6925_v10 = vsel %vm3013_vm14, %v14370_v29, %v14376_v25 }
 0x38f   :  { %11289 = vmatmul.mubr.msk.bf16.vlgmr.msra.gmra.mxu0 %vm1684_vm9, %v16751_v54  ;;  %v6742_v22 = vmul.f32 %v6730_v16, %v16759_v33  ;;  %v6718_v41 = vrot.slane %v14236_v30, %v16752_v4  ;;  %v6736_v2 = vmul.f32 %v6730_v16, %v16762_v45  ;;  %v6920_v5 = vsel %vm3013_vm14, %v16763_v52, %v14372_v60 }
 0x390   :  { %6581 = vmatpush1.bf16.msra.mxu0 %v6555_v3  ;;  %6598 = vmatprep.mubr.bf16.mxu0 %v16743_v15  ;;  %v16761_v3 = vld [vmem:[#allocation10_spill] sm:$0xff]  ;;  %v6743_v58 = vpack.c.bf16 %v6737_v20, %v6731_v50  ;;  %v6726_v11 = vrot.slane %v14346_v44, %v16752_v4  ;;  %v6922_v51 = vsel %vm3013_vm14, %v14397_v31, %v14416_v21 }
 0x391   :  { %6666 = vmatprep.subr.bf16.mxu0 %v6560_v14  ;;  %v6952_v14 = vrot.slane %v14214_v62, %v16761_v3  ;;  %v6739_v7 = vmul.f32 %v6718_v41, %v16764_v23  ;;  %v6748_v61 = vpack.c.bf16 %v6742_v22, %v6736_v2  ;;  %v6733_v38 = vmul.f32 %v6718_v41, %v16765_v37  ;;  %v16767_v50 = vld [vmem:[#allocation22_spill] sm:$0xff]  ;;  %v16768_v23 = vld [vmem:[#allocation27_spill] sm:$0xff] }
 0x392   :  { %v14553_v49 = vpop.permute.xlu0 %7145  ;;  %v14555_v55 = vpop.permute.xlu1 %7151  ;;  %v6960_v19 = vrot.slane %v14229_v32, %v16761_v3  ;;  %v6741_v20 = vmul.f32 %v6726_v11, %v16766_v36  ;;  %v6948_v56 = vrot.slane %v14332_v27, %v16761_v3  ;;  %v6735_v41 = vmul.f32 %v6726_v11, %v16767_v50 }
 0x393   :  { %11290 = vmatmul.mubr.msk.bf16.vlgmr.msra.gmra.mxu1 %vm1684_vm9, %v16751_v54  ;;  %v16758_v54 = vld [vmem:[#allocation28_spill] sm:$0xff]  ;;  %v6976_v39 = vmul.f32 %v6952_v14, %v6925_v10  ;;  %v6970_v28 = vmul.f32 %v6952_v14, %v6920_v5  ;;  %v6919_v14 = vsel %vm3013_vm14, %v14374_v48, %v16763_v52  ;;  %v6956_v52 = vrot.slane %v14236_v30, %v16761_v3 }
 0x394   :  { %6624 = vmatpush1.bf16.msra.mxu1 %v6557_v18  ;;  %6641 = vmatprep.mubr.bf16.mxu1 %v16743_v15  ;;  %v6747_v5 = vpack.c.bf16 %v6741_v20, %v6735_v41  ;;  %v7158_v11 = vsel %vm3691_vm3, %v14447_v1, %v14519_v9  ;;  %v6923_v36 = vsel %vm3013_vm14, %v14416_v21, %v14445_v13 }
 0x395   :  { %6768 = vmatprep.subr.bf16.mxu1 %v6744_v46  ;;  %v6927_v46 = vsel %vm3013_vm14, %v14436_v34, %v14438_v6  ;;  %v6982_v10 = vpack.c.bf16 %v6976_v39, %v6970_v28  ;;  %v6969_v39 = vmul.f32 %v6948_v56, %v6919_v14  ;;  %v6943_v20 = vsel %vm3013_vm14, %v14445_v13, %v14374_v48 }
 0x396   :  { %v14566_v47 = vpop.permute.xlu0 %7141  ;;  %v14569_v24 = vpop.permute.xlu1 %7143  ;;  %v6978_v33 = vmul.f32 %v6960_v19, %v6927_v46  ;;  %v7162_v48 = vsel %vm3691_vm3, %v14553_v49, %v14479_v26 }
 0x397   :  { %11291 = vmatmul.mubr.msk.bf16.vlgmr.msra.gmra.mxu0 %vm1684_vm9, %v16758_v54 }
 0x398   :  { %6667 = vmatpush1.bf16.msra.mxu0 %v6559_v43  ;;  %6684 = vmatprep.mubr.bf16.mxu0 %v16743_v15  ;;  %v6745_v43 = vpack.c.bf16 %v6739_v7, %v6733_v38 }
 0x399   :  { %6811 = vmatprep.subr.bf16.mxu0 %v6746_v12  ;;  %v6924_v12 = vsel %vm3013_vm14, %v14399_v53, %v14370_v29  ;;  %v6972_v29 = vmul.f32 %v6960_v19, %v6922_v51  ;;  %v6964_v19 = vrot.slane %v14346_v44, %v16761_v3  ;;  %v6968_v51 = vrot.slane %v14337_v59, %v16761_v3 }
 0x39a   :  { %v14587_v40 = vpop.permute.xlu0 %7153  ;;  %v14590_v18 = vpop.permute.xlu1 %7225  ;;  %v6975_v45 = vmul.f32 %v6948_v56, %v6924_v12 }
 0x39b   :  { %11292 = vmatmul.mubr.msk.bf16.vlgmr.msra.gmra.mxu1 %vm1684_vm9, %v16758_v54  ;;  %v6984_v7 = vpack.c.bf16 %v6978_v33, %v6972_v29  ;;  %v7165_v50 = vsel %vm3691_vm3, %v14555_v55, %v14587_v40  ;;  %v6973_v41 = vmul.f32 %v6964_v19, %v6923_v36  ;;  %v6974_v14 = vmul.f32 %v6968_v51, %v6943_v20 }
 0x39c   :  { %6769 = vmatpush1.bf16.msra.mxu1 %v6743_v58  ;;  %6786 = vmatprep.mubr.bf16.mxu1 %v16743_v15  ;;  %v6981_v37 = vpack.c.bf16 %v6975_v45, %v6969_v39  ;;  %v7160_v45 = vsel %vm3691_vm3, %v14536_v42, %v14566_v47 }
 0x39d   :  { %6854 = vmatprep.subr.bf16.mxu1 %v6748_v61  ;;  %v7163_v61 = vsel %vm3691_vm3, %v14479_v26, %v14534_v57  ;;  %v7157_v26 = vsel %vm3691_vm3, %v14501_v63, %v14447_v1 }
 0x39e   :  { %v14606_v16 = vpop.permute.xlu0 %7373  ;;  %v14612_v22 = vpop.permute.xlu1 %7375 }
 0x39f   :  { %11293 = vmatmul.mubr.msk.bf16.vlgmr.msra.gmra.mxu0 %vm1684_vm9, %v16758_v54  ;;  %v6926_v54 = vsel %vm3013_vm14, %v14376_v25, %v14436_v34  ;;  %v6921_v25 = vsel %vm3013_vm14, %v14372_v60, %v14397_v31  ;;  %v16769_v34 = vld [vmem:[#allocation11_spill] sm:$0xff]  ;;  %v7396_v36 = vsel %vm3918_vm5, %v14606_v16, %v14612_v22 }
 0x3a0   :  { %6812 = vmatpush1.bf16.msra.mxu0 %v6745_v43  ;;  %6829 = vmatprep.mubr.bf16.mxu0 %v16743_v15  ;;  %v7190_v46 = vrot.slane %v14214_v62, %v16769_v34  ;;  %v6977_v38 = vmul.f32 %v6956_v52, %v6926_v54  ;;  %v6971_v31 = vmul.f32 %v6956_v52, %v6921_v25 }
 0x3a1   :  { %7006 = vmatprep.subr.bf16.mxu0 %v6982_v10  ;;  %v7186_v10 = vrot.slane %v14332_v27, %v16769_v34  ;;  %v7198_v56 = vrot.slane %v14229_v32, %v16769_v34  ;;  %v7194_v1 = vrot.slane %v14236_v30, %v16769_v34 }
 0x3a2   :  { %v14623_v2 = vpop.permute.xlu0 %7385  ;;  %v14628_v58 = vpop.permute.xlu1 %7387  ;;  %v7214_v43 = vmul.f32 %v7190_v46, %v7163_v61  ;;  %v7208_v12 = vmul.f32 %v7190_v46, %v7158_v11  ;;  %v6983_v33 = vpack.c.bf16 %v6977_v38, %v6971_v31 }
 0x3a3   :  { %11294 = vmatmul.mubr.msk.bf16.vlgmr.msra.gmra.mxu1 %vm1684_vm9, %v16768_v23  ;;  %v7213_v52 = vmul.f32 %v7186_v10, %v7162_v48  ;;  %v7210_v25 = vmul.f32 %v7198_v56, %v7160_v45  ;;  %v7207_v38 = vmul.f32 %v7186_v10, %v7157_v26  ;;  %v7401_v11 = vsel %vm3918_vm5, %v14623_v2, %v14628_v58 }
 0x3a4   :  { %6855 = vmatpush1.bf16.msra.mxu1 %v6747_v5  ;;  %6872 = vmatprep.mubr.bf16.mxu1 %v16743_v15  ;;  %v7220_v29 = vpack.c.bf16 %v7214_v43, %v7208_v12  ;;  %v7206_v48 = vrot.slane %v14337_v59, %v16769_v34 }
 0x3a5   :  { %7049 = vmatprep.subr.bf16.mxu1 %v6984_v7  ;;  %v7216_v7 = vmul.f32 %v7198_v56, %v7165_v50  ;;  %v7219_v43 = vpack.c.bf16 %v7213_v52, %v7207_v38  ;;  %v7202_v56 = vrot.slane %v14346_v44, %v16769_v34 }
 0x3a6   :  { %v14646_v28 = vpop.permute.xlu0 %7371  ;;  %v14652_v60 = vpop.permute.xlu1 %7383 }
 0x3a7   :  { %11295 = vmatmul.mubr.msk.bf16.vlgmr.msra.gmra.mxu0 %vm1684_vm9, %v16768_v23  ;;  %v7395_v50 = vsel %vm3918_vm5, %v14646_v28, %v14606_v16  ;;  %v7181_v16 = vsel %vm3691_vm3, %v14569_v24, %v14501_v63 }
 0x3a8   :  { %7007 = vmatpush1.bf16.msra.mxu0 %v6981_v37  ;;  %7024 = vmatprep.mubr.bf16.mxu0 %v16743_v15 }
 0x3aa   :  { %v14670_v21 = vpop.permute.xlu0 %7377  ;;  %v6918_v13 = vpop.permute.xlu1 %6917 }
 0x3ab   :  { %11296 = vmatmul.mubr.msk.bf16.vlgmr.msra.gmra.mxu1 %vm1684_vm9, %v16768_v23  ;;  %v6928_v5 = vsel %vm3013_vm14, %v14438_v6, %v6918_v13  ;;  %v6944_v54 = vsel %vm3013_vm14, %v6918_v13, %v14399_v53  ;;  %v7164_v6 = vsel %vm3691_vm3, %v14534_v57, %v14555_v55  ;;  %v7159_v57 = vsel %vm3691_vm3, %v14519_v9, %v14536_v42  ;;  %v16770_v55 = vld [vmem:[#allocation12_spill] sm:$0xff] }
 0x3ac   :  { %7050 = vmatpush1.bf16.msra.mxu1 %v6983_v33  ;;  %7067 = vmatprep.mubr.bf16.mxu1 %v16743_v15  ;;  %v6979_v23 = vmul.f32 %v6964_v19, %v6928_v5  ;;  %v6980_v39 = vmul.f32 %v6968_v51, %v6944_v54  ;;  %v7428_v19 = vrot.slane %v14214_v62, %v16770_v55 }
 0x3ad   :  { %7244 = vmatprep.subr.bf16.mxu1 %v7220_v29  ;;  %v7222_v51 = vpack.c.bf16 %v7216_v7, %v7210_v25  ;;  %v7215_v31 = vmul.f32 %v7194_v1, %v7164_v6  ;;  %v7209_v9 = vmul.f32 %v7194_v1, %v7159_v57  ;;  %v7424_v42 = vrot.slane %v14332_v27, %v16770_v55 }
 0x3ae   :  { %v7390_v61 = vpop.permute.xlu0 %7389  ;;  %v6985_v46 = vpack.c.bf16 %v6979_v23, %v6973_v41  ;;  %v14691_v53 = vpop.permute.xlu1 %7379  ;;  %v6986_v37 = vpack.c.bf16 %v6980_v39, %v6974_v14  ;;  %v7452_v12 = vmul.f32 %v7428_v19, %v7401_v11  ;;  %v7446_v62 = vmul.f32 %v7428_v19, %v7396_v36 }
 0x3af   :  { %11297 = vmatmul.mubr.msk.bf16.vlgmr.msra.gmra.mxu0 %vm1684_vm9, %v14499_v35  ;;  %v7221_v10 = vpack.c.bf16 %v7215_v31, %v7209_v9  ;;  %v7400_v41 = vsel %vm3918_vm5, %v14652_v60, %v14623_v2  ;;  %v7161_v27 = vsel %vm3691_vm3, %v14566_v47, %v14569_v24  ;;  %v7445_v2 = vmul.f32 %v7424_v42, %v7395_v50 }
 0x3b0   :  { %7110 = vmatprep.mubr.bf16.mxu0 %v16743_v15  ;;  %7092 = vmatprep.subr.bf16.mxu0 %v6986_v37  ;;  %v7458_v29 = vpack.c.bf16 %v7452_v12, %v7446_v62  ;;  %v7451_v45 = vmul.f32 %v7424_v42, %v7400_v41  ;;  %v7211_v54 = vmul.f32 %v7202_v56, %v7161_v27  ;;  %v11306_v42 = vld [vmem:[%s16561_s10 + $0x30] ss:$0 sm:$0xff] }
 0x3b1   :  { %7093 = vmatpush1.bf16.msra.mxu0 %v6985_v46  ;;  %v7436_v47 = vrot.slane %v14229_v32, %v16770_v55  ;;  %v7398_v7 = vsel %vm3918_vm5, %v14670_v21, %v14691_v53  ;;  %v7402_v39 = vsel %vm3918_vm5, %v14628_v58, %v7390_v61  ;;  %v7432_v46 = vrot.slane %v14236_v30, %v16770_v55 }
 0x3b2   :  { %v7382_v20 = vpop.permute.xlu0 %7381  ;;  %7287 = vmatprep.subr.bf16.mxu0 %v7222_v51  ;;  %v14709_v33 = vpop.permute.xlu1 %7391  ;;  %v7457_v25 = vpack.c.bf16 %v7451_v45, %v7445_v2  ;;  %v7440_v58 = vrot.slane %v14346_v44, %v16770_v55  ;;  %v11307_v44 = vld [vmem:[%s16561_s10 + $0x38] ss:$0 sm:$0xff] }
 0x3b3   :  { %11298 = vmatmul.mubr.msk.bf16.vlgmr.msra.gmra.mxu1 %vm1684_vm9, %v14499_v35  ;;  %v7403_v5 = vsel %vm3918_vm5, %v7390_v61, %v14709_v33  ;;  %v7453_v11 = vmul.f32 %v7432_v46, %v7402_v39  ;;  %v7444_v61 = vrot.slane %v14337_v59, %v16770_v55  ;;  %v7399_v30 = vsel %vm3918_vm5, %v14691_v53, %v7382_v20 }
 0x3b4   :  { %7245 = vmatpush1.bf16.msra.mxu1 %v7219_v43  ;;  %7262 = vmatprep.mubr.bf16.mxu1 %v16743_v15  ;;  %v7454_v32 = vmul.f32 %v7436_v47, %v7403_v5  ;;  %v7449_v53 = vmul.f32 %v7440_v58, %v7399_v30 }
 0x3b6   :  { %v14724_v14 = vpop.permute.xlu0 %7463 }
 0x3b7   :  { %v7612_v13 = vpop.permute.xlu1 %7611  ;;  %11299 = vmatmul.mubr.msk.bf16.vlgmr.msra.gmra.mxu0 %vm1684_vm9, %v14499_v35  ;;  %v7212_v35 = vmul.f32 %v7206_v48, %v7181_v16 }
 0x3b8   :  { %7288 = vmatpush1.bf16.msra.mxu0 %v7221_v10  ;;  %7305 = vmatprep.mubr.bf16.mxu0 %v16743_v15 }
 0x3b9   :  { %7482 = vmatprep.subr.bf16.mxu0 %v7458_v29 }
 0x3ba   :  { %v7156_v26 = vpop.permute.xlu0 %7155 }
 0x3bb   :  { %v7166_v63 = vsel %vm3691_vm3, %v14587_v40, %v7156_v26  ;;  %v7182_v24 = vsel %vm3691_vm3, %v7156_v26, %v14553_v49  ;;  %v7624_v23 = vpop.permute.xlu1 %7623  ;;  %11300 = vmatmul.mubr.msk.bf16.vlgmr.msra.gmra.mxu1 %vm1684_vm9, %v14590_v18  ;;  %v7397_v49 = vsel %vm3918_vm5, %v14612_v22, %v14670_v21  ;;  %v7448_v40 = vmul.f32 %v7436_v47, %v7398_v7  ;;  %v11308_v26 = vld [vmem:[%s16561_s10 + $0x40] ss:$0 sm:$0xff] }
 0x3bc   :  { %v7217_v52 = vmul.f32 %v7202_v56, %v7166_v63  ;;  %v7218_v6 = vmul.f32 %v7206_v48, %v7182_v24  ;;  %7348 = vmatprep.mubr.bf16.mxu1 %v16743_v15  ;;  %v7419_v22 = vsel %vm3918_vm5, %v7382_v20, %v14646_v28  ;;  %v7447_v19 = vmul.f32 %v7432_v46, %v7397_v49  ;;  %v11311_v49 = vld [vmem:[%s16561_s10 + $0x58] ss:$0 sm:$0xff] }
 0x3bd   :  { %v7460_v21 = vpack.c.bf16 %v7454_v32, %v7448_v40  ;;  %v7450_v31 = vmul.f32 %v7444_v61, %v7419_v22  ;;  %vm9328_vm3 = vcmask 465920  }
 0x3be   :  { %v7223_v37 = vpack.c.bf16 %v7217_v52, %v7211_v54  ;;  %v7614_v38 = vpop.permute.xlu0 %7613  ;;  %v7224_v1 = vpack.c.bf16 %v7218_v6, %v7212_v35  ;;  %v7459_v43 = vpack.c.bf16 %v7453_v11, %v7447_v19  ;;  %v11309_v54 = vld [vmem:[%s16561_s10 + $0x48] ss:$0 sm:$0xff]  ;;  %v11310_v52 = vld [vmem:[%s16561_s10 + $0x50] ss:$0 sm:$0xff]  ;;  %s16793_s10 = smov 8  }
 0x3bf   :  { %v14762_v57 = vpop.permute.xlu1 %7609  ;;  %11301 = vmatmul.mubr.msk.bf16.vlgmr.msra.gmra.mxu0 %vm1684_vm9, %v14590_v18  ;;  %v7634_v59 = vsel %vm4144_vm6, %v7612_v13, %v7614_v38 }
 0x3c0   :  { %7483 = vmatpush1.bf16.msra.mxu0 %v7457_v25  ;;  %7330 = vmatprep.subr.bf16.mxu1 %v7224_v1  ;;  %v7684_v20 = vmul.f32 %v11307_v44, %v7634_v59  ;;  %v7633_v10 = vsel %vm4144_vm6, %v14762_v57, %v7612_v13  ;;  %v11823_v25 = vld [vmem:[%s16705_s26 + $0x4] ss:$8 sps:$4 sm:$0xff]   ;;  %s16670_s26 = smov 9  }
 0x3c1   :  { %7331 = vmatpush1.bf16.msra.mxu1 %v7223_v37  ;;  %7500 = vmatprep.mubr.bf16.mxu0 %v16743_v15  ;;  %v7683_v29 = vmul.f32 %v11306_v42, %v7633_v10 }
 0x3c2   :  { %v7626_v51 = vpop.permute.xlu0 %7625  ;;  %7525 = vmatprep.subr.bf16.mxu1 %v7460_v21 }
 0x3c3   :  { %v7639_v28 = vsel %vm4144_vm6, %v7624_v23, %v7626_v51  ;;  %v7394_v36 = vpop.permute.xlu1 %7393 }
 0x3c4   :  { %v7690_v12 = vmul.f32 %v11307_v44, %v7639_v28  ;;  %v7404_v9 = vsel %vm3918_vm5, %v14709_v33, %v7394_v36  ;;  %v7420_v62 = vsel %vm3918_vm5, %v7394_v36, %v14652_v60  ;;  %11302 = vmatmul.mubr.msk.bf16.vlgmr.msra.gmra.mxu1 %vm1684_vm9, %v14590_v18 }
 0x3c5   :  { %v7455_v56 = vmul.f32 %v7440_v58, %v7404_v9  ;;  %v7456_v50 = vmul.f32 %v7444_v61, %v7420_v62  ;;  %7526 = vmatpush1.bf16.msra.mxu1 %v7459_v43  ;;  %7543 = vmatprep.mubr.bf16.mxu1 %v16743_v15 }
 0x3c6   :  { %v7622_v41 = vpop.permute.xlu0 %7621  ;;  %v7696_v33 = vpack.c.bf16 %v7690_v12, %v7684_v20 }
 0x3c7   :  { %v7461_v48 = vpack.c.bf16 %v7455_v56, %v7449_v53  ;;  %v7638_v60 = vsel %vm4144_vm6, %v7622_v41, %v7624_v23  ;;  %v7616_v27 = vpop.permute.xlu1 %7615  ;;  %11303 = vmatmul.mubr.msk.bf16.vlgmr.msra.gmra.mxu0 %vm1684_vm9, %v14724_v14  ;;  %v7462_v18 = vpack.c.bf16 %v7456_v50, %v7450_v31 }
 0x3c8   :  { %v7689_v16 = vmul.f32 %v11306_v42, %v7638_v60  ;;  %7721 = vmatprep.subr.bf16.mxu1 %v7696_v33  ;;  %7586 = vmatprep.mubr.bf16.mxu0 %v16743_v15  ;;  %v7635_v35 = vsel %vm4144_vm6, %v7614_v38, %v7616_v27  ;;  %v11824_v60 = vld [vmem:[%s16563_s12 + $0x70] ss:$8 sps:$4 sm:$0xff]  }
 0x3c9   :  { %7568 = vmatprep.subr.bf16.mxu0 %v7462_v18  ;;  %v7685_v46 = vmul.f32 %v11308_v26, %v7635_v35 }
 0x3ca   :  { %v7695_v13 = vpack.c.bf16 %v7689_v16, %v7683_v29  ;;  %7569 = vmatpush1.bf16.msra.mxu0 %v7461_v48  ;;  %v7618_v2 = vpop.permute.xlu0 %7617  ;;  %v11829_v16 = vld [vmem:[%s16563_s12 + $0x64] ss:$8 sps:$4 sm:$0xff]  }
 0x3cb   :  { %v7628_v45 = vpop.permute.xlu1 %7627  ;;  %v7636_v47 = vsel %vm4144_vm6, %v7616_v27, %v7618_v2  ;;  %v11826_v27 = vld [vmem:[%s16563_s12 + $0x74] ss:$8 sps:$4 sm:$0xff]  }
 0x3cc   :  { %v7640_v5 = vsel %vm4144_vm6, %v7626_v51, %v7628_v45  ;;  %11304 = vmatmul.mubr.msk.bf16.vlgmr.msra.gmra.mxu1 %vm1684_vm9, %v14724_v14  ;;  %v7686_v39 = vmul.f32 %v11309_v54, %v7636_v47  ;;  %v11839_v47 = vld [vmem:[%s16563_s12 + $0x170] ss:$8 sps:$4 sm:$0xff]  }
 0x3cd   :  { %7722 = vmatpush1.bf16.msra.mxu1 %v7695_v13  ;;  %7739 = vmatprep.mubr.bf16.mxu1 %v16743_v15  ;;  %v7691_v63 = vmul.f32 %v11308_v26, %v7640_v5  ;;  %v11841_v26 = vld [vmem:[%s16563_s12 + $0x174] ss:$8 sps:$4 sm:$0xff]  }
 0x3ce   :  { %v7630_v7 = vpop.permute.xlu0 %7629 }
 0x3cf   :  { %v7641_v24 = vsel %vm4144_vm6, %v7628_v45, %v7630_v7  ;;  %v7620_v23 = vpop.permute.xlu1 %7619  ;;  %11305 = vmatmul.mubr.msk.bf16.vlgmr.msra.gmra.mxu0 %vm1684_vm9, %v14724_v14  ;;  %v7697_v38 = vpack.c.bf16 %v7691_v63, %v7685_v46  ;;  %v11835_v46 = vld [vmem:[%s16563_s12 + $0x44] ss:$8 sps:$4 sm:$0xff]  }
 0x3d0   :  { %v7692_v32 = vmul.f32 %v11309_v54, %v7641_v24  ;;  %v7637_v6 = vsel %vm4144_vm6, %v7618_v2, %v7620_v23  ;;  %7782 = vmatprep.mubr.bf16.mxu0 %v16743_v15  ;;  %v7657_v14 = vsel %vm4144_vm6, %v7620_v23, %v14762_v57  ;;  %v11827_v54 = vld [vmem:[%s16563_s12 + $0x60] ss:$8 sps:$4 sm:$0xff]   ;;  %v11847_v24 = vld [vmem:[%s16563_s12 + $0x164] ss:$8 sps:$4 sm:$0xff]  }
 0x3d1   :  { %v7687_v1 = vmul.f32 %v11310_v52, %v7637_v6  ;;  %v7688_v61 = vmul.f32 %v11311_v49, %v7657_v14  ;;  %v11853_v6 = vld [vmem:[%s16563_s12 + $0x154] ss:$8 sps:$4 sm:$0xff]  }
 0x3d2   :  { %v7632_v40 = vpop.permute.xlu0 %7631  ;;  %v7698_v37 = vpack.c.bf16 %v7692_v32, %v7686_v39  ;;  %v11845_v39 = vld [vmem:[%s16563_s12 + $0x160] ss:$8 sps:$4 sm:$0xff]  }
 0x3d3   :  { %v7642_v11 = vsel %vm4144_vm6, %v7630_v7, %v7632_v40  ;;  %v7658_v58 = vsel %vm4144_vm6, %v7632_v40, %v7622_v41  ;;  %v11832_v7 = vld [vmem:[%s16563_s12 + $0x54] ss:$8 sps:$4 sm:$0xff]  }
 0x3d4   :  { %v7693_v30 = vmul.f32 %v11310_v52, %v7642_v11  ;;  %v7694_v22 = vmul.f32 %v11311_v49, %v7658_v58  ;;  %11313 = vmatmul.mubr.msk.bf16.vlgmr.msra.gmra.mxu1 %vm1684_vm9, %v11823_v25  ;;  %7764 = vmatprep.subr.bf16.mxu0 %v7698_v37  ;;  %v11830_v52 = vld [vmem:[%s16563_s12 + $0x50] ss:$8 sps:$4 sm:$0xff]   ;;  %v11833_v58 = vld [vmem:[%s16563_s12 + $0x40] ss:$8 sps:$4 sm:$0xff]  }
 0x3d5   :  { %7765 = vmatpush1.bf16.msra.mxu0 %v7697_v38  ;;  %7825 = vmatprep.mubr.bf16.mxu1 %v16743_v15  ;;  %v11851_v38 = vld [vmem:[%s16563_s12 + $0x150] ss:$8 sps:$4 sm:$0xff]  }
 0x3d6   :  { %v7699_v21 = vpack.c.bf16 %v7693_v30, %v7687_v1  ;;  %v7700_v19 = vpack.c.bf16 %v7694_v22, %v7688_v61  ;;  %8664 = vmatprep.subr.bf16.mxu0 %v11826_v27  ;;  %v11859_v61 = vld [vmem:[%s16563_s12 + $0x144] ss:$8 sps:$4 sm:$0xff]   ;;  %v11838_v30 = vld [vmem:[%s16563_s12 + $0x34] ss:$8 sps:$4 sm:$0xff]  }
 0x3d8   :  { %11314 = vmatmul.mubr.msk.bf16.vlgmr.msra.gmra.mxu0 %vm1684_vm9, %v11823_v25  ;;  %7807 = vmatprep.subr.bf16.mxu1 %v7700_v19 }
 0x3d9   :  { %7808 = vmatpush1.bf16.msra.mxu1 %v7699_v21  ;;  %8665 = vmatpush1.bf16.msra.mxu0 %v11824_v60 }
 0x3da   :  { %8666 = vmatprep.subr.bf16.mxu0 %v11829_v16  ;;  %8707 = vmatprep.subr.bf16.mxu1 %v11841_v26  ;;  %v11848_v26 = vld [vmem:[%s16563_s12 + $0x10] ss:$8 sps:$4 sm:$0xff]  }
 0x3dc   :  { %11315 = vmatmul.mubr.msk.bf16.vlgmr.msra.gmra.mxu1 %vm1684_vm9, %v11823_v25 }
 0x3dd   :  { %8708 = vmatpush1.bf16.msra.mxu1 %v11839_v47  ;;  %8667 = vmatpush1.bf16.msra.mxu0 %v11827_v54 }
 0x3de   :  { %8709 = vmatprep.subr.bf16.mxu1 %v11847_v24  ;;  %8668 = vmatprep.subr.bf16.mxu0 %v11832_v7 }
 0x3e1   :  { %8710 = vmatpush1.bf16.msra.mxu1 %v11845_v39  ;;  %8669 = vmatpush1.bf16.msra.mxu0 %v11830_v52  ;;  %v11854_v39 = vld [vmem:[%s16563_s12] ss:$8 sps:$4 sm:$0xff]  }
 0x3e2   :  { %8711 = vmatprep.subr.bf16.mxu1 %v11853_v6  ;;  %8670 = vmatprep.subr.bf16.mxu0 %v11835_v46 }
 0x3e5   :  { %8712 = vmatpush1.bf16.msra.mxu1 %v11851_v38  ;;  %8671 = vmatpush1.bf16.msra.mxu0 %v11833_v58  ;;  %v11868_v38 = vld [vmem:[%s16563_s12 + $0xe4] ss:$8 sps:$4 sm:$0xff]  }
 0x3e6   :  { %8713 = vmatprep.subr.bf16.mxu1 %v11859_v61  ;;  %8672 = vmatprep.subr.bf16.mxu0 %v11838_v30 }
 0x40c   :  { %v6047_v44 = vpop.f32.mrf.mxu0 }
 0x40e   :  { %v6049_v43 = vpop.f32.mrf.mxu0 }
 0x410   :  { %v6051_v28 = vpop.f32.mrf.mxu0 }
 0x412   :  { %v6053_v12 = vpop.f32.mrf.mxu0 }
 0x42f   :  { %v6004_v57 = vpop.f32.mrf.mxu1 }
 0x431   :  { %v6006_v59 = vpop.f32.mrf.mxu1 }
 0x433   :  { %v6008_v51 = vpop.f32.mrf.mxu1 }
 0x435   :  { %v6010_v53 = vpop.f32.mrf.mxu1 }
 0x437   :  { %v6090_v31 = vpop.f32.mrf.mxu1 }
 0x439   :  { %v6092_v36 = vpop.f32.mrf.mxu1 }
 0x43b   :  { %v6094_v20 = vpop.f32.mrf.mxu1 }
 0x43d   :  { %v14826_v9 = vpop.f32.mrf.mxu1 }
 0x43f   :  { %v6136_v62 = vpop.f32.mrf.mxu0  ;;  %v6179_v42 = vpop.f32.mrf.mxu1 }
 0x440   :  { %v6137_v10 = vadd.f32 %v6136_v62, %v6004_v57  ;;  %v14828_v56 = vadd.f32 %v6179_v42, %v6047_v44  ;;  %v11857_v57 = vld [vmem:[%s16563_s12 + $0x140] ss:$8 sps:$4 sm:$0xff]   ;;  %v11863_v42 = vld [vmem:[%s16563_s12 + $0x130] ss:$8 sps:$4 sm:$0xff]  }
 0x441   :  { %v6138_v50 = vpop.f32.mrf.mxu0  ;;  %v6181_v41 = vpop.f32.mrf.mxu1  ;;  %8714 = vmatpush1.bf16.msra.mxu1 %v11857_v57  ;;  %v11866_v57 = vld [vmem:[%s16563_s12 + $0xe0] ss:$8 sps:$4 sm:$0xff]  }
 0x442   :  { %v14830_v33 = vadd.f32 %v6138_v50, %v6006_v59  ;;  %v6182_v48 = vadd.f32 %v6181_v41, %v6049_v43  ;;  %v11865_v43 = vld [vmem:[%s16563_s12 + $0x134] ss:$8 sps:$4 sm:$0xff]   ;;  %v11842_v41 = vld [vmem:[%s16563_s12 + $0x20] ss:$8 sps:$4 sm:$0xff]  }
 0x443   :  { %v6140_v18 = vpop.f32.mrf.mxu0  ;;  %v6183_v29 = vpop.f32.mrf.mxu1  ;;  %8715 = vmatprep.subr.bf16.mxu1 %v11865_v43 }
 0x444   :  { %v14841_v13 = vadd.f32 %v6140_v18, %v6008_v51  ;;  %v6184_v2 = vadd.f32 %v6183_v29, %v6051_v28  ;;  %v11836_v51 = vld [vmem:[%s16563_s12 + $0x30] ss:$8 sps:$4 sm:$0xff]   ;;  %v11844_v28 = vld [vmem:[%s16563_s12 + $0x24] ss:$8 sps:$4 sm:$0xff]   ;;  %v11850_v18 = vld [vmem:[%s16563_s12 + $0x14] ss:$8 sps:$4 sm:$0xff]  }
 0x445   :  { %v6142_v45 = vpop.f32.mrf.mxu0  ;;  %v6185_v5 = vpop.f32.mrf.mxu1  ;;  %8673 = vmatpush1.bf16.msra.mxu0 %v11836_v51  ;;  %8716 = vmatpush1.bf16.msra.mxu1 %v11863_v42 }
 0x446   :  { %v6186_v35 = vadd.f32 %v6185_v5, %v6053_v12  ;;  %v6143_v19 = vadd.f32 %v6142_v45, %v6010_v53  ;;  %8674 = vmatprep.subr.bf16.mxu0 %v11844_v28  ;;  %v11869_v5 = vld [vmem:[%s16563_s12 + $0x120] ss:$8 sps:$4 sm:$0xff]  }
 0x447   :  { %v6222_v63 = vpop.f32.mrf.mxu0 }
 0x448   :  { %v6223_v23 = vadd.f32 %v6222_v63, %v6090_v31 }
 0x449   :  { %v6224_v32 = vpop.f32.mrf.mxu0  ;;  %8675 = vmatpush1.bf16.msra.mxu0 %v11842_v41 }
 0x44a   :  { %v6225_v25 = vadd.f32 %v6224_v32, %v6092_v36  ;;  %8676 = vmatprep.subr.bf16.mxu0 %v11850_v18  ;;  %v11862_v32 = vld [vmem:[%s16563_s12 + $0xf4] ss:$8 sps:$4 sm:$0xff]  }
 0x44b   :  { %v6226_v49 = vpop.f32.mrf.mxu0  ;;  %v6362_v14 = vpop.f32.mrf.mxu1 }
 0x44c   :  { %v6227_v40 = vadd.f32 %v6226_v49, %v6094_v20  ;;  %v14870_v37 = vadd.f32 %v6362_v14, %v6137_v10  ;;  %v11860_v49 = vld [vmem:[%s16563_s12 + $0xf0] ss:$8 sps:$4 sm:$0xff]  }
 0x44d   :  { %v6228_v1 = vpop.f32.mrf.mxu0  ;;  %v14875_v11 = vpop.f32.mrf.mxu1  ;;  %8677 = vmatpush1.bf16.msra.mxu0 %v11848_v26 }
 0x44e   :  { %v6458_v17 = vadd.f32 %v14875_v11, %v14830_v33 }
 0x44f   :  { %v14886_v22 = vpop.f32.mrf.mxu1  ;;  %v14888_v21 = vpop.f32.mrf.mxu0 }
 0x451   :  { %v6368_v44 = vpop.f32.mrf.mxu1  ;;  %v6407_v59 = vpop.f32.mrf.mxu0 }
 0x452   :  { %v14899_v31 = vadd.f32 %v6368_v44, %v6143_v19  ;;  %v14901_v53 = vadd.f32 %v6407_v59, %v6182_v48  ;;  %v11871_v48 = vld [vmem:[%s16563_s12 + $0x124] ss:$8 sps:$4 sm:$0xff]   ;;  %v11874_v59 = vld [vmem:[%s16563_s12 + $0xd4] ss:$8 sps:$4 sm:$0xff]  }
 0x453   :  { %v6409_v36 = vpop.f32.mrf.mxu0  ;;  %v6448_v20 = vpop.f32.mrf.mxu1  ;;  %8717 = vmatprep.subr.bf16.mxu1 %v11871_v48 }
 0x454   :  { %v14906_v12 = vadd.f32 %v6409_v36, %v6184_v2  ;;  %v14908_v62 = vadd.f32 %v6448_v20, %v6223_v23  ;;  %v6229_v2 = vadd.f32 %v6228_v1, %v14826_v9  ;;  %v11856_v9 = vld [vmem:[%s16563_s12 + $0x4] ss:$8 sps:$4 sm:$0xff]   ;;  %8718 = vmatpush1.bf16.msra.mxu1 %v11869_v5  ;;  %v11872_v20 = vld [vmem:[%s16563_s12 + $0xd0] ss:$8 sps:$4 sm:$0xff]  }
 0x455   :  { %v6411_v10 = vpop.f32.mrf.mxu0  ;;  %v6450_v50 = vpop.f32.mrf.mxu1  ;;  %8678 = vmatprep.subr.bf16.mxu0 %v11856_v9 }
 0x456   :  { %v6466_v60 = vadd.f32 %v6411_v10, %v6186_v35  ;;  %v6462_v27 = vadd.f32 %v6450_v50, %v6225_v25  ;;  %8679 = vmatpush1.bf16.msra.mxu0 %v11854_v39 }
 0x457   :  { %v6452_v29 = vpop.f32.mrf.mxu1  ;;  %v14922_v16 = vpop.f32.mrf.mxu0  ;;  %8680 = vmatprep.subr.bf16.mxu0 %v11862_v32 }
 0x458   :  { %v6467_v45 = vadd.f32 %v6452_v29, %v6227_v40  ;;  %v6695_v11 = vadd.f32 %v14922_v16, %v14870_v37 }
 0x459   :  { %v6454_v54 = vpop.f32.mrf.mxu1  ;;  %v14928_v47 = vpop.f32.mrf.mxu0 }
 0x45a   :  { %v6468_v35 = vadd.f32 %v6454_v54, %v6229_v2  ;;  %8681 = vmatpush2.bf16.msra.mxu0 %v11860_v49 }
 0x45b   :  { %v14936_v7 = vpop.f32.mrf.mxu0  ;;  %v14938_v63 = vpop.f32.mrf.mxu1  ;;  %8682 = vmatprep.subr.bf16.mxu0 %v11868_v38 }
 0x45d   :  { %v14940_v24 = vpop.f32.mrf.mxu0  ;;  %v14942_v23 = vpop.f32.mrf.mxu1 }
 0x45e   :  { %8683 = vmatpush2.bf16.msra.mxu0 %v11866_v57  ;;  %v6702_v37 = vadd.f32 %v14940_v24, %v14899_v31  ;;  %v11877_v31 = vld [vmem:[%s16563_s12 + $0x114] ss:$8 sps:$4 sm:$0xff]  }
 0x45f   :  { %v14950_v52 = vpop.f32.mrf.mxu1  ;;  %v14952_v6 = vpop.f32.mrf.mxu0  ;;  %8684 = vmatprep.subr.bf16.mxu0 %v11874_v59  ;;  %8719 = vmatprep.subr.bf16.mxu1 %v11877_v31 }
 0x461   :  { %v6649_v25 = vpop.f32.mrf.mxu1  ;;  %v6688_v46 = vpop.f32.mrf.mxu0 }
 0x462   :  { %v14957_v14 = vadd.f32 %v6649_v25, %v6466_v60  ;;  %v14959_v40 = vadd.f32 %v6688_v46, %v6462_v27  ;;  %8685 = vmatpush2.bf16.msra.mxu0 %v11872_v20 }
 0x463   :  { %v6690_v1 = vpop.f32.mrf.mxu0  ;;  %v14964_v58 = vpop.f32.mrf.mxu1 }
 0x464   :  { %16771 = vst [vmem:[#allocation29_spill] sm:$0xff] %v14959_v40  ;;  %v14966_v61 = vadd.f32 %v6690_v1, %v6467_v45 }
 0x465   :  { %v6692_v30 = vpop.f32.mrf.mxu0  ;;  %v6790_v19 = vpop.f32.mrf.mxu1 }
 0x466   :  { %v14971_v44 = vadd.f32 %v6692_v30, %v6468_v35 }
 0x467   :  { %v6792_v51 = vpop.f32.mrf.mxu1  ;;  %v6831_v43 = vpop.f32.mrf.mxu0 }
 0x469   :  { %v14976_v28 = vpop.f32.mrf.mxu1  ;;  %v14978_v36 = vpop.f32.mrf.mxu0 }
 0x46b   :  { %v6835_v42 = vpop.f32.mrf.mxu0  ;;  %v14983_v10 = vpop.f32.mrf.mxu1 }
 0x46d   :  { %v14985_v50 = vpop.f32.mrf.mxu0  ;;  %v14987_v41 = vpop.f32.mrf.mxu1 }
 0x46e   :  { %16772 = vst [vmem:[#allocation30_spill] sm:$0xff] %v14987_v41 }
 0x46f   :  { %v14989_v48 = vpop.f32.mrf.mxu1  ;;  %v7026_v60 = vpop.f32.mrf.mxu0 }
 0x471   :  { %v14991_v27 = vpop.f32.mrf.mxu1  ;;  %v7028_v18 = vpop.f32.mrf.mxu0 }
 0x473   :  { %v7030_v29 = vpop.f32.mrf.mxu0  ;;  %v7069_v2 = vpop.f32.mrf.mxu1 }
 0x475   :  { %v14993_v45 = vpop.f32.mrf.mxu0  ;;  %v14995_v5 = vpop.f32.mrf.mxu1 }
 0x477   :  { %v7073_v54 = vpop.f32.mrf.mxu1  ;;  %v14997_v26 = vpop.f32.mrf.mxu0 }
 0x479   :  { %v14999_v35 = vpop.f32.mrf.mxu1  ;;  %v15001_v9 = vpop.f32.mrf.mxu0 }
 0x47a   :  { %16773 = vst [vmem:[#allocation26_spill] sm:$0xff] %v14999_v35  ;;  %16774 = vst [vmem:[#allocation20_spill] sm:$0xff] %v15001_v9  ;;  %v6463_v9 = vadd.f32 %v14886_v22, %v14841_v13 }
 0x47b   :  { %v15003_v39 = vpop.f32.mrf.mxu0  ;;  %v7264_v32 = vpop.f32.mrf.mxu1 }
 0x47c   :  { %v6701_v40 = vadd.f32 %v14936_v7, %v6463_v9  ;;  %v6703_v7 = vadd.f32 %v14950_v52, %v14906_v12 }
 0x47d   :  { %v15005_v25 = vpop.f32.mrf.mxu0  ;;  %v7266_v46 = vpop.f32.mrf.mxu1 }
 0x47e   :  { %16775 = vst [vmem:[#allocation16_spill] sm:$0xff] %v15005_v25  ;;  %v6459_v25 = vadd.f32 %v14888_v21, %v14828_v56  ;;  %v6889_v22 = vadd.f32 %v6792_v51, %v6701_v40 }
 0x47f   :  { %v7268_v49 = vpop.f32.mrf.mxu1  ;;  %v7307_v38 = vpop.f32.mrf.mxu0 }
 0x481   :  { %v15007_v1 = vpop.f32.mrf.mxu1  ;;  %v15009_v30 = vpop.f32.mrf.mxu0 }
 0x483   :  { %v7311_v57 = vpop.f32.mrf.mxu0 }
 0x484   :  { %v15011_v59 = vpop.f32.mrf.mxu1 }
 0x485   :  { %v15013_v20 = vpop.f32.mrf.mxu0 }
 0x486   :  { %16776 = vst [vmem:[#allocation21_spill] sm:$0xff] %v15013_v20  ;;  %v15015_v55 = vpop.f32.mrf.mxu1  ;;  %v6696_v20 = vadd.f32 %v14928_v47, %v6458_v17  ;;  %v6883_v17 = vadd.f32 %v14964_v58, %v6695_v11 }
 0x487   :  { %16777 = vst [vmem:[#allocation17_spill] sm:$0xff] %v15015_v55  ;;  %v7502_v34 = vpop.f32.mrf.mxu0 }
 0x488   :  { %v15017_v3 = vpop.f32.mrf.mxu1  ;;  %v7121_v16 = vadd.f32 %v7026_v60, %v6883_v17  ;;  %v6698_v17 = vadd.f32 %v14942_v23, %v14901_v53 }
 0x489   :  { %16778 = vst [vmem:[#allocation18_spill] sm:$0xff] %v15017_v3  ;;  %v7504_v4 = vpop.f32.mrf.mxu0  ;;  %v6884_v3 = vadd.f32 %v6790_v19, %v6696_v20 }
 0x48a   :  { %v15019_v0 = vpop.f32.mrf.mxu1  ;;  %v7359_v20 = vadd.f32 %v7264_v32, %v7121_v16 }
 0x48b   :  { %16779 = vst [vmem:[#allocation28_spill] sm:$0xff] %v15019_v0  ;;  %v7506_v8 = vpop.f32.mrf.mxu0  ;;  %v6697_v0 = vadd.f32 %v14938_v63, %v6459_v25  ;;  %v7122_v56 = vadd.f32 %v7028_v18, %v6884_v3  ;;  %v7127_v63 = vadd.f32 %v7030_v29, %v6889_v22  ;;  %v6891_v3 = vadd.f32 %v6835_v42, %v6703_v7 }
 0x48c   :  { %v7545_v15 = vpop.f32.mrf.mxu1  ;;  %v6890_v18 = vadd.f32 %v14976_v28, %v6702_v37  ;;  %v7597_v42 = vadd.f32 %v7502_v34, %v7359_v20  ;;  %v11878_v28 = vld [vmem:[%s16563_s12 + $0xc0] ss:$8 sps:$4 sm:$0xff]   ;;  %v6886_v37 = vadd.f32 %v14978_v36, %v6698_v17  ;;  %v11889_v36 = vld [vmem:[%s16563_s12 + $0x1f4] ss:$8 sps:$4 sm:$0xff]   ;;  %v16784_v17 = vld [vmem:[#allocation30_spill] sm:$0xff] }
 0x48d   :  { %v15028_v55 = vpop.f32.mrf.mxu0  ;;  %v6885_v35 = vadd.f32 %v6831_v43, %v6697_v0  ;;  %v7360_v9 = vadd.f32 %v7266_v46, %v7122_v56  ;;  %v7365_v40 = vadd.f32 %v7268_v49, %v7127_v63  ;;  %v7129_v52 = vadd.f32 %v7073_v54, %v6891_v3  ;;  %v15073_v56 = vpop.permute.xlu0 %7857 }
 0x48e   :  { %v15030_v41 = vpop.f32.mrf.mxu1  ;;  %v7128_v24 = vadd.f32 %v14993_v45, %v6890_v18  ;;  %v6699_v45 = vadd.f32 %v14952_v6, %v14908_v62 }
 0x48f   :  { %v15034_v33 = vpop.f32.mrf.mxu0  ;;  %v7123_v19 = vadd.f32 %v7069_v2, %v6885_v35  ;;  %v7598_v43 = vadd.f32 %v7504_v4, %v7360_v9  ;;  %v7603_v29 = vadd.f32 %v7506_v8, %v7365_v40  ;;  %v11875_v4 = vld [vmem:[%s16563_s12 + $0x110] ss:$8 sps:$4 sm:$0xff]   ;;  %v11880_v8 = vld [vmem:[%s16563_s12 + $0xc4] ss:$8 sps:$4 sm:$0xff]   ;;  %v7367_v34 = vadd.f32 %v7311_v57, %v7129_v52  ;;  %v11886_v9 = vld [vmem:[%s16563_s12 + $0xb4] ss:$8 sps:$4 sm:$0xff]  }
 0x490   :  { %v7549_v13 = vpop.f32.mrf.mxu1  ;;  %v7366_v49 = vadd.f32 %v15007_v1, %v7128_v24  ;;  %8720 = vmatpush1.bf16.msra.mxu1 %v11875_v4  ;;  %8686 = vmatprep.subr.bf16.mxu0 %v11880_v8  ;;  %v11881_v1 = vld [vmem:[%s16563_s12 + $0x100] ss:$8 sps:$4 sm:$0xff]   ;;  %v11883_v57 = vld [vmem:[%s16563_s12 + $0x104] ss:$8 sps:$4 sm:$0xff]   ;;  %v6887_v63 = vadd.f32 %v14983_v10, %v6699_v45  ;;  %v6893_v24 = vadd.f32 %v14989_v48, %v14966_v61  ;;  %v11896_v48 = vld [vmem:[%s16563_s12 + $0x90] ss:$8 sps:$4 sm:$0xff]  }
 0x491   :  { %v15038_v21 = vpop.f32.mrf.mxu0  ;;  %v7361_v51 = vadd.f32 %v7307_v38, %v7123_v19  ;;  %v7605_v7 = vadd.f32 %v7549_v13, %v7367_v34  ;;  %8687 = vmatpush2.bf16.msra.mxu0 %v11878_v28  ;;  %v11884_v13 = vld [vmem:[%s16563_s12 + $0xb0] ss:$8 sps:$4 sm:$0xff]   ;;  %8721 = vmatprep.subr.bf16.mxu1 %v11883_v57  ;;  %v11893_v61 = vld [vmem:[%s16563_s12 + $0x1e0] ss:$8 sps:$4 sm:$0xff]   ;;  %v6892_v4 = vadd.f32 %v14985_v50, %v14957_v14  ;;  %v11901_v14 = vld [vmem:[%s16563_s12 + $0x1d4] ss:$8 sps:$4 sm:$0xff]  }
 0x492   :  { %v15041_v47 = vpop.f32.mrf.mxu1  ;;  %v7604_v19 = vadd.f32 %v15028_v55, %v7366_v49  ;;  %v7125_v55 = vadd.f32 %v14997_v26, %v6887_v63  ;;  %8688 = vmatprep.subr.bf16.mxu0 %v11886_v9  ;;  %v7131_v8 = vadd.f32 %v15003_v39, %v6893_v24  ;;  %v16782_v50 = vld [vmem:[#allocation18_spill] sm:$0xff]  ;;  %v16786_v57 = vld [vmem:[#allocation21_spill] sm:$0xff] }
 0x493   :  { %v15045_v25 = vpop.f32.mrf.mxu0  ;;  %v7599_v2 = vadd.f32 %v7545_v15, %v7361_v51  ;;  %v15065_v15 = vpop.permute.xlu1 %7852  ;;  %v7124_v51 = vadd.f32 %v14995_v5, %v6886_v37  ;;  %v11887_v5 = vld [vmem:[%s16563_s12 + $0x1f0] ss:$8 sps:$4 sm:$0xff]   ;;  %v11902_v37 = vld [vmem:[%s16563_s12 + $0x80] ss:$8 sps:$4 sm:$0xff]  }
 0x494   :  { %v7741_v0 = vpop.f32.mrf.mxu1  ;;  %8722 = vmatpush1.bf16.msra.mxu1 %v11881_v1  ;;  %v7363_v26 = vadd.f32 %v15011_v59, %v7125_v55  ;;  %v11892_v59 = vld [vmem:[%s16563_s12 + $0xa4] ss:$8 sps:$4 sm:$0xff]   ;;  %v7369_v39 = vadd.f32 %v16782_v50, %v7131_v8 }
 0x495   :  { %v15049_v58 = vpop.f32.mrf.mxu0  ;;  %v7836_v38 = vadd.f32 %v7741_v0, %v7597_v42  ;;  %8689 = vmatpush2.bf16.msra.mxu0 %v11884_v13  ;;  %8723 = vmatprep.subr.bf16.mxu1 %v11889_v36  ;;  %v11919_v8 = vld [vmem:[%s16563_s12 + $0x1a4] ss:$8 sps:$4 sm:$0xff]  }
 0x496   :  { %v7743_v12 = vpop.f32.mrf.mxu1  ;;  %8690 = vmatprep.subr.bf16.mxu0 %v11892_v59  ;;  %v7607_v13 = vadd.f32 %v15045_v25, %v7369_v39  ;;  %v11907_v25 = vld [vmem:[%s16563_s12 + $0x1c4] ss:$8 sps:$4 sm:$0xff]   ;;  %v11929_v39 = vld [vmem:[%s16563_s12 + $0x180] ss:$8 sps:$4 sm:$0xff]  }
 0x497   :  { %v7837_v35 = vadd.f32 %v7743_v12, %v7598_v43  ;;  %v15101_v10 = vadd.f32 %v15065_v15, %v7836_v38  ;;  %v11890_v12 = vld [vmem:[%s16563_s12 + $0xa0] ss:$8 sps:$4 sm:$0xff]  }
 0x498   :  { %v7745_v60 = vpop.f32.mrf.mxu1  ;;  %v7784_v46 = vpop.f32.mrf.mxu0  ;;  %8724 = vmatpush2.bf16.msra.mxu1 %v11887_v5 }
 0x499   :  { %v7842_v54 = vadd.f32 %v7745_v60, %v7603_v29  ;;  %v7838_v32 = vadd.f32 %v7784_v46, %v7599_v2  ;;  %v15071_v11 = vadd.f32 %v15065_v15, %v7837_v35  ;;  %v7362_v29 = vadd.f32 %v15009_v30, %v7124_v51  ;;  %v11895_v30 = vld [vmem:[%s16563_s12 + $0x1e4] ss:$8 sps:$4 sm:$0xff]   ;;  %8691 = vmatpush2.bf16.msra.mxu0 %v11890_v12  ;;  %v11905_v12 = vld [vmem:[%s16563_s12 + $0x1c0] ss:$8 sps:$4 sm:$0xff]  }
 0x49a   :  { %v7786_v22 = vpop.f32.mrf.mxu0  ;;  %v7747_v6 = vpop.f32.mrf.mxu1  ;;  %v7601_v2 = vadd.f32 %v15034_v33, %v7363_v26  ;;  %v7872_v35 = vmax.f32 %v15101_v10, 0.0  ;;  %8725 = vmatprep.subr.bf16.mxu1 %v11895_v30 }
 0x49b   :  { %v15078_v62 = vadd.f32 %v15065_v15, %v7838_v32  ;;  %v15089_v53 = vadd.f32 %v15073_v56, %v7842_v54  ;;  %v7873_v3 = vmax.f32 %v15071_v11, 0.0  ;;  %v7843_v40 = vadd.f32 %v7747_v6, %v7604_v19  ;;  %v16781_v32 = vld [vmem:[#allocation26_spill] sm:$0xff]  ;;  %v16785_v6 = vld [vmem:[#allocation16_spill] sm:$0xff] }
 0x49c   :  { %v7788_v23 = vpop.f32.mrf.mxu0  ;;  %v7827_v52 = vpop.f32.mrf.mxu1  ;;  %v7600_v33 = vadd.f32 %v15030_v41, %v7362_v29  ;;  %v11898_v41 = vld [vmem:[%s16563_s12 + $0x94] ss:$8 sps:$4 sm:$0xff]   ;;  %v6894_v54 = vadd.f32 %v14991_v27, %v14971_v44  ;;  %v7130_v49 = vadd.f32 %v16781_v32, %v6892_v4  ;;  %8726 = vmatpush2.bf16.msra.mxu1 %v11893_v61  ;;  %v11899_v44 = vld [vmem:[%s16563_s12 + $0x1d0] ss:$8 sps:$4 sm:$0xff]   ;;  %v16783_v27 = vld [vmem:[#allocation29_spill] sm:$0xff] }
 0x49d   :  { %v7874_v16 = vmax.f32 %v15078_v62, 0.0  ;;  %v7844_v0 = vadd.f32 %v7788_v23, %v7605_v7  ;;  %v7878_v18 = vmax.f32 %v15089_v53, 0.0  ;;  %v15130_v31 = vadd.f32 %v15073_v56, %v7843_v40  ;;  %8692 = vmatprep.subr.bf16.mxu0 %v11898_v41  ;;  %8727 = vmatprep.subr.bf16.mxu1 %v11901_v14  ;;  %v11904_v23 = vld [vmem:[%s16563_s12 + $0x84] ss:$8 sps:$4 sm:$0xff]   ;;  %v16788_v40 = vld [vmem:[#allocation28_spill] sm:$0xff] }
 0x49e   :  { %v7840_v60 = vadd.f32 %v7827_v52, %v7601_v2  ;;  %v7829_v28 = vpop.f32.mrf.mxu1  ;;  %v7839_v34 = vadd.f32 %v7786_v22, %v7600_v33  ;;  %8693 = vmatpush2.bf16.msra.mxu0 %v11896_v48  ;;  %v6888_v7 = vadd.f32 %v16784_v17, %v16783_v27  ;;  %v7132_v1 = vadd.f32 %v16785_v6, %v6894_v54  ;;  %v7790_v26 = vpop.f32.mrf.mxu0  ;;  %v16789_v52 = vld [vmem:[#allocation17_spill] sm:$0xff]  ;;  %v11911_v41 = vld [vmem:[%s16563_s12 + $0x1b0] ss:$8 sps:$4 sm:$0xff]  }
 0x49f   :  { %v15106_v43 = vadd.f32 %v15073_v56, %v7844_v0  ;;  %v11583_v20 = vpack.i.bf16 %v7874_v16, %v7873_v3  ;;  %v15145_v46 = vpack.i.bf16 %v7878_v18, %v7872_v35  ;;  %v7879_v45 = vmax.f32 %v15130_v31, 0.0  ;;  %v16787_v0 = vld [vmem:[#allocation20_spill] sm:$0xff]  ;;  %8694 = vmatprep.subr.bf16.mxu0 %v11904_v23 }
 0x4a0   :  { %v15171_v38 = vadd.f32 %v15065_v15, %v7840_v60  ;;  %v7368_v63 = vadd.f32 %v16786_v57, %v7130_v49  ;;  %v7831_v19 = vpop.f32.mrf.mxu1  ;;  %v15189_v9 = vadd.f32 %v15065_v15, %v7839_v34  ;;  %v7126_v55 = vadd.f32 %v16787_v0, %v6888_v7  ;;  %8728 = vmatpush2.bf16.msra.mxu1 %v11899_v44  ;;  %v11913_v60 = vld [vmem:[%s16563_s12 + $0x1b4] ss:$8 sps:$4 sm:$0xff]   ;;  %v11917_v32 = vld [vmem:[%s16563_s12 + $0x1a0] ss:$8 sps:$4 sm:$0xff]  }
 0x4a1   :  { %11584 = vrot.lane.b32.xlu0 %v11583_v20, %s16674_s28  ;;  %11579 = vrot.lane.b32.xlu1 %v11583_v20, %s16780_s5  ;;  %v7880_v42 = vmax.f32 %v15106_v43, 0.0  ;;  %v7370_v51 = vadd.f32 %v16788_v40, %v7132_v1  ;;  %v7846_v5 = vadd.f32 %v7831_v19, %v7607_v13 }
 0x4a2   :  { %v7606_v36 = vadd.f32 %v15041_v47, %v7368_v63  ;;  %8695 = vmatpush2.bf16.msra.mxu0 %v11902_v37  ;;  %v7364_v59 = vadd.f32 %v16789_v52, %v7126_v55  ;;  %v7833_v29 = vpop.f32.mrf.mxu1  ;;  %8729 = vmatprep.subr.bf16.mxu1 %v11907_v25  ;;  %v11910_v47 = vld [vmem:[%s16563_s12 + $0x274] ss:$8 sps:$4 sm:$0xff]   ;;  %v7875_v24 = vmax.f32 %v15189_v9, 0.0 }
 0x4a3   :  { %v11603_v22 = vpack.i.bf16 %v7880_v42, %v7879_v45  ;;  %v7608_v2 = vadd.f32 %v15049_v58, %v7370_v51  ;;  %8750 = vmatprep.subr.bf16.mxu0 %v11910_v47  ;;  %v15220_v61 = vadd.f32 %v15073_v56, %v7846_v5 }
 0x4a4   :  { %v7845_v30 = vadd.f32 %v7790_v26, %v7606_v36  ;;  %v7602_v33 = vadd.f32 %v15038_v21, %v7364_v59  ;;  %8730 = vmatpush2.bf16.msra.mxu1 %v11905_v12 }
 0x4a5   :  { %11589 = vrot.lane.b32.xlu1 %v11583_v20, %s12078_s1  ;;  %11599 = vrot.lane.b32.xlu0 %v15145_v46, %s16674_s28  ;;  %v7876_v20 = vmax.f32 %v15171_v38, 0.0  ;;  %v7847_v48 = vadd.f32 %v7833_v29, %v7608_v2  ;;  %v7882_v34 = vmax.f32 %v15220_v61, 0.0  ;;  %v11962_v38 = vld [vmem:[%s16563_s12 + $0x290] ss:$8 sps:$4 sm:$0xff]  }
 0x4a6   :  { %8731 = vmatprep.subr.bf16.mxu1 %v11913_v60  ;;  %v15230_v21 = vadd.f32 %v15073_v56, %v7845_v30  ;;  %v7841_v4 = vadd.f32 %v7829_v28, %v7602_v33 }
 0x4a7   :  { %v11623_v58 = vpack.i.bf16 %v7876_v20, %v7875_v24  ;;  %v15240_v54 = vadd.f32 %v15073_v56, %v7847_v48  ;;  %v11925_v56 = vld [vmem:[%s16563_s12 + $0x194] ss:$8 sps:$4 sm:$0xff]  }
 0x4a8   :  { %8732 = vmatpush2.bf16.msra.mxu1 %v11911_v41  ;;  %v7881_v28 = vmax.f32 %v15230_v21, 0.0 }
 0x4a9   :  { %11594 = vrot.lane.b32.xlu1 %v15145_v46, %s16780_s5  ;;  %11604 = vrot.lane.b32.xlu0 %v11603_v22, %s16780_s5  ;;  %v7883_v49 = vmax.f32 %v15240_v54, 0.0 }
 0x4aa   :  { %8733 = vmatprep.subr.bf16.mxu1 %v11919_v8  ;;  %v11643_v14 = vpack.i.bf16 %v7882_v34, %v7881_v28 }
 0x4ac   :  { %8734 = vmatpush2.bf16.msra.mxu1 %v11917_v32 }
 0x4ad   :  { %11609 = vrot.lane.b32.xlu1 %v11603_v22, %s16674_s28  ;;  %11614 = vrot.lane.b32.xlu0 %v11603_v22, %s12078_s1  ;;  %v11931_v22 = vld [vmem:[%s16563_s12 + $0x184] ss:$8 sps:$4 sm:$0xff]  }
 0x4ae   :  { %8735 = vmatprep.subr.bf16.mxu1 %v11925_v56 }
 0x4b1   :  { %11619 = vrot.lane.b32.xlu1 %v15145_v46, %s12078_s1  ;;  %11624 = vrot.lane.b32.xlu0 %v11623_v58, %s16780_s5  ;;  %v15247_v46 = vadd.f32 %v15065_v15, %v7841_v4  ;;  %v11923_v15 = vld [vmem:[%s16563_s12 + $0x190] ss:$8 sps:$4 sm:$0xff]  }
 0x4b2   :  { %8736 = vmatpush2.bf16.msra.mxu1 %v11923_v15 }
 0x4b3   :  { %v7877_v50 = vmax.f32 %v15247_v46, 0.0  ;;  %8737 = vmatprep.subr.bf16.mxu1 %v11931_v22 }
 0x4b5   :  { %11629 = vrot.lane.b32.xlu1 %v11623_v58, %s16674_s28  ;;  %11634 = vrot.lane.b32.xlu0 %v11623_v58, %s12078_s1  ;;  %v11653_v44 = vpack.i.bf16 %v7883_v49, %v7877_v50 }
 0x4b6   :  { %8738 = vmatpush2.bf16.msra.mxu1 %v11929_v39 }
 0x4b9   :  { %11644 = vrot.lane.b32.xlu0 %v11643_v14, %s16674_s28  ;;  %11639 = vrot.lane.b32.xlu1 %v11643_v14, %s16780_s5 }
 0x4bd   :  { %11654 = vrot.lane.b32.xlu1 %v11653_v44, %s16674_s28  ;;  %11649 = vrot.lane.b32.xlu0 %v11653_v44, %s16780_s5 }
 0x4c1   :  { %11659 = vrot.lane.b32.xlu1 %v11643_v14, %s12078_s1  ;;  %11664 = vrot.lane.b32.xlu0 %v11653_v44, %s12078_s1  ;;  %s16660_s1 = smov 71  }
 0x513   :  { %v15279_v27 = vpop.permute.xlu0 %11584  ;;  %v11580_v17 = vpop.permute.xlu1 %11579 }
 0x514   :  { %v11582_v7 = vunpack.i.h.bf16 %v11580_v17  ;;  %v11581_v6 = vunpack.i.l.bf16 %v11580_v17  ;;  %v11587_v40 = vunpack.i.h.bf16 %v15279_v27  ;;  %v11586_v51 = vunpack.i.l.bf16 %v15279_v27 }
 0x516   :  { %v7921_v63 = vsel %vm3013_vm14, %v11581_v6, %v11582_v7  ;;  %v7983_v58 = vsel %vm3918_vm5, %v11586_v51, %v11587_v40 }
 0x517   :  { %v15281_v1 = vpop.permute.xlu1 %11589  ;;  %v15283_v57 = vpop.permute.xlu0 %11599  ;;  %v7947_v36 = vmax.f32 %v7873_v3, %v7921_v63 }
 0x518   :  { %v11592_v26 = vunpack.i.h.bf16 %v15281_v1  ;;  %v11591_v12 = vunpack.i.l.bf16 %v15281_v1  ;;  %v11602_v52 = vunpack.i.h.bf16 %v15283_v57  ;;  %v11601_v59 = vunpack.i.l.bf16 %v15283_v57 }
 0x51a   :  { %v7982_v8 = vsel %vm3918_vm5, %v11601_v59, %v11586_v51  ;;  %v8045_v15 = vsel %vm4144_vm6, %v11591_v12, %v11592_v26 }
 0x51b   :  { %v15286_v19 = vpop.permute.xlu1 %11594  ;;  %v15288_v23 = vpop.permute.xlu0 %11604 }
 0x51c   :  { %v11597_v13 = vunpack.i.h.bf16 %v15286_v19  ;;  %v11596_v37 = vunpack.i.l.bf16 %v15286_v19  ;;  %v11607_v0 = vunpack.i.h.bf16 %v15288_v23  ;;  %v11606_v55 = vunpack.i.l.bf16 %v15288_v23 }
 0x51e   :  { %v7920_v25 = vsel %vm3013_vm14, %v11596_v37, %v11581_v6  ;;  %v7926_v5 = vsel %vm3013_vm14, %v11606_v55, %v11607_v0  ;;  %v7925_v11 = vsel %vm3013_vm14, %v11597_v13, %v11606_v55 }
 0x51f   :  { %v15311_v3 = vpop.permute.xlu1 %11609  ;;  %v15313_v29 = vpop.permute.xlu0 %11614  ;;  %v7946_v60 = vmax.f32 %v7872_v35, %v7920_v25  ;;  %v7953_v48 = vmax.f32 %v7879_v45, %v7926_v5  ;;  %v7952_v10 = vmax.f32 %v7878_v18, %v7925_v11  ;;  %v8009_v45 = vmax.f32 %v7947_v36, %v7983_v58  ;;  %v11908_v11 = vld [vmem:[%s16563_s12 + $0x270] ss:$8 sps:$4 sm:$0xff]  }
 0x520   :  { %v11612_v47 = vunpack.i.h.bf16 %v15311_v3  ;;  %v11611_v2 = vunpack.i.l.bf16 %v15311_v3  ;;  %v11617_v30 = vunpack.i.h.bf16 %v15313_v29  ;;  %v11616_v33 = vunpack.i.l.bf16 %v15313_v29  ;;  %v11932_v29 = vld [vmem:[%s16563_s12 + $0x230] ss:$8 sps:$4 sm:$0xff]  }
 0x521   :  { %v8008_v18 = vmax.f32 %v7946_v60, %v7982_v8  ;;  %v8071_v36 = vmax.f32 %v8009_v45, %v8045_v15  ;;  %v11914_v45 = vld [vmem:[%s16563_s12 + $0x260] ss:$8 sps:$4 sm:$0xff]  }
 0x522   :  { %v7987_v41 = vsel %vm3918_vm5, %v11602_v52, %v11611_v2  ;;  %v7988_v4 = vsel %vm3918_vm5, %v11611_v2, %v11612_v47  ;;  %v8050_v39 = vsel %vm4144_vm6, %v11616_v33, %v11617_v30 }
 0x523   :  { %v15335_v35 = vpop.permute.xlu1 %11619  ;;  %v15337_v31 = vpop.permute.xlu0 %11624  ;;  %v8015_v32 = vmax.f32 %v7953_v48, %v7988_v4  ;;  %v8014_v53 = vmax.f32 %v7952_v10, %v7987_v41 }
 0x524   :  { %v11622_v56 = vunpack.i.h.bf16 %v15335_v35  ;;  %v11621_v14 = vunpack.i.l.bf16 %v15335_v35  ;;  %v11626_v63 = vunpack.i.l.bf16 %v15337_v31  ;;  %v11935_v35 = vld [vmem:[%s16563_s12 + $0x220] ss:$8 sps:$4 sm:$0xff]  }
 0x525   :  { %v8077_v22 = vmax.f32 %v8015_v32, %v8050_v39  ;;  %v11922_v39 = vld [vmem:[%s16563_s12 + $0x254] ss:$8 sps:$4 sm:$0xff]  }
 0x526   :  { %v8044_v44 = vsel %vm4144_vm6, %v11621_v14, %v11591_v12  ;;  %v8049_v27 = vsel %vm4144_vm6, %v11622_v56, %v11616_v33  ;;  %v11627_v12 = vunpack.i.h.bf16 %v15337_v31  ;;  %v11916_v33 = vld [vmem:[%s16563_s12 + $0x264] ss:$8 sps:$4 sm:$0xff]   ;;  %v7922_v60 = vsel %vm3013_vm14, %v11582_v7, %v11626_v63 }
 0x527   :  { %v8070_v17 = vmax.f32 %v8008_v18, %v8044_v44  ;;  %v8076_v6 = vmax.f32 %v8014_v53, %v8049_v27  ;;  %v15354_v55 = vpop.permute.xlu1 %11629  ;;  %v15356_v51 = vpop.permute.xlu0 %11634  ;;  %v8083_v5 = vpack.c.bf16 %v8077_v22, %v8071_v36  ;;  %v7948_v32 = vmax.f32 %v7874_v16, %v7922_v60  ;;  %v11920_v36 = vld [vmem:[%s16563_s12 + $0x250] ss:$8 sps:$4 sm:$0xff]  }
 0x528   :  { %v11631_v2 = vunpack.i.l.bf16 %v15354_v55  ;;  %v11632_v48 = vunpack.i.h.bf16 %v15354_v55  ;;  %v11636_v10 = vunpack.i.l.bf16 %v15356_v51  ;;  %v7923_v7 = vsel %vm3013_vm14, %v11626_v63, %v11627_v12 }
 0x529   :  { %v8082_v25 = vpack.c.bf16 %v8076_v6, %v8070_v17  ;;  %8696 = vmatprep.mubr.bf16.mxu0 %v8083_v5  ;;  %v7949_v23 = vmax.f32 %v7875_v24, %v7923_v7  ;;  %v11928_v24 = vld [vmem:[%s16563_s12 + $0x244] ss:$8 sps:$4 sm:$0xff]  }
 0x52a   :  { %v7984_v15 = vsel %vm3918_vm5, %v11587_v40, %v11631_v2  ;;  %v7985_v53 = vsel %vm3918_vm5, %v11631_v2, %v11632_v48  ;;  %v8046_v63 = vsel %vm4144_vm6, %v11592_v26, %v11636_v10 }
 0x52b   :  { %v15368_v58 = vpop.permute.xlu0 %11644  ;;  %v15370_v41 = vpop.permute.xlu1 %11639  ;;  %8697 = vmatmul.mubr.bf16.vlgmr.msra.gmra.mxu0 %v8082_v25  ;;  %v8010_v25 = vmax.f32 %v7948_v32, %v7984_v15  ;;  %v8011_v26 = vmax.f32 %v7949_v23, %v7985_v53  ;;  %v11937_v23 = vld [vmem:[%s16563_s12 + $0x224] ss:$8 sps:$4 sm:$0xff]  }
 0x52c   :  { %v11642_v4 = vunpack.i.h.bf16 %v15370_v41  ;;  %v11641_v8 = vunpack.i.l.bf16 %v15370_v41  ;;  %8751 = vmatpush1.bf16.msra.mxu0 %v11908_v11  ;;  %v11646_v18 = vunpack.i.l.bf16 %v15368_v58  ;;  %v11647_v44 = vunpack.i.h.bf16 %v15368_v58  ;;  %v11964_v41 = vld [vmem:[%s16563_s12 + $0x294] ss:$8 sps:$4 sm:$0xff]   ;;  %v11965_v58 = vld [vmem:[%s16563_s12 + $0x280] ss:$8 sps:$4 sm:$0xff]  }
 0x52d   :  { %8752 = vmatprep.subr.bf16.mxu0 %v11916_v33  ;;  %v8072_v32 = vmax.f32 %v8010_v25, %v8046_v63  ;;  %v11938_v25 = vld [vmem:[%s16563_s12 + $0x210] ss:$8 sps:$4 sm:$0xff]  }
 0x52e   :  { %v7927_v22 = vsel %vm3013_vm14, %v11607_v0, %v11641_v8  ;;  %v7928_v62 = vsel %vm3013_vm14, %v11641_v8, %v11642_v4  ;;  %v11637_v0 = vunpack.i.h.bf16 %v15356_v51  ;;  %v7989_v1 = vsel %vm3918_vm5, %v11612_v47, %v11646_v18  ;;  %v11926_v8 = vld [vmem:[%s16563_s12 + $0x240] ss:$8 sps:$4 sm:$0xff]  }
 0x52f   :  { %v15397_v16 = vpop.permute.xlu1 %11654  ;;  %v15399_v40 = vpop.permute.xlu0 %11649  ;;  %v7954_v5 = vmax.f32 %v7880_v42, %v7927_v22  ;;  %v7955_v11 = vmax.f32 %v7881_v28, %v7928_v62  ;;  %v7990_v3 = vsel %vm3918_vm5, %v11646_v18, %v11647_v44 }
 0x530   :  { %v11656_v27 = vunpack.i.l.bf16 %v15397_v16  ;;  %v11652_v17 = vunpack.i.h.bf16 %v15399_v40  ;;  %v11651_v6 = vunpack.i.l.bf16 %v15399_v40  ;;  %8753 = vmatpush1.bf16.msra.mxu0 %v11914_v45  ;;  %v11657_v9 = vunpack.i.h.bf16 %v15397_v16 }
 0x531   :  { %8754 = vmatprep.subr.bf16.mxu0 %v11922_v39  ;;  %v8016_v46 = vmax.f32 %v7954_v5, %v7989_v1  ;;  %v8047_v57 = vsel %vm4144_vm6, %v11636_v10, %v11637_v0  ;;  %v11943_v5 = vld [vmem:[%s16563_s12 + $0x204] ss:$8 sps:$4 sm:$0xff]   ;;  %v11944_v1 = vld [vmem:[%s16563_s12 + $0x2f0] ss:$8 sps:$4 sm:$0xff]  }
 0x532   :  { %v7945_v43 = vsel %vm3013_vm14, %v11652_v17, %v11597_v13  ;;  %v7944_v42 = vsel %vm3013_vm14, %v11651_v6, %v11596_v37  ;;  %v8006_v13 = vsel %vm3918_vm5, %v11656_v27, %v11601_v59  ;;  %v8007_v54 = vsel %vm3918_vm5, %v11657_v9, %v11602_v52 }
 0x533   :  { %v15435_v21 = vpop.permute.xlu1 %11659  ;;  %v15437_v28 = vpop.permute.xlu0 %11664  ;;  %v7957_v19 = vmax.f32 %v7883_v49, %v7945_v43  ;;  %v7951_v37 = vmax.f32 %v7877_v50, %v7944_v42  ;;  %v11934_v49 = vld [vmem:[%s16563_s12 + $0x234] ss:$8 sps:$4 sm:$0xff]   ;;  %v8017_v50 = vmax.f32 %v7955_v11, %v7990_v3  ;;  %v8073_v39 = vmax.f32 %v8011_v26, %v8047_v57  ;;  %v11941_v11 = vld [vmem:[%s16563_s12 + $0x200] ss:$8 sps:$4 sm:$0xff]   ;;  %v11949_v43 = vld [vmem:[%s16563_s12 + $0x2e4] ss:$8 sps:$4 sm:$0xff]  }
 0x534   :  { %8755 = vmatpush1.bf16.msra.mxu0 %v11920_v36  ;;  %v11662_v47 = vunpack.i.h.bf16 %v15435_v21  ;;  %v11661_v2 = vunpack.i.l.bf16 %v15435_v21  ;;  %v11667_v33 = vunpack.i.h.bf16 %v15437_v28  ;;  %v11666_v60 = vunpack.i.l.bf16 %v15437_v28  ;;  %v11947_v42 = vld [vmem:[%s16563_s12 + $0x2e0] ss:$8 sps:$4 sm:$0xff]   ;;  %v11952_v26 = vld [vmem:[%s16563_s12 + $0x2d4] ss:$8 sps:$4 sm:$0xff]   ;;  %v11950_v3 = vld [vmem:[%s16563_s12 + $0x2d0] ss:$8 sps:$4 sm:$0xff]  }
 0x535   :  { %8756 = vmatprep.subr.bf16.mxu0 %v11928_v24  ;;  %v8013_v59 = vmax.f32 %v7951_v37, %v8006_v13  ;;  %v8019_v7 = vmax.f32 %v7957_v19, %v8007_v54  ;;  %v11946_v24 = vld [vmem:[%s16563_s12 + $0x2f4] ss:$8 sps:$4 sm:$0xff]   ;;  %v11955_v13 = vld [vmem:[%s16563_s12 + $0x2c4] ss:$8 sps:$4 sm:$0xff]   ;;  %v11953_v19 = vld [vmem:[%s16563_s12 + $0x2c0] ss:$8 sps:$4 sm:$0xff]   ;;  %v7929_v54 = vsel %vm3013_vm14, %v11642_v4, %v11652_v17  ;;  %v7991_v31 = vsel %vm3918_vm5, %v11647_v44, %v11657_v9 }
 0x536   :  { %v8051_v45 = vsel %vm4144_vm6, %v11617_v30, %v11661_v2  ;;  %v8052_v52 = vsel %vm4144_vm6, %v11661_v2, %v11662_v47  ;;  %v8068_v30 = vsel %vm4144_vm6, %v11666_v60, %v11621_v14  ;;  %v8069_v10 = vsel %vm4144_vm6, %v11667_v33, %v11622_v56  ;;  %v11940_v56 = vld [vmem:[%s16563_s12 + $0x214] ss:$8 sps:$4 sm:$0xff]   ;;  %v11956_v2 = vld [vmem:[%s16563_s12 + $0x2b0] ss:$8 sps:$4 sm:$0xff]   ;;  %v15593_v44 = vld [vmem:[%s16791_s29] ss:$8 sps:$4 sm:$0xff]  }
 0x537   :  { %v8078_v15 = vmax.f32 %v8016_v46, %v8051_v45  ;;  %v8079_v53 = vmax.f32 %v8017_v50, %v8052_v52  ;;  %v8075_v62 = vmax.f32 %v8013_v59, %v8068_v30  ;;  %v8081_v63 = vmax.f32 %v8019_v7, %v8069_v10  ;;  %v11958_v37 = vld [vmem:[%s16563_s12 + $0x2b4] ss:$8 sps:$4 sm:$0xff]   ;;  %8881 = vrot.lane.b32.xlu1 %v15593_v44, %s16674_s28  ;;  %v9578_v30 = vld [vmem:[%s16557_s6] sm:$0xff]  ;;  %v9579_v10 = vld [vmem:[%s16557_s6 + $0x8] sm:$0xff]  ;;  %s16809_s28 = smov 112   ;;  %s16815_s6 = smov 71  }
 0x538   :  { %8757 = vmatpush1.bf16.msra.mxu0 %v11926_v8  ;;  %v16790_v14 = vmov 0   ;;  %v11961_v8 = vld [vmem:[%s16563_s12 + $0x2a4] ss:$8 sps:$4 sm:$0xff]   ;;  %v7924_v46 = vsel %vm3013_vm14, %v11627_v12, %v11651_v6  ;;  %v7956_v50 = vmax.f32 %v7882_v34, %v7929_v54  ;;  %v7986_v61 = vsel %vm3918_vm5, %v11632_v48, %v11656_v27  ;;  %9012 = vrot.lane.b32.xlu0 %v15593_v44, %s16792_s24 }
 0x539   :  { %v8084_v18 = vpack.c.bf16 %v8078_v15, %v8072_v32  ;;  %8758 = vmatprep.subr.bf16.mxu0 %v11934_v49  ;;  %v8085_v22 = vpack.c.bf16 %v8079_v53, %v8073_v39  ;;  %v8087_v36 = vpack.c.bf16 %v8081_v63, %v8075_v62  ;;  %v11959_v49 = vld [vmem:[%s16563_s12 + $0x2a0] ss:$8 sps:$4 sm:$0xff]   ;;  %v7950_v59 = vmax.f32 %v7876_v20, %v7924_v46  ;;  %v11967_v12 = vld [vmem:[%s16563_s12 + $0x284] ss:$8 sps:$4 sm:$0xff]   ;;  %s16664_s12 = smov 7  }
 0x53a   :  { %v8018_v34 = vmax.f32 %v7956_v50, %v7991_v31  ;;  %v8053_v55 = vsel %vm4144_vm6, %v11662_v47, %v11667_v33  ;;  %v8048_v48 = vsel %vm4144_vm6, %v11637_v0, %v11666_v60  ;;  %v16798_v54 = vld [vmem:[#allocation5_spill] sm:$0xff]  ;;  %vm9315_vm6 = vcmask 990208  }
 0x53b   :  { %8739 = vmatprep.mubr.bf16.mxu1 %v8085_v22  ;;  %8782 = vmatprep.mubr.bf16.mxu0 %v8087_v36  ;;  %v8012_v20 = vmax.f32 %v7950_v59, %v7986_v61 }
 0x53c   :  { %8759 = vmatpush1.bf16.msra.mxu0 %v11932_v29  ;;  %8740 = vmatmul.mubr.bf16.vlgmr.msra.gmra.mxu1 %v8084_v18  ;;  %v8080_v16 = vmax.f32 %v8018_v34, %v8053_v55 }
 0x53d   :  { %8760 = vmatprep.subr.bf16.mxu0 %v11937_v23  ;;  %8918 = vmatprep.mubr.bf16.mxu1 %v16790_v14  ;;  %v8074_v4 = vmax.f32 %v8012_v20, %v8048_v48 }
 0x53e   :  { %9100 = vrot.lane.b32.xlu1 %v15593_v44, %s16702_s30 }
 0x53f   :  { %v8086_v40 = vpack.c.bf16 %v8080_v16, %v8074_v4  ;;  %v16799_v16 = vld [vmem:[#allocation6_spill] sm:$0xff] }
 0x540   :  { %8761 = vmatpush1.bf16.msra.mxu0 %v11935_v35 }
 0x541   :  { %8762 = vmatprep.subr.bf16.mxu0 %v11940_v56 }
 0x544   :  { %8763 = vmatpush1.bf16.msra.mxu0 %v11938_v25 }
 0x545   :  { %8764 = vmatprep.subr.bf16.mxu0 %v11943_v5 }
 0x548   :  { %8765 = vmatpush1.bf16.msra.mxu0 %v11941_v11 }
 0x549   :  { %8766 = vmatprep.subr.bf16.mxu0 %v11946_v24 }
 0x54c   :  { %8767 = vmatpush2.bf16.msra.mxu0 %v11944_v1 }
 0x54d   :  { %8768 = vmatprep.subr.bf16.mxu0 %v11949_v43 }
 0x550   :  { %8769 = vmatpush2.bf16.msra.mxu0 %v11947_v42 }
 0x551   :  { %8770 = vmatprep.subr.bf16.mxu0 %v11952_v26 }
 0x554   :  { %8771 = vmatpush2.bf16.msra.mxu0 %v11950_v3 }
 0x555   :  { %8772 = vmatprep.subr.bf16.mxu0 %v11955_v13 }
 0x558   :  { %8773 = vmatpush2.bf16.msra.mxu0 %v11953_v19 }
 0x559   :  { %8774 = vmatprep.subr.bf16.mxu0 %v11958_v37 }
 0x55c   :  { %8775 = vmatpush2.bf16.msra.mxu0 %v11956_v2 }
 0x55d   :  { %8776 = vmatprep.subr.bf16.mxu0 %v11961_v8  ;;  %v15742_v8 = vld [vmem:[%s16562_s11 + $0x8] sm:$0xff] }
 0x55e   :  { %v15746_v46 = vrot.slane %v15742_v8, %v16798_v54 }
 0x560   :  { %8777 = vmatpush2.bf16.msra.mxu0 %v11959_v49 }
 0x561   :  { %8778 = vmatprep.subr.bf16.mxu0 %v11964_v41  ;;  %v15754_v41 = vld [vmem:[%s16562_s11] sm:$0xff] }
 0x562   :  { %v15759_v61 = vrot.slane %v15754_v41, %v16798_v54 }
 0x564   :  { %8779 = vmatpush2.bf16.msra.mxu0 %v11962_v38 }
 0x565   :  { %8780 = vmatprep.subr.bf16.mxu0 %v11967_v12 }
 0x568   :  { %8781 = vmatpush2.bf16.msra.mxu0 %v11965_v58 }
 0x56b   :  { %8783 = vmatmul.mubr.bf16.vlgmr.msra.gmra.mxu0 %v8086_v40  ;;  %v15770_v40 = vrot.slane %v15742_v8, %v16799_v16 }
 0x56c   :  { %9563 = vmatprep.mubr.bf16.mxu0 %v16790_v14 }
 0x5a9   :  { %v15719_v18 = vpop.permute.xlu1 %8881 }
 0x5aa   :  { %v15723_v62 = vpop.permute.xlu0 %9012 }
 0x5b0   :  { %v15721_v22 = vpop.permute.xlu1 %9100 }
 0x5eb   :  { %v8698_v51 = vpop.f32.mrf.mxu0 }
 0x5ed   :  { %v8700_v27 = vpop.f32.mrf.mxu0 }
 0x5ef   :  { %v8702_v17 = vpop.f32.mrf.mxu0 }
 0x5f1   :  { %v8704_v0 = vpop.f32.mrf.mxu0 }
 0x5fc   :  { %v8741_v6 = vpop.f32.mrf.mxu1 }
 0x5fd   :  { %v8742_v9 = vadd.f32 %v8741_v6, %v8698_v51 }
 0x5fe   :  { %v8743_v47 = vpop.f32.mrf.mxu1 }
 0x5ff   :  { %v8744_v60 = vadd.f32 %v8743_v47, %v8700_v27 }
 0x600   :  { %v8745_v57 = vpop.f32.mrf.mxu1 }
 0x601   :  { %v8746_v7 = vadd.f32 %v8745_v57, %v8702_v17 }
 0x602   :  { %v8747_v15 = vpop.f32.mrf.mxu1 }
 0x603   :  { %v8748_v53 = vadd.f32 %v8747_v15, %v8704_v0 }
 0x62b   :  { %v8784_v21 = vpop.f32.mrf.mxu0 }
 0x62c   :  { %v15601_v28 = vadd.f32 %v8784_v21, %v8742_v9  ;;  %v15778_v9 = vrot.slane %v15754_v41, %v16799_v16 }
 0x62d   :  { %v8786_v33 = vpop.f32.mrf.mxu0 }
 0x62e   :  { %8981 = vrot.lane.b32.xlu0 %v15601_v28, %s16664_s12  ;;  %8846 = vrot.lane.b32.xlu1 %v15601_v28, %s16793_s10  ;;  %v15611_v45 = vadd.f32 %v8786_v33, %v8744_v60  ;;  %v16800_v60 = vld [vmem:[#allocation7_spill] sm:$0xff] }
 0x62f   :  { %v8788_v52 = vpop.f32.mrf.mxu0  ;;  %v15785_v57 = vrot.slane %v15742_v8, %v16800_v60 }
 0x630   :  { %v15633_v32 = vadd.f32 %v8788_v52, %v8746_v7 }
 0x631   :  { %v8790_v39 = vpop.f32.mrf.mxu0 }
 0x632   :  { %9070 = vrot.lane.b32.xlu0 %v15601_v28, %s16722_s3  ;;  %8809 = vrot.lane.b32.xlu1 %v15601_v28, %s16670_s26  ;;  %v15643_v29 = vadd.f32 %v8790_v39, %v8748_v53 }
 0x636   :  { %9232 = vrot.lane.b32.xlu0 %v15601_v28, %s16656_s2  ;;  %8840 = vrot.lane.b32.xlu1 %v15611_v45, %s16703_s25 }
 0x63a   :  { %8848 = vrot.lane.b32.xlu0 %v15611_v45, %s16793_s10  ;;  %8801 = vrot.lane.b32.xlu1 %v15611_v45, %s16658_s23 }
 0x63e   :  { %8811 = vrot.lane.b32.xlu0 %v15611_v45, %s16670_s26  ;;  %8983 = vrot.lane.b32.xlu1 %v15611_v45, %s16664_s12 }
 0x642   :  { %8975 = vrot.lane.b32.xlu0 %v15611_v45, %s16660_s1  ;;  %9072 = vrot.lane.b32.xlu1 %v15611_v45, %s16722_s3 }
 0x646   :  { %9220 = vrot.lane.b32.xlu0 %v15611_v45, %s16780_s5  ;;  %9064 = vrot.lane.b32.xlu1 %v15611_v45, %s16662_s27 }
 0x64a   :  { %8985 = vrot.lane.b32.xlu0 %v15633_v32, %s16664_s12  ;;  %8850 = vrot.lane.b32.xlu1 %v15633_v32, %s16793_s10 }
 0x64e   :  { %9074 = vrot.lane.b32.xlu0 %v15633_v32, %s16722_s3  ;;  %8813 = vrot.lane.b32.xlu1 %v15633_v32, %s16670_s26 }
 0x652   :  { %8852 = vrot.lane.b32.xlu0 %v15643_v29, %s16793_s10  ;;  %9234 = vrot.lane.b32.xlu1 %v15633_v32, %s16656_s2  ;;  %s16668_s2 = smov 57  }
 0x656   :  { %8842 = vrot.lane.b32.xlu0 %v15643_v29, %s16703_s25  ;;  %9218 = vrot.lane.b32.xlu1 %v15601_v28, %s16780_s5 }
 0x65a   :  { %8815 = vrot.lane.b32.xlu0 %v15643_v29, %s16670_s26  ;;  %9309 = vrot.lane.b32.xlu1 %v15611_v45, %s16666_s0  ;;  %s16812_s26 = smov 7  }
 0x65e   :  { %8803 = vrot.lane.b32.xlu0 %v15643_v29, %s16658_s23  ;;  %8987 = vrot.lane.b32.xlu1 %v15643_v29, %s16664_s12  ;;  %s16795_s23 = smov 120   ;;  %s16672_s12 = smov 55  }
 0x662   :  { %9166 = vrot.lane.b32.xlu0 %v15593_v44, %s16794_s4  ;;  %8977 = vrot.lane.b32.xlu1 %v15643_v29, %s16660_s1  ;;  %s16796_s1 = smov 56  }
 0x666   :  { %9222 = vrot.lane.b32.xlu0 %v15633_v32, %s16780_s5  ;;  %9322 = vrot.lane.b32.xlu1 %v15601_v28, %s16668_s2 }
 0x66a   :  { %9324 = vrot.lane.b32.xlu0 %v15633_v32, %s16668_s2  ;;  %9076 = vrot.lane.b32.xlu1 %v15643_v29, %s16722_s3  ;;  %s16813_s2 = smov 63  }
 0x66e   :  { %9066 = vrot.lane.b32.xlu0 %v15643_v29, %s16662_s27  ;;  %9255 = vrot.lane.b32.xlu1 %v15593_v44, %s16737_s22  ;;  %s16676_s27 = smov 119  }
 0x672   :  { %9307 = vrot.lane.b32.xlu0 %v15601_v28, %s16666_s0  ;;  %9311 = vrot.lane.b32.xlu1 %v15633_v32, %s16666_s0 }
 0x676   :  { %9399 = vrot.lane.b32.xlu0 %v15611_v45, %s16795_s23  ;;  %9414 = vrot.lane.b32.xlu1 %v15633_v32, %s16796_s1 }
 0x67a   :  { %9412 = vrot.lane.b32.xlu0 %v15601_v28, %s16796_s1  ;;  %9224 = vrot.lane.b32.xlu1 %v15643_v29, %s16780_s5 }
 0x67e   :  { %9345 = vrot.lane.b32.xlu0 %v15593_v44, %s16739_s9  ;;  %9397 = vrot.lane.b32.xlu1 %v15601_v28, %s16795_s23 }
 0x682   :  { %9401 = vrot.lane.b32.xlu0 %v15633_v32, %s16795_s23  ;;  %9489 = vrot.lane.b32.xlu1 %v15611_v45, %s16676_s27 }
 0x686   :  { %9313 = vrot.lane.b32.xlu0 %v15643_v29, %s16666_s0  ;;  %9502 = vrot.lane.b32.xlu1 %v15601_v28, %s16672_s12  ;;  %s16797_s0 = smov 16  }
 0x68a   :  { %9504 = vrot.lane.b32.xlu0 %v15633_v32, %s16672_s12  ;;  %9403 = vrot.lane.b32.xlu1 %v15643_v29, %s16795_s23  ;;  %s16811_s12 = smov 57  }
 0x68e   :  { %9493 = vrot.lane.b32.xlu0 %v15643_v29, %s16676_s27  ;;  %9487 = vrot.lane.b32.xlu1 %v15601_v28, %s16676_s27 }
 0x692   :  { %9491 = vrot.lane.b32.xlu0 %v15633_v32, %s16676_s27  ;;  %9435 = vrot.lane.b32.xlu1 %v15593_v44, %s16797_s0  ;;  %s16816_s27 = smov 73  }
 0x696   :  { %9582 = vperm.xlu0 %11577, %v9578_v30   ;;  %9587 = vperm.xlu1 %11576, %v9579_v10   ;;  %v15793_v10 = vrot.slane %v15754_v41, %v16800_v60 }
 0x6a0   :  { %v15725_v23 = vpop.permute.xlu0 %8981  ;;  %v8847_v63 = vpop.permute.xlu1 %8846 }
 0x6a4   :  { %v15727_v36 = vpop.permute.xlu0 %9070  ;;  %v8810_v35 = vpop.permute.xlu1 %8809 }
 0x6a8   :  { %v15729_v56 = vpop.permute.xlu0 %9232  ;;  %v8841_v25 = vpop.permute.xlu1 %8840 }
 0x6a9   :  { %v8860_v34 = vsel %vm239_vm2, %v8841_v25, %v8847_v63 }
 0x6aa   :  { %v8870_v4 = vmul.f32 %v15759_v61, %v8860_v34 }
 0x6ac   :  { %v8849_v5 = vpop.permute.xlu0 %8848  ;;  %v8802_v11 = vpop.permute.xlu1 %8801 }
 0x6ad   :  { %v8854_v49 = vsel %vm239_vm2, %v8847_v63, %v8849_v5  ;;  %v8824_v47 = vsel %vm8817_vm1, %v8802_v11, %v8810_v35 }
 0x6ae   :  { %v8871_v38 = vmul.f32 %v15746_v46, %v8854_v49  ;;  %v8834_v30 = vmul.f32 %v15778_v9, %v8824_v47 }
 0x6b0   :  { %v8812_v24 = vpop.permute.xlu0 %8811  ;;  %v8984_v1 = vpop.permute.xlu1 %8983 }
 0x6b1   :  { %v8818_v27 = vsel %vm8817_vm1, %v8810_v35, %v8812_v24  ;;  %v8990_v7 = vsel %vm8989_vm8, %v15725_v23, %v8984_v1 }
 0x6b2   :  { %v8835_v33 = vmul.f32 %v15770_v40, %v8818_v27  ;;  %v9007_v25 = vmul.f32 %v15785_v57, %v8990_v7 }
 0x6b4   :  { %v8976_v43 = vpop.permute.xlu0 %8975  ;;  %v15731_v42 = vpop.permute.xlu1 %9072 }
 0x6b5   :  { %v8996_v24 = vsel %vm8989_vm8, %v8976_v43, %v15725_v23  ;;  %v16801_v23 = vld [vmem:[#allocation8_spill] sm:$0xff] }
 0x6b6   :  { %v15816_v43 = vrot.slane %v15742_v8, %v16801_v23 }
 0x6b8   :  { %v15733_v26 = vpop.permute.xlu0 %9220  ;;  %v15735_v3 = vpop.permute.xlu1 %9064 }
 0x6b9   :  { %v9084_v16 = vsel %vm2588_vm13, %v15735_v3, %v15727_v36 }
 0x6bc   :  { %v8986_v13 = vpop.permute.xlu0 %8985  ;;  %v8851_v19 = vpop.permute.xlu1 %8850 }
 0x6c0   :  { %v15737_v37 = vpop.permute.xlu0 %9074  ;;  %v8814_v2 = vpop.permute.xlu1 %8813 }
 0x6c4   :  { %v8853_v50 = vpop.permute.xlu0 %8852  ;;  %v15749_v59 = vpop.permute.xlu1 %9234 }
 0x6c5   :  { %v8855_v31 = vsel %vm239_vm2, %v8851_v19, %v8853_v50 }
 0x6c6   :  { %v8873_v20 = vmul.f32 %v15746_v46, %v8855_v31 }
 0x6c8   :  { %v8843_v12 = vpop.permute.xlu0 %8842  ;;  %v15764_v55 = vpop.permute.xlu1 %9218  ;;  %v8875_v48 = vpack.c.bf16 %v8873_v20, %v8871_v38 }
 0x6c9   :  { %v8861_v58 = vsel %vm239_vm2, %v8843_v12, %v8851_v19 }
 0x6ca   :  { %v8872_v51 = vmul.f32 %v15759_v61, %v8861_v58  ;;  %8900 = vmatprep.subr.bf16.mxu1 %v8875_v48 }
 0x6cc   :  { %v8874_v17 = vpack.c.bf16 %v8872_v51, %v8870_v4  ;;  %v8816_v6 = vpop.permute.xlu0 %8815  ;;  %v15774_v0 = vpop.permute.xlu1 %9309  ;;  %v16802_v51 = vld [vmem:[#allocation9_spill] sm:$0xff] }
 0x6cd   :  { %v8819_v21 = vsel %vm8817_vm1, %v8814_v2, %v8816_v6  ;;  %v15852_v3 = vrot.slane %v15754_v41, %v16802_v51 }
 0x6ce   :  { %v8837_v52 = vmul.f32 %v15770_v40, %v8819_v21  ;;  %8901 = vmatpush1.bf16.msra.mxu1 %v8874_v17 }
 0x6d0   :  { %v8804_v15 = vpop.permute.xlu0 %8803  ;;  %v8988_v39 = vpop.permute.xlu1 %8987  ;;  %v8839_v53 = vpack.c.bf16 %v8837_v52, %v8835_v33 }
 0x6d1   :  { %v8825_v63 = vsel %vm8817_vm1, %v8804_v15, %v8814_v2  ;;  %v8991_v35 = vsel %vm8989_vm8, %v8986_v13, %v8988_v39  ;;  %11413 = vmatmul.mubr.msk.bf16.vlgmr.msra.gmra.mxu1 %vm1684_vm9, %v15719_v18  ;;  %v9006_v18 = vmul.f32 %v15793_v10, %v8996_v24  ;;  %v9160_v15 = vmul.f32 %v15852_v3, %v15601_v28 }
 0x6d2   :  { %v8836_v5 = vmul.f32 %v15778_v9, %v8825_v63  ;;  %v9009_v11 = vmul.f32 %v15785_v57, %v8991_v35  ;;  %8946 = vmatprep.subr.bf16.mxu1 %v8839_v53  ;;  %8964 = vmatprep.mubr.bf16.mxu1 %v16790_v14  ;;  %v9239_v28 = vsel %vm9238_vm10, %v15733_v26, %v15729_v56 }
 0x6d3   :  { %v9226_v35 = vsel %vm3013_vm14, %v15764_v55, %v15733_v26  ;;  %v16804_v55 = vld [vmem:[#allocation11_spill] sm:$0xff] }
 0x6d4   :  { %v8838_v1 = vpack.c.bf16 %v8836_v5, %v8834_v30  ;;  %v15805_v19 = vpop.permute.xlu0 %9166  ;;  %v8978_v2 = vpop.permute.xlu1 %8977  ;;  %v9011_v54 = vpack.c.bf16 %v9009_v11, %v9007_v25 }
 0x6d5   :  { %v8997_v49 = vsel %vm8989_vm8, %v8978_v2, %v8986_v13  ;;  %v9078_v13 = vsel %vm2588_vm13, %v15727_v36, %v15731_v42  ;;  %v15837_v42 = vrot.slane %v15742_v8, %v16802_v51 }
 0x6d6   :  { %v9008_v50 = vmul.f32 %v15793_v10, %v8997_v49  ;;  %8947 = vmatpush1.bf16.msra.mxu1 %v8838_v1  ;;  %v9095_v58 = vmul.f32 %v15816_v43, %v9078_v13 }
 0x6d7   :  { %9031 = vmatprep.subr.bf16.mxu1 %v9011_v54  ;;  %v9163_v47 = vmul.f32 %v15837_v42, %v15643_v29  ;;  %v9162_v29 = vmul.f32 %v15852_v3, %v15633_v32 }
 0x6d8   :  { %v9010_v31 = vpack.c.bf16 %v9008_v50, %v9006_v18  ;;  %v9223_v38 = vpop.permute.xlu0 %9222  ;;  %v15810_v20 = vpop.permute.xlu1 %9322 }
 0x6d9   :  { %11414 = vmatmul.mubr.msk.bf16.vlgmr.msra.gmra.mxu1 %vm1684_vm9, %v15593_v44  ;;  %v15829_v44 = vrot.slane %v15754_v41, %v16801_v23  ;;  %v9164_v30 = vpack.c.bf16 %v9162_v29, %v9160_v15  ;;  %v15929_v29 = vld [vmem:[%s16562_s11 + $0x18] ss:$0 sm:$0xff] }
 0x6da   :  { %9032 = vmatpush1.bf16.msra.mxu1 %v9010_v31  ;;  %9049 = vmatprep.mubr.bf16.mxu1 %v16790_v14  ;;  %v15889_v31 = vrot.slane %v15742_v8, %v16804_v55 }
 0x6db   :  { %v9094_v33 = vmul.f32 %v15829_v44, %v9084_v16 }
 0x6dc   :  { %v15822_v34 = vpop.permute.xlu0 %9324  ;;  %v9077_v12 = vpop.permute.xlu1 %9076 }
 0x6dd   :  { %v9079_v48 = vsel %vm2588_vm13, %v15737_v37, %v9077_v12 }
 0x6de   :  { %v9097_v4 = vmul.f32 %v15816_v43, %v9079_v48  ;;  %v16805_v48 = vld [vmem:[#allocation12_spill] sm:$0xff] }
 0x6e0   :  { %v9067_v27 = vpop.permute.xlu0 %9066  ;;  %v15839_v17 = vpop.permute.xlu1 %9255  ;;  %v9099_v6 = vpack.c.bf16 %v9097_v4, %v9095_v58  ;;  %v15902_v58 = vrot.slane %v15742_v8, %v16805_v48  ;;  %v15906_v4 = vrot.slane %v15754_v41, %v16805_v48 }
 0x6e1   :  { %v9085_v21 = vsel %vm2588_vm13, %v9067_v27, %v15737_v37  ;;  %11415 = vmatmul.mubr.msk.bf16.vlgmr.msra.gmra.mxu1 %vm1684_vm9, %v15723_v62  ;;  %v9161_v37 = vmul.f32 %v15837_v42, %v15611_v45  ;;  %v16803_v45 = vld [vmem:[#allocation10_spill] sm:$0xff] }
 0x6e2   :  { %v9096_v36 = vmul.f32 %v15829_v44, %v9085_v21  ;;  %9119 = vmatprep.subr.bf16.mxu1 %v9099_v6  ;;  %9137 = vmatprep.mubr.bf16.mxu1 %v16790_v14  ;;  %v15864_v63 = vrot.slane %v15742_v8, %v16803_v45  ;;  %v15868_v32 = vrot.slane %v15754_v41, %v16803_v45 }
 0x6e3   :  { %v9165_v7 = vpack.c.bf16 %v9163_v47, %v9161_v37  ;;  %16806 = vst [vmem:[#allocation25_spill] sm:$0xff] %v15902_v58  ;;  %16807 = vst [vmem:[#allocation15_spill] sm:$0xff] %v15906_v4 }
 0x6e4   :  { %v9098_v60 = vpack.c.bf16 %v9096_v36, %v9094_v33  ;;  %v9308_v52 = vpop.permute.xlu0 %9307  ;;  %v9312_v62 = vpop.permute.xlu1 %9311  ;;  %v9250_v24 = vmul.f32 %v15864_v63, %v9239_v28  ;;  %v9249_v1 = vmul.f32 %v15868_v32, %v9226_v35 }
 0x6e5   :  { %v9316_v23 = vsel %vm9315_vm6, %v9308_v52, %v15774_v0 }
 0x6e6   :  { %9120 = vmatpush1.bf16.msra.mxu1 %v9098_v60 }
 0x6e7   :  { %9185 = vmatprep.subr.bf16.mxu1 %v9165_v7 }
 0x6e8   :  { %v9400_v39 = vpop.permute.xlu0 %9399  ;;  %v9415_v53 = vpop.permute.xlu1 %9414 }
 0x6e9   :  { %11416 = vmatmul.mubr.msk.bf16.vlgmr.msra.gmra.mxu1 %vm1684_vm9, %v15721_v22 }
 0x6ea   :  { %9186 = vmatpush1.bf16.msra.mxu1 %v9164_v30  ;;  %9203 = vmatprep.mubr.bf16.mxu1 %v16790_v14 }
 0x6ec   :  { %v9413_v22 = vpop.permute.xlu0 %9412  ;;  %v9225_v25 = vpop.permute.xlu1 %9224 }
 0x6ed   :  { %v9227_v5 = vsel %vm3013_vm14, %v9223_v38, %v9225_v25  ;;  %v9240_v11 = vsel %vm9238_vm10, %v9225_v25, %v15749_v59  ;;  %v15893_v38 = vrot.slane %v15754_v41, %v16804_v55  ;;  %v9419_v41 = vsel %vm9418_vm11, %v9400_v39, %v9413_v22  ;;  %v15939_v22 = vld [vmem:[%s16562_s11 + $0x10] ss:$0 sm:$0xff]  ;;  %s16814_s11 = smov 121  }
 0x6ee   :  { %v9251_v2 = vmul.f32 %v15868_v32, %v9227_v5  ;;  %v9252_v54 = vmul.f32 %v15864_v63, %v9240_v11  ;;  %v9430_v37 = vmul.f32 %v15902_v58, %v9419_v41  ;;  %16808 = vst [vmem:[#allocation23_spill] sm:$0xff] %v15939_v22 }
 0x6ef   :  { %v9339_v51 = vmul.f32 %v15893_v38, %v9316_v23 }
 0x6f0   :  { %v9253_v56 = vpack.c.bf16 %v9251_v2, %v9249_v1  ;;  %v9346_v49 = vpop.permute.xlu0 %9345  ;;  %v9398_v18 = vpop.permute.xlu1 %9397  ;;  %v9254_v50 = vpack.c.bf16 %v9252_v54, %v9250_v24 }
 0x6f1   :  { %11417 = vmatmul.mubr.msk.bf16.vlgmr.msra.gmra.mxu1 %vm1684_vm9, %v15805_v19  ;;  %v9329_v19 = vsel %vm9328_vm3, %v15774_v0, %v15810_v20  ;;  %v9406_v6 = vsel %vm9405_vm12, %v9398_v18, %v9400_v39  ;;  %v15956_v18 = vld [vmem:[%s16558_s7] ss:$8 sps:$4 sm:$0xff]  }
 0x6f2   :  { %9274 = vmatprep.subr.bf16.mxu1 %v9254_v50  ;;  %9292 = vmatprep.mubr.bf16.mxu1 %v16790_v14  ;;  %v9340_v0 = vmul.f32 %v15889_v31, %v9329_v19  ;;  %v9429_v60 = vmul.f32 %v15906_v4, %v9406_v6 }
 0x6f3   :  { %9275 = vmatpush1.bf16.msra.mxu1 %v9253_v56  ;;  %9665 = vrot.lane.b32.xlu0 %v15956_v18, %s16809_s28 }
 0x6f4   :  { %v9402_v26 = vpop.permute.xlu0 %9401  ;;  %v9490_v59 = vpop.permute.xlu1 %9489  ;;  %9787 = vrot.lane.b32.xlu1 %v15956_v18, %s16792_s24 }
 0x6f7   :  { %9867 = vrot.lane.b32.xlu0 %v15956_v18, %s16702_s30 }
 0x6f8   :  { %v9314_v13 = vpop.permute.xlu0 %9313  ;;  %v9503_v12 = vpop.permute.xlu1 %9502  ;;  %9925 = vrot.lane.b32.xlu1 %v15956_v18, %s16794_s4 }
 0x6f9   :  { %v9317_v16 = vsel %vm9315_vm6, %v9312_v62, %v9314_v13  ;;  %v9330_v20 = vsel %vm9328_vm3, %v9314_v13, %v15822_v34  ;;  %11418 = vmatmul.mubr.msk.bf16.vlgmr.msra.gmra.mxu1 %vm1684_vm9, %v15839_v17  ;;  %v9509_v7 = vsel %vm9508_vm0, %v9490_v59, %v9503_v12 }
 0x6fa   :  { %v9341_v27 = vmul.f32 %v15893_v38, %v9317_v16  ;;  %v9342_v8 = vmul.f32 %v15889_v31, %v9330_v20  ;;  %9382 = vmatprep.mubr.bf16.mxu1 %v16790_v14  ;;  %v9520_v28 = vmul.f32 %v15929_v29, %v9509_v7 }
 0x6fb   :  { %10005 = vrot.lane.b32.xlu0 %v15956_v18, %s16737_s22 }
 0x6fc   :  { %v9343_v21 = vpack.c.bf16 %v9341_v27, %v9339_v51  ;;  %v9505_v34 = vpop.permute.xlu0 %9504  ;;  %v9404_v47 = vpop.permute.xlu1 %9403  ;;  %v9344_v33 = vpack.c.bf16 %v9342_v8, %v9340_v0 }
 0x6fd   :  { %v9407_v17 = vsel %vm9405_vm12, %v9402_v26, %v9404_v47  ;;  %v9420_v36 = vsel %vm9418_vm11, %v9404_v47, %v9415_v53 }
 0x6fe   :  { %v9431_v52 = vmul.f32 %v15906_v4, %v9407_v17  ;;  %v9432_v62 = vmul.f32 %v15902_v58, %v9420_v36  ;;  %9364 = vmatprep.subr.bf16.mxu1 %v9344_v33 }
 0x6ff   :  { %9365 = vmatpush1.bf16.msra.mxu1 %v9343_v21 }
 0x700   :  { %v9433_v15 = vpack.c.bf16 %v9431_v52, %v9429_v60  ;;  %v9494_v39 = vpop.permute.xlu0 %9493  ;;  %v9488_v53 = vpop.permute.xlu1 %9487  ;;  %v9434_v30 = vpack.c.bf16 %v9432_v62, %v9430_v37 }
 0x701   :  { %v9510_v45 = vsel %vm9508_vm0, %v9494_v39, %v9505_v34  ;;  %v9496_v25 = vsel %vm9495_vm7, %v9488_v53, %v9490_v59 }
 0x702   :  { %v9522_v35 = vmul.f32 %v15929_v29, %v9510_v45  ;;  %11419 = vmatmul.mubr.msk.bf16.vlgmr.msra.gmra.mxu1 %vm1684_vm9, %v9346_v49  ;;  %9454 = vmatprep.subr.bf16.mxu1 %v9434_v30  ;;  %v9519_v1 = vmul.f32 %v15939_v22, %v9496_v25  ;;  %v11970_v49 = vld [vmem:[%s16791_s29 + $0x4] ss:$8 sps:$4 sm:$0xff]   ;;  %s16810_s29 = smov 9  }
 0x703   :  { %9455 = vmatpush1.bf16.msra.mxu1 %v9433_v15  ;;  %9472 = vmatprep.mubr.bf16.mxu1 %v16790_v14 }
 0x704   :  { %v9492_v5 = vpop.permute.xlu0 %9491  ;;  %v9524_v11 = vpack.c.bf16 %v9522_v35, %v9520_v28  ;;  %v9436_v54 = vpop.permute.xlu1 %9435 }
 0x705   :  { %v9497_v24 = vsel %vm9495_vm7, %v9492_v5, %v9494_v39 }
 0x706   :  { %v9521_v2 = vmul.f32 %v15939_v22, %v9497_v24  ;;  %9545 = vmatprep.subr.bf16.mxu0 %v9524_v11 }
 0x708   :  { %v9523_v56 = vpack.c.bf16 %v9521_v2, %v9519_v1 }
 0x70a   :  { %11420 = vmatmul.mubr.msk.bf16.vlgmr.msra.gmra.mxu1 %vm1684_vm9, %v9436_v54  ;;  %9546 = vmatpush1.bf16.msra.mxu0 %v9523_v56 }
 0x70b   :  { %9702 = vmatprep.mubr.bf16.mxu1 %v16790_v14 }
 0x70d   :  { %11424 = vmatmul.mubr.msk.bf16.vlgmr.msra.gmra.mxu0 %vm1684_vm9, %v11970_v49 }
 0x70e   :  { %9748 = vmatprep.mubr.bf16.mxu0 %v16790_v14 }
 0x791   :  { %v8920_v50 = vpop.f32.mrf.mxu1 }
 0x793   :  { %v8922_v26 = vpop.f32.mrf.mxu1 }
 0x795   :  { %v8924_v59 = vpop.f32.mrf.mxu1 }
 0x797   :  { %v8926_v55 = vpop.f32.mrf.mxu1 }
 0x799   :  { %v8966_v19 = vpop.f32.mrf.mxu1 }
 0x79a   :  { %v8967_v15 = vadd.f32 %v8966_v19, %v8920_v50  ;;  %v9583_v50 = vpop.permute.xlu0 %9582 }
 0x79b   :  { %v8968_v23 = vpop.f32.mrf.mxu1 }
 0x79c   :  { %v8969_v25 = vadd.f32 %v8968_v23, %v8922_v26 }
 0x79d   :  { %v8970_v13 = vpop.f32.mrf.mxu1 }
 0x79e   :  { %v8971_v12 = vadd.f32 %v8970_v13, %v8924_v59 }
 0x79f   :  { %v8972_v48 = vpop.f32.mrf.mxu1 }
 0x7a0   :  { %v8973_v16 = vadd.f32 %v8972_v48, %v8926_v55 }
 0x7a1   :  { %v9051_v20 = vpop.f32.mrf.mxu1 }
 0x7a2   :  { %v9060_v53 = vadd.f32 %v9051_v20, %v8967_v15 }
 0x7a3   :  { %v9053_v0 = vpop.f32.mrf.mxu1 }
 0x7a4   :  { %v9061_v24 = vadd.f32 %v9053_v0, %v8969_v25  ;;  %v10299_v25 = vld [vmem:[%s16559_s8 + $0x8] sm:$0xff] }
 0x7a5   :  { %v9055_v51 = vpop.f32.mrf.mxu1 }
 0x7a7   :  { %v9057_v27 = vpop.f32.mrf.mxu1 }
 0x7a8   :  { %v9063_v8 = vadd.f32 %v9057_v27, %v8973_v16 }
 0x7a9   :  { %v9139_v41 = vpop.f32.mrf.mxu1 }
 0x7aa   :  { %v9148_v45 = vadd.f32 %v9139_v41, %v9060_v53 }
 0x7ab   :  { %v9141_v6 = vpop.f32.mrf.mxu1 }
 0x7ac   :  { %v9149_v54 = vadd.f32 %v9141_v6, %v9061_v24  ;;  %v9062_v6 = vadd.f32 %v9055_v51, %v8971_v12 }
 0x7ad   :  { %v9143_v21 = vpop.f32.mrf.mxu1 }
 0x7af   :  { %v9145_v34 = vpop.f32.mrf.mxu1 }
 0x7b0   :  { %v9151_v47 = vadd.f32 %v9145_v34, %v9063_v8  ;;  %v9150_v34 = vadd.f32 %v9143_v21, %v9062_v6 }
 0x7b1   :  { %v9205_v33 = vpop.f32.mrf.mxu1 }
 0x7b2   :  { %v9214_v35 = vadd.f32 %v9205_v33, %v9148_v45 }
 0x7b3   :  { %v9207_v17 = vpop.f32.mrf.mxu1 }
 0x7b4   :  { %v9215_v59 = vadd.f32 %v9207_v17, %v9149_v54 }
 0x7b5   :  { %v9209_v36 = vpop.f32.mrf.mxu1 }
 0x7b7   :  { %v9211_v37 = vpop.f32.mrf.mxu1 }
 0x7b8   :  { %v15968_v60 = vadd.f32 %v9211_v37, %v9151_v47  ;;  %v9216_v47 = vadd.f32 %v9209_v36, %v9150_v34  ;;  %v9588_v36 = vpop.permute.xlu1 %9587 }
 0x7b9   :  { %v9294_v52 = vpop.f32.mrf.mxu1 }
 0x7ba   :  { %v9303_v11 = vadd.f32 %v9294_v52, %v9214_v35  ;;  %v16079_v35 = vpop.permute.xlu0 %9665 }
 0x7bb   :  { %v9296_v62 = vpop.f32.mrf.mxu1 }
 0x7bc   :  { %v9304_v13 = vadd.f32 %v9296_v62, %v9215_v59  ;;  %v16089_v24 = vpop.permute.xlu1 %9787 }
 0x7bd   :  { %v9298_v7 = vpop.f32.mrf.mxu1 }
 0x7be   :  { %v9305_v33 = vadd.f32 %v9298_v7, %v9216_v47 }
 0x7bf   :  { %v9300_v39 = vpop.f32.mrf.mxu1 }
 0x7c0   :  { %v9306_v62 = vadd.f32 %v9300_v39, %v15968_v60 }
 0x7c2   :  { %v9384_v30 = vpop.f32.mrf.mxu1 }
 0x7c3   :  { %v9393_v2 = vadd.f32 %v9384_v30, %v9303_v11  ;;  %v16087_v11 = vpop.permute.xlu0 %9867 }
 0x7c4   :  { %v9386_v28 = vpop.f32.mrf.mxu1 }
 0x7c5   :  { %v9394_v16 = vadd.f32 %v9386_v28, %v9304_v13 }
 0x7c6   :  { %v9388_v5 = vpop.f32.mrf.mxu1 }
 0x7c7   :  { %v9395_v37 = vadd.f32 %v9388_v5, %v9305_v33  ;;  %v10298_v5 = vld [vmem:[%s16559_s8] sm:$0xff] }
 0x7c8   :  { %v9390_v1 = vpop.f32.mrf.mxu1 }
 0x7c9   :  { %v9396_v53 = vadd.f32 %v9390_v1, %v9306_v62  ;;  %v16091_v1 = vpop.permute.xlu0 %10005 }
 0x7ca   :  { %v9474_v56 = vpop.f32.mrf.mxu1  ;;  %16820 = vst [vmem:[#allocation13_spill] sm:$0xff] %v16091_v1 }
 0x7cb   :  { %v9483_v49 = vadd.f32 %v9474_v56, %v9393_v2  ;;  %v16093_v2 = vpop.permute.xlu1 %9925 }
 0x7cc   :  { %v9476_v19 = vpop.f32.mrf.mxu1 }
 0x7cd   :  { %v9565_v55 = vpop.f32.mrf.mxu0  ;;  %v9484_v27 = vadd.f32 %v9476_v19, %v9394_v16 }
 0x7ce   :  { %v9574_v48 = vadd.f32 %v9565_v55, %v9483_v49  ;;  %v9478_v17 = vpop.f32.mrf.mxu1 }
 0x7cf   :  { %v9567_v26 = vpop.f32.mrf.mxu0  ;;  %v9485_v12 = vadd.f32 %v9478_v17, %v9395_v37 }
 0x7d0   :  { %v9590_v20 = vadd.f32 %v9583_v50, %v9574_v48  ;;  %v9575_v23 = vadd.f32 %v9567_v26, %v9484_v27  ;;  %v9480_v15 = vpop.f32.mrf.mxu1 }
 0x7d1   :  { %v9569_v51 = vpop.f32.mrf.mxu0  ;;  %v9486_v30 = vadd.f32 %v9480_v15, %v9396_v53 }
 0x7d2   :  { %v15970_v8 = vmax.f32 %v9590_v20, 0.0  ;;  %v9591_v0 = vadd.f32 %v9583_v50, %v9575_v23  ;;  %v9576_v21 = vadd.f32 %v9569_v51, %v9485_v12 }
 0x7d3   :  { %v9571_v45 = vpop.f32.mrf.mxu0 }
 0x7d4   :  { %9845 = vrot.lane.b32.xlu1 %v15970_v8, %s16722_s3  ;;  %9638 = vrot.lane.b32.xlu0 %v15970_v8, %s16793_s10  ;;  %v15984_v41 = vmax.f32 %v9591_v0, 0.0  ;;  %v9592_v52 = vadd.f32 %v9588_v36, %v9576_v21  ;;  %v9577_v28 = vadd.f32 %v9571_v45, %v9486_v30 }
 0x7d6   :  { %v16011_v7 = vmax.f32 %v9592_v52, 0.0  ;;  %v9593_v60 = vadd.f32 %v9588_v36, %v9577_v28 }
 0x7d8   :  { %9977 = vrot.lane.b32.xlu1 %v15970_v8, %s16780_s5  ;;  %9610 = vrot.lane.b32.xlu0 %v15970_v8, %s16810_s29  ;;  %v16029_v39 = vmax.f32 %v9593_v60, 0.0 }
 0x7dc   :  { %10071 = vrot.lane.b32.xlu1 %v15970_v8, %s16811_s12  ;;  %9765 = vrot.lane.b32.xlu0 %v15970_v8, %s16812_s26 }
 0x7e0   :  { %9991 = vrot.lane.b32.xlu0 %v15970_v8, %s16813_s2  ;;  %9640 = vrot.lane.b32.xlu1 %v15984_v41, %s16793_s10 }
 0x7e4   :  { %10057 = vrot.lane.b32.xlu0 %v15970_v8, %s16814_s11  ;;  %9612 = vrot.lane.b32.xlu1 %v15984_v41, %s16810_s29 }
 0x7e8   :  { %10151 = vrot.lane.b32.xlu0 %v15970_v8, %s16796_s1  ;;  %9767 = vrot.lane.b32.xlu1 %v15984_v41, %s16812_s26 }
 0x7ec   :  { %9632 = vrot.lane.b32.xlu0 %v15984_v41, %s16703_s25  ;;  %9759 = vrot.lane.b32.xlu1 %v15984_v41, %s16815_s6 }
 0x7f0   :  { %9602 = vrot.lane.b32.xlu0 %v15984_v41, %s16816_s27  ;;  %9839 = vrot.lane.b32.xlu1 %v15984_v41, %s16817_s21 }
 0x7f4   :  { %9847 = vrot.lane.b32.xlu0 %v15984_v41, %s16722_s3  ;;  %10059 = vrot.lane.b32.xlu1 %v15984_v41, %s16814_s11 }
 0x7f8   :  { %9979 = vrot.lane.b32.xlu0 %v15984_v41, %s16780_s5  ;;  %9849 = vrot.lane.b32.xlu1 %v16011_v7, %s16722_s3 }
 0x7fc   :  { %10139 = vrot.lane.b32.xlu0 %v15984_v41, %s16795_s23  ;;  %9993 = vrot.lane.b32.xlu1 %v16011_v7, %s16813_s2 }
 0x800   :  { %10061 = vrot.lane.b32.xlu1 %v16011_v7, %s16814_s11  ;;  %9642 = vrot.lane.b32.xlu0 %v16011_v7, %s16793_s10 }
 0x804   :  { %10153 = vrot.lane.b32.xlu1 %v16011_v7, %s16796_s1  ;;  %9614 = vrot.lane.b32.xlu0 %v16011_v7, %s16810_s29 }
 0x808   :  { %9769 = vrot.lane.b32.xlu0 %v16011_v7, %s16812_s26  ;;  %9644 = vrot.lane.b32.xlu1 %v16029_v39, %s16793_s10  ;;  %s16819_s10 = smov 55  }
 0x80c   :  { %9981 = vrot.lane.b32.xlu0 %v16011_v7, %s16780_s5  ;;  %9634 = vrot.lane.b32.xlu1 %v16029_v39, %s16703_s25  ;;  %s16818_s25 = smov 119  }
 0x810   :  { %10073 = vrot.lane.b32.xlu0 %v16011_v7, %s16811_s12  ;;  %9616 = vrot.lane.b32.xlu1 %v16029_v39, %s16810_s29 }
 0x814   :  { %9761 = vrot.lane.b32.xlu0 %v16029_v39, %s16815_s6  ;;  %9604 = vrot.lane.b32.xlu1 %v16029_v39, %s16816_s27 }
 0x818   :  { %9851 = vrot.lane.b32.xlu0 %v16029_v39, %s16722_s3  ;;  %9771 = vrot.lane.b32.xlu1 %v16029_v39, %s16812_s26 }
 0x81c   :  { %9841 = vrot.lane.b32.xlu0 %v16029_v39, %s16817_s21  ;;  %10137 = vrot.lane.b32.xlu1 %v15970_v8, %s16795_s23 }
 0x820   :  { %10141 = vrot.lane.b32.xlu0 %v16011_v7, %s16795_s23  ;;  %10219 = vrot.lane.b32.xlu1 %v15984_v41, %s16818_s25 }
 0x824   :  { %10063 = vrot.lane.b32.xlu0 %v16029_v39, %s16814_s11  ;;  %10231 = vrot.lane.b32.xlu1 %v15970_v8, %s16819_s10 }
 0x828   :  { %10233 = vrot.lane.b32.xlu0 %v16011_v7, %s16819_s10  ;;  %9983 = vrot.lane.b32.xlu1 %v16029_v39, %s16780_s5 }
 0x82c   :  { %10223 = vrot.lane.b32.xlu0 %v16029_v39, %s16818_s25  ;;  %10085 = vrot.lane.b32.xlu1 %v15956_v18, %s16739_s9 }
 0x830   :  { %10217 = vrot.lane.b32.xlu0 %v15970_v8, %s16818_s25  ;;  %10143 = vrot.lane.b32.xlu1 %v16029_v39, %s16795_s23 }
 0x834   :  { %10165 = vrot.lane.b32.xlu0 %v15956_v18, %s16797_s0  ;;  %10221 = vrot.lane.b32.xlu1 %v16011_v7, %s16818_s25 }
 0x838   :  { %10307 = vperm.xlu0 %11577, %v10299_v25   ;;  %10302 = vperm.xlu1 %11576, %v10298_v5  }
 0x846   :  { %v16095_v54 = vpop.permute.xlu1 %9845  ;;  %v9639_v56 = vpop.permute.xlu0 %9638 }
 0x84a   :  { %v16097_v49 = vpop.permute.xlu1 %9977  ;;  %v9611_v59 = vpop.permute.xlu0 %9610 }
 0x84e   :  { %v16099_v55 = vpop.permute.xlu1 %10071  ;;  %v9766_v13 = vpop.permute.xlu0 %9765 }
 0x852   :  { %v16101_v48 = vpop.permute.xlu0 %9991  ;;  %v9641_v50 = vpop.permute.xlu1 %9640 }
 0x853   :  { %v9646_v62 = vsel %vm239_vm2, %v9639_v56, %v9641_v50 }
 0x854   :  { %v9655_v45 = vmul.f32 %v9646_v62, %v15746_v46 }
 0x856   :  { %v16103_v19 = vpop.permute.xlu0 %10057  ;;  %v9613_v16 = vpop.permute.xlu1 %9612 }
 0x85a   :  { %v16105_v20 = vpop.permute.xlu0 %10151  ;;  %v9768_v27 = vpop.permute.xlu1 %9767 }
 0x85e   :  { %v9633_v26 = vpop.permute.xlu0 %9632  ;;  %v9760_v23 = vpop.permute.xlu1 %9759 }
 0x85f   :  { %v9652_v60 = vsel %vm239_vm2, %v9633_v26, %v9639_v56 }
 0x860   :  { %v9654_v4 = vmul.f32 %v9652_v60, %v15759_v61 }
 0x862   :  { %v9603_v0 = vpop.permute.xlu0 %9602  ;;  %v9840_v6 = vpop.permute.xlu1 %9839 }
 0x866   :  { %v9848_v34 = vpop.permute.xlu0 %9847  ;;  %v16107_v47 = vpop.permute.xlu1 %10059 }
 0x86a   :  { %v16109_v33 = vpop.permute.xlu0 %9979  ;;  %v16111_v17 = vpop.permute.xlu1 %9849 }
 0x86e   :  { %v16113_v37 = vpop.permute.xlu0 %10139  ;;  %v16115_v12 = vpop.permute.xlu1 %9993 }
 0x872   :  { %v16117_v51 = vpop.permute.xlu1 %10061  ;;  %v9643_v21 = vpop.permute.xlu0 %9642 }
 0x876   :  { %v16119_v36 = vpop.permute.xlu1 %10153  ;;  %v9615_v52 = vpop.permute.xlu0 %9614 }
 0x877   :  { %16821 = vst [vmem:[#allocation19_spill] sm:$0xff] %v16119_v36  ;;  %v9618_v36 = vsel %vm8817_vm1, %v9611_v59, %v9613_v16  ;;  %v9779_v16 = vsel %vm8989_vm8, %v9760_v23, %v9766_v13 }
 0x878   :  { %v9627_v56 = vmul.f32 %v9618_v36, %v15770_v40  ;;  %v9781_v23 = vmul.f32 %v9779_v16, %v15793_v10 }
 0x87a   :  { %v9770_v15 = vpop.permute.xlu0 %9769  ;;  %v9645_v53 = vpop.permute.xlu1 %9644 }
 0x87b   :  { %v9647_v30 = vsel %vm239_vm2, %v9643_v21, %v9645_v53 }
 0x87c   :  { %v9657_v28 = vmul.f32 %v9647_v30, %v15746_v46 }
 0x87e   :  { %v16126_v25 = vpop.permute.xlu0 %9981  ;;  %v9635_v5 = vpop.permute.xlu1 %9634  ;;  %v9659_v22 = vpack.c.bf16 %v9657_v28, %v9655_v45 }
 0x87f   :  { %v9653_v1 = vsel %vm239_vm2, %v9635_v5, %v9643_v21  ;;  %v9624_v21 = vsel %vm8817_vm1, %v9603_v0, %v9611_v59  ;;  %v9853_v59 = vsel %vm2588_vm13, %v16095_v54, %v9848_v34  ;;  %v9922_v5 = vmul.f32 %v16029_v39, %v15837_v42 }
 0x880   :  { %v9656_v50 = vmul.f32 %v9653_v1, %v15759_v61  ;;  %9684 = vmatprep.subr.bf16.mxu1 %v9659_v22  ;;  %v9920_v39 = vmul.f32 %v15984_v41, %v15837_v42  ;;  %v9919_v42 = vmul.f32 %v15970_v8, %v15852_v3  ;;  %vm10498_vm2 = vcmask 523264  }
 0x882   :  { %v9658_v53 = vpack.c.bf16 %v9656_v50, %v9654_v4  ;;  %v16132_v58 = vpop.permute.xlu0 %10073  ;;  %v9617_v62 = vpop.permute.xlu1 %9616  ;;  %v9626_v4 = vmul.f32 %v9624_v21, %v15778_v9  ;;  %v9862_v50 = vmul.f32 %v9853_v59, %v15816_v43 }
 0x883   :  { %v9619_v46 = vsel %vm8817_vm1, %v9615_v52, %v9617_v62 }
 0x884   :  { %v9629_v26 = vmul.f32 %v9619_v46, %v15770_v40  ;;  %9685 = vmatpush1.bf16.msra.mxu1 %v9658_v53  ;;  %v9773_v40 = vsel %vm8989_vm8, %v9766_v13, %v9768_v27  ;;  %v9859_v53 = vsel %vm2588_vm13, %v9840_v6, %v16095_v54  ;;  %v9924_v6 = vpack.c.bf16 %v9922_v5, %v9920_v39 }
 0x885   :  { %v9782_v27 = vmul.f32 %v9773_v40, %v15785_v57 }
 0x886   :  { %v9762_v30 = vpop.permute.xlu0 %9761  ;;  %v9605_v45 = vpop.permute.xlu1 %9604  ;;  %v9631_v28 = vpack.c.bf16 %v9629_v26, %v9627_v56 }
 0x887   :  { %v9625_v61 = vsel %vm8817_vm1, %v9605_v45, %v9615_v52  ;;  %11426 = vmatmul.mubr.msk.bf16.vlgmr.msra.gmra.mxu1 %vm1684_vm9, %v16079_v35  ;;  %v9780_v22 = vsel %vm8989_vm8, %v9762_v30, %v9770_v15  ;;  %vm10748_vm1 = vcmask 1041408  }
 0x888   :  { %v9628_v1 = vmul.f32 %v9625_v61, %v15778_v9  ;;  %9730 = vmatprep.subr.bf16.mxu0 %v9631_v28  ;;  %9824 = vmatprep.mubr.bf16.mxu1 %v16790_v14  ;;  %v9783_v35 = vmul.f32 %v9780_v22, %v15793_v10  ;;  %v9861_v10 = vmul.f32 %v9859_v53, %v15829_v44 }
 0x88a   :  { %v9630_v0 = vpack.c.bf16 %v9628_v1, %v9626_v4  ;;  %v9852_v36 = vpop.permute.xlu0 %9851  ;;  %v9772_v52 = vpop.permute.xlu1 %9771  ;;  %v9785_v26 = vpack.c.bf16 %v9783_v35, %v9781_v23  ;;  %v16825_v23 = vld [vmem:[#allocation13_spill] sm:$0xff] }
 0x88b   :  { %v9854_v60 = vsel %vm2588_vm13, %v16111_v17, %v9852_v36  ;;  %v9774_v9 = vsel %vm8989_vm8, %v9770_v15, %v9772_v52 }
 0x88c   :  { %v9864_v34 = vmul.f32 %v9854_v60, %v15816_v43  ;;  %v9784_v13 = vmul.f32 %v9774_v9, %v15785_v57  ;;  %9731 = vmatpush1.bf16.msra.mxu0 %v9630_v0  ;;  %v9921_v57 = vmul.f32 %v16011_v7, %v15852_v3  ;;  %v10065_v7 = vsel %vm9315_vm6, %v16103_v19, %v16107_v47  ;;  %v16822_v60 = vld [vmem:[#allocation25_spill] sm:$0xff] }
 0x88d   :  { %v10079_v30 = vmul.f32 %v10065_v7, %v15893_v38 }
 0x88e   :  { %v9842_v62 = vpop.permute.xlu0 %9841  ;;  %v16162_v46 = vpop.permute.xlu1 %10137  ;;  %v9786_v15 = vpack.c.bf16 %v9784_v13, %v9782_v27  ;;  %v9866_v56 = vpack.c.bf16 %v9864_v34, %v9862_v50  ;;  %v16823_v27 = vld [vmem:[#allocation19_spill] sm:$0xff] }
 0x88f   :  { %v9860_v43 = vsel %vm2588_vm13, %v9842_v62, %v16111_v17  ;;  %11427 = vmatmul.mubr.msk.bf16.vlgmr.msra.gmra.mxu0 %vm1684_vm9, %v15956_v18  ;;  %v9923_v18 = vpack.c.bf16 %v9921_v57, %v9919_v42  ;;  %v10145_v0 = vsel %vm9405_vm12, %v16162_v46, %v16113_v37  ;;  %v16824_v50 = vld [vmem:[#allocation15_spill] sm:$0xff]  ;;  %v11976_v42 = vld [vmem:[%s16564_s13 + $0x28] sm:$0xff]   ;;  %vm10603_vm13 = vcmask 392192  }
 0x890   :  { %v9863_v54 = vmul.f32 %v9860_v43, %v15829_v44  ;;  %9806 = vmatprep.subr.bf16.mxu1 %v9786_v15  ;;  %9886 = vmatprep.subr.bf16.mxu0 %v9866_v56  ;;  %v10077_v44 = vsel %vm9328_vm3, %v16107_v47, %v16099_v55  ;;  %v9985_v55 = vsel %vm3013_vm14, %v16097_v49, %v16109_v33  ;;  %v16826_v56 = vld [vmem:[#allocation23_spill] sm:$0xff] }
 0x891   :  { %9807 = vmatpush1.bf16.msra.mxu1 %v9785_v26  ;;  %9904 = vmatprep.mubr.bf16.mxu0 %v16790_v14  ;;  %v9999_v22 = vmul.f32 %v9985_v55, %v15868_v32  ;;  %v10159_v34 = vmul.f32 %v10145_v0, %v16824_v50 }
 0x892   :  { %v9865_v41 = vpack.c.bf16 %v9863_v54, %v9861_v10  ;;  %v10142_v17 = vpop.permute.xlu0 %10141  ;;  %v10220_v21 = vpop.permute.xlu1 %10219  ;;  %9944 = vmatprep.subr.bf16.mxu1 %v9924_v6  ;;  %v11973_v10 = vld [vmem:[%s16558_s7 + $0x4] ss:$8 sps:$4 sm:$0xff]   ;;  %v11974_v54 = vld [vmem:[%s16564_s13 + $0x38] sm:$0xff]   ;;  %v11975_v6 = vld [vmem:[%s16564_s13 + $0x30] sm:$0xff]  }
 0x894   :  { %11428 = vmatmul.mubr.msk.bf16.vlgmr.msra.gmra.mxu1 %vm1684_vm9, %v16089_v24  ;;  %9887 = vmatpush1.bf16.msra.mxu0 %v9865_v41  ;;  %v10080_v24 = vmul.f32 %v10077_v44, %v15889_v31  ;;  %v11977_v41 = vld [vmem:[%s16564_s13 + $0x20] sm:$0xff]  }
 0x895   :  { %9945 = vmatpush1.bf16.msra.mxu1 %v9923_v18  ;;  %9962 = vmatprep.mubr.bf16.mxu1 %v16790_v14 }
 0x896   :  { %v10064_v3 = vpop.permute.xlu0 %10063  ;;  %v10232_v8 = vpop.permute.xlu1 %10231 }
 0x897   :  { %v10066_v45 = vsel %vm9315_vm6, %v16117_v51, %v10064_v3  ;;  %v10078_v19 = vsel %vm9328_vm3, %v10064_v3, %v16132_v58  ;;  %11429 = vmatmul.mubr.msk.bf16.vlgmr.msra.gmra.mxu0 %vm1684_vm9, %v16087_v11  ;;  %v9997_v51 = vsel %vm9238_vm10, %v16109_v33, %v16101_v48  ;;  %v10237_v48 = vsel %vm9508_vm0, %v10220_v21, %v10232_v8 }
 0x898   :  { %v10081_v47 = vmul.f32 %v10066_v45, %v15893_v38  ;;  %v10082_v28 = vmul.f32 %v10078_v19, %v15889_v31  ;;  %10042 = vmatprep.mubr.bf16.mxu0 %v16790_v14  ;;  %v10000_v31 = vmul.f32 %v9997_v51, %v15864_v63 }
 0x89a   :  { %v10083_v58 = vpack.c.bf16 %v10081_v47, %v10079_v30  ;;  %v10234_v61 = vpop.permute.xlu0 %10233  ;;  %v9984_v4 = vpop.permute.xlu1 %9983  ;;  %v10084_v11 = vpack.c.bf16 %v10082_v28, %v10080_v24 }
 0x89b   :  { %v9986_v1 = vsel %vm3013_vm14, %v16126_v25, %v9984_v4  ;;  %v9998_v38 = vsel %vm9238_vm10, %v9984_v4, %v16115_v12 }
 0x89c   :  { %v10001_v49 = vmul.f32 %v9986_v1, %v15868_v32  ;;  %v10002_v40 = vmul.f32 %v9998_v38, %v15864_v63  ;;  %11430 = vmatmul.mubr.msk.bf16.vlgmr.msra.gmra.mxu1 %vm1684_vm9, %v16093_v2  ;;  %10104 = vmatprep.subr.bf16.mxu1 %v10084_v11  ;;  %v10157_v32 = vsel %vm9418_vm11, %v16113_v37, %v16105_v20 }
 0x89d   :  { %10105 = vmatpush1.bf16.msra.mxu1 %v10083_v58  ;;  %10122 = vmatprep.mubr.bf16.mxu1 %v16790_v14  ;;  %v10240_v63 = vmul.f32 %v15929_v29, %v10237_v48  ;;  %v10160_v9 = vmul.f32 %v10157_v32, %v16822_v60 }
 0x89e   :  { %v10003_v33 = vpack.c.bf16 %v10001_v49, %v9999_v22  ;;  %v10224_v25 = vpop.permute.xlu0 %10223  ;;  %v10086_v59 = vpop.permute.xlu1 %10085  ;;  %v10004_v16 = vpack.c.bf16 %v10002_v40, %v10000_v31 }
 0x89f   :  { %v10238_v12 = vsel %vm9508_vm0, %v10224_v25, %v10234_v61 }
 0x8a0   :  { %v10242_v2 = vmul.f32 %v15929_v29, %v10238_v12  ;;  %10024 = vmatprep.subr.bf16.mxu0 %v10004_v16 }
 0x8a1   :  { %10025 = vmatpush1.bf16.msra.mxu0 %v10003_v33 }
 0x8a2   :  { %v10218_v36 = vpop.permute.xlu0 %10217  ;;  %v10144_v52 = vpop.permute.xlu1 %10143  ;;  %v10244_v35 = vpack.c.bf16 %v10242_v2, %v10240_v63 }
 0x8a3   :  { %v10146_v5 = vsel %vm9405_vm12, %v10142_v17, %v10144_v52  ;;  %v10158_v20 = vsel %vm9418_vm11, %v10144_v52, %v16823_v27  ;;  %v10225_v37 = vsel %vm9495_vm7, %v10218_v36, %v10220_v21  ;;  %v11978_v17 = vld [vmem:[%s16564_s13 + $0x18] sm:$0xff]   ;;  %v11979_v21 = vld [vmem:[%s16564_s13 + $0x10] sm:$0xff]  }
 0x8a4   :  { %v10161_v29 = vmul.f32 %v10146_v5, %v16824_v50  ;;  %v10162_v13 = vmul.f32 %v10158_v20, %v16822_v60  ;;  %11431 = vmatmul.mubr.msk.bf16.vlgmr.msra.gmra.mxu0 %vm1684_vm9, %v16825_v23  ;;  %11432 = vmatmul.mubr.msk.bf16.vlgmr.msra.gmra.mxu1 %vm1684_vm9, %v10086_v59  ;;  %v10239_v39 = vmul.f32 %v16826_v56, %v10225_v37 }
 0x8a5   :  { %10265 = vmatprep.subr.bf16.mxu1 %v10244_v35  ;;  %10202 = vmatprep.mubr.bf16.mxu0 %v16790_v14 }
 0x8a6   :  { %v10163_v53 = vpack.c.bf16 %v10161_v29, %v10159_v34  ;;  %v10222_v62 = vpop.permute.xlu1 %10221  ;;  %v10164_v46 = vpack.c.bf16 %v10162_v13, %v10160_v9  ;;  %10283 = vmatprep.mubr.bf16.mxu1 %v16790_v14  ;;  %v10166_v43 = vpop.permute.xlu0 %10165 }
 0x8a7   :  { %v10226_v15 = vsel %vm9495_vm7, %v10222_v62, %v10224_v25 }
 0x8a8   :  { %v10241_v26 = vmul.f32 %v16826_v56, %v10226_v15  ;;  %10184 = vmatprep.subr.bf16.mxu0 %v10164_v46 }
 0x8a9   :  { %10185 = vmatpush1.bf16.msra.mxu0 %v10163_v53 }
 0x8aa   :  { %v10243_v57 = vpack.c.bf16 %v10241_v26, %v10239_v39  ;;  %10502 = vmatprep.subr.bf16.mxu0 %v16790_v14 }
 0x8ac   :  { %11433 = vmatmul.mubr.msk.bf16.vlgmr.msra.gmra.mxu0 %vm1684_vm9, %v10166_v43  ;;  %10266 = vmatpush1.bf16.msra.mxu1 %v10243_v57  ;;  %v11980_v43 = vld [vmem:[%s16564_s13 + $0x8] sm:$0xff]  }
 0x8ad   :  { %10503 = vmatpush1.bf16.msra.mxu0 %v11974_v54 }
 0x8ae   :  { %10504 = vmatprep.subr.bf16.mxu0 %v16790_v14 }
 0x8af   :  { %11435 = vmatmul.mubr.msk.bf16.vlgmr.msra.gmra.mxu1 %vm1684_vm9, %v11973_v10 }
 0x8b1   :  { %10505 = vmatpush1.bf16.msra.mxu0 %v11975_v6 }
 0x8b2   :  { %10506 = vmatprep.subr.bf16.mxu0 %v16790_v14 }
 0x8b5   :  { %10507 = vmatpush1.bf16.msra.mxu0 %v11976_v42 }
 0x8b6   :  { %10508 = vmatprep.subr.bf16.mxu0 %v16790_v14 }
 0x8b9   :  { %10509 = vmatpush1.bf16.msra.mxu0 %v11977_v41 }
 0x8ba   :  { %10510 = vmatprep.subr.bf16.mxu0 %v16790_v14 }
 0x8bd   :  { %10511 = vmatpush1.bf16.msra.mxu0 %v11978_v17 }
 0x8be   :  { %10512 = vmatprep.subr.bf16.mxu0 %v16790_v14 }
 0x8c1   :  { %10513 = vmatpush1.bf16.msra.mxu0 %v11979_v21  ;;  %v10303_v21 = vpop.permute.xlu1 %10302 }
 0x8c2   :  { %10514 = vmatprep.subr.bf16.mxu0 %v16790_v14 }
 0x8c5   :  { %10515 = vmatpush1.bf16.msra.mxu0 %v11980_v43 }
 0x8c6   :  { %10516 = vmatprep.subr.bf16.mxu0 %v16790_v14 }
 0x947   :  { %v9704_v18 = vpop.f32.mrf.mxu1 }
 0x949   :  { %v9706_v7 = vpop.f32.mrf.mxu1 }
 0x94b   :  { %v9708_v44 = vpop.f32.mrf.mxu1 }
 0x94d   :  { %v9710_v30 = vpop.f32.mrf.mxu1 }
 0x94f   :  { %v9750_v3 = vpop.f32.mrf.mxu0 }
 0x950   :  { %v9751_v4 = vadd.f32 %v9750_v3, %v9704_v18 }
 0x951   :  { %v9752_v8 = vpop.f32.mrf.mxu0 }
 0x952   :  { %v9753_v59 = vadd.f32 %v9752_v8, %v9706_v7 }
 0x953   :  { %v9754_v45 = vpop.f32.mrf.mxu0 }
 0x954   :  { %v9826_v19 = vpop.f32.mrf.mxu1  ;;  %v9755_v31 = vadd.f32 %v9754_v45, %v9708_v44  ;;  %v11981_v44 = vld [vmem:[%s16564_s13] sm:$0xff]   ;;  %v10308_v45 = vpop.permute.xlu0 %10307 }
 0x955   :  { %v9756_v24 = vpop.f32.mrf.mxu0  ;;  %v9835_v1 = vadd.f32 %v9826_v19, %v9751_v4  ;;  %10517 = vmatpush1.bf16.msra.mxu0 %v11981_v44 }
 0x956   :  { %v9828_v55 = vpop.f32.mrf.mxu1  ;;  %v9757_v48 = vadd.f32 %v9756_v24, %v9710_v30  ;;  %10526 = vmatprep.subr.bf16.mxu0 %v16790_v14 }
 0x957   :  { %v9906_v47 = vpop.f32.mrf.mxu0  ;;  %v9836_v2 = vadd.f32 %v9828_v55, %v9753_v59 }
 0x958   :  { %v9830_v28 = vpop.f32.mrf.mxu1  ;;  %v9915_v33 = vadd.f32 %v9906_v47, %v9835_v1  ;;  %v11982_v47 = vld [vmem:[%s16564_s13 + $0x58] sm:$0xff]  }
 0x959   :  { %v9908_v51 = vpop.f32.mrf.mxu0  ;;  %v9837_v25 = vadd.f32 %v9830_v28, %v9755_v31  ;;  %10527 = vmatpush2.bf16.msra.mxu0 %v11982_v47 }
 0x95a   :  { %v9832_v58 = vpop.f32.mrf.mxu1  ;;  %v9916_v20 = vadd.f32 %v9908_v51, %v9836_v2  ;;  %10528 = vmatprep.subr.bf16.mxu0 %v16790_v14 }
 0x95b   :  { %v9910_v11 = vpop.f32.mrf.mxu0  ;;  %v9838_v32 = vadd.f32 %v9832_v58, %v9757_v48 }
 0x95c   :  { %v9964_v61 = vpop.f32.mrf.mxu1  ;;  %v9917_v52 = vadd.f32 %v9910_v11, %v9837_v25  ;;  %v11983_v11 = vld [vmem:[%s16564_s13 + $0x50] sm:$0xff]  }
 0x95d   :  { %v9912_v49 = vpop.f32.mrf.mxu0  ;;  %v9973_v63 = vadd.f32 %v9964_v61, %v9915_v33  ;;  %10529 = vmatpush2.bf16.msra.mxu0 %v11983_v11 }
 0x95e   :  { %v9966_v22 = vpop.f32.mrf.mxu1  ;;  %v9918_v9 = vadd.f32 %v9912_v49, %v9838_v32  ;;  %10530 = vmatprep.subr.bf16.mxu0 %v16790_v14 }
 0x95f   :  { %v9974_v23 = vadd.f32 %v9966_v22, %v9916_v20 }
 0x960   :  { %v9968_v38 = vpop.f32.mrf.mxu1 }
 0x961   :  { %v9975_v5 = vadd.f32 %v9968_v38, %v9917_v52  ;;  %v11984_v38 = vld [vmem:[%s16564_s13 + $0x48] sm:$0xff]  }
 0x962   :  { %v9970_v40 = vpop.f32.mrf.mxu1  ;;  %10531 = vmatpush2.bf16.msra.mxu0 %v11984_v38 }
 0x963   :  { %v9976_v34 = vadd.f32 %v9970_v40, %v9918_v9  ;;  %10532 = vmatprep.subr.bf16.mxu0 %v16790_v14  ;;  %v11985_v40 = vld [vmem:[%s16564_s13 + $0x40] sm:$0xff]  }
 0x964   :  { %v10044_v16 = vpop.f32.mrf.mxu0  ;;  %v10124_v12 = vpop.f32.mrf.mxu1 }
 0x965   :  { %v10053_v35 = vadd.f32 %v10044_v16, %v9973_v63 }
 0x966   :  { %v10046_v0 = vpop.f32.mrf.mxu0  ;;  %v10126_v36 = vpop.f32.mrf.mxu1  ;;  %10533 = vmatpush2.bf16.msra.mxu0 %v11985_v40 }
 0x967   :  { %v10133_v29 = vadd.f32 %v10124_v12, %v10053_v35  ;;  %v10054_v15 = vadd.f32 %v10046_v0, %v9974_v23 }
 0x968   :  { %v10048_v60 = vpop.f32.mrf.mxu0  ;;  %v10128_v27 = vpop.f32.mrf.mxu1 }
 0x969   :  { %v10055_v13 = vadd.f32 %v10048_v60, %v9975_v5  ;;  %v10134_v41 = vadd.f32 %v10126_v36, %v10054_v15 }
 0x96a   :  { %v10050_v50 = vpop.f32.mrf.mxu0  ;;  %v10130_v62 = vpop.f32.mrf.mxu1 }
 0x96b   :  { %v10056_v53 = vadd.f32 %v10050_v50, %v9976_v34  ;;  %v10135_v39 = vadd.f32 %v10128_v27, %v10055_v13 }
 0x96c   :  { %v10204_v37 = vpop.f32.mrf.mxu0 }
 0x96d   :  { %v10213_v46 = vadd.f32 %v10204_v37, %v10133_v29  ;;  %v10136_v54 = vadd.f32 %v10130_v62, %v10056_v53 }
 0x96e   :  { %v10206_v56 = vpop.f32.mrf.mxu0 }
 0x96f   :  { %v10285_v26 = vpop.f32.mrf.mxu1  ;;  %v10214_v3 = vadd.f32 %v10206_v56, %v10134_v41 }
 0x970   :  { %v10294_v57 = vadd.f32 %v10285_v26, %v10213_v46  ;;  %v10208_v10 = vpop.f32.mrf.mxu0 }
 0x971   :  { %v10215_v6 = vadd.f32 %v10208_v10, %v10135_v39  ;;  %v10287_v42 = vpop.f32.mrf.mxu1 }
 0x972   :  { %v10210_v17 = vpop.f32.mrf.mxu0  ;;  %v16277_v8 = vadd.f32 %v10303_v21, %v10294_v57  ;;  %v10295_v51 = vadd.f32 %v10287_v42, %v10214_v3 }
 0x973   :  { %v10216_v18 = vadd.f32 %v10210_v17, %v10136_v54  ;;  %v10289_v7 = vpop.f32.mrf.mxu1 }
 0x974   :  { %v10296_v30 = vadd.f32 %v10289_v7, %v10215_v6  ;;  %v10314_v28 = vmax.f32 %v16277_v8, 0.0  ;;  %v10311_v22 = vadd.f32 %v10303_v21, %v10295_v51 }
 0x975   :  { %v10291_v19 = vpop.f32.mrf.mxu1 }
 0x976   :  { %v10312_v24 = vadd.f32 %v10308_v45, %v10296_v30  ;;  %v10297_v55 = vadd.f32 %v10291_v19, %v10216_v18  ;;  %v10315_v31 = vmax.f32 %v10311_v22, 0.0 }
 0x978   :  { %v10316_v58 = vmax.f32 %v10312_v24, 0.0  ;;  %v10313_v61 = vadd.f32 %v10308_v45, %v10297_v55 }
 0x97a   :  { %v11673_v4 = vpack.i.bf16 %v10316_v58, %v10314_v28  ;;  %v10317_v1 = vmax.f32 %v10313_v61, 0.0 }
 0x97c   :  { %11674 = vrot.lane.b32.xlu1 %v11673_v4, %s16780_s5  ;;  %11669 = vrot.lane.b32.xlu0 %v11673_v4, %s16813_s2  ;;  %v11693_v49 = vpack.i.bf16 %v10317_v1, %v10315_v31 }
 0x980   :  { %11679 = vrot.lane.b32.xlu1 %v11673_v4, %s16796_s1  ;;  %11684 = vrot.lane.b32.xlu0 %v11673_v4, %s16795_s23 }
 0x984   :  { %11694 = vrot.lane.b32.xlu0 %v11693_v49, %s16795_s23  ;;  %11689 = vrot.lane.b32.xlu1 %v11693_v49, %s16780_s5 }
 0x988   :  { %11699 = vrot.lane.b32.xlu0 %v11673_v4, %s16819_s10  ;;  %11704 = vrot.lane.b32.xlu1 %v11693_v49, %s16818_s25 }
 0x98c   :  { %11709 = vrot.lane.b32.xlu1 %v11673_v4, %s16818_s25 }
 0x9ee   :  { %v11675_v48 = vpop.permute.xlu1 %11674  ;;  %v11670_v33 = vpop.permute.xlu0 %11669 }
 0x9ef   :  { %v11677_v52 = vunpack.i.h.bf16 %v11675_v48  ;;  %v11676_v35 = vunpack.i.l.bf16 %v11675_v48  ;;  %v11672_v60 = vunpack.i.h.bf16 %v11670_v33  ;;  %v11671_v9 = vunpack.i.l.bf16 %v11670_v33 }
 0x9f2   :  { %v11680_v25 = vpop.permute.xlu1 %11679  ;;  %v11685_v59 = vpop.permute.xlu0 %11684 }
 0x9f3   :  { %v11682_v14 = vunpack.i.h.bf16 %v11680_v25  ;;  %v11681_v16 = vunpack.i.l.bf16 %v11680_v25  ;;  %v11687_v5 = vunpack.i.h.bf16 %v11685_v59  ;;  %v11686_v27 = vunpack.i.l.bf16 %v11685_v59 }
 0x9f6   :  { %v11695_v12 = vpop.permute.xlu0 %11694  ;;  %v11690_v32 = vpop.permute.xlu1 %11689 }
 0x9f7   :  { %v11697_v63 = vunpack.i.h.bf16 %v11695_v12  ;;  %v11696_v2 = vunpack.i.l.bf16 %v11695_v12  ;;  %v11692_v0 = vunpack.i.h.bf16 %v11690_v32  ;;  %v11691_v36 = vunpack.i.l.bf16 %v11690_v32 }
 0x9f9   :  { %v10369_v20 = vsel %vm9418_vm11, %v11697_v63, %v11682_v14  ;;  %v10368_v50 = vsel %vm9418_vm11, %v11696_v2, %v11681_v16  ;;  %v10331_v34 = vsel %vm3013_vm14, %v11677_v52, %v11692_v0  ;;  %v10343_v29 = vsel %vm9238_vm10, %v11692_v0, %v11672_v60  ;;  %v11986_v16 = vld [vmem:[%s16565_s14 + $0x78] sm:$0xff]   ;;  %v11988_v0 = vld [vmem:[%s16565_s14 + $0x70] sm:$0xff]  }
 0x9fa   :  { %v10330_v13 = vsel %vm3013_vm14, %v11676_v35, %v11691_v36  ;;  %v10342_v23 = vsel %vm9238_vm10, %v11691_v36, %v11671_v9  ;;  %v11700_v37 = vpop.permute.xlu0 %11699  ;;  %v11705_v53 = vpop.permute.xlu1 %11704  ;;  %v10346_v62 = vmax.f32 %v10316_v58, %v10331_v34  ;;  %v10347_v46 = vmax.f32 %v10317_v1, %v10343_v29  ;;  %11477 = vmatprep.subr.bf16.mxu1 %v11986_v16  ;;  %v11989_v60 = vld [vmem:[%s16565_s14 + $0x30] sm:$0xff]   ;;  %v11990_v9 = vld [vmem:[%s16565_s14 + $0x68] sm:$0xff]   ;;  %v11992_v34 = vld [vmem:[%s16565_s14 + $0x60] sm:$0xff]  }
 0x9fb   :  { %v10344_v15 = vmax.f32 %v10314_v28, %v10330_v13  ;;  %v10345_v56 = vmax.f32 %v10315_v31, %v10342_v23  ;;  %v11702_v39 = vunpack.i.h.bf16 %v11700_v37  ;;  %v11701_v26 = vunpack.i.l.bf16 %v11700_v37  ;;  %v11993_v13 = vld [vmem:[%s16565_s14 + $0x20] sm:$0xff]   ;;  %v11994_v23 = vld [vmem:[%s16565_s14 + $0x58] sm:$0xff]  }
 0x9fc   :  { %v11707_v43 = vunpack.i.h.bf16 %v11705_v53  ;;  %v11706_v57 = vunpack.i.l.bf16 %v11705_v53  ;;  %v10373_v54 = vmax.f32 %v10347_v46, %v10369_v20  ;;  %v10357_v6 = vsel %vm9405_vm12, %v11687_v5, %v11697_v63 }
 0x9fd   :  { %v10371_v10 = vmax.f32 %v10345_v56, %v10368_v50  ;;  %v10356_v42 = vsel %vm9405_vm12, %v11686_v27, %v11696_v2  ;;  %v10372_v30 = vmax.f32 %v10346_v62, %v10357_v6  ;;  %v11987_v2 = vld [vmem:[%s16565_s14 + $0x38] sm:$0xff]   ;;  %v11991_v50 = vld [vmem:[%s16565_s14 + $0x28] sm:$0xff]   ;;  %v11996_v56 = vld [vmem:[%s16565_s14 + $0x50] sm:$0xff]   ;;  %vm10606_vm14 = vcmask 654336  }
 0x9fe   :  { %v10395_v41 = vsel %vm9508_vm0, %v11707_v43, %v11702_v39  ;;  %v10394_v17 = vsel %vm9508_vm0, %v11706_v57, %v11701_v26  ;;  %v11710_v21 = vpop.permute.xlu1 %11709  ;;  %v10370_v8 = vmax.f32 %v10344_v15, %v10356_v42  ;;  %11478 = vmatpush3.bf16.msra.mxu1 %v11987_v2  ;;  %v11995_v15 = vld [vmem:[%s16565_s14 + $0x18] sm:$0xff]   ;;  %v11999_v42 = vld [vmem:[%s16565_s14 + $0x8] sm:$0xff]  }
 0x9ff   :  { %v10397_v18 = vmax.f32 %v10371_v10, %v10394_v17  ;;  %v10399_v7 = vmax.f32 %v10373_v54, %v10395_v41  ;;  %v11712_v44 = vunpack.i.h.bf16 %v11710_v21  ;;  %v11711_v3 = vunpack.i.l.bf16 %v11710_v21  ;;  %11479 = vmatprep.subr.bf16.mxu1 %v11988_v0  ;;  %v12000_v41 = vld [vmem:[%s16565_s14 + $0x40] sm:$0xff]  }
 0xa00   :  { %v12001_v17 = vld [vmem:[%s16565_s14] sm:$0xff]  }
 0xa01   :  { %v10382_v45 = vsel %vm9495_vm7, %v11711_v3, %v11706_v57  ;;  %v10383_v19 = vsel %vm9495_vm7, %v11712_v44, %v11707_v43  ;;  %v10401_v24 = vpack.c.bf16 %v10399_v7, %v10397_v18  ;;  %v11997_v43 = vld [vmem:[%s16565_s14 + $0x10] sm:$0xff]   ;;  %v11998_v57 = vld [vmem:[%s16565_s14 + $0x48] sm:$0xff]   ;;  %v12094_v7 = vmov 0.0  }
 0xa02   :  { %v10396_v55 = vmax.f32 %v10370_v8, %v10382_v45  ;;  %v10398_v47 = vmax.f32 %v10372_v30, %v10383_v19  ;;  %11480 = vmatpush3.bf16.msra.mxu1 %v11989_v60  ;;  %11519 = vmatprep.subr.bf16.mxu0 %v12094_v7 }
 0xa03   :  { %11448 = vmatprep.mubr.msk.bf16.mxu0 %vm10498_vm2, %v10401_v24  ;;  %11481 = vmatprep.subr.bf16.mxu1 %v11990_v9 }
 0xa04   :  { %v10400_v28 = vpack.c.bf16 %v10398_v47, %v10396_v55 }
 0xa06   :  { %10535 = vmatmul.mubr.bf16.vlgmr.msra.gmra.mxu0 %v10400_v28  ;;  %11482 = vmatpush3.bf16.msra.mxu1 %v11991_v50 }
 0xa07   :  { %11483 = vmatprep.subr.bf16.mxu1 %v11992_v34 }
 0xa0a   :  { %11484 = vmatpush3.bf16.msra.mxu1 %v11993_v13 }
 0xa0b   :  { %11485 = vmatprep.subr.bf16.mxu1 %v11994_v23 }
 0xa0e   :  { %11486 = vmatpush3.bf16.msra.mxu1 %v11995_v15 }
 0xa0f   :  { %11487 = vmatprep.subr.bf16.mxu1 %v11996_v56 }
 0xa12   :  { %11488 = vmatpush3.bf16.msra.mxu1 %v11997_v43 }
 0xa13   :  { %11489 = vmatprep.subr.bf16.mxu1 %v11998_v57 }
 0xa16   :  { %11490 = vmatpush3.bf16.msra.mxu1 %v11999_v42 }
 0xa17   :  { %11491 = vmatprep.subr.bf16.mxu1 %v12000_v41 }
 0xa1a   :  { %11492 = vmatpush3.bf16.msra.mxu1 %v12001_v17 }
 0xa1b   :  { %11507 = vmatprep.subr.bf16.mxu1 %v12094_v7 }
 0xac6   :  { %v16318_v51 = vpop.f32.mrf.mxu0 }
 0xac7   :  { %v10552_v58 = vrot.slane %v16318_v51, 3  ;;  %v10556_v61 = vrot.slane %v16318_v51, 4  ;;  %v16323_v4 = vrot.slane %v16318_v51, 1  ;;  %v16326_v11 = vrot.slane %v16318_v51, 2 }
 0xac8   :  { %v10538_v22 = vpop.f32.mrf.mxu0  ;;  %v16331_v31 = vrot.slane %v16318_v51, 5  ;;  %v16334_v49 = vrot.slane %v16318_v51, 6  ;;  %v10568_v63 = vrot.slane %v16318_v51, 7 }
 0xac9   :  { %v11723_v1 = vpack.i.bf16 %v10552_v58, %v10556_v61  ;;  %v11713_v38 = vpack.i.bf16 %v16323_v4, %v16326_v11  ;;  %v11718_v25 = vpack.i.bf16 %v16326_v11, %v10552_v58 }
 0xaca   :  { %v16336_v40 = vpop.f32.mrf.mxu0  ;;  %v11733_v33 = vpack.i.bf16 %v16331_v31, %v16334_v49  ;;  %v11728_v12 = vpack.i.bf16 %v10556_v61, %v16331_v31  ;;  %v11738_v36 = vpack.i.bf16 %v16334_v49, %v10568_v63 }
 0xacb   :  { %11724 = vrot.lane.b32.xlu1 %v11723_v1, %s16737_s22  ;;  %11714 = vrot.lane.b32.xlu0 %v11713_v38, %s16797_s0  ;;  %v16344_v59 = vrot.slane %v16336_v40, 1  ;;  %v16347_v14 = vrot.slane %v16336_v40, 2  ;;  %v10581_v35 = vrot.slane %v16336_v40, 3  ;;  %v11743_v5 = vpack.i.bf16 %v16318_v51, %v16336_v40 }
 0xacc   :  { %v10541_v48 = vpop.f32.mrf.mxu0  ;;  %v10585_v20 = vrot.slane %v16336_v40, 4  ;;  %v10589_v62 = vrot.slane %v16336_v40, 5  ;;  %v10593_v46 = vrot.slane %v16336_v40, 6  ;;  %v10597_v6 = vrot.slane %v16336_v40, 7 }
 0xacd   :  { %v11753_v32 = vpack.i.bf16 %v16344_v59, %v16347_v14  ;;  %v11758_v52 = vpack.i.bf16 %v16323_v4, %v16344_v59  ;;  %v11763_v27 = vpack.i.bf16 %v16347_v14, %v10581_v35  ;;  %v11773_v37 = vpack.i.bf16 %v10552_v58, %v10581_v35 }
 0xace   :  { %v11768_v29 = vpack.i.bf16 %v10581_v35, %v10585_v20  ;;  %v11783_v53 = vpack.i.bf16 %v10556_v61, %v10585_v20  ;;  %v11778_v39 = vpack.i.bf16 %v10585_v20, %v10589_v62  ;;  %v11788_v26 = vpack.i.bf16 %v10589_v62, %v10593_v46 }
 0xacf   :  { %11734 = vrot.lane.b32.xlu1 %v11733_v33, %s16702_s30  ;;  %11719 = vrot.lane.b32.xlu0 %v11718_v25, %s16739_s9  ;;  %v11793_v10 = vpack.i.bf16 %v16331_v31, %v10589_v62  ;;  %v11803_v54 = vpack.i.bf16 %v16334_v49, %v10593_v46  ;;  %v11798_v21 = vpack.i.bf16 %v10593_v46, %v10597_v6 }
 0xad0   :  { %v11808_v18 = vpack.i.bf16 %v10568_v63, %v10597_v6 }
 0xad3   :  { %11729 = vrot.lane.b32.xlu0 %v11728_v12, %s16794_s4  ;;  %11754 = vrot.lane.b32.xlu1 %v11753_v32, %s16797_s0 }
 0xad7   :  { %11739 = vrot.lane.b32.xlu0 %v11738_v36, %s16792_s24  ;;  %11759 = vrot.lane.b32.xlu1 %v11758_v52, %s16809_s28 }
 0xadb   :  { %11744 = vrot.lane.b32.xlu0 %v11743_v5, %s16809_s28  ;;  %11764 = vrot.lane.b32.xlu1 %v11763_v27, %s16739_s9 }
 0xadf   :  { %11749 = vrot.lane.b32.xlu0 %v11743_v5, %s16792_s24  ;;  %11769 = vrot.lane.b32.xlu1 %v11768_v29, %s16737_s22 }
 0xae3   :  { %11774 = vrot.lane.b32.xlu0 %v11773_v37, %s16797_s0  ;;  %11784 = vrot.lane.b32.xlu1 %v11783_v53, %s16739_s9 }
 0xae7   :  { %11779 = vrot.lane.b32.xlu0 %v11778_v39, %s16794_s4  ;;  %11789 = vrot.lane.b32.xlu1 %v11788_v26, %s16702_s30 }
 0xaeb   :  { %11794 = vrot.lane.b32.xlu0 %v11793_v10, %s16737_s22  ;;  %11804 = vrot.lane.b32.xlu1 %v11803_v54, %s16794_s4 }
 0xaef   :  { %11799 = vrot.lane.b32.xlu0 %v11798_v21, %s16792_s24  ;;  %11809 = vrot.lane.b32.xlu1 %v11808_v18, %s16702_s30 }
 0xaf3   :  { %11814 = vrot.lane.b32.xlu0 %v11808_v18, %s16809_s28 }
 0xb3d   :  { %v11725_v44 = vpop.permute.xlu1 %11724  ;;  %v11715_v3 = vpop.permute.xlu0 %11714 }
 0xb3e   :  { %v11717_v22 = vunpack.i.h.bf16 %v11715_v3  ;;  %v11716_v48 = vunpack.i.l.bf16 %v11715_v3  ;;  %v11727_v33 = vunpack.i.h.bf16 %v11725_v44  ;;  %v11726_v25 = vunpack.i.l.bf16 %v11725_v44 }
 0xb40   :  { %v10601_v32 = vsel %vm1684_vm9, %v16318_v51, %v11717_v22 }
 0xb41   :  { %v16435_v8 = vpop.permute.xlu1 %11734  ;;  %v11720_v30 = vpop.permute.xlu0 %11719 }
 0xb42   :  { %v11722_v31 = vunpack.i.h.bf16 %v11720_v30  ;;  %v11721_v35 = vunpack.i.l.bf16 %v11720_v30  ;;  %v11737_v5 = vunpack.i.h.bf16 %v16435_v8 }
 0xb45   :  { %v16437_v45 = vpop.permute.xlu0 %11729  ;;  %v11755_v19 = vpop.permute.xlu1 %11754 }
 0xb46   :  { %v11756_v63 = vunpack.i.l.bf16 %v11755_v19  ;;  %v11732_v60 = vunpack.i.h.bf16 %v16437_v45  ;;  %v11757_v23 = vunpack.i.h.bf16 %v11755_v19  ;;  %v11731_v15 = vunpack.i.l.bf16 %v16437_v45 }
 0xb48   :  { %v10610_v21 = vsel %vm1684_vm9, %v16336_v40, %v11757_v23 }
 0xb49   :  { %v16439_v24 = vpop.permute.xlu0 %11739  ;;  %v11760_v55 = vpop.permute.xlu1 %11759 }
 0xb4a   :  { %v11762_v9 = vunpack.i.h.bf16 %v11760_v55  ;;  %v11761_v27 = vunpack.i.l.bf16 %v11760_v55  ;;  %v11741_v18 = vunpack.i.l.bf16 %v16439_v24 }
 0xb4d   :  { %v11745_v47 = vpop.permute.xlu0 %11744  ;;  %v11765_v28 = vpop.permute.xlu1 %11764 }
 0xb4e   :  { %v11747_v58 = vunpack.i.h.bf16 %v11745_v47  ;;  %v11746_v61 = vunpack.i.l.bf16 %v11745_v47  ;;  %v11766_v50 = vunpack.i.l.bf16 %v11765_v28  ;;  %v11767_v39 = vunpack.i.h.bf16 %v11765_v28 }
 0xb50   :  { %v10661_v49 = vsel %vm1684_vm9, %v11747_v58, %v16323_v4  ;;  %v10668_v16 = vsel %vm1684_vm9, %v11746_v61, %v16344_v59  ;;  %v10602_v4 = vsel %vm554_vm4, %v10601_v32, %v11722_v31  ;;  %v11736_v59 = vunpack.i.l.bf16 %v16435_v8 }
 0xb51   :  { %v11750_v1 = vpop.permute.xlu0 %11749  ;;  %v16441_v38 = vpop.permute.xlu1 %11769  ;;  %v10662_v2 = vsel %vm554_vm4, %v10661_v49, %v11716_v48  ;;  %v10669_v51 = vsel %vm554_vm4, %v10668_v16, %v11756_v63  ;;  %v10604_v13 = vsel %vm10603_vm13, %v10602_v4, %v11727_v33  ;;  %v10611_v19 = vsel %vm554_vm4, %v10610_v21, %v11767_v39 }
 0xb52   :  { %v11752_v12 = vunpack.i.h.bf16 %v11750_v1  ;;  %v11751_v0 = vunpack.i.l.bf16 %v11750_v1  ;;  %v10663_v20 = vsel %vm10603_vm13, %v10662_v2, %v11721_v35  ;;  %v10605_v56 = vsel %vm10498_vm2, %v10604_v13, %v11732_v60 }
 0xb53   :  { %v10670_v26 = vsel %vm10603_vm13, %v10669_v51, %v11766_v50  ;;  %v10664_v43 = vsel %vm10498_vm2, %v10663_v20, %v11726_v25  ;;  %v11771_v57 = vunpack.i.l.bf16 %v16441_v38  ;;  %v11772_v44 = vunpack.i.h.bf16 %v16441_v38 }
 0xb54   :  { %v10719_v34 = vsel %vm1684_vm9, %v11752_v12, %v11762_v9  ;;  %v10726_v37 = vsel %vm1684_vm9, %v11751_v0, %v11761_v27  ;;  %v11742_v0 = vunpack.i.h.bf16 %v16439_v24  ;;  %vm10745_vm9 = vcmask 1040384  }
 0xb55   :  { %v11775_v36 = vpop.permute.xlu0 %11774  ;;  %v11785_v52 = vpop.permute.xlu1 %11784  ;;  %v10720_v10 = vsel %vm554_vm4, %v10719_v34, %v16326_v11  ;;  %v10727_v42 = vsel %vm554_vm4, %v10726_v37, %v16347_v14  ;;  %v10665_v11 = vsel %vm10606_vm14, %v10664_v43, %v11731_v15  ;;  %v10671_v14 = vsel %vm10498_vm2, %v10670_v26, %v11771_v57 }
 0xb56   :  { %v11777_v29 = vunpack.i.h.bf16 %v11775_v36  ;;  %v11776_v53 = vunpack.i.l.bf16 %v11775_v36  ;;  %v11787_v54 = vunpack.i.h.bf16 %v11785_v52  ;;  %v11786_v41 = vunpack.i.l.bf16 %v11785_v52 }
 0xb57   :  { %v10612_v31 = vsel %vm10603_vm13, %v10611_v19, %v11772_v44  ;;  %v10666_v16 = vsel %vm5048_vm15, %v10665_v11, %v11736_v59  ;;  %v10607_v24 = vsel %vm10606_vm14, %v10605_v56, %v11737_v5  ;;  %v12006_v19 = vld [vmem:[%s16569_s18 + $0x8] sm:$0xff]  }
 0xb58   :  { %v10721_v6 = vsel %vm10603_vm13, %v10720_v10, %v11777_v29  ;;  %v10728_v3 = vsel %vm10603_vm13, %v10727_v42, %v11776_v53  ;;  %v10667_v27 = vsel %vm3918_vm5, %v10666_v16, %v11741_v18  ;;  %v10608_v13 = vsel %vm5048_vm15, %v10607_v24, %v11742_v0  ;;  %v12002_v10 = vld [vmem:[%s16567_s16 + $0x18] sm:$0xff]   ;;  %v12005_v42 = vld [vmem:[%s16567_s16] sm:$0xff]   ;;  %11520 = vmatpush3.bf16.msra.mxu0 %v12006_v19 }
 0xb59   :  { %v11780_v62 = vpop.permute.xlu0 %11779  ;;  %v11790_v46 = vpop.permute.xlu1 %11789  ;;  %v10722_v28 = vsel %vm10498_vm2, %v10721_v6, %v11787_v54  ;;  %v10729_v61 = vsel %vm10498_vm2, %v10728_v3, %v11786_v41  ;;  %v10735_v53 = vrot.slane %v10667_v27, 7  ;;  %v12003_v54 = vld [vmem:[%s16567_s16 + $0x10] sm:$0xff]   ;;  %v12004_v6 = vld [vmem:[%s16567_s16 + $0x8] sm:$0xff]   ;;  %11521 = vmatprep.subr.bf16.mxu0 %v12094_v7 }
 0xb5a   :  { %v11781_v17 = vunpack.i.l.bf16 %v11780_v62  ;;  %v11782_v58 = vunpack.i.h.bf16 %v11780_v62  ;;  %v11791_v40 = vunpack.i.l.bf16 %v11790_v46  ;;  %v11792_v12 = vunpack.i.h.bf16 %v11790_v46 }
 0xb5c   :  { %v10672_v22 = vsel %vm10606_vm14, %v10671_v14, %v11781_v17  ;;  %v10613_v36 = vsel %vm10498_vm2, %v10612_v31, %v11782_v58  ;;  %v11449_v17 = vld [vmem:[%s16566_s15] ss:$0 sm:$0xff] }
 0xb5d   :  { %v11795_v30 = vpop.permute.xlu0 %11794  ;;  %v11805_v45 = vpop.permute.xlu1 %11804  ;;  %v10673_v52 = vsel %vm5048_vm15, %v10672_v22, %v11791_v40  ;;  %v10614_v50 = vsel %vm10606_vm14, %v10613_v36, %v11792_v12 }
 0xb5e   :  { %v11797_v55 = vunpack.i.h.bf16 %v11795_v30  ;;  %v11796_v47 = vunpack.i.l.bf16 %v11795_v30  ;;  %v11807_v1 = vunpack.i.h.bf16 %v11805_v45  ;;  %v11806_v38 = vunpack.i.l.bf16 %v11805_v45 }
 0xb60   :  { %v10723_v49 = vsel %vm10606_vm14, %v10722_v28, %v11797_v55  ;;  %v10730_v48 = vsel %vm10606_vm14, %v10729_v61, %v11796_v47  ;;  %v12007_v55 = vld [vmem:[%s16569_s18] sm:$0xff]  }
 0xb61   :  { %v11800_v33 = vpop.permute.xlu0 %11799  ;;  %v11810_v25 = vpop.permute.xlu1 %11809  ;;  %v10724_v4 = vsel %vm5048_vm15, %v10723_v49, %v11807_v1  ;;  %v10731_v60 = vsel %vm5048_vm15, %v10730_v48, %v11806_v38  ;;  %11522 = vmatpush3.bf16.msra.mxu0 %v12007_v55  ;;  %v11466_v47 = vld [vmem:[%s16568_s17] ss:$0 sm:$0xff]  ;;  %s12096_s17 = smov [#allocation2]  }
 0xb62   :  { %v11801_v32 = vunpack.i.l.bf16 %v11800_v33  ;;  %v11812_v63 = vunpack.i.h.bf16 %v11810_v25  ;;  %v11811_v2 = vunpack.i.l.bf16 %v11810_v25  ;;  %v11802_v35 = vunpack.i.h.bf16 %v11800_v33  ;;  %v11472_v38 = vld [vmem:[%s16570_s19] ss:$0 sm:$0xff]  ;;  %s11115_s19 = sshll.u32 %s12096_s17, 4  ;;  %s11116_s19 = int_to_ptr.vmem [resolvable:$true] %s11115_s19 }
 0xb63   :  { %v11080_v49 = vld [vmem:[%s16571_s20] sm:$0x7]  ;;  %s12026_s20 = scalar_lea.vmem %s11116_s19, 64  ;;  %p12031_p1 = scmp.lt.s32.totalorder %s11116_s19, %s11116_s19 }
 0xb64   :  { %v10674_v9 = vsel %vm3918_vm5, %v10673_v52, %v11801_v32  ;;  %v10725_v59 = vsel %vm3918_vm5, %v10724_v4, %v11812_v63  ;;  %v10732_v51 = vsel %vm3918_vm5, %v10731_v60, %v11811_v2  ;;  %v10615_v23 = vsel %vm5048_vm15, %v10614_v50, %v11802_v35  ;;  %p12027_p0 = scmp.ne.s32.totalorder %s11116_s19, %s12026_s20  ;;  %p12032_p2 = scmp.lt.s32.totalorder %s12026_s20, %s12026_s20 }
 0xb65   :  { %v11815_v20 = vpop.permute.xlu0 %11814  ;;  %v10736_v37 = vrot.slane %v10674_v9, 7  ;;  %v10741_v62 = vrot.slane %v10725_v59, 6  ;;  %v10742_v46 = vrot.slane %v10732_v51, 6  ;;  %vm11082_vm15 = vcmask 124928  }
 0xb66   :  { %v11817_v34 = vunpack.i.h.bf16 %v11815_v20  ;;  %v11816_v29 = vunpack.i.l.bf16 %v11815_v20  ;;  %v16827_v63 = vlaneseq  ;;  %p12033_p3 = por %p12032_p2, %p12031_p1 }
 0xb68   :  { %v10609_v15 = vsel %vm3918_vm5, %v10608_v13, %v11817_v34  ;;  %v10616_v39 = vsel %vm3918_vm5, %v10615_v23, %v11816_v29  ;;  %vm12095_vm5 = vmmov 0   ;;  %v11087_v2 = vand.u32 127, %v16827_v63  ;;  %p12034_p4 = pnand %p12033_p3, %p12027_p0 }
 0xb69   :  { %v10746_v8 = vsel %vm10745_vm9, %v10609_v15, %v10735_v53  ;;  %v10747_v5 = vsel %vm10745_vm9, %v10616_v39, %v10736_v37  ;;  %11523 = vmatprep.mubr.msk.bf16.mxu0 %vm12095_vm5, %v12094_v7 }
 0xb6a   :  { %v10749_v56 = vsel %vm10748_vm1, %v10746_v8, %v10741_v62  ;;  %v10750_v26 = vsel %vm10748_vm1, %v10747_v5, %v10742_v46 }
 0xb6b   :  { %v10751_v43 = vpack.c.bf16 %v10749_v56, %v10749_v56  ;;  %v10752_v57 = vpack.c.bf16 %v10750_v26, %v10750_v26 }
 0xb6d   :  { %10920 = vmatprep.mubr.bf16.mxu1 %v10752_v57 }
 0xb6e   :  { %10921 = vmatmul.mubr.bf16.vlgmr.msra.gmra.mxu1 %v10751_v43 }
 0xb6f   :  { %11508 = vmatpush3.bf16.msra.mxu1 %v12002_v10  ;;  %11515 = vmatprep.mubr.msk.bf16.mxu1 %vm12095_vm5, %v12094_v7 }
 0xb70   :  { %11509 = vmatprep.subr.bf16.mxu1 %v12094_v7 }
 0xb73   :  { %11510 = vmatpush3.bf16.msra.mxu1 %v12003_v54 }
 0xb74   :  { %11511 = vmatprep.subr.bf16.mxu1 %v12094_v7 }
 0xb77   :  { %11512 = vmatpush3.bf16.msra.mxu1 %v12004_v6 }
 0xb78   :  { %11513 = vmatprep.subr.bf16.mxu1 %v12094_v7 }
 0xb7b   :  { %11514 = vmatpush3.bf16.msra.mxu1 %v12005_v42 }
 0xc2e   :  { %v11493_v41 = vpop.f32.mrf.mxu1 }
 0xc30   :  { %v11494_v21 = vpop.f32.mrf.mxu1 }
 0xc31   :  { %v11495_v18 = vadd.f32 %v11494_v21, %v11493_v41 }
 0xc32   :  { %v11496_v44 = vpop.f32.mrf.mxu1 }
 0xc33   :  { %v10923_v3 = vadd.f32 %v11495_v18, %v11449_v17 }
 0xc34   :  { %v11497_v30 = vpop.f32.mrf.mxu1 }
 0xc35   :  { %v10928_v45 = vmax.f32 %v10923_v3, 0.0 }
 0xc37   :  { %v10929_v11 = vpack.c.bf16 %v10928_v45, %v10928_v45 }
 0xc39   :  { %11516 = vmatmul.mubr.msk.bf16.vlgmr.msra.gmra.mxu1 %vm10498_vm2, %v10929_v11 }
 0xcf9   :  { %v11006_v14 = vpop.f32.mrf.mxu1 }
 0xcfa   :  { %v11007_v28 = vadd.f32 %v11466_v47, %v11006_v14 }
 0xcfb   :  { %v11517_v58 = vpop.f32.mrf.mxu1 }
 0xcfc   :  { %v11012_v40 = vmax.f32 %v11007_v28, 0.0 }
 0xcfd   :  { %v11009_v61 = vpop.f32.mrf.mxu1 }
 0xcfe   :  { %v11013_v22 = vpack.c.bf16 %v11012_v40, %v11012_v40 }
 0xcff   :  { %v11518_v1 = vpop.f32.mrf.mxu1 }
 0xd00   :  { %11524 = vmatmul.mubr.msk.bf16.vlgmr.msra.gmra.mxu0 %vm554_vm4, %v11013_v22 }
 0xdc0   :  { %v11074_v31 = vpop.f32.mrf.mxu0 }
 0xdc1   :  { %v11075_v48 = vadd.f32 %v11472_v38, %v11074_v31 }
 0xdc2   :  { %v11525_v33 = vpop.f32.mrf.mxu0 }
 0xdc3   :  { %v11081_v25 = vadd.f32 %v11080_v49, %v11075_v48 }
 0xdc4   :  { %v11077_v16 = vpop.f32.mrf.mxu0 }
 0xdc5   :  { %v11083_v12 = vsel %vm11082_vm15, %v11081_v25, -inf }
 0xdc6   :  { %11084 = vmax.xlane.f32.xlu1 %v11083_v12  ;;  %v11526_v32 = vpop.f32.mrf.mxu0 }
 0xe4f   :  { %v11085_v0 = vpop.xlane.xlu1 %11084 }
 0xe50   :  { %vm11088_vm4 = vcmp.eq.f32.partialorder %v11081_v25, %v11085_v0 }
 0xe51   :  { %v11089_v36 = vsel %vm11088_vm4, %v11087_v2, 16 }
 0xe52   :  { %v11090_v52 = vsel %vm11082_vm15, %v11089_v36, 2147483647 }
 0xe53   :  { %v11092_v35 = vshra.s32 %v11090_v52, 16  ;;  %v11091_v60 = vand.u32 65535, %v11090_v52 }
 0xe55   :  { %v11094_v4 = vcvt.s32.f32 %v11092_v35  ;;  %v11093_v27 = vcvt.s32.f32 %v11091_v60 }
 0xe57   :  { %11095 = vmin.xlane.f32.xlu0 %v11094_v4 }
 0xee0   :  { %v11096_v9 = vpop.xlane.xlu0 %11095 }
 0xee1   :  { %vm11097_vm8 = vcmp.eq.f32.partialorder %v11094_v4, %v11096_v9  ;;  %v11102_v51 = vcvt.f32.s32 %v11096_v9 }
 0xee2   :  { %v11098_v59 = vsel %vm11097_vm8, %v11093_v27, inf }
 0xee3   :  { %11099 = vmin.xlane.f32.xlu0 %v11098_v59  ;;  %v11103_v24 = vshll.u32 %v11102_v51, 16 }
 0xf6c   :  { %v11100_v20 = vpop.xlane.xlu0 %11099 }
 0xf6d   :  { %v11101_v50 = vcvt.f32.s32 %v11100_v20 }
 0xf6f   :  { %v11104_v34 = vadd.s32 %v11103_v24, %v11101_v50 }
 0xf71   :  { %vm11105_vm10 = vcmp.eq.s32.totalorder %v11087_v2, %v11104_v34 }
 0xf72   :  { %v11476_v29 = vsel %vm11105_vm10, 1.0, %v12094_v7 }
 0xf73   :  { %11108 = vst.msk [vmem:[#allocation2] sm:$0x7] %vm11082_vm15, %v11476_v29 }
 0xf74   :  { %12037 = shalt.err (!%p12034_p4)
}
 0xf75   :  { %s16828_s9 = sld [smem:[#allocation37_spill]] }
 0xf7b   :  { %11118 = dma.vmem_to_hbm [thread:$0]  %s11116_s19, 64, %s16828_s9, [#allocation3]  }
 0xf7c   :  { %12046 = dma.done.wait [#allocation3], 64  }
 0xf7d   :  { %12047 = vsyncadd [#allocation3], 4294967232 }
 0xf7e   :  { %11122 = vsyncpa [#allocation3], 1 }

</bundles_post_ra>
